<compile_context>
chip_gen: v7x
topology: tpu7x:2x2x1
jax: 0.10.0
libtpu: 0.0.40
codegen_flags: <defaults>
</compile_context>

<pallas_src>
import functools

import jax
import jax.numpy as jnp
import numpy as np
from jax.experimental import pallas as pl
from jax.experimental.pallas import tpu as pltpu


_LAYERS = ("inc", "conv1", "conv2", "conv3", "conv4", "conv5", "outc")


def _round_up(x, m):
    return (x + m - 1) // m * m


def _build_tap_tables(D, H, W, cp):
    """Static flat-spatial offsets + pre-broadcast validity masks (3x3x3 SAME)."""
    S = D * H * W
    s = np.arange(S)
    d = s // (H * W)
    h = (s // W) % H
    w = s % W
    offsets, masks = [], []
    for kd in range(3):
        for kh in range(3):
            for kw in range(3):
                dd, dh, dw = kd - 1, kh - 1, kw - 1
                offsets.append(dd * H * W + dh * W + dw)
                valid = ((d + dd >= 0) & (d + dd < D) &
                         (h + dh >= 0) & (h + dh < H) &
                         (w + dw >= 0) & (w + dw < W))
                masks.append(valid.astype(np.float32))
    masks = np.stack(masks, axis=0)                       # (27, S)
    # Pre-broadcast to (27, cp, S): plain vmul in the kernel, no per-tap
    # sublane broadcast (JAX does not CSE broadcast_in_dim).
    masks = np.broadcast_to(masks[:, None, :], (27, cp, S)).copy()
    return tuple(int(o) for o in offsets), jnp.asarray(masks, jnp.float32)


def _pack_params(params, cp):
    """im2col-pack PyTorch-layout weights (bf16), zero-padded to `cp` channels.

    Returns W_all (L, 3, cp, 9*cp) bf16 and B_all (L, cp, 1) f32.  Column order
    within each 9-tap group is (tap, cin) - it matches the patch matrix built
    inside the kernel (tap-major, channel-minor).
    """
    w_list, b_list = [], []
    for name in _LAYERS:
        w = jnp.asarray(params[name]["w"], jnp.float32)   # (Cout, Cin, 3,3,3)
        b = jnp.asarray(params[name]["b"], jnp.float32)   # (Cout,)
        cout, cin = w.shape[0], w.shape[1]
        wt = jnp.transpose(w, (0, 2, 3, 4, 1))            # (Cout, 3,3,3, Cin)
        wt = jnp.pad(wt, ((0, cp - cout), (0, 0), (0, 0), (0, 0),
                          (0, cp - cin)))
        wt = wt.reshape(cp, 27 * cp)                      # tap-major, cin-minor
        wt = wt.reshape(cp, 3, 9 * cp)                    # split into 3 groups
        wt = jnp.transpose(wt, (1, 0, 2))                 # (3, cp, 9*cp)
        w_list.append(wt.astype(jnp.bfloat16))
        b_list.append(jnp.pad(b, (0, cp - cout)).reshape(cp, 1))
    return jnp.stack(w_list, 0), jnp.stack(b_list, 0)


def _deepcnn_kernel(x_ref, w_ref, b_ref, m_ref, o_ref, p0, p1, p2, *,
                    n_layers, cp, cout_p, tap_offsets, spatial):
    """Fused 7-layer forward for one batch element.

    x_ref : (1, cp, S) f32        zero-channel-padded input
    w_ref : (L, 3, cp, 9*cp) bf16 im2col-packed weights, grouped by 9 taps
    b_ref : (L, cp, 1) f32        biases
    m_ref : (27, cp, S) f32       pre-broadcast 0/1 border masks per tap
    o_ref : (1, cout_p, S) f32    final output (8 channels, lane-dense spatial)
    p0/p1/p2 : (9*cp, S) bf16     per-group im2col patch scratch (independent
                                  refs so group-g dot overlaps group-(g+1) build)
    """
    p_refs = (p0, p1, p2)
    act = x_ref[0]                                        # (cp, S) f32

    for layer in range(n_layers):
        acc = None
        for g in range(3):
            pg = p_refs[g]
            # Build this group's 9 taps (f32 roll + mask mul, cast at store).
            for tl in range(9):
                t = g * 9 + tl
                off = tap_offsets[t]
                if off == 0:                              # centre tap: no shift
                    slab = act
                else:
                    shifted = pltpu.roll(act, shift=(-off) % spatial, axis=1)
                    slab = shifted * m_ref[t]             # zero SAME-padding
                pg[tl * cp:(tl + 1) * cp, :] = slab.astype(jnp.bfloat16)
            # Accumulating bf16 MXU dot for this 9-tap group (f32 accumulate).
            part = jnp.dot(w_ref[layer, g], pg[...],
                           preferred_element_type=jnp.float32)
            acc = part if acc is None else acc + part

        out = acc + b_ref[layer]                          # (cp, S) + (cp, 1)

        if layer < n_layers - 1:
            act = jnp.maximum(out, 0.0)                   # ReLU
        else:
            # outc: no ReLU; residual = first cout_p input channels (extra
            # padded rows are sliced off in the wrapper).
            o_ref[0] = out[:cout_p, :] + x_ref[0, :cout_p, :]


def deepcnn_forward(params, x_ncdhw):
    """Forward pass matching DeepCNN.forward.  Input/output are NCDHW."""
    N, cin, D, H, W = x_ncdhw.shape
    S = D * H * W
    cout = params["outc"]["w"].shape[0]
    cout_p = _round_up(cout, 8)                           # sublane-aligned out
    widths = [cin, cout] + [params[n]["w"].shape[0] for n in _LAYERS]
    cp = _round_up(max(widths), 8)                        # padded channel width
    n_layers = len(_LAYERS)

    tap_offsets, masks = _build_tap_tables(D, H, W, cp)
    w_all, b_all = _pack_params(params, cp)

    # NCDHW -> (N, C, D*H*W): contiguous reshape (free), then tiny channel pad.
    x = jnp.asarray(x_ncdhw, jnp.float32).reshape(N, cin, S)
    x = jnp.pad(x, ((0, 0), (0, cp - cin), (0, 0)))       # (N, cp, S)

    kernel = functools.partial(
        _deepcnn_kernel, n_layers=n_layers, cp=cp, cout_p=cout_p,
        tap_offsets=tap_offsets, spatial=S)

    out = pl.pallas_call(
        kernel,
        out_shape=jax.ShapeDtypeStruct((N, cout_p, S), jnp.float32),
        grid=(N,),
        in_specs=[
            pl.BlockSpec((1, cp, S), lambda n: (n, 0, 0)),
            pl.BlockSpec((n_layers, 3, cp, 9 * cp), lambda n: (0, 0, 0, 0)),
            pl.BlockSpec((n_layers, cp, 1), lambda n: (0, 0, 0)),
            pl.BlockSpec((27, cp, S), lambda n: (0, 0, 0)),
        ],
        out_specs=pl.BlockSpec((1, cout_p, S), lambda n: (n, 0, 0)),
        scratch_shapes=[
            pltpu.VMEM((9 * cp, S), jnp.bfloat16),
            pltpu.VMEM((9 * cp, S), jnp.bfloat16),
            pltpu.VMEM((9 * cp, S), jnp.bfloat16),
        ],
        compiler_params=pltpu.CompilerParams(
            dimension_semantics=("parallel",)),
    )(x, w_all, b_all, masks)

    # Slice off the padded output channel, then free reshape back to NCDHW.
    return out[:, :cout].reshape(N, cout, D, H, W)


def deepcnn_reference(params, x, operand_dtype=jnp.float32):
    """Pure-JAX/XLA reference (NCDHW, PyTorch conv semantics).

    With operand_dtype=bfloat16 it reproduces the kernel's numerics exactly
    (bf16 conv operands, f32 accumulation, f32 bias/ReLU/residual).
    """
    xf = jnp.asarray(x, jnp.float32)

    def conv(h, w, b):
        y = jax.lax.conv_general_dilated(
            h.astype(operand_dtype),
            jnp.asarray(w, jnp.float32).astype(operand_dtype),
            window_strides=(1, 1, 1),
            padding=((1, 1), (1, 1), (1, 1)),
            dimension_numbers=("NCDHW", "OIDHW", "NCDHW"),
            preferred_element_type=jnp.float32,
            precision=jax.lax.Precision.HIGHEST)
        return y + jnp.asarray(b, jnp.float32).reshape(1, -1, 1, 1, 1)

    cout = params["outc"]["w"].shape[0]
    h = jax.nn.relu(conv(xf, params["inc"]["w"], params["inc"]["b"]))
    for name in ("conv1", "conv2", "conv3", "conv4", "conv5"):
        h = jax.nn.relu(conv(h, params[name]["w"], params[name]["b"]))
    return conv(h, params["outc"]["w"], params["outc"]["b"]) + xf[:, :cout]


def init_deepcnn_params(key, mid_channels, in_channels=9, out_channels=7):
    """Deterministic synthetic parameters, PyTorch Conv3d layout."""
    specs = [("inc", in_channels, mid_channels)]
    for i in range(1, 6):
        specs.append((f"conv{i}", mid_channels, mid_channels))
    specs.append(("outc", mid_channels, out_channels))
    params = {}
    for name, cin, cout in specs:
        key, kw_, kb_ = jax.random.split(key, 3)
        params[name] = {
            "w": 0.05 * jax.random.normal(kw_, (cout, cin, 3, 3, 3), jnp.float32),
            "b": 0.05 * jax.random.normal(kb_, (cout,), jnp.float32),
        }
    return params


if __name__ == "__main__":
    key = jax.random.PRNGKey(0)
    k_param, k_x = jax.random.split(key)

    mid_channels, in_channels, out_channels = 8, 9, 7
    N, D, H, W = 2, 4, 8, 8          # D*H*W = 256 -> lane-dense spatial axis

    params = init_deepcnn_params(k_param, mid_channels, in_channels, out_channels)
    x = jax.random.normal(k_x, (N, in_channels, D, H, W), jnp.float32)

    y = jax.block_until_ready(jax.jit(deepcnn_forward)(params, x))
    assert y.shape == (N, out_channels, D, H, W), y.shape
    assert bool(jnp.all(jnp.isfinite(y)))

    # Tight structural check: reference with the kernel's exact numerics
    # (bf16 conv operands, f32 accumulation).  Any tap/mask/packing bug shows
    # up here at O(0.1-1).
    y_ref_q = jax.block_until_ready(deepcnn_reference(params, x, jnp.bfloat16))
    err_q = float(jnp.max(jnp.abs(y - y_ref_q)))
    assert err_q < 2e-3, f"max abs err vs bf16-operand reference {err_q}"

    # Loose numerics check vs the full-f32 reference: bounds the bf16 operand
    # quantization drift accumulated over 7 chained conv layers.
    y_ref_f = jax.block_until_ready(deepcnn_reference(params, x, jnp.float32))
    err_f = float(jnp.max(jnp.abs(y - y_ref_f)))
    assert err_f < 5e-2, f"max abs err vs f32 reference {err_f}"

    print("KERNEL_OK")
</pallas_src>

<mosaic_0001>
module attributes {stable_mosaic.version = 11 : i64} {
  func.func @_deepcnn_kernel(%arg0: i32, %arg1: memref<1x16x256xf32, #tpu.memory_space<vmem>>, %arg2: memref<7x3x16x144xbf16, #tpu.memory_space<vmem>>, %arg3: memref<7x16x1xf32, #tpu.memory_space<vmem>>, %arg4: memref<27x16x256xf32, #tpu.memory_space<vmem>>, %arg5: memref<1x8x256xf32, #tpu.memory_space<vmem>>, %arg6: memref<144x256xbf16, #tpu.memory_space<vmem>>, %arg7: memref<144x256xbf16, #tpu.memory_space<vmem>>, %arg8: memref<144x256xbf16, #tpu.memory_space<vmem>>) attributes {dimension_semantics = [#tpu.dimension_semantics<parallel>], iteration_bounds = array<i64: 2>, scalar_prefetch = 0 : i64, scratch_operands = 3 : i64, tpu.core_type = #tpu.core_type<tc>, window_params = [{transform_indices = @transform_0, window_bounds = array<i64: 1, 16, 256>}, {pipeline_mode = #tpu.pipeline_mode<synchronous>, transform_indices = @transform_1, window_bounds = array<i64: 7, 3, 16, 144>}, {pipeline_mode = #tpu.pipeline_mode<synchronous>, transform_indices = @transform_2, window_bounds = array<i64: 7, 16, 1>}, {pipeline_mode = #tpu.pipeline_mode<synchronous>, transform_indices = @transform_3, window_bounds = array<i64: 27, 16, 256>}, {transform_indices = @transform_4, window_bounds = array<i64: 1, 8, 256>}]} {
    %c0 = arith.constant 0 : index
    %c0_0 = arith.constant 0 : index
    %c0_1 = arith.constant 0 : index
    %0 = vector.load %arg1[%c0, %c0_0, %c0_1] : memref<1x16x256xf32, #tpu.memory_space<vmem>>, vector<1x16x256xf32>
    %1 = vector.shape_cast %0 : vector<1x16x256xf32> to vector<16x256xf32>
    %c73_i32 = arith.constant 73 : i32
    %2 = tpu.dynamic_rotate %1 by %c73_i32 dim 1 : vector<16x256xf32>, i32 -> vector<16x256xf32>
    %c0_2 = arith.constant 0 : index
    %c0_3 = arith.constant 0 : index
    %c0_4 = arith.constant 0 : index
    %3 = vector.load %arg4[%c0_2, %c0_3, %c0_4] : memref<27x16x256xf32, #tpu.memory_space<vmem>>, vector<1x16x256xf32>
    %4 = vector.shape_cast %3 : vector<1x16x256xf32> to vector<16x256xf32>
    %5 = arith.mulf %2, %4 : vector<16x256xf32>
    %6 = arith.truncf %5 : vector<16x256xf32> to vector<16x256xbf16>
    %c0_5 = arith.constant 0 : index
    %c0_6 = arith.constant 0 : index
    %7 = vector.load %arg6[%c0_5, %c0_6] : memref<144x256xbf16, #tpu.memory_space<vmem>>, vector<16x256xbf16>
    tpu.vector_store %arg6[%c0_5, %c0_6], %6 {strides = array<i32>} : memref<144x256xbf16, #tpu.memory_space<vmem>>, vector<16x256xbf16>,
    %c72_i32 = arith.constant 72 : i32
    %8 = tpu.dynamic_rotate %1 by %c72_i32 dim 1 : vector<16x256xf32>, i32 -> vector<16x256xf32>
    %c1 = arith.constant 1 : index
    %c0_7 = arith.constant 0 : index
    %c0_8 = arith.constant 0 : index
    %9 = vector.load %arg4[%c1, %c0_7, %c0_8] : memref<27x16x256xf32, #tpu.memory_space<vmem>>, vector<1x16x256xf32>
    %10 = vector.shape_cast %9 : vector<1x16x256xf32> to vector<16x256xf32>
    %11 = arith.mulf %8, %10 : vector<16x256xf32>
    %12 = arith.truncf %11 : vector<16x256xf32> to vector<16x256xbf16>
    %c16 = arith.constant 16 : index
    %c0_9 = arith.constant 0 : index
    %13 = vector.load %arg6[%c16, %c0_9] : memref<144x256xbf16, #tpu.memory_space<vmem>>, vector<16x256xbf16>
    tpu.vector_store %arg6[%c16, %c0_9], %12 {strides = array<i32>} : memref<144x256xbf16, #tpu.memory_space<vmem>>, vector<16x256xbf16>,
    %c71_i32 = arith.constant 71 : i32
    %14 = tpu.dynamic_rotate %1 by %c71_i32 dim 1 : vector<16x256xf32>, i32 -> vector<16x256xf32>
    %c2 = arith.constant 2 : index
    %c0_10 = arith.constant 0 : index
    %c0_11 = arith.constant 0 : index
    %15 = vector.load %arg4[%c2, %c0_10, %c0_11] : memref<27x16x256xf32, #tpu.memory_space<vmem>>, vector<1x16x256xf32>
    %16 = vector.shape_cast %15 : vector<1x16x256xf32> to vector<16x256xf32>
    %17 = arith.mulf %14, %16 : vector<16x256xf32>
    %18 = arith.truncf %17 : vector<16x256xf32> to vector<16x256xbf16>
    %c32 = arith.constant 32 : index
    %c0_12 = arith.constant 0 : index
    %19 = vector.load %arg6[%c32, %c0_12] : memref<144x256xbf16, #tpu.memory_space<vmem>>, vector<16x256xbf16>
    tpu.vector_store %arg6[%c32, %c0_12], %18 {strides = array<i32>} : memref<144x256xbf16, #tpu.memory_space<vmem>>, vector<16x256xbf16>,
    %c65_i32 = arith.constant 65 : i32
    %20 = tpu.dynamic_rotate %1 by %c65_i32 dim 1 : vector<16x256xf32>, i32 -> vector<16x256xf32>
    %c3 = arith.constant 3 : index
    %c0_13 = arith.constant 0 : index
    %c0_14 = arith.constant 0 : index
    %21 = vector.load %arg4[%c3, %c0_13, %c0_14] : memref<27x16x256xf32, #tpu.memory_space<vmem>>, vector<1x16x256xf32>
    %22 = vector.shape_cast %21 : vector<1x16x256xf32> to vector<16x256xf32>
    %23 = arith.mulf %20, %22 : vector<16x256xf32>
    %24 = arith.truncf %23 : vector<16x256xf32> to vector<16x256xbf16>
    %c48 = arith.constant 48 : index
    %c0_15 = arith.constant 0 : index
    %25 = vector.load %arg6[%c48, %c0_15] : memref<144x256xbf16, #tpu.memory_space<vmem>>, vector<16x256xbf16>
    tpu.vector_store %arg6[%c48, %c0_15], %24 {strides = array<i32>} : memref<144x256xbf16, #tpu.memory_space<vmem>>, vector<16x256xbf16>,
    %c64_i32 = arith.constant 64 : i32
    %26 = tpu.dynamic_rotate %1 by %c64_i32 dim 1 : vector<16x256xf32>, i32 -> vector<16x256xf32>
    %c4 = arith.constant 4 : index
    %c0_16 = arith.constant 0 : index
    %c0_17 = arith.constant 0 : index
    %27 = vector.load %arg4[%c4, %c0_16, %c0_17] : memref<27x16x256xf32, #tpu.memory_space<vmem>>, vector<1x16x256xf32>
    %28 = vector.shape_cast %27 : vector<1x16x256xf32> to vector<16x256xf32>
    %29 = arith.mulf %26, %28 : vector<16x256xf32>
    %30 = arith.truncf %29 : vector<16x256xf32> to vector<16x256xbf16>
    %c64 = arith.constant 64 : index
    %c0_18 = arith.constant 0 : index
    %31 = vector.load %arg6[%c64, %c0_18] : memref<144x256xbf16, #tpu.memory_space<vmem>>, vector<16x256xbf16>
    tpu.vector_store %arg6[%c64, %c0_18], %30 {strides = array<i32>} : memref<144x256xbf16, #tpu.memory_space<vmem>>, vector<16x256xbf16>,
    %c63_i32 = arith.constant 63 : i32
    %32 = tpu.dynamic_rotate %1 by %c63_i32 dim 1 : vector<16x256xf32>, i32 -> vector<16x256xf32>
    %c5 = arith.constant 5 : index
    %c0_19 = arith.constant 0 : index
    %c0_20 = arith.constant 0 : index
    %33 = vector.load %arg4[%c5, %c0_19, %c0_20] : memref<27x16x256xf32, #tpu.memory_space<vmem>>, vector<1x16x256xf32>
    %34 = vector.shape_cast %33 : vector<1x16x256xf32> to vector<16x256xf32>
    %35 = arith.mulf %32, %34 : vector<16x256xf32>
    %36 = arith.truncf %35 : vector<16x256xf32> to vector<16x256xbf16>
    %c80 = arith.constant 80 : index
    %c0_21 = arith.constant 0 : index
    %37 = vector.load %arg6[%c80, %c0_21] : memref<144x256xbf16, #tpu.memory_space<vmem>>, vector<16x256xbf16>
    tpu.vector_store %arg6[%c80, %c0_21], %36 {strides = array<i32>} : memref<144x256xbf16, #tpu.memory_space<vmem>>, vector<16x256xbf16>,
    %c57_i32 = arith.constant 57 : i32
    %38 = tpu.dynamic_rotate %1 by %c57_i32 dim 1 : vector<16x256xf32>, i32 -> vector<16x256xf32>
    %c6 = arith.constant 6 : index
    %c0_22 = arith.constant 0 : index
    %c0_23 = arith.constant 0 : index
    %39 = vector.load %arg4[%c6, %c0_22, %c0_23] : memref<27x16x256xf32, #tpu.memory_space<vmem>>, vector<1x16x256xf32>
    %40 = vector.shape_cast %39 : vector<1x16x256xf32> to vector<16x256xf32>
    %41 = arith.mulf %38, %40 : vector<16x256xf32>
    %42 = arith.truncf %41 : vector<16x256xf32> to vector<16x256xbf16>
    %c96 = arith.constant 96 : index
    %c0_24 = arith.constant 0 : index
    %43 = vector.load %arg6[%c96, %c0_24] : memref<144x256xbf16, #tpu.memory_space<vmem>>, vector<16x256xbf16>
    tpu.vector_store %arg6[%c96, %c0_24], %42 {strides = array<i32>} : memref<144x256xbf16, #tpu.memory_space<vmem>>, vector<16x256xbf16>,
    %c56_i32 = arith.constant 56 : i32
    %44 = tpu.dynamic_rotate %1 by %c56_i32 dim 1 : vector<16x256xf32>, i32 -> vector<16x256xf32>
    %c7 = arith.constant 7 : index
    %c0_25 = arith.constant 0 : index
    %c0_26 = arith.constant 0 : index
    %45 = vector.load %arg4[%c7, %c0_25, %c0_26] : memref<27x16x256xf32, #tpu.memory_space<vmem>>, vector<1x16x256xf32>
    %46 = vector.shape_cast %45 : vector<1x16x256xf32> to vector<16x256xf32>
    %47 = arith.mulf %44, %46 : vector<16x256xf32>
    %48 = arith.truncf %47 : vector<16x256xf32> to vector<16x256xbf16>
    %c112 = arith.constant 112 : index
    %c0_27 = arith.constant 0 : index
    %49 = vector.load %arg6[%c112, %c0_27] : memref<144x256xbf16, #tpu.memory_space<vmem>>, vector<16x256xbf16>
    tpu.vector_store %arg6[%c112, %c0_27], %48 {strides = array<i32>} : memref<144x256xbf16, #tpu.memory_space<vmem>>, vector<16x256xbf16>,
    %c55_i32 = arith.constant 55 : i32
    %50 = tpu.dynamic_rotate %1 by %c55_i32 dim 1 : vector<16x256xf32>, i32 -> vector<16x256xf32>
    %c8 = arith.constant 8 : index
    %c0_28 = arith.constant 0 : index
    %c0_29 = arith.constant 0 : index
    %51 = vector.load %arg4[%c8, %c0_28, %c0_29] : memref<27x16x256xf32, #tpu.memory_space<vmem>>, vector<1x16x256xf32>
    %52 = vector.shape_cast %51 : vector<1x16x256xf32> to vector<16x256xf32>
    %53 = arith.mulf %50, %52 : vector<16x256xf32>
    %54 = arith.truncf %53 : vector<16x256xf32> to vector<16x256xbf16>
    %c128 = arith.constant 128 : index
    %c0_30 = arith.constant 0 : index
    %55 = vector.load %arg6[%c128, %c0_30] : memref<144x256xbf16, #tpu.memory_space<vmem>>, vector<16x256xbf16>
    tpu.vector_store %arg6[%c128, %c0_30], %54 {strides = array<i32>} : memref<144x256xbf16, #tpu.memory_space<vmem>>, vector<16x256xbf16>,
    %c0_31 = arith.constant 0 : index
    %c0_32 = arith.constant 0 : index
    %c0_33 = arith.constant 0 : index
    %c0_34 = arith.constant 0 : index
    %56 = vector.load %arg2[%c0_31, %c0_32, %c0_33, %c0_34] : memref<7x3x16x144xbf16, #tpu.memory_space<vmem>>, vector<1x1x16x144xbf16>
    %57 = vector.shape_cast %56 : vector<1x1x16x144xbf16> to vector<16x144xbf16>
    %c0_35 = arith.constant 0 : index
    %c0_36 = arith.constant 0 : index
    %58 = vector.load %arg6[%c0_35, %c0_36] : memref<144x256xbf16, #tpu.memory_space<vmem>>, vector<144x256xbf16>
    %cst = arith.constant dense<0.000000e+00> : vector<16x256xf32>
    %59 = tpu.matmul %57, %58, %cst {dimension_numbers = #tpu.dot_dimension_numbers<[1], [0], [0], [1], [0, 0, 1, 1], [], []>} : vector<16x144xbf16>, vector<144x256xbf16>, vector<16x256xf32> -> vector<16x256xf32>
    %c9_i32 = arith.constant 9 : i32
    %60 = tpu.dynamic_rotate %1 by %c9_i32 dim 1 : vector<16x256xf32>, i32 -> vector<16x256xf32>
    %c9 = arith.constant 9 : index
    %c0_37 = arith.constant 0 : index
    %c0_38 = arith.constant 0 : index
    %61 = vector.load %arg4[%c9, %c0_37, %c0_38] : memref<27x16x256xf32, #tpu.memory_space<vmem>>, vector<1x16x256xf32>
    %62 = vector.shape_cast %61 : vector<1x16x256xf32> to vector<16x256xf32>
    %63 = arith.mulf %60, %62 : vector<16x256xf32>
    %64 = arith.truncf %63 : vector<16x256xf32> to vector<16x256xbf16>
    %c0_39 = arith.constant 0 : index
    %c0_40 = arith.constant 0 : index
    %65 = vector.load %arg7[%c0_39, %c0_40] : memref<144x256xbf16, #tpu.memory_space<vmem>>, vector<16x256xbf16>
    tpu.vector_store %arg7[%c0_39, %c0_40], %64 {strides = array<i32>} : memref<144x256xbf16, #tpu.memory_space<vmem>>, vector<16x256xbf16>,
    %c8_i32 = arith.constant 8 : i32
    %66 = tpu.dynamic_rotate %1 by %c8_i32 dim 1 : vector<16x256xf32>, i32 -> vector<16x256xf32>
    %c10 = arith.constant 10 : index
    %c0_41 = arith.constant 0 : index
    %c0_42 = arith.constant 0 : index
    %67 = vector.load %arg4[%c10, %c0_41, %c0_42] : memref<27x16x256xf32, #tpu.memory_space<vmem>>, vector<1x16x256xf32>
    %68 = vector.shape_cast %67 : vector<1x16x256xf32> to vector<16x256xf32>
    %69 = arith.mulf %66, %68 : vector<16x256xf32>
    %70 = arith.truncf %69 : vector<16x256xf32> to vector<16x256xbf16>
    %c16_43 = arith.constant 16 : index
    %c0_44 = arith.constant 0 : index
    %71 = vector.load %arg7[%c16_43, %c0_44] : memref<144x256xbf16, #tpu.memory_space<vmem>>, vector<16x256xbf16>
    tpu.vector_store %arg7[%c16_43, %c0_44], %70 {strides = array<i32>} : memref<144x256xbf16, #tpu.memory_space<vmem>>, vector<16x256xbf16>,
    %c7_i32 = arith.constant 7 : i32
    %72 = tpu.dynamic_rotate %1 by %c7_i32 dim 1 : vector<16x256xf32>, i32 -> vector<16x256xf32>
    %c11 = arith.constant 11 : index
    %c0_45 = arith.constant 0 : index
    %c0_46 = arith.constant 0 : index
    %73 = vector.load %arg4[%c11, %c0_45, %c0_46] : memref<27x16x256xf32, #tpu.memory_space<vmem>>, vector<1x16x256xf32>
    %74 = vector.shape_cast %73 : vector<1x16x256xf32> to vector<16x256xf32>
    %75 = arith.mulf %72, %74 : vector<16x256xf32>
    %76 = arith.truncf %75 : vector<16x256xf32> to vector<16x256xbf16>
    %c32_47 = arith.constant 32 : index
    %c0_48 = arith.constant 0 : index
    %77 = vector.load %arg7[%c32_47, %c0_48] : memref<144x256xbf16, #tpu.memory_space<vmem>>, vector<16x256xbf16>
    tpu.vector_store %arg7[%c32_47, %c0_48], %76 {strides = array<i32>} : memref<144x256xbf16, #tpu.memory_space<vmem>>, vector<16x256xbf16>,
    %c1_i32 = arith.constant 1 : i32
    %78 = tpu.dynamic_rotate %1 by %c1_i32 dim 1 : vector<16x256xf32>, i32 -> vector<16x256xf32>
    %c12 = arith.constant 12 : index
    %c0_49 = arith.constant 0 : index
    %c0_50 = arith.constant 0 : index
    %79 = vector.load %arg4[%c12, %c0_49, %c0_50] : memref<27x16x256xf32, #tpu.memory_space<vmem>>, vector<1x16x256xf32>
    %80 = vector.shape_cast %79 : vector<1x16x256xf32> to vector<16x256xf32>
    %81 = arith.mulf %78, %80 : vector<16x256xf32>
    %82 = arith.truncf %81 : vector<16x256xf32> to vector<16x256xbf16>
    %c48_51 = arith.constant 48 : index
    %c0_52 = arith.constant 0 : index
    %83 = vector.load %arg7[%c48_51, %c0_52] : memref<144x256xbf16, #tpu.memory_space<vmem>>, vector<16x256xbf16>
    tpu.vector_store %arg7[%c48_51, %c0_52], %82 {strides = array<i32>} : memref<144x256xbf16, #tpu.memory_space<vmem>>, vector<16x256xbf16>,
    %84 = arith.truncf %1 : vector<16x256xf32> to vector<16x256xbf16>
    %c64_53 = arith.constant 64 : index
    %c0_54 = arith.constant 0 : index
    %85 = vector.load %arg7[%c64_53, %c0_54] : memref<144x256xbf16, #tpu.memory_space<vmem>>, vector<16x256xbf16>
    tpu.vector_store %arg7[%c64_53, %c0_54], %84 {strides = array<i32>} : memref<144x256xbf16, #tpu.memory_space<vmem>>, vector<16x256xbf16>,
    %c255_i32 = arith.constant 255 : i32
    %86 = tpu.dynamic_rotate %1 by %c255_i32 dim 1 : vector<16x256xf32>, i32 -> vector<16x256xf32>
    %c14 = arith.constant 14 : index
    %c0_55 = arith.constant 0 : index
    %c0_56 = arith.constant 0 : index
    %87 = vector.load %arg4[%c14, %c0_55, %c0_56] : memref<27x16x256xf32, #tpu.memory_space<vmem>>, vector<1x16x256xf32>
    %88 = vector.shape_cast %87 : vector<1x16x256xf32> to vector<16x256xf32>
    %89 = arith.mulf %86, %88 : vector<16x256xf32>
    %90 = arith.truncf %89 : vector<16x256xf32> to vector<16x256xbf16>
    %c80_57 = arith.constant 80 : index
    %c0_58 = arith.constant 0 : index
    %91 = vector.load %arg7[%c80_57, %c0_58] : memref<144x256xbf16, #tpu.memory_space<vmem>>, vector<16x256xbf16>
    tpu.vector_store %arg7[%c80_57, %c0_58], %90 {strides = array<i32>} : memref<144x256xbf16, #tpu.memory_space<vmem>>, vector<16x256xbf16>,
    %c249_i32 = arith.constant 249 : i32
    %92 = tpu.dynamic_rotate %1 by %c249_i32 dim 1 : vector<16x256xf32>, i32 -> vector<16x256xf32>
    %c15 = arith.constant 15 : index
    %c0_59 = arith.constant 0 : index
    %c0_60 = arith.constant 0 : index
    %93 = vector.load %arg4[%c15, %c0_59, %c0_60] : memref<27x16x256xf32, #tpu.memory_space<vmem>>, vector<1x16x256xf32>
    %94 = vector.shape_cast %93 : vector<1x16x256xf32> to vector<16x256xf32>
    %95 = arith.mulf %92, %94 : vector<16x256xf32>
    %96 = arith.truncf %95 : vector<16x256xf32> to vector<16x256xbf16>
    %c96_61 = arith.constant 96 : index
    %c0_62 = arith.constant 0 : index
    %97 = vector.load %arg7[%c96_61, %c0_62] : memref<144x256xbf16, #tpu.memory_space<vmem>>, vector<16x256xbf16>
    tpu.vector_store %arg7[%c96_61, %c0_62], %96 {strides = array<i32>} : memref<144x256xbf16, #tpu.memory_space<vmem>>, vector<16x256xbf16>,
    %c248_i32 = arith.constant 248 : i32
    %98 = tpu.dynamic_rotate %1 by %c248_i32 dim 1 : vector<16x256xf32>, i32 -> vector<16x256xf32>
    %c16_63 = arith.constant 16 : index
    %c0_64 = arith.constant 0 : index
    %c0_65 = arith.constant 0 : index
    %99 = vector.load %arg4[%c16_63, %c0_64, %c0_65] : memref<27x16x256xf32, #tpu.memory_space<vmem>>, vector<1x16x256xf32>
    %100 = vector.shape_cast %99 : vector<1x16x256xf32> to vector<16x256xf32>
    %101 = arith.mulf %98, %100 : vector<16x256xf32>
    %102 = arith.truncf %101 : vector<16x256xf32> to vector<16x256xbf16>
    %c112_66 = arith.constant 112 : index
    %c0_67 = arith.constant 0 : index
    %103 = vector.load %arg7[%c112_66, %c0_67] : memref<144x256xbf16, #tpu.memory_space<vmem>>, vector<16x256xbf16>
    tpu.vector_store %arg7[%c112_66, %c0_67], %102 {strides = array<i32>} : memref<144x256xbf16, #tpu.memory_space<vmem>>, vector<16x256xbf16>,
    %c247_i32 = arith.constant 247 : i32
    %104 = tpu.dynamic_rotate %1 by %c247_i32 dim 1 : vector<16x256xf32>, i32 -> vector<16x256xf32>
    %c17 = arith.constant 17 : index
    %c0_68 = arith.constant 0 : index
    %c0_69 = arith.constant 0 : index
    %105 = vector.load %arg4[%c17, %c0_68, %c0_69] : memref<27x16x256xf32, #tpu.memory_space<vmem>>, vector<1x16x256xf32>
    %106 = vector.shape_cast %105 : vector<1x16x256xf32> to vector<16x256xf32>
    %107 = arith.mulf %104, %106 : vector<16x256xf32>
    %108 = arith.truncf %107 : vector<16x256xf32> to vector<16x256xbf16>
    %c128_70 = arith.constant 128 : index
    %c0_71 = arith.constant 0 : index
    %109 = vector.load %arg7[%c128_70, %c0_71] : memref<144x256xbf16, #tpu.memory_space<vmem>>, vector<16x256xbf16>
    tpu.vector_store %arg7[%c128_70, %c0_71], %108 {strides = array<i32>} : memref<144x256xbf16, #tpu.memory_space<vmem>>, vector<16x256xbf16>,
    %c0_72 = arith.constant 0 : index
    %c1_73 = arith.constant 1 : index
    %c0_74 = arith.constant 0 : index
    %c0_75 = arith.constant 0 : index
    %110 = vector.load %arg2[%c0_72, %c1_73, %c0_74, %c0_75] : memref<7x3x16x144xbf16, #tpu.memory_space<vmem>>, vector<1x1x16x144xbf16>
    %111 = vector.shape_cast %110 : vector<1x1x16x144xbf16> to vector<16x144xbf16>
    %c0_76 = arith.constant 0 : index
    %c0_77 = arith.constant 0 : index
    %112 = vector.load %arg7[%c0_76, %c0_77] : memref<144x256xbf16, #tpu.memory_space<vmem>>, vector<144x256xbf16>
    %cst_78 = arith.constant dense<0.000000e+00> : vector<16x256xf32>
    %113 = tpu.matmul %111, %112, %cst_78 {dimension_numbers = #tpu.dot_dimension_numbers<[1], [0], [0], [1], [0, 0, 1, 1], [], []>} : vector<16x144xbf16>, vector<144x256xbf16>, vector<16x256xf32> -> vector<16x256xf32>
    %114 = arith.addf %59, %113 : vector<16x256xf32>
    %c201_i32 = arith.constant 201 : i32
    %115 = tpu.dynamic_rotate %1 by %c201_i32 dim 1 : vector<16x256xf32>, i32 -> vector<16x256xf32>
    %c18 = arith.constant 18 : index
    %c0_79 = arith.constant 0 : index
    %c0_80 = arith.constant 0 : index
    %116 = vector.load %arg4[%c18, %c0_79, %c0_80] : memref<27x16x256xf32, #tpu.memory_space<vmem>>, vector<1x16x256xf32>
    %117 = vector.shape_cast %116 : vector<1x16x256xf32> to vector<16x256xf32>
    %118 = arith.mulf %115, %117 : vector<16x256xf32>
    %119 = arith.truncf %118 : vector<16x256xf32> to vector<16x256xbf16>
    %c0_81 = arith.constant 0 : index
    %c0_82 = arith.constant 0 : index
    %120 = vector.load %arg8[%c0_81, %c0_82] : memref<144x256xbf16, #tpu.memory_space<vmem>>, vector<16x256xbf16>
    tpu.vector_store %arg8[%c0_81, %c0_82], %119 {strides = array<i32>} : memref<144x256xbf16, #tpu.memory_space<vmem>>, vector<16x256xbf16>,
    %c200_i32 = arith.constant 200 : i32
    %121 = tpu.dynamic_rotate %1 by %c200_i32 dim 1 : vector<16x256xf32>, i32 -> vector<16x256xf32>
    %c19 = arith.constant 19 : index
    %c0_83 = arith.constant 0 : index
    %c0_84 = arith.constant 0 : index
    %122 = vector.load %arg4[%c19, %c0_83, %c0_84] : memref<27x16x256xf32, #tpu.memory_space<vmem>>, vector<1x16x256xf32>
    %123 = vector.shape_cast %122 : vector<1x16x256xf32> to vector<16x256xf32>
    %124 = arith.mulf %121, %123 : vector<16x256xf32>
    %125 = arith.truncf %124 : vector<16x256xf32> to vector<16x256xbf16>
    %c16_85 = arith.constant 16 : index
    %c0_86 = arith.constant 0 : index
    %126 = vector.load %arg8[%c16_85, %c0_86] : memref<144x256xbf16, #tpu.memory_space<vmem>>, vector<16x256xbf16>
    tpu.vector_store %arg8[%c16_85, %c0_86], %125 {strides = array<i32>} : memref<144x256xbf16, #tpu.memory_space<vmem>>, vector<16x256xbf16>,
    %c199_i32 = arith.constant 199 : i32
    %127 = tpu.dynamic_rotate %1 by %c199_i32 dim 1 : vector<16x256xf32>, i32 -> vector<16x256xf32>
    %c20 = arith.constant 20 : index
    %c0_87 = arith.constant 0 : index
    %c0_88 = arith.constant 0 : index
    %128 = vector.load %arg4[%c20, %c0_87, %c0_88] : memref<27x16x256xf32, #tpu.memory_space<vmem>>, vector<1x16x256xf32>
    %129 = vector.shape_cast %128 : vector<1x16x256xf32> to vector<16x256xf32>
    %130 = arith.mulf %127, %129 : vector<16x256xf32>
    %131 = arith.truncf %130 : vector<16x256xf32> to vector<16x256xbf16>
    %c32_89 = arith.constant 32 : index
    %c0_90 = arith.constant 0 : index
    %132 = vector.load %arg8[%c32_89, %c0_90] : memref<144x256xbf16, #tpu.memory_space<vmem>>, vector<16x256xbf16>
    tpu.vector_store %arg8[%c32_89, %c0_90], %131 {strides = array<i32>} : memref<144x256xbf16, #tpu.memory_space<vmem>>, vector<16x256xbf16>,
    %c193_i32 = arith.constant 193 : i32
    %133 = tpu.dynamic_rotate %1 by %c193_i32 dim 1 : vector<16x256xf32>, i32 -> vector<16x256xf32>
    %c21 = arith.constant 21 : index
    %c0_91 = arith.constant 0 : index
    %c0_92 = arith.constant 0 : index
    %134 = vector.load %arg4[%c21, %c0_91, %c0_92] : memref<27x16x256xf32, #tpu.memory_space<vmem>>, vector<1x16x256xf32>
    %135 = vector.shape_cast %134 : vector<1x16x256xf32> to vector<16x256xf32>
    %136 = arith.mulf %133, %135 : vector<16x256xf32>
    %137 = arith.truncf %136 : vector<16x256xf32> to vector<16x256xbf16>
    %c48_93 = arith.constant 48 : index
    %c0_94 = arith.constant 0 : index
    %138 = vector.load %arg8[%c48_93, %c0_94] : memref<144x256xbf16, #tpu.memory_space<vmem>>, vector<16x256xbf16>
    tpu.vector_store %arg8[%c48_93, %c0_94], %137 {strides = array<i32>} : memref<144x256xbf16, #tpu.memory_space<vmem>>, vector<16x256xbf16>,
    %c192_i32 = arith.constant 192 : i32
    %139 = tpu.dynamic_rotate %1 by %c192_i32 dim 1 : vector<16x256xf32>, i32 -> vector<16x256xf32>
    %c22 = arith.constant 22 : index
    %c0_95 = arith.constant 0 : index
    %c0_96 = arith.constant 0 : index
    %140 = vector.load %arg4[%c22, %c0_95, %c0_96] : memref<27x16x256xf32, #tpu.memory_space<vmem>>, vector<1x16x256xf32>
    %141 = vector.shape_cast %140 : vector<1x16x256xf32> to vector<16x256xf32>
    %142 = arith.mulf %139, %141 : vector<16x256xf32>
    %143 = arith.truncf %142 : vector<16x256xf32> to vector<16x256xbf16>
    %c64_97 = arith.constant 64 : index
    %c0_98 = arith.constant 0 : index
    %144 = vector.load %arg8[%c64_97, %c0_98] : memref<144x256xbf16, #tpu.memory_space<vmem>>, vector<16x256xbf16>
    tpu.vector_store %arg8[%c64_97, %c0_98], %143 {strides = array<i32>} : memref<144x256xbf16, #tpu.memory_space<vmem>>, vector<16x256xbf16>,
    %c191_i32 = arith.constant 191 : i32
    %145 = tpu.dynamic_rotate %1 by %c191_i32 dim 1 : vector<16x256xf32>, i32 -> vector<16x256xf32>
    %c23 = arith.constant 23 : index
    %c0_99 = arith.constant 0 : index
    %c0_100 = arith.constant 0 : index
    %146 = vector.load %arg4[%c23, %c0_99, %c0_100] : memref<27x16x256xf32, #tpu.memory_space<vmem>>, vector<1x16x256xf32>
    %147 = vector.shape_cast %146 : vector<1x16x256xf32> to vector<16x256xf32>
    %148 = arith.mulf %145, %147 : vector<16x256xf32>
    %149 = arith.truncf %148 : vector<16x256xf32> to vector<16x256xbf16>
    %c80_101 = arith.constant 80 : index
    %c0_102 = arith.constant 0 : index
    %150 = vector.load %arg8[%c80_101, %c0_102] : memref<144x256xbf16, #tpu.memory_space<vmem>>, vector<16x256xbf16>
    tpu.vector_store %arg8[%c80_101, %c0_102], %149 {strides = array<i32>} : memref<144x256xbf16, #tpu.memory_space<vmem>>, vector<16x256xbf16>,
    %c185_i32 = arith.constant 185 : i32
    %151 = tpu.dynamic_rotate %1 by %c185_i32 dim 1 : vector<16x256xf32>, i32 -> vector<16x256xf32>
    %c24 = arith.constant 24 : index
    %c0_103 = arith.constant 0 : index
    %c0_104 = arith.constant 0 : index
    %152 = vector.load %arg4[%c24, %c0_103, %c0_104] : memref<27x16x256xf32, #tpu.memory_space<vmem>>, vector<1x16x256xf32>
    %153 = vector.shape_cast %152 : vector<1x16x256xf32> to vector<16x256xf32>
    %154 = arith.mulf %151, %153 : vector<16x256xf32>
    %155 = arith.truncf %154 : vector<16x256xf32> to vector<16x256xbf16>
    %c96_105 = arith.constant 96 : index
    %c0_106 = arith.constant 0 : index
    %156 = vector.load %arg8[%c96_105, %c0_106] : memref<144x256xbf16, #tpu.memory_space<vmem>>, vector<16x256xbf16>
    tpu.vector_store %arg8[%c96_105, %c0_106], %155 {strides = array<i32>} : memref<144x256xbf16, #tpu.memory_space<vmem>>, vector<16x256xbf16>,
    %c184_i32 = arith.constant 184 : i32
    %157 = tpu.dynamic_rotate %1 by %c184_i32 dim 1 : vector<16x256xf32>, i32 -> vector<16x256xf32>
    %c25 = arith.constant 25 : index
    %c0_107 = arith.constant 0 : index
    %c0_108 = arith.constant 0 : index
    %158 = vector.load %arg4[%c25, %c0_107, %c0_108] : memref<27x16x256xf32, #tpu.memory_space<vmem>>, vector<1x16x256xf32>
    %159 = vector.shape_cast %158 : vector<1x16x256xf32> to vector<16x256xf32>
    %160 = arith.mulf %157, %159 : vector<16x256xf32>
    %161 = arith.truncf %160 : vector<16x256xf32> to vector<16x256xbf16>
    %c112_109 = arith.constant 112 : index
    %c0_110 = arith.constant 0 : index
    %162 = vector.load %arg8[%c112_109, %c0_110] : memref<144x256xbf16, #tpu.memory_space<vmem>>, vector<16x256xbf16>
    tpu.vector_store %arg8[%c112_109, %c0_110], %161 {strides = array<i32>} : memref<144x256xbf16, #tpu.memory_space<vmem>>, vector<16x256xbf16>,
    %c183_i32 = arith.constant 183 : i32
    %163 = tpu.dynamic_rotate %1 by %c183_i32 dim 1 : vector<16x256xf32>, i32 -> vector<16x256xf32>
    %c26 = arith.constant 26 : index
    %c0_111 = arith.constant 0 : index
    %c0_112 = arith.constant 0 : index
    %164 = vector.load %arg4[%c26, %c0_111, %c0_112] : memref<27x16x256xf32, #tpu.memory_space<vmem>>, vector<1x16x256xf32>
    %165 = vector.shape_cast %164 : vector<1x16x256xf32> to vector<16x256xf32>
    %166 = arith.mulf %163, %165 : vector<16x256xf32>
    %167 = arith.truncf %166 : vector<16x256xf32> to vector<16x256xbf16>
    %c128_113 = arith.constant 128 : index
    %c0_114 = arith.constant 0 : index
    %168 = vector.load %arg8[%c128_113, %c0_114] : memref<144x256xbf16, #tpu.memory_space<vmem>>, vector<16x256xbf16>
    tpu.vector_store %arg8[%c128_113, %c0_114], %167 {strides = array<i32>} : memref<144x256xbf16, #tpu.memory_space<vmem>>, vector<16x256xbf16>,
    %c0_115 = arith.constant 0 : index
    %c2_116 = arith.constant 2 : index
    %c0_117 = arith.constant 0 : index
    %c0_118 = arith.constant 0 : index
    %169 = vector.load %arg2[%c0_115, %c2_116, %c0_117, %c0_118] : memref<7x3x16x144xbf16, #tpu.memory_space<vmem>>, vector<1x1x16x144xbf16>
    %170 = vector.shape_cast %169 : vector<1x1x16x144xbf16> to vector<16x144xbf16>
    %c0_119 = arith.constant 0 : index
    %c0_120 = arith.constant 0 : index
    %171 = vector.load %arg8[%c0_119, %c0_120] : memref<144x256xbf16, #tpu.memory_space<vmem>>, vector<144x256xbf16>
    %cst_121 = arith.constant dense<0.000000e+00> : vector<16x256xf32>
    %172 = tpu.matmul %170, %171, %cst_121 {dimension_numbers = #tpu.dot_dimension_numbers<[1], [0], [0], [1], [0, 0, 1, 1], [], []>} : vector<16x144xbf16>, vector<144x256xbf16>, vector<16x256xf32> -> vector<16x256xf32>
    %173 = arith.addf %114, %172 : vector<16x256xf32>
    %c0_122 = arith.constant 0 : index
    %c0_123 = arith.constant 0 : index
    %c0_124 = arith.constant 0 : index
    %174 = vector.load %arg3[%c0_122, %c0_123, %c0_124] : memref<7x16x1xf32, #tpu.memory_space<vmem>>, vector<1x16x1xf32>
    %175 = vector.shape_cast %174 : vector<1x16x1xf32> to vector<16x1xf32>
    %176 = vector.broadcast %175 : vector<16x1xf32> to vector<16x256xf32>
    %177 = arith.addf %173, %176 : vector<16x256xf32>
    %cst_125 = arith.constant 0.000000e+00 : f32
    %178 = vector.broadcast %cst_125 : f32 to vector<16x256xf32>
    %179 = arith.maximumf %177, %178 : vector<16x256xf32>
    %c73_i32_126 = arith.constant 73 : i32
    %180 = tpu.dynamic_rotate %179 by %c73_i32_126 dim 1 : vector<16x256xf32>, i32 -> vector<16x256xf32>
    %c0_127 = arith.constant 0 : index
    %c0_128 = arith.constant 0 : index
    %c0_129 = arith.constant 0 : index
    %181 = vector.load %arg4[%c0_127, %c0_128, %c0_129] : memref<27x16x256xf32, #tpu.memory_space<vmem>>, vector<1x16x256xf32>
    %182 = vector.shape_cast %181 : vector<1x16x256xf32> to vector<16x256xf32>
    %183 = arith.mulf %180, %182 : vector<16x256xf32>
    %184 = arith.truncf %183 : vector<16x256xf32> to vector<16x256xbf16>
    %c0_130 = arith.constant 0 : index
    %c0_131 = arith.constant 0 : index
    %185 = vector.load %arg6[%c0_130, %c0_131] : memref<144x256xbf16, #tpu.memory_space<vmem>>, vector<16x256xbf16>
    tpu.vector_store %arg6[%c0_130, %c0_131], %184 {strides = array<i32>} : memref<144x256xbf16, #tpu.memory_space<vmem>>, vector<16x256xbf16>,
    %c72_i32_132 = arith.constant 72 : i32
    %186 = tpu.dynamic_rotate %179 by %c72_i32_132 dim 1 : vector<16x256xf32>, i32 -> vector<16x256xf32>
    %c1_133 = arith.constant 1 : index
    %c0_134 = arith.constant 0 : index
    %c0_135 = arith.constant 0 : index
    %187 = vector.load %arg4[%c1_133, %c0_134, %c0_135] : memref<27x16x256xf32, #tpu.memory_space<vmem>>, vector<1x16x256xf32>
    %188 = vector.shape_cast %187 : vector<1x16x256xf32> to vector<16x256xf32>
    %189 = arith.mulf %186, %188 : vector<16x256xf32>
    %190 = arith.truncf %189 : vector<16x256xf32> to vector<16x256xbf16>
    %c16_136 = arith.constant 16 : index
    %c0_137 = arith.constant 0 : index
    %191 = vector.load %arg6[%c16_136, %c0_137] : memref<144x256xbf16, #tpu.memory_space<vmem>>, vector<16x256xbf16>
    tpu.vector_store %arg6[%c16_136, %c0_137], %190 {strides = array<i32>} : memref<144x256xbf16, #tpu.memory_space<vmem>>, vector<16x256xbf16>,
    %c71_i32_138 = arith.constant 71 : i32
    %192 = tpu.dynamic_rotate %179 by %c71_i32_138 dim 1 : vector<16x256xf32>, i32 -> vector<16x256xf32>
    %c2_139 = arith.constant 2 : index
    %c0_140 = arith.constant 0 : index
    %c0_141 = arith.constant 0 : index
    %193 = vector.load %arg4[%c2_139, %c0_140, %c0_141] : memref<27x16x256xf32, #tpu.memory_space<vmem>>, vector<1x16x256xf32>
    %194 = vector.shape_cast %193 : vector<1x16x256xf32> to vector<16x256xf32>
    %195 = arith.mulf %192, %194 : vector<16x256xf32>
    %196 = arith.truncf %195 : vector<16x256xf32> to vector<16x256xbf16>
    %c32_142 = arith.constant 32 : index
    %c0_143 = arith.constant 0 : index
    %197 = vector.load %arg6[%c32_142, %c0_143] : memref<144x256xbf16, #tpu.memory_space<vmem>>, vector<16x256xbf16>
    tpu.vector_store %arg6[%c32_142, %c0_143], %196 {strides = array<i32>} : memref<144x256xbf16, #tpu.memory_space<vmem>>, vector<16x256xbf16>,
    %c65_i32_144 = arith.constant 65 : i32
    %198 = tpu.dynamic_rotate %179 by %c65_i32_144 dim 1 : vector<16x256xf32>, i32 -> vector<16x256xf32>
    %c3_145 = arith.constant 3 : index
    %c0_146 = arith.constant 0 : index
    %c0_147 = arith.constant 0 : index
    %199 = vector.load %arg4[%c3_145, %c0_146, %c0_147] : memref<27x16x256xf32, #tpu.memory_space<vmem>>, vector<1x16x256xf32>
    %200 = vector.shape_cast %199 : vector<1x16x256xf32> to vector<16x256xf32>
    %201 = arith.mulf %198, %200 : vector<16x256xf32>
    %202 = arith.truncf %201 : vector<16x256xf32> to vector<16x256xbf16>
    %c48_148 = arith.constant 48 : index
    %c0_149 = arith.constant 0 : index
    %203 = vector.load %arg6[%c48_148, %c0_149] : memref<144x256xbf16, #tpu.memory_space<vmem>>, vector<16x256xbf16>
    tpu.vector_store %arg6[%c48_148, %c0_149], %202 {strides = array<i32>} : memref<144x256xbf16, #tpu.memory_space<vmem>>, vector<16x256xbf16>,
    %c64_i32_150 = arith.constant 64 : i32
    %204 = tpu.dynamic_rotate %179 by %c64_i32_150 dim 1 : vector<16x256xf32>, i32 -> vector<16x256xf32>
    %c4_151 = arith.constant 4 : index
    %c0_152 = arith.constant 0 : index
    %c0_153 = arith.constant 0 : index
    %205 = vector.load %arg4[%c4_151, %c0_152, %c0_153] : memref<27x16x256xf32, #tpu.memory_space<vmem>>, vector<1x16x256xf32>
    %206 = vector.shape_cast %205 : vector<1x16x256xf32> to vector<16x256xf32>
    %207 = arith.mulf %204, %206 : vector<16x256xf32>
    %208 = arith.truncf %207 : vector<16x256xf32> to vector<16x256xbf16>
    %c64_154 = arith.constant 64 : index
    %c0_155 = arith.constant 0 : index
    %209 = vector.load %arg6[%c64_154, %c0_155] : memref<144x256xbf16, #tpu.memory_space<vmem>>, vector<16x256xbf16>
    tpu.vector_store %arg6[%c64_154, %c0_155], %208 {strides = array<i32>} : memref<144x256xbf16, #tpu.memory_space<vmem>>, vector<16x256xbf16>,
    %c63_i32_156 = arith.constant 63 : i32
    %210 = tpu.dynamic_rotate %179 by %c63_i32_156 dim 1 : vector<16x256xf32>, i32 -> vector<16x256xf32>
    %c5_157 = arith.constant 5 : index
    %c0_158 = arith.constant 0 : index
    %c0_159 = arith.constant 0 : index
    %211 = vector.load %arg4[%c5_157, %c0_158, %c0_159] : memref<27x16x256xf32, #tpu.memory_space<vmem>>, vector<1x16x256xf32>
    %212 = vector.shape_cast %211 : vector<1x16x256xf32> to vector<16x256xf32>
    %213 = arith.mulf %210, %212 : vector<16x256xf32>
    %214 = arith.truncf %213 : vector<16x256xf32> to vector<16x256xbf16>
    %c80_160 = arith.constant 80 : index
    %c0_161 = arith.constant 0 : index
    %215 = vector.load %arg6[%c80_160, %c0_161] : memref<144x256xbf16, #tpu.memory_space<vmem>>, vector<16x256xbf16>
    tpu.vector_store %arg6[%c80_160, %c0_161], %214 {strides = array<i32>} : memref<144x256xbf16, #tpu.memory_space<vmem>>, vector<16x256xbf16>,
    %c57_i32_162 = arith.constant 57 : i32
    %216 = tpu.dynamic_rotate %179 by %c57_i32_162 dim 1 : vector<16x256xf32>, i32 -> vector<16x256xf32>
    %c6_163 = arith.constant 6 : index
    %c0_164 = arith.constant 0 : index
    %c0_165 = arith.constant 0 : index
    %217 = vector.load %arg4[%c6_163, %c0_164, %c0_165] : memref<27x16x256xf32, #tpu.memory_space<vmem>>, vector<1x16x256xf32>
    %218 = vector.shape_cast %217 : vector<1x16x256xf32> to vector<16x256xf32>
    %219 = arith.mulf %216, %218 : vector<16x256xf32>
    %220 = arith.truncf %219 : vector<16x256xf32> to vector<16x256xbf16>
    %c96_166 = arith.constant 96 : index
    %c0_167 = arith.constant 0 : index
    %221 = vector.load %arg6[%c96_166, %c0_167] : memref<144x256xbf16, #tpu.memory_space<vmem>>, vector<16x256xbf16>
    tpu.vector_store %arg6[%c96_166, %c0_167], %220 {strides = array<i32>} : memref<144x256xbf16, #tpu.memory_space<vmem>>, vector<16x256xbf16>,
    %c56_i32_168 = arith.constant 56 : i32
    %222 = tpu.dynamic_rotate %179 by %c56_i32_168 dim 1 : vector<16x256xf32>, i32 -> vector<16x256xf32>
    %c7_169 = arith.constant 7 : index
    %c0_170 = arith.constant 0 : index
    %c0_171 = arith.constant 0 : index
    %223 = vector.load %arg4[%c7_169, %c0_170, %c0_171] : memref<27x16x256xf32, #tpu.memory_space<vmem>>, vector<1x16x256xf32>
    %224 = vector.shape_cast %223 : vector<1x16x256xf32> to vector<16x256xf32>
    %225 = arith.mulf %222, %224 : vector<16x256xf32>
    %226 = arith.truncf %225 : vector<16x256xf32> to vector<16x256xbf16>
    %c112_172 = arith.constant 112 : index
    %c0_173 = arith.constant 0 : index
    %227 = vector.load %arg6[%c112_172, %c0_173] : memref<144x256xbf16, #tpu.memory_space<vmem>>, vector<16x256xbf16>
    tpu.vector_store %arg6[%c112_172, %c0_173], %226 {strides = array<i32>} : memref<144x256xbf16, #tpu.memory_space<vmem>>, vector<16x256xbf16>,
    %c55_i32_174 = arith.constant 55 : i32
    %228 = tpu.dynamic_rotate %179 by %c55_i32_174 dim 1 : vector<16x256xf32>, i32 -> vector<16x256xf32>
    %c8_175 = arith.constant 8 : index
    %c0_176 = arith.constant 0 : index
    %c0_177 = arith.constant 0 : index
    %229 = vector.load %arg4[%c8_175, %c0_176, %c0_177] : memref<27x16x256xf32, #tpu.memory_space<vmem>>, vector<1x16x256xf32>
    %230 = vector.shape_cast %229 : vector<1x16x256xf32> to vector<16x256xf32>
    %231 = arith.mulf %228, %230 : vector<16x256xf32>
    %232 = arith.truncf %231 : vector<16x256xf32> to vector<16x256xbf16>
    %c128_178 = arith.constant 128 : index
    %c0_179 = arith.constant 0 : index
    %233 = vector.load %arg6[%c128_178, %c0_179] : memref<144x256xbf16, #tpu.memory_space<vmem>>, vector<16x256xbf16>
    tpu.vector_store %arg6[%c128_178, %c0_179], %232 {strides = array<i32>} : memref<144x256xbf16, #tpu.memory_space<vmem>>, vector<16x256xbf16>,
    %c1_180 = arith.constant 1 : index
    %c0_181 = arith.constant 0 : index
    %c0_182 = arith.constant 0 : index
    %c0_183 = arith.constant 0 : index
    %234 = vector.load %arg2[%c1_180, %c0_181, %c0_182, %c0_183] : memref<7x3x16x144xbf16, #tpu.memory_space<vmem>>, vector<1x1x16x144xbf16>
    %235 = vector.shape_cast %234 : vector<1x1x16x144xbf16> to vector<16x144xbf16>
    %c0_184 = arith.constant 0 : index
    %c0_185 = arith.constant 0 : index
    %236 = vector.load %arg6[%c0_184, %c0_185] : memref<144x256xbf16, #tpu.memory_space<vmem>>, vector<144x256xbf16>
    %cst_186 = arith.constant dense<0.000000e+00> : vector<16x256xf32>
    %237 = tpu.matmul %235, %236, %cst_186 {dimension_numbers = #tpu.dot_dimension_numbers<[1], [0], [0], [1], [0, 0, 1, 1], [], []>} : vector<16x144xbf16>, vector<144x256xbf16>, vector<16x256xf32> -> vector<16x256xf32>
    %c9_i32_187 = arith.constant 9 : i32
    %238 = tpu.dynamic_rotate %179 by %c9_i32_187 dim 1 : vector<16x256xf32>, i32 -> vector<16x256xf32>
    %c9_188 = arith.constant 9 : index
    %c0_189 = arith.constant 0 : index
    %c0_190 = arith.constant 0 : index
    %239 = vector.load %arg4[%c9_188, %c0_189, %c0_190] : memref<27x16x256xf32, #tpu.memory_space<vmem>>, vector<1x16x256xf32>
    %240 = vector.shape_cast %239 : vector<1x16x256xf32> to vector<16x256xf32>
    %241 = arith.mulf %238, %240 : vector<16x256xf32>
    %242 = arith.truncf %241 : vector<16x256xf32> to vector<16x256xbf16>
    %c0_191 = arith.constant 0 : index
    %c0_192 = arith.constant 0 : index
    %243 = vector.load %arg7[%c0_191, %c0_192] : memref<144x256xbf16, #tpu.memory_space<vmem>>, vector<16x256xbf16>
    tpu.vector_store %arg7[%c0_191, %c0_192], %242 {strides = array<i32>} : memref<144x256xbf16, #tpu.memory_space<vmem>>, vector<16x256xbf16>,
    %c8_i32_193 = arith.constant 8 : i32
    %244 = tpu.dynamic_rotate %179 by %c8_i32_193 dim 1 : vector<16x256xf32>, i32 -> vector<16x256xf32>
    %c10_194 = arith.constant 10 : index
    %c0_195 = arith.constant 0 : index
    %c0_196 = arith.constant 0 : index
    %245 = vector.load %arg4[%c10_194, %c0_195, %c0_196] : memref<27x16x256xf32, #tpu.memory_space<vmem>>, vector<1x16x256xf32>
    %246 = vector.shape_cast %245 : vector<1x16x256xf32> to vector<16x256xf32>
    %247 = arith.mulf %244, %246 : vector<16x256xf32>
    %248 = arith.truncf %247 : vector<16x256xf32> to vector<16x256xbf16>
    %c16_197 = arith.constant 16 : index
    %c0_198 = arith.constant 0 : index
    %249 = vector.load %arg7[%c16_197, %c0_198] : memref<144x256xbf16, #tpu.memory_space<vmem>>, vector<16x256xbf16>
    tpu.vector_store %arg7[%c16_197, %c0_198], %248 {strides = array<i32>} : memref<144x256xbf16, #tpu.memory_space<vmem>>, vector<16x256xbf16>,
    %c7_i32_199 = arith.constant 7 : i32
    %250 = tpu.dynamic_rotate %179 by %c7_i32_199 dim 1 : vector<16x256xf32>, i32 -> vector<16x256xf32>
    %c11_200 = arith.constant 11 : index
    %c0_201 = arith.constant 0 : index
    %c0_202 = arith.constant 0 : index
    %251 = vector.load %arg4[%c11_200, %c0_201, %c0_202] : memref<27x16x256xf32, #tpu.memory_space<vmem>>, vector<1x16x256xf32>
    %252 = vector.shape_cast %251 : vector<1x16x256xf32> to vector<16x256xf32>
    %253 = arith.mulf %250, %252 : vector<16x256xf32>
    %254 = arith.truncf %253 : vector<16x256xf32> to vector<16x256xbf16>
    %c32_203 = arith.constant 32 : index
    %c0_204 = arith.constant 0 : index
    %255 = vector.load %arg7[%c32_203, %c0_204] : memref<144x256xbf16, #tpu.memory_space<vmem>>, vector<16x256xbf16>
    tpu.vector_store %arg7[%c32_203, %c0_204], %254 {strides = array<i32>} : memref<144x256xbf16, #tpu.memory_space<vmem>>, vector<16x256xbf16>,
    %c1_i32_205 = arith.constant 1 : i32
    %256 = tpu.dynamic_rotate %179 by %c1_i32_205 dim 1 : vector<16x256xf32>, i32 -> vector<16x256xf32>
    %c12_206 = arith.constant 12 : index
    %c0_207 = arith.constant 0 : index
    %c0_208 = arith.constant 0 : index
    %257 = vector.load %arg4[%c12_206, %c0_207, %c0_208] : memref<27x16x256xf32, #tpu.memory_space<vmem>>, vector<1x16x256xf32>
    %258 = vector.shape_cast %257 : vector<1x16x256xf32> to vector<16x256xf32>
    %259 = arith.mulf %256, %258 : vector<16x256xf32>
    %260 = arith.truncf %259 : vector<16x256xf32> to vector<16x256xbf16>
    %c48_209 = arith.constant 48 : index
    %c0_210 = arith.constant 0 : index
    %261 = vector.load %arg7[%c48_209, %c0_210] : memref<144x256xbf16, #tpu.memory_space<vmem>>, vector<16x256xbf16>
    tpu.vector_store %arg7[%c48_209, %c0_210], %260 {strides = array<i32>} : memref<144x256xbf16, #tpu.memory_space<vmem>>, vector<16x256xbf16>,
    %262 = arith.truncf %179 : vector<16x256xf32> to vector<16x256xbf16>
    %c64_211 = arith.constant 64 : index
    %c0_212 = arith.constant 0 : index
    %263 = vector.load %arg7[%c64_211, %c0_212] : memref<144x256xbf16, #tpu.memory_space<vmem>>, vector<16x256xbf16>
    tpu.vector_store %arg7[%c64_211, %c0_212], %262 {strides = array<i32>} : memref<144x256xbf16, #tpu.memory_space<vmem>>, vector<16x256xbf16>,
    %c255_i32_213 = arith.constant 255 : i32
    %264 = tpu.dynamic_rotate %179 by %c255_i32_213 dim 1 : vector<16x256xf32>, i32 -> vector<16x256xf32>
    %c14_214 = arith.constant 14 : index
    %c0_215 = arith.constant 0 : index
    %c0_216 = arith.constant 0 : index
    %265 = vector.load %arg4[%c14_214, %c0_215, %c0_216] : memref<27x16x256xf32, #tpu.memory_space<vmem>>, vector<1x16x256xf32>
    %266 = vector.shape_cast %265 : vector<1x16x256xf32> to vector<16x256xf32>
    %267 = arith.mulf %264, %266 : vector<16x256xf32>
    %268 = arith.truncf %267 : vector<16x256xf32> to vector<16x256xbf16>
    %c80_217 = arith.constant 80 : index
    %c0_218 = arith.constant 0 : index
    %269 = vector.load %arg7[%c80_217, %c0_218] : memref<144x256xbf16, #tpu.memory_space<vmem>>, vector<16x256xbf16>
    tpu.vector_store %arg7[%c80_217, %c0_218], %268 {strides = array<i32>} : memref<144x256xbf16, #tpu.memory_space<vmem>>, vector<16x256xbf16>,
    %c249_i32_219 = arith.constant 249 : i32
    %270 = tpu.dynamic_rotate %179 by %c249_i32_219 dim 1 : vector<16x256xf32>, i32 -> vector<16x256xf32>
    %c15_220 = arith.constant 15 : index
    %c0_221 = arith.constant 0 : index
    %c0_222 = arith.constant 0 : index
    %271 = vector.load %arg4[%c15_220, %c0_221, %c0_222] : memref<27x16x256xf32, #tpu.memory_space<vmem>>, vector<1x16x256xf32>
    %272 = vector.shape_cast %271 : vector<1x16x256xf32> to vector<16x256xf32>
    %273 = arith.mulf %270, %272 : vector<16x256xf32>
    %274 = arith.truncf %273 : vector<16x256xf32> to vector<16x256xbf16>
    %c96_223 = arith.constant 96 : index
    %c0_224 = arith.constant 0 : index
    %275 = vector.load %arg7[%c96_223, %c0_224] : memref<144x256xbf16, #tpu.memory_space<vmem>>, vector<16x256xbf16>
    tpu.vector_store %arg7[%c96_223, %c0_224], %274 {strides = array<i32>} : memref<144x256xbf16, #tpu.memory_space<vmem>>, vector<16x256xbf16>,
    %c248_i32_225 = arith.constant 248 : i32
    %276 = tpu.dynamic_rotate %179 by %c248_i32_225 dim 1 : vector<16x256xf32>, i32 -> vector<16x256xf32>
    %c16_226 = arith.constant 16 : index
    %c0_227 = arith.constant 0 : index
    %c0_228 = arith.constant 0 : index
    %277 = vector.load %arg4[%c16_226, %c0_227, %c0_228] : memref<27x16x256xf32, #tpu.memory_space<vmem>>, vector<1x16x256xf32>
    %278 = vector.shape_cast %277 : vector<1x16x256xf32> to vector<16x256xf32>
    %279 = arith.mulf %276, %278 : vector<16x256xf32>
    %280 = arith.truncf %279 : vector<16x256xf32> to vector<16x256xbf16>
    %c112_229 = arith.constant 112 : index
    %c0_230 = arith.constant 0 : index
    %281 = vector.load %arg7[%c112_229, %c0_230] : memref<144x256xbf16, #tpu.memory_space<vmem>>, vector<16x256xbf16>
    tpu.vector_store %arg7[%c112_229, %c0_230], %280 {strides = array<i32>} : memref<144x256xbf16, #tpu.memory_space<vmem>>, vector<16x256xbf16>,
    %c247_i32_231 = arith.constant 247 : i32
    %282 = tpu.dynamic_rotate %179 by %c247_i32_231 dim 1 : vector<16x256xf32>, i32 -> vector<16x256xf32>
    %c17_232 = arith.constant 17 : index
    %c0_233 = arith.constant 0 : index
    %c0_234 = arith.constant 0 : index
    %283 = vector.load %arg4[%c17_232, %c0_233, %c0_234] : memref<27x16x256xf32, #tpu.memory_space<vmem>>, vector<1x16x256xf32>
    %284 = vector.shape_cast %283 : vector<1x16x256xf32> to vector<16x256xf32>
    %285 = arith.mulf %282, %284 : vector<16x256xf32>
    %286 = arith.truncf %285 : vector<16x256xf32> to vector<16x256xbf16>
    %c128_235 = arith.constant 128 : index
    %c0_236 = arith.constant 0 : index
    %287 = vector.load %arg7[%c128_235, %c0_236] : memref<144x256xbf16, #tpu.memory_space<vmem>>, vector<16x256xbf16>
    tpu.vector_store %arg7[%c128_235, %c0_236], %286 {strides = array<i32>} : memref<144x256xbf16, #tpu.memory_space<vmem>>, vector<16x256xbf16>,
    %c1_237 = arith.constant 1 : index
    %c1_238 = arith.constant 1 : index
    %c0_239 = arith.constant 0 : index
    %c0_240 = arith.constant 0 : index
    %288 = vector.load %arg2[%c1_237, %c1_238, %c0_239, %c0_240] : memref<7x3x16x144xbf16, #tpu.memory_space<vmem>>, vector<1x1x16x144xbf16>
    %289 = vector.shape_cast %288 : vector<1x1x16x144xbf16> to vector<16x144xbf16>
    %c0_241 = arith.constant 0 : index
    %c0_242 = arith.constant 0 : index
    %290 = vector.load %arg7[%c0_241, %c0_242] : memref<144x256xbf16, #tpu.memory_space<vmem>>, vector<144x256xbf16>
    %cst_243 = arith.constant dense<0.000000e+00> : vector<16x256xf32>
    %291 = tpu.matmul %289, %290, %cst_243 {dimension_numbers = #tpu.dot_dimension_numbers<[1], [0], [0], [1], [0, 0, 1, 1], [], []>} : vector<16x144xbf16>, vector<144x256xbf16>, vector<16x256xf32> -> vector<16x256xf32>
    %292 = arith.addf %237, %291 : vector<16x256xf32>
    %c201_i32_244 = arith.constant 201 : i32
    %293 = tpu.dynamic_rotate %179 by %c201_i32_244 dim 1 : vector<16x256xf32>, i32 -> vector<16x256xf32>
    %c18_245 = arith.constant 18 : index
    %c0_246 = arith.constant 0 : index
    %c0_247 = arith.constant 0 : index
    %294 = vector.load %arg4[%c18_245, %c0_246, %c0_247] : memref<27x16x256xf32, #tpu.memory_space<vmem>>, vector<1x16x256xf32>
    %295 = vector.shape_cast %294 : vector<1x16x256xf32> to vector<16x256xf32>
    %296 = arith.mulf %293, %295 : vector<16x256xf32>
    %297 = arith.truncf %296 : vector<16x256xf32> to vector<16x256xbf16>
    %c0_248 = arith.constant 0 : index
    %c0_249 = arith.constant 0 : index
    %298 = vector.load %arg8[%c0_248, %c0_249] : memref<144x256xbf16, #tpu.memory_space<vmem>>, vector<16x256xbf16>
    tpu.vector_store %arg8[%c0_248, %c0_249], %297 {strides = array<i32>} : memref<144x256xbf16, #tpu.memory_space<vmem>>, vector<16x256xbf16>,
    %c200_i32_250 = arith.constant 200 : i32
    %299 = tpu.dynamic_rotate %179 by %c200_i32_250 dim 1 : vector<16x256xf32>, i32 -> vector<16x256xf32>
    %c19_251 = arith.constant 19 : index
    %c0_252 = arith.constant 0 : index
    %c0_253 = arith.constant 0 : index
    %300 = vector.load %arg4[%c19_251, %c0_252, %c0_253] : memref<27x16x256xf32, #tpu.memory_space<vmem>>, vector<1x16x256xf32>
    %301 = vector.shape_cast %300 : vector<1x16x256xf32> to vector<16x256xf32>
    %302 = arith.mulf %299, %301 : vector<16x256xf32>
    %303 = arith.truncf %302 : vector<16x256xf32> to vector<16x256xbf16>
    %c16_254 = arith.constant 16 : index
    %c0_255 = arith.constant 0 : index
    %304 = vector.load %arg8[%c16_254, %c0_255] : memref<144x256xbf16, #tpu.memory_space<vmem>>, vector<16x256xbf16>
    tpu.vector_store %arg8[%c16_254, %c0_255], %303 {strides = array<i32>} : memref<144x256xbf16, #tpu.memory_space<vmem>>, vector<16x256xbf16>,
    %c199_i32_256 = arith.constant 199 : i32
    %305 = tpu.dynamic_rotate %179 by %c199_i32_256 dim 1 : vector<16x256xf32>, i32 -> vector<16x256xf32>
    %c20_257 = arith.constant 20 : index
    %c0_258 = arith.constant 0 : index
    %c0_259 = arith.constant 0 : index
    %306 = vector.load %arg4[%c20_257, %c0_258, %c0_259] : memref<27x16x256xf32, #tpu.memory_space<vmem>>, vector<1x16x256xf32>
    %307 = vector.shape_cast %306 : vector<1x16x256xf32> to vector<16x256xf32>
    %308 = arith.mulf %305, %307 : vector<16x256xf32>
    %309 = arith.truncf %308 : vector<16x256xf32> to vector<16x256xbf16>
    %c32_260 = arith.constant 32 : index
    %c0_261 = arith.constant 0 : index
    %310 = vector.load %arg8[%c32_260, %c0_261] : memref<144x256xbf16, #tpu.memory_space<vmem>>, vector<16x256xbf16>
    tpu.vector_store %arg8[%c32_260, %c0_261], %309 {strides = array<i32>} : memref<144x256xbf16, #tpu.memory_space<vmem>>, vector<16x256xbf16>,
    %c193_i32_262 = arith.constant 193 : i32
    %311 = tpu.dynamic_rotate %179 by %c193_i32_262 dim 1 : vector<16x256xf32>, i32 -> vector<16x256xf32>
    %c21_263 = arith.constant 21 : index
    %c0_264 = arith.constant 0 : index
    %c0_265 = arith.constant 0 : index
    %312 = vector.load %arg4[%c21_263, %c0_264, %c0_265] : memref<27x16x256xf32, #tpu.memory_space<vmem>>, vector<1x16x256xf32>
    %313 = vector.shape_cast %312 : vector<1x16x256xf32> to vector<16x256xf32>
    %314 = arith.mulf %311, %313 : vector<16x256xf32>
    %315 = arith.truncf %314 : vector<16x256xf32> to vector<16x256xbf16>
    %c48_266 = arith.constant 48 : index
    %c0_267 = arith.constant 0 : index
    %316 = vector.load %arg8[%c48_266, %c0_267] : memref<144x256xbf16, #tpu.memory_space<vmem>>, vector<16x256xbf16>
    tpu.vector_store %arg8[%c48_266, %c0_267], %315 {strides = array<i32>} : memref<144x256xbf16, #tpu.memory_space<vmem>>, vector<16x256xbf16>,
    %c192_i32_268 = arith.constant 192 : i32
    %317 = tpu.dynamic_rotate %179 by %c192_i32_268 dim 1 : vector<16x256xf32>, i32 -> vector<16x256xf32>
    %c22_269 = arith.constant 22 : index
    %c0_270 = arith.constant 0 : index
    %c0_271 = arith.constant 0 : index
    %318 = vector.load %arg4[%c22_269, %c0_270, %c0_271] : memref<27x16x256xf32, #tpu.memory_space<vmem>>, vector<1x16x256xf32>
    %319 = vector.shape_cast %318 : vector<1x16x256xf32> to vector<16x256xf32>
    %320 = arith.mulf %317, %319 : vector<16x256xf32>
    %321 = arith.truncf %320 : vector<16x256xf32> to vector<16x256xbf16>
    %c64_272 = arith.constant 64 : index
    %c0_273 = arith.constant 0 : index
    %322 = vector.load %arg8[%c64_272, %c0_273] : memref<144x256xbf16, #tpu.memory_space<vmem>>, vector<16x256xbf16>
    tpu.vector_store %arg8[%c64_272, %c0_273], %321 {strides = array<i32>} : memref<144x256xbf16, #tpu.memory_space<vmem>>, vector<16x256xbf16>,
    %c191_i32_274 = arith.constant 191 : i32
    %323 = tpu.dynamic_rotate %179 by %c191_i32_274 dim 1 : vector<16x256xf32>, i32 -> vector<16x256xf32>
    %c23_275 = arith.constant 23 : index
    %c0_276 = arith.constant 0 : index
    %c0_277 = arith.constant 0 : index
    %324 = vector.load %arg4[%c23_275, %c0_276, %c0_277] : memref<27x16x256xf32, #tpu.memory_space<vmem>>, vector<1x16x256xf32>
    %325 = vector.shape_cast %324 : vector<1x16x256xf32> to vector<16x256xf32>
    %326 = arith.mulf %323, %325 : vector<16x256xf32>
    %327 = arith.truncf %326 : vector<16x256xf32> to vector<16x256xbf16>
    %c80_278 = arith.constant 80 : index
    %c0_279 = arith.constant 0 : index
    %328 = vector.load %arg8[%c80_278, %c0_279] : memref<144x256xbf16, #tpu.memory_space<vmem>>, vector<16x256xbf16>
    tpu.vector_store %arg8[%c80_278, %c0_279], %327 {strides = array<i32>} : memref<144x256xbf16, #tpu.memory_space<vmem>>, vector<16x256xbf16>,
    %c185_i32_280 = arith.constant 185 : i32
    %329 = tpu.dynamic_rotate %179 by %c185_i32_280 dim 1 : vector<16x256xf32>, i32 -> vector<16x256xf32>
    %c24_281 = arith.constant 24 : index
    %c0_282 = arith.constant 0 : index
    %c0_283 = arith.constant 0 : index
    %330 = vector.load %arg4[%c24_281, %c0_282, %c0_283] : memref<27x16x256xf32, #tpu.memory_space<vmem>>, vector<1x16x256xf32>
    %331 = vector.shape_cast %330 : vector<1x16x256xf32> to vector<16x256xf32>
    %332 = arith.mulf %329, %331 : vector<16x256xf32>
    %333 = arith.truncf %332 : vector<16x256xf32> to vector<16x256xbf16>
    %c96_284 = arith.constant 96 : index
    %c0_285 = arith.constant 0 : index
    %334 = vector.load %arg8[%c96_284, %c0_285] : memref<144x256xbf16, #tpu.memory_space<vmem>>, vector<16x256xbf16>
    tpu.vector_store %arg8[%c96_284, %c0_285], %333 {strides = array<i32>} : memref<144x256xbf16, #tpu.memory_space<vmem>>, vector<16x256xbf16>,
    %c184_i32_286 = arith.constant 184 : i32
    %335 = tpu.dynamic_rotate %179 by %c184_i32_286 dim 1 : vector<16x256xf32>, i32 -> vector<16x256xf32>
    %c25_287 = arith.constant 25 : index
    %c0_288 = arith.constant 0 : index
    %c0_289 = arith.constant 0 : index
    %336 = vector.load %arg4[%c25_287, %c0_288, %c0_289] : memref<27x16x256xf32, #tpu.memory_space<vmem>>, vector<1x16x256xf32>
    %337 = vector.shape_cast %336 : vector<1x16x256xf32> to vector<16x256xf32>
    %338 = arith.mulf %335, %337 : vector<16x256xf32>
    %339 = arith.truncf %338 : vector<16x256xf32> to vector<16x256xbf16>
    %c112_290 = arith.constant 112 : index
    %c0_291 = arith.constant 0 : index
    %340 = vector.load %arg8[%c112_290, %c0_291] : memref<144x256xbf16, #tpu.memory_space<vmem>>, vector<16x256xbf16>
    tpu.vector_store %arg8[%c112_290, %c0_291], %339 {strides = array<i32>} : memref<144x256xbf16, #tpu.memory_space<vmem>>, vector<16x256xbf16>,
    %c183_i32_292 = arith.constant 183 : i32
    %341 = tpu.dynamic_rotate %179 by %c183_i32_292 dim 1 : vector<16x256xf32>, i32 -> vector<16x256xf32>
    %c26_293 = arith.constant 26 : index
    %c0_294 = arith.constant 0 : index
    %c0_295 = arith.constant 0 : index
    %342 = vector.load %arg4[%c26_293, %c0_294, %c0_295] : memref<27x16x256xf32, #tpu.memory_space<vmem>>, vector<1x16x256xf32>
    %343 = vector.shape_cast %342 : vector<1x16x256xf32> to vector<16x256xf32>
    %344 = arith.mulf %341, %343 : vector<16x256xf32>
    %345 = arith.truncf %344 : vector<16x256xf32> to vector<16x256xbf16>
    %c128_296 = arith.constant 128 : index
    %c0_297 = arith.constant 0 : index
    %346 = vector.load %arg8[%c128_296, %c0_297] : memref<144x256xbf16, #tpu.memory_space<vmem>>, vector<16x256xbf16>
    tpu.vector_store %arg8[%c128_296, %c0_297], %345 {strides = array<i32>} : memref<144x256xbf16, #tpu.memory_space<vmem>>, vector<16x256xbf16>,
    %c1_298 = arith.constant 1 : index
    %c2_299 = arith.constant 2 : index
    %c0_300 = arith.constant 0 : index
    %c0_301 = arith.constant 0 : index
    %347 = vector.load %arg2[%c1_298, %c2_299, %c0_300, %c0_301] : memref<7x3x16x144xbf16, #tpu.memory_space<vmem>>, vector<1x1x16x144xbf16>
    %348 = vector.shape_cast %347 : vector<1x1x16x144xbf16> to vector<16x144xbf16>
    %c0_302 = arith.constant 0 : index
    %c0_303 = arith.constant 0 : index
    %349 = vector.load %arg8[%c0_302, %c0_303] : memref<144x256xbf16, #tpu.memory_space<vmem>>, vector<144x256xbf16>
    %cst_304 = arith.constant dense<0.000000e+00> : vector<16x256xf32>
    %350 = tpu.matmul %348, %349, %cst_304 {dimension_numbers = #tpu.dot_dimension_numbers<[1], [0], [0], [1], [0, 0, 1, 1], [], []>} : vector<16x144xbf16>, vector<144x256xbf16>, vector<16x256xf32> -> vector<16x256xf32>
    %351 = arith.addf %292, %350 : vector<16x256xf32>
    %c1_305 = arith.constant 1 : index
    %c0_306 = arith.constant 0 : index
    %c0_307 = arith.constant 0 : index
    %352 = vector.load %arg3[%c1_305, %c0_306, %c0_307] : memref<7x16x1xf32, #tpu.memory_space<vmem>>, vector<1x16x1xf32>
    %353 = vector.shape_cast %352 : vector<1x16x1xf32> to vector<16x1xf32>
    %354 = vector.broadcast %353 : vector<16x1xf32> to vector<16x256xf32>
    %355 = arith.addf %351, %354 : vector<16x256xf32>
    %cst_308 = arith.constant 0.000000e+00 : f32
    %356 = vector.broadcast %cst_308 : f32 to vector<16x256xf32>
    %357 = arith.maximumf %355, %356 : vector<16x256xf32>
    %c73_i32_309 = arith.constant 73 : i32
    %358 = tpu.dynamic_rotate %357 by %c73_i32_309 dim 1 : vector<16x256xf32>, i32 -> vector<16x256xf32>
    %c0_310 = arith.constant 0 : index
    %c0_311 = arith.constant 0 : index
    %c0_312 = arith.constant 0 : index
    %359 = vector.load %arg4[%c0_310, %c0_311, %c0_312] : memref<27x16x256xf32, #tpu.memory_space<vmem>>, vector<1x16x256xf32>
    %360 = vector.shape_cast %359 : vector<1x16x256xf32> to vector<16x256xf32>
    %361 = arith.mulf %358, %360 : vector<16x256xf32>
    %362 = arith.truncf %361 : vector<16x256xf32> to vector<16x256xbf16>
    %c0_313 = arith.constant 0 : index
    %c0_314 = arith.constant 0 : index
    %363 = vector.load %arg6[%c0_313, %c0_314] : memref<144x256xbf16, #tpu.memory_space<vmem>>, vector<16x256xbf16>
    tpu.vector_store %arg6[%c0_313, %c0_314], %362 {strides = array<i32>} : memref<144x256xbf16, #tpu.memory_space<vmem>>, vector<16x256xbf16>,
    %c72_i32_315 = arith.constant 72 : i32
    %364 = tpu.dynamic_rotate %357 by %c72_i32_315 dim 1 : vector<16x256xf32>, i32 -> vector<16x256xf32>
    %c1_316 = arith.constant 1 : index
    %c0_317 = arith.constant 0 : index
    %c0_318 = arith.constant 0 : index
    %365 = vector.load %arg4[%c1_316, %c0_317, %c0_318] : memref<27x16x256xf32, #tpu.memory_space<vmem>>, vector<1x16x256xf32>
    %366 = vector.shape_cast %365 : vector<1x16x256xf32> to vector<16x256xf32>
    %367 = arith.mulf %364, %366 : vector<16x256xf32>
    %368 = arith.truncf %367 : vector<16x256xf32> to vector<16x256xbf16>
    %c16_319 = arith.constant 16 : index
    %c0_320 = arith.constant 0 : index
    %369 = vector.load %arg6[%c16_319, %c0_320] : memref<144x256xbf16, #tpu.memory_space<vmem>>, vector<16x256xbf16>
    tpu.vector_store %arg6[%c16_319, %c0_320], %368 {strides = array<i32>} : memref<144x256xbf16, #tpu.memory_space<vmem>>, vector<16x256xbf16>,
    %c71_i32_321 = arith.constant 71 : i32
    %370 = tpu.dynamic_rotate %357 by %c71_i32_321 dim 1 : vector<16x256xf32>, i32 -> vector<16x256xf32>
    %c2_322 = arith.constant 2 : index
    %c0_323 = arith.constant 0 : index
    %c0_324 = arith.constant 0 : index
    %371 = vector.load %arg4[%c2_322, %c0_323, %c0_324] : memref<27x16x256xf32, #tpu.memory_space<vmem>>, vector<1x16x256xf32>
    %372 = vector.shape_cast %371 : vector<1x16x256xf32> to vector<16x256xf32>
    %373 = arith.mulf %370, %372 : vector<16x256xf32>
    %374 = arith.truncf %373 : vector<16x256xf32> to vector<16x256xbf16>
    %c32_325 = arith.constant 32 : index
    %c0_326 = arith.constant 0 : index
    %375 = vector.load %arg6[%c32_325, %c0_326] : memref<144x256xbf16, #tpu.memory_space<vmem>>, vector<16x256xbf16>
    tpu.vector_store %arg6[%c32_325, %c0_326], %374 {strides = array<i32>} : memref<144x256xbf16, #tpu.memory_space<vmem>>, vector<16x256xbf16>,
    %c65_i32_327 = arith.constant 65 : i32
    %376 = tpu.dynamic_rotate %357 by %c65_i32_327 dim 1 : vector<16x256xf32>, i32 -> vector<16x256xf32>
    %c3_328 = arith.constant 3 : index
    %c0_329 = arith.constant 0 : index
    %c0_330 = arith.constant 0 : index
    %377 = vector.load %arg4[%c3_328, %c0_329, %c0_330] : memref<27x16x256xf32, #tpu.memory_space<vmem>>, vector<1x16x256xf32>
    %378 = vector.shape_cast %377 : vector<1x16x256xf32> to vector<16x256xf32>
    %379 = arith.mulf %376, %378 : vector<16x256xf32>
    %380 = arith.truncf %379 : vector<16x256xf32> to vector<16x256xbf16>
    %c48_331 = arith.constant 48 : index
    %c0_332 = arith.constant 0 : index
    %381 = vector.load %arg6[%c48_331, %c0_332] : memref<144x256xbf16, #tpu.memory_space<vmem>>, vector<16x256xbf16>
    tpu.vector_store %arg6[%c48_331, %c0_332], %380 {strides = array<i32>} : memref<144x256xbf16, #tpu.memory_space<vmem>>, vector<16x256xbf16>,
    %c64_i32_333 = arith.constant 64 : i32
    %382 = tpu.dynamic_rotate %357 by %c64_i32_333 dim 1 : vector<16x256xf32>, i32 -> vector<16x256xf32>
    %c4_334 = arith.constant 4 : index
    %c0_335 = arith.constant 0 : index
    %c0_336 = arith.constant 0 : index
    %383 = vector.load %arg4[%c4_334, %c0_335, %c0_336] : memref<27x16x256xf32, #tpu.memory_space<vmem>>, vector<1x16x256xf32>
    %384 = vector.shape_cast %383 : vector<1x16x256xf32> to vector<16x256xf32>
    %385 = arith.mulf %382, %384 : vector<16x256xf32>
    %386 = arith.truncf %385 : vector<16x256xf32> to vector<16x256xbf16>
    %c64_337 = arith.constant 64 : index
    %c0_338 = arith.constant 0 : index
    %387 = vector.load %arg6[%c64_337, %c0_338] : memref<144x256xbf16, #tpu.memory_space<vmem>>, vector<16x256xbf16>
    tpu.vector_store %arg6[%c64_337, %c0_338], %386 {strides = array<i32>} : memref<144x256xbf16, #tpu.memory_space<vmem>>, vector<16x256xbf16>,
    %c63_i32_339 = arith.constant 63 : i32
    %388 = tpu.dynamic_rotate %357 by %c63_i32_339 dim 1 : vector<16x256xf32>, i32 -> vector<16x256xf32>
    %c5_340 = arith.constant 5 : index
    %c0_341 = arith.constant 0 : index
    %c0_342 = arith.constant 0 : index
    %389 = vector.load %arg4[%c5_340, %c0_341, %c0_342] : memref<27x16x256xf32, #tpu.memory_space<vmem>>, vector<1x16x256xf32>
    %390 = vector.shape_cast %389 : vector<1x16x256xf32> to vector<16x256xf32>
    %391 = arith.mulf %388, %390 : vector<16x256xf32>
    %392 = arith.truncf %391 : vector<16x256xf32> to vector<16x256xbf16>
    %c80_343 = arith.constant 80 : index
    %c0_344 = arith.constant 0 : index
    %393 = vector.load %arg6[%c80_343, %c0_344] : memref<144x256xbf16, #tpu.memory_space<vmem>>, vector<16x256xbf16>
    tpu.vector_store %arg6[%c80_343, %c0_344], %392 {strides = array<i32>} : memref<144x256xbf16, #tpu.memory_space<vmem>>, vector<16x256xbf16>,
    %c57_i32_345 = arith.constant 57 : i32
    %394 = tpu.dynamic_rotate %357 by %c57_i32_345 dim 1 : vector<16x256xf32>, i32 -> vector<16x256xf32>
    %c6_346 = arith.constant 6 : index
    %c0_347 = arith.constant 0 : index
    %c0_348 = arith.constant 0 : index
    %395 = vector.load %arg4[%c6_346, %c0_347, %c0_348] : memref<27x16x256xf32, #tpu.memory_space<vmem>>, vector<1x16x256xf32>
    %396 = vector.shape_cast %395 : vector<1x16x256xf32> to vector<16x256xf32>
    %397 = arith.mulf %394, %396 : vector<16x256xf32>
    %398 = arith.truncf %397 : vector<16x256xf32> to vector<16x256xbf16>
    %c96_349 = arith.constant 96 : index
    %c0_350 = arith.constant 0 : index
    %399 = vector.load %arg6[%c96_349, %c0_350] : memref<144x256xbf16, #tpu.memory_space<vmem>>, vector<16x256xbf16>
    tpu.vector_store %arg6[%c96_349, %c0_350], %398 {strides = array<i32>} : memref<144x256xbf16, #tpu.memory_space<vmem>>, vector<16x256xbf16>,
    %c56_i32_351 = arith.constant 56 : i32
    %400 = tpu.dynamic_rotate %357 by %c56_i32_351 dim 1 : vector<16x256xf32>, i32 -> vector<16x256xf32>
    %c7_352 = arith.constant 7 : index
    %c0_353 = arith.constant 0 : index
    %c0_354 = arith.constant 0 : index
    %401 = vector.load %arg4[%c7_352, %c0_353, %c0_354] : memref<27x16x256xf32, #tpu.memory_space<vmem>>, vector<1x16x256xf32>
    %402 = vector.shape_cast %401 : vector<1x16x256xf32> to vector<16x256xf32>
    %403 = arith.mulf %400, %402 : vector<16x256xf32>
    %404 = arith.truncf %403 : vector<16x256xf32> to vector<16x256xbf16>
    %c112_355 = arith.constant 112 : index
    %c0_356 = arith.constant 0 : index
    %405 = vector.load %arg6[%c112_355, %c0_356] : memref<144x256xbf16, #tpu.memory_space<vmem>>, vector<16x256xbf16>
    tpu.vector_store %arg6[%c112_355, %c0_356], %404 {strides = array<i32>} : memref<144x256xbf16, #tpu.memory_space<vmem>>, vector<16x256xbf16>,
    %c55_i32_357 = arith.constant 55 : i32
    %406 = tpu.dynamic_rotate %357 by %c55_i32_357 dim 1 : vector<16x256xf32>, i32 -> vector<16x256xf32>
    %c8_358 = arith.constant 8 : index
    %c0_359 = arith.constant 0 : index
    %c0_360 = arith.constant 0 : index
    %407 = vector.load %arg4[%c8_358, %c0_359, %c0_360] : memref<27x16x256xf32, #tpu.memory_space<vmem>>, vector<1x16x256xf32>
    %408 = vector.shape_cast %407 : vector<1x16x256xf32> to vector<16x256xf32>
    %409 = arith.mulf %406, %408 : vector<16x256xf32>
    %410 = arith.truncf %409 : vector<16x256xf32> to vector<16x256xbf16>
    %c128_361 = arith.constant 128 : index
    %c0_362 = arith.constant 0 : index
    %411 = vector.load %arg6[%c128_361, %c0_362] : memref<144x256xbf16, #tpu.memory_space<vmem>>, vector<16x256xbf16>
    tpu.vector_store %arg6[%c128_361, %c0_362], %410 {strides = array<i32>} : memref<144x256xbf16, #tpu.memory_space<vmem>>, vector<16x256xbf16>,
    %c2_363 = arith.constant 2 : index
    %c0_364 = arith.constant 0 : index
    %c0_365 = arith.constant 0 : index
    %c0_366 = arith.constant 0 : index
    %412 = vector.load %arg2[%c2_363, %c0_364, %c0_365, %c0_366] : memref<7x3x16x144xbf16, #tpu.memory_space<vmem>>, vector<1x1x16x144xbf16>
    %413 = vector.shape_cast %412 : vector<1x1x16x144xbf16> to vector<16x144xbf16>
    %c0_367 = arith.constant 0 : index
    %c0_368 = arith.constant 0 : index
    %414 = vector.load %arg6[%c0_367, %c0_368] : memref<144x256xbf16, #tpu.memory_space<vmem>>, vector<144x256xbf16>
    %cst_369 = arith.constant dense<0.000000e+00> : vector<16x256xf32>
    %415 = tpu.matmul %413, %414, %cst_369 {dimension_numbers = #tpu.dot_dimension_numbers<[1], [0], [0], [1], [0, 0, 1, 1], [], []>} : vector<16x144xbf16>, vector<144x256xbf16>, vector<16x256xf32> -> vector<16x256xf32>
    %c9_i32_370 = arith.constant 9 : i32
    %416 = tpu.dynamic_rotate %357 by %c9_i32_370 dim 1 : vector<16x256xf32>, i32 -> vector<16x256xf32>
    %c9_371 = arith.constant 9 : index
    %c0_372 = arith.constant 0 : index
    %c0_373 = arith.constant 0 : index
    %417 = vector.load %arg4[%c9_371, %c0_372, %c0_373] : memref<27x16x256xf32, #tpu.memory_space<vmem>>, vector<1x16x256xf32>
    %418 = vector.shape_cast %417 : vector<1x16x256xf32> to vector<16x256xf32>
    %419 = arith.mulf %416, %418 : vector<16x256xf32>
    %420 = arith.truncf %419 : vector<16x256xf32> to vector<16x256xbf16>
    %c0_374 = arith.constant 0 : index
    %c0_375 = arith.constant 0 : index
    %421 = vector.load %arg7[%c0_374, %c0_375] : memref<144x256xbf16, #tpu.memory_space<vmem>>, vector<16x256xbf16>
    tpu.vector_store %arg7[%c0_374, %c0_375], %420 {strides = array<i32>} : memref<144x256xbf16, #tpu.memory_space<vmem>>, vector<16x256xbf16>,
    %c8_i32_376 = arith.constant 8 : i32
    %422 = tpu.dynamic_rotate %357 by %c8_i32_376 dim 1 : vector<16x256xf32>, i32 -> vector<16x256xf32>
    %c10_377 = arith.constant 10 : index
    %c0_378 = arith.constant 0 : index
    %c0_379 = arith.constant 0 : index
    %423 = vector.load %arg4[%c10_377, %c0_378, %c0_379] : memref<27x16x256xf32, #tpu.memory_space<vmem>>, vector<1x16x256xf32>
    %424 = vector.shape_cast %423 : vector<1x16x256xf32> to vector<16x256xf32>
    %425 = arith.mulf %422, %424 : vector<16x256xf32>
    %426 = arith.truncf %425 : vector<16x256xf32> to vector<16x256xbf16>
    %c16_380 = arith.constant 16 : index
    %c0_381 = arith.constant 0 : index
    %427 = vector.load %arg7[%c16_380, %c0_381] : memref<144x256xbf16, #tpu.memory_space<vmem>>, vector<16x256xbf16>
    tpu.vector_store %arg7[%c16_380, %c0_381], %426 {strides = array<i32>} : memref<144x256xbf16, #tpu.memory_space<vmem>>, vector<16x256xbf16>,
    %c7_i32_382 = arith.constant 7 : i32
    %428 = tpu.dynamic_rotate %357 by %c7_i32_382 dim 1 : vector<16x256xf32>, i32 -> vector<16x256xf32>
    %c11_383 = arith.constant 11 : index
    %c0_384 = arith.constant 0 : index
    %c0_385 = arith.constant 0 : index
    %429 = vector.load %arg4[%c11_383, %c0_384, %c0_385] : memref<27x16x256xf32, #tpu.memory_space<vmem>>, vector<1x16x256xf32>
    %430 = vector.shape_cast %429 : vector<1x16x256xf32> to vector<16x256xf32>
    %431 = arith.mulf %428, %430 : vector<16x256xf32>
    %432 = arith.truncf %431 : vector<16x256xf32> to vector<16x256xbf16>
    %c32_386 = arith.constant 32 : index
    %c0_387 = arith.constant 0 : index
    %433 = vector.load %arg7[%c32_386, %c0_387] : memref<144x256xbf16, #tpu.memory_space<vmem>>, vector<16x256xbf16>
    tpu.vector_store %arg7[%c32_386, %c0_387], %432 {strides = array<i32>} : memref<144x256xbf16, #tpu.memory_space<vmem>>, vector<16x256xbf16>,
    %c1_i32_388 = arith.constant 1 : i32
    %434 = tpu.dynamic_rotate %357 by %c1_i32_388 dim 1 : vector<16x256xf32>, i32 -> vector<16x256xf32>
    %c12_389 = arith.constant 12 : index
    %c0_390 = arith.constant 0 : index
    %c0_391 = arith.constant 0 : index
    %435 = vector.load %arg4[%c12_389, %c0_390, %c0_391] : memref<27x16x256xf32, #tpu.memory_space<vmem>>, vector<1x16x256xf32>
    %436 = vector.shape_cast %435 : vector<1x16x256xf32> to vector<16x256xf32>
    %437 = arith.mulf %434, %436 : vector<16x256xf32>
    %438 = arith.truncf %437 : vector<16x256xf32> to vector<16x256xbf16>
    %c48_392 = arith.constant 48 : index
    %c0_393 = arith.constant 0 : index
    %439 = vector.load %arg7[%c48_392, %c0_393] : memref<144x256xbf16, #tpu.memory_space<vmem>>, vector<16x256xbf16>
    tpu.vector_store %arg7[%c48_392, %c0_393], %438 {strides = array<i32>} : memref<144x256xbf16, #tpu.memory_space<vmem>>, vector<16x256xbf16>,
    %440 = arith.truncf %357 : vector<16x256xf32> to vector<16x256xbf16>
    %c64_394 = arith.constant 64 : index
    %c0_395 = arith.constant 0 : index
    %441 = vector.load %arg7[%c64_394, %c0_395] : memref<144x256xbf16, #tpu.memory_space<vmem>>, vector<16x256xbf16>
    tpu.vector_store %arg7[%c64_394, %c0_395], %440 {strides = array<i32>} : memref<144x256xbf16, #tpu.memory_space<vmem>>, vector<16x256xbf16>,
    %c255_i32_396 = arith.constant 255 : i32
    %442 = tpu.dynamic_rotate %357 by %c255_i32_396 dim 1 : vector<16x256xf32>, i32 -> vector<16x256xf32>
    %c14_397 = arith.constant 14 : index
    %c0_398 = arith.constant 0 : index
    %c0_399 = arith.constant 0 : index
    %443 = vector.load %arg4[%c14_397, %c0_398, %c0_399] : memref<27x16x256xf32, #tpu.memory_space<vmem>>, vector<1x16x256xf32>
    %444 = vector.shape_cast %443 : vector<1x16x256xf32> to vector<16x256xf32>
    %445 = arith.mulf %442, %444 : vector<16x256xf32>
    %446 = arith.truncf %445 : vector<16x256xf32> to vector<16x256xbf16>
    %c80_400 = arith.constant 80 : index
    %c0_401 = arith.constant 0 : index
    %447 = vector.load %arg7[%c80_400, %c0_401] : memref<144x256xbf16, #tpu.memory_space<vmem>>, vector<16x256xbf16>
    tpu.vector_store %arg7[%c80_400, %c0_401], %446 {strides = array<i32>} : memref<144x256xbf16, #tpu.memory_space<vmem>>, vector<16x256xbf16>,
    %c249_i32_402 = arith.constant 249 : i32
    %448 = tpu.dynamic_rotate %357 by %c249_i32_402 dim 1 : vector<16x256xf32>, i32 -> vector<16x256xf32>
    %c15_403 = arith.constant 15 : index
    %c0_404 = arith.constant 0 : index
    %c0_405 = arith.constant 0 : index
    %449 = vector.load %arg4[%c15_403, %c0_404, %c0_405] : memref<27x16x256xf32, #tpu.memory_space<vmem>>, vector<1x16x256xf32>
    %450 = vector.shape_cast %449 : vector<1x16x256xf32> to vector<16x256xf32>
    %451 = arith.mulf %448, %450 : vector<16x256xf32>
    %452 = arith.truncf %451 : vector<16x256xf32> to vector<16x256xbf16>
    %c96_406 = arith.constant 96 : index
    %c0_407 = arith.constant 0 : index
    %453 = vector.load %arg7[%c96_406, %c0_407] : memref<144x256xbf16, #tpu.memory_space<vmem>>, vector<16x256xbf16>
    tpu.vector_store %arg7[%c96_406, %c0_407], %452 {strides = array<i32>} : memref<144x256xbf16, #tpu.memory_space<vmem>>, vector<16x256xbf16>,
    %c248_i32_408 = arith.constant 248 : i32
    %454 = tpu.dynamic_rotate %357 by %c248_i32_408 dim 1 : vector<16x256xf32>, i32 -> vector<16x256xf32>
    %c16_409 = arith.constant 16 : index
    %c0_410 = arith.constant 0 : index
    %c0_411 = arith.constant 0 : index
    %455 = vector.load %arg4[%c16_409, %c0_410, %c0_411] : memref<27x16x256xf32, #tpu.memory_space<vmem>>, vector<1x16x256xf32>
    %456 = vector.shape_cast %455 : vector<1x16x256xf32> to vector<16x256xf32>
    %457 = arith.mulf %454, %456 : vector<16x256xf32>
    %458 = arith.truncf %457 : vector<16x256xf32> to vector<16x256xbf16>
    %c112_412 = arith.constant 112 : index
    %c0_413 = arith.constant 0 : index
    %459 = vector.load %arg7[%c112_412, %c0_413] : memref<144x256xbf16, #tpu.memory_space<vmem>>, vector<16x256xbf16>
    tpu.vector_store %arg7[%c112_412, %c0_413], %458 {strides = array<i32>} : memref<144x256xbf16, #tpu.memory_space<vmem>>, vector<16x256xbf16>,
    %c247_i32_414 = arith.constant 247 : i32
    %460 = tpu.dynamic_rotate %357 by %c247_i32_414 dim 1 : vector<16x256xf32>, i32 -> vector<16x256xf32>
    %c17_415 = arith.constant 17 : index
    %c0_416 = arith.constant 0 : index
    %c0_417 = arith.constant 0 : index
    %461 = vector.load %arg4[%c17_415, %c0_416, %c0_417] : memref<27x16x256xf32, #tpu.memory_space<vmem>>, vector<1x16x256xf32>
    %462 = vector.shape_cast %461 : vector<1x16x256xf32> to vector<16x256xf32>
    %463 = arith.mulf %460, %462 : vector<16x256xf32>
    %464 = arith.truncf %463 : vector<16x256xf32> to vector<16x256xbf16>
    %c128_418 = arith.constant 128 : index
    %c0_419 = arith.constant 0 : index
    %465 = vector.load %arg7[%c128_418, %c0_419] : memref<144x256xbf16, #tpu.memory_space<vmem>>, vector<16x256xbf16>
    tpu.vector_store %arg7[%c128_418, %c0_419], %464 {strides = array<i32>} : memref<144x256xbf16, #tpu.memory_space<vmem>>, vector<16x256xbf16>,
    %c2_420 = arith.constant 2 : index
    %c1_421 = arith.constant 1 : index
    %c0_422 = arith.constant 0 : index
    %c0_423 = arith.constant 0 : index
    %466 = vector.load %arg2[%c2_420, %c1_421, %c0_422, %c0_423] : memref<7x3x16x144xbf16, #tpu.memory_space<vmem>>, vector<1x1x16x144xbf16>
    %467 = vector.shape_cast %466 : vector<1x1x16x144xbf16> to vector<16x144xbf16>
    %c0_424 = arith.constant 0 : index
    %c0_425 = arith.constant 0 : index
    %468 = vector.load %arg7[%c0_424, %c0_425] : memref<144x256xbf16, #tpu.memory_space<vmem>>, vector<144x256xbf16>
    %cst_426 = arith.constant dense<0.000000e+00> : vector<16x256xf32>
    %469 = tpu.matmul %467, %468, %cst_426 {dimension_numbers = #tpu.dot_dimension_numbers<[1], [0], [0], [1], [0, 0, 1, 1], [], []>} : vector<16x144xbf16>, vector<144x256xbf16>, vector<16x256xf32> -> vector<16x256xf32>
    %470 = arith.addf %415, %469 : vector<16x256xf32>
    %c201_i32_427 = arith.constant 201 : i32
    %471 = tpu.dynamic_rotate %357 by %c201_i32_427 dim 1 : vector<16x256xf32>, i32 -> vector<16x256xf32>
    %c18_428 = arith.constant 18 : index
    %c0_429 = arith.constant 0 : index
    %c0_430 = arith.constant 0 : index
    %472 = vector.load %arg4[%c18_428, %c0_429, %c0_430] : memref<27x16x256xf32, #tpu.memory_space<vmem>>, vector<1x16x256xf32>
    %473 = vector.shape_cast %472 : vector<1x16x256xf32> to vector<16x256xf32>
    %474 = arith.mulf %471, %473 : vector<16x256xf32>
    %475 = arith.truncf %474 : vector<16x256xf32> to vector<16x256xbf16>
    %c0_431 = arith.constant 0 : index
    %c0_432 = arith.constant 0 : index
    %476 = vector.load %arg8[%c0_431, %c0_432] : memref<144x256xbf16, #tpu.memory_space<vmem>>, vector<16x256xbf16>
    tpu.vector_store %arg8[%c0_431, %c0_432], %475 {strides = array<i32>} : memref<144x256xbf16, #tpu.memory_space<vmem>>, vector<16x256xbf16>,
    %c200_i32_433 = arith.constant 200 : i32
    %477 = tpu.dynamic_rotate %357 by %c200_i32_433 dim 1 : vector<16x256xf32>, i32 -> vector<16x256xf32>
    %c19_434 = arith.constant 19 : index
    %c0_435 = arith.constant 0 : index
    %c0_436 = arith.constant 0 : index
    %478 = vector.load %arg4[%c19_434, %c0_435, %c0_436] : memref<27x16x256xf32, #tpu.memory_space<vmem>>, vector<1x16x256xf32>
    %479 = vector.shape_cast %478 : vector<1x16x256xf32> to vector<16x256xf32>
    %480 = arith.mulf %477, %479 : vector<16x256xf32>
    %481 = arith.truncf %480 : vector<16x256xf32> to vector<16x256xbf16>
    %c16_437 = arith.constant 16 : index
    %c0_438 = arith.constant 0 : index
    %482 = vector.load %arg8[%c16_437, %c0_438] : memref<144x256xbf16, #tpu.memory_space<vmem>>, vector<16x256xbf16>
    tpu.vector_store %arg8[%c16_437, %c0_438], %481 {strides = array<i32>} : memref<144x256xbf16, #tpu.memory_space<vmem>>, vector<16x256xbf16>,
    %c199_i32_439 = arith.constant 199 : i32
    %483 = tpu.dynamic_rotate %357 by %c199_i32_439 dim 1 : vector<16x256xf32>, i32 -> vector<16x256xf32>
    %c20_440 = arith.constant 20 : index
    %c0_441 = arith.constant 0 : index
    %c0_442 = arith.constant 0 : index
    %484 = vector.load %arg4[%c20_440, %c0_441, %c0_442] : memref<27x16x256xf32, #tpu.memory_space<vmem>>, vector<1x16x256xf32>
    %485 = vector.shape_cast %484 : vector<1x16x256xf32> to vector<16x256xf32>
    %486 = arith.mulf %483, %485 : vector<16x256xf32>
    %487 = arith.truncf %486 : vector<16x256xf32> to vector<16x256xbf16>
    %c32_443 = arith.constant 32 : index
    %c0_444 = arith.constant 0 : index
    %488 = vector.load %arg8[%c32_443, %c0_444] : memref<144x256xbf16, #tpu.memory_space<vmem>>, vector<16x256xbf16>
    tpu.vector_store %arg8[%c32_443, %c0_444], %487 {strides = array<i32>} : memref<144x256xbf16, #tpu.memory_space<vmem>>, vector<16x256xbf16>,
    %c193_i32_445 = arith.constant 193 : i32
    %489 = tpu.dynamic_rotate %357 by %c193_i32_445 dim 1 : vector<16x256xf32>, i32 -> vector<16x256xf32>
    %c21_446 = arith.constant 21 : index
    %c0_447 = arith.constant 0 : index
    %c0_448 = arith.constant 0 : index
    %490 = vector.load %arg4[%c21_446, %c0_447, %c0_448] : memref<27x16x256xf32, #tpu.memory_space<vmem>>, vector<1x16x256xf32>
    %491 = vector.shape_cast %490 : vector<1x16x256xf32> to vector<16x256xf32>
    %492 = arith.mulf %489, %491 : vector<16x256xf32>
    %493 = arith.truncf %492 : vector<16x256xf32> to vector<16x256xbf16>
    %c48_449 = arith.constant 48 : index
    %c0_450 = arith.constant 0 : index
    %494 = vector.load %arg8[%c48_449, %c0_450] : memref<144x256xbf16, #tpu.memory_space<vmem>>, vector<16x256xbf16>
    tpu.vector_store %arg8[%c48_449, %c0_450], %493 {strides = array<i32>} : memref<144x256xbf16, #tpu.memory_space<vmem>>, vector<16x256xbf16>,
    %c192_i32_451 = arith.constant 192 : i32
    %495 = tpu.dynamic_rotate %357 by %c192_i32_451 dim 1 : vector<16x256xf32>, i32 -> vector<16x256xf32>
    %c22_452 = arith.constant 22 : index
    %c0_453 = arith.constant 0 : index
    %c0_454 = arith.constant 0 : index
    %496 = vector.load %arg4[%c22_452, %c0_453, %c0_454] : memref<27x16x256xf32, #tpu.memory_space<vmem>>, vector<1x16x256xf32>
    %497 = vector.shape_cast %496 : vector<1x16x256xf32> to vector<16x256xf32>
    %498 = arith.mulf %495, %497 : vector<16x256xf32>
    %499 = arith.truncf %498 : vector<16x256xf32> to vector<16x256xbf16>
    %c64_455 = arith.constant 64 : index
    %c0_456 = arith.constant 0 : index
    %500 = vector.load %arg8[%c64_455, %c0_456] : memref<144x256xbf16, #tpu.memory_space<vmem>>, vector<16x256xbf16>
    tpu.vector_store %arg8[%c64_455, %c0_456], %499 {strides = array<i32>} : memref<144x256xbf16, #tpu.memory_space<vmem>>, vector<16x256xbf16>,
    %c191_i32_457 = arith.constant 191 : i32
    %501 = tpu.dynamic_rotate %357 by %c191_i32_457 dim 1 : vector<16x256xf32>, i32 -> vector<16x256xf32>
    %c23_458 = arith.constant 23 : index
    %c0_459 = arith.constant 0 : index
    %c0_460 = arith.constant 0 : index
    %502 = vector.load %arg4[%c23_458, %c0_459, %c0_460] : memref<27x16x256xf32, #tpu.memory_space<vmem>>, vector<1x16x256xf32>
    %503 = vector.shape_cast %502 : vector<1x16x256xf32> to vector<16x256xf32>
    %504 = arith.mulf %501, %503 : vector<16x256xf32>
    %505 = arith.truncf %504 : vector<16x256xf32> to vector<16x256xbf16>
    %c80_461 = arith.constant 80 : index
    %c0_462 = arith.constant 0 : index
    %506 = vector.load %arg8[%c80_461, %c0_462] : memref<144x256xbf16, #tpu.memory_space<vmem>>, vector<16x256xbf16>
    tpu.vector_store %arg8[%c80_461, %c0_462], %505 {strides = array<i32>} : memref<144x256xbf16, #tpu.memory_space<vmem>>, vector<16x256xbf16>,
    %c185_i32_463 = arith.constant 185 : i32
    %507 = tpu.dynamic_rotate %357 by %c185_i32_463 dim 1 : vector<16x256xf32>, i32 -> vector<16x256xf32>
    %c24_464 = arith.constant 24 : index
    %c0_465 = arith.constant 0 : index
    %c0_466 = arith.constant 0 : index
    %508 = vector.load %arg4[%c24_464, %c0_465, %c0_466] : memref<27x16x256xf32, #tpu.memory_space<vmem>>, vector<1x16x256xf32>
    %509 = vector.shape_cast %508 : vector<1x16x256xf32> to vector<16x256xf32>
    %510 = arith.mulf %507, %509 : vector<16x256xf32>
    %511 = arith.truncf %510 : vector<16x256xf32> to vector<16x256xbf16>
    %c96_467 = arith.constant 96 : index
    %c0_468 = arith.constant 0 : index
    %512 = vector.load %arg8[%c96_467, %c0_468] : memref<144x256xbf16, #tpu.memory_space<vmem>>, vector<16x256xbf16>
    tpu.vector_store %arg8[%c96_467, %c0_468], %511 {strides = array<i32>} : memref<144x256xbf16, #tpu.memory_space<vmem>>, vector<16x256xbf16>,
    %c184_i32_469 = arith.constant 184 : i32
    %513 = tpu.dynamic_rotate %357 by %c184_i32_469 dim 1 : vector<16x256xf32>, i32 -> vector<16x256xf32>
    %c25_470 = arith.constant 25 : index
    %c0_471 = arith.constant 0 : index
    %c0_472 = arith.constant 0 : index
    %514 = vector.load %arg4[%c25_470, %c0_471, %c0_472] : memref<27x16x256xf32, #tpu.memory_space<vmem>>, vector<1x16x256xf32>
    %515 = vector.shape_cast %514 : vector<1x16x256xf32> to vector<16x256xf32>
    %516 = arith.mulf %513, %515 : vector<16x256xf32>
    %517 = arith.truncf %516 : vector<16x256xf32> to vector<16x256xbf16>
    %c112_473 = arith.constant 112 : index
    %c0_474 = arith.constant 0 : index
    %518 = vector.load %arg8[%c112_473, %c0_474] : memref<144x256xbf16, #tpu.memory_space<vmem>>, vector<16x256xbf16>
    tpu.vector_store %arg8[%c112_473, %c0_474], %517 {strides = array<i32>} : memref<144x256xbf16, #tpu.memory_space<vmem>>, vector<16x256xbf16>,
    %c183_i32_475 = arith.constant 183 : i32
    %519 = tpu.dynamic_rotate %357 by %c183_i32_475 dim 1 : vector<16x256xf32>, i32 -> vector<16x256xf32>
    %c26_476 = arith.constant 26 : index
    %c0_477 = arith.constant 0 : index
    %c0_478 = arith.constant 0 : index
    %520 = vector.load %arg4[%c26_476, %c0_477, %c0_478] : memref<27x16x256xf32, #tpu.memory_space<vmem>>, vector<1x16x256xf32>
    %521 = vector.shape_cast %520 : vector<1x16x256xf32> to vector<16x256xf32>
    %522 = arith.mulf %519, %521 : vector<16x256xf32>
    %523 = arith.truncf %522 : vector<16x256xf32> to vector<16x256xbf16>
    %c128_479 = arith.constant 128 : index
    %c0_480 = arith.constant 0 : index
    %524 = vector.load %arg8[%c128_479, %c0_480] : memref<144x256xbf16, #tpu.memory_space<vmem>>, vector<16x256xbf16>
    tpu.vector_store %arg8[%c128_479, %c0_480], %523 {strides = array<i32>} : memref<144x256xbf16, #tpu.memory_space<vmem>>, vector<16x256xbf16>,
    %c2_481 = arith.constant 2 : index
    %c2_482 = arith.constant 2 : index
    %c0_483 = arith.constant 0 : index
    %c0_484 = arith.constant 0 : index
    %525 = vector.load %arg2[%c2_481, %c2_482, %c0_483, %c0_484] : memref<7x3x16x144xbf16, #tpu.memory_space<vmem>>, vector<1x1x16x144xbf16>
    %526 = vector.shape_cast %525 : vector<1x1x16x144xbf16> to vector<16x144xbf16>
    %c0_485 = arith.constant 0 : index
    %c0_486 = arith.constant 0 : index
    %527 = vector.load %arg8[%c0_485, %c0_486] : memref<144x256xbf16, #tpu.memory_space<vmem>>, vector<144x256xbf16>
    %cst_487 = arith.constant dense<0.000000e+00> : vector<16x256xf32>
    %528 = tpu.matmul %526, %527, %cst_487 {dimension_numbers = #tpu.dot_dimension_numbers<[1], [0], [0], [1], [0, 0, 1, 1], [], []>} : vector<16x144xbf16>, vector<144x256xbf16>, vector<16x256xf32> -> vector<16x256xf32>
    %529 = arith.addf %470, %528 : vector<16x256xf32>
    %c2_488 = arith.constant 2 : index
    %c0_489 = arith.constant 0 : index
    %c0_490 = arith.constant 0 : index
    %530 = vector.load %arg3[%c2_488, %c0_489, %c0_490] : memref<7x16x1xf32, #tpu.memory_space<vmem>>, vector<1x16x1xf32>
    %531 = vector.shape_cast %530 : vector<1x16x1xf32> to vector<16x1xf32>
    %532 = vector.broadcast %531 : vector<16x1xf32> to vector<16x256xf32>
    %533 = arith.addf %529, %532 : vector<16x256xf32>
    %cst_491 = arith.constant 0.000000e+00 : f32
    %534 = vector.broadcast %cst_491 : f32 to vector<16x256xf32>
    %535 = arith.maximumf %533, %534 : vector<16x256xf32>
    %c73_i32_492 = arith.constant 73 : i32
    %536 = tpu.dynamic_rotate %535 by %c73_i32_492 dim 1 : vector<16x256xf32>, i32 -> vector<16x256xf32>
    %c0_493 = arith.constant 0 : index
    %c0_494 = arith.constant 0 : index
    %c0_495 = arith.constant 0 : index
    %537 = vector.load %arg4[%c0_493, %c0_494, %c0_495] : memref<27x16x256xf32, #tpu.memory_space<vmem>>, vector<1x16x256xf32>
    %538 = vector.shape_cast %537 : vector<1x16x256xf32> to vector<16x256xf32>
    %539 = arith.mulf %536, %538 : vector<16x256xf32>
    %540 = arith.truncf %539 : vector<16x256xf32> to vector<16x256xbf16>
    %c0_496 = arith.constant 0 : index
    %c0_497 = arith.constant 0 : index
    %541 = vector.load %arg6[%c0_496, %c0_497] : memref<144x256xbf16, #tpu.memory_space<vmem>>, vector<16x256xbf16>
    tpu.vector_store %arg6[%c0_496, %c0_497], %540 {strides = array<i32>} : memref<144x256xbf16, #tpu.memory_space<vmem>>, vector<16x256xbf16>,
    %c72_i32_498 = arith.constant 72 : i32
    %542 = tpu.dynamic_rotate %535 by %c72_i32_498 dim 1 : vector<16x256xf32>, i32 -> vector<16x256xf32>
    %c1_499 = arith.constant 1 : index
    %c0_500 = arith.constant 0 : index
    %c0_501 = arith.constant 0 : index
    %543 = vector.load %arg4[%c1_499, %c0_500, %c0_501] : memref<27x16x256xf32, #tpu.memory_space<vmem>>, vector<1x16x256xf32>
    %544 = vector.shape_cast %543 : vector<1x16x256xf32> to vector<16x256xf32>
    %545 = arith.mulf %542, %544 : vector<16x256xf32>
    %546 = arith.truncf %545 : vector<16x256xf32> to vector<16x256xbf16>
    %c16_502 = arith.constant 16 : index
    %c0_503 = arith.constant 0 : index
    %547 = vector.load %arg6[%c16_502, %c0_503] : memref<144x256xbf16, #tpu.memory_space<vmem>>, vector<16x256xbf16>
    tpu.vector_store %arg6[%c16_502, %c0_503], %546 {strides = array<i32>} : memref<144x256xbf16, #tpu.memory_space<vmem>>, vector<16x256xbf16>,
    %c71_i32_504 = arith.constant 71 : i32
    %548 = tpu.dynamic_rotate %535 by %c71_i32_504 dim 1 : vector<16x256xf32>, i32 -> vector<16x256xf32>
    %c2_505 = arith.constant 2 : index
    %c0_506 = arith.constant 0 : index
    %c0_507 = arith.constant 0 : index
    %549 = vector.load %arg4[%c2_505, %c0_506, %c0_507] : memref<27x16x256xf32, #tpu.memory_space<vmem>>, vector<1x16x256xf32>
    %550 = vector.shape_cast %549 : vector<1x16x256xf32> to vector<16x256xf32>
    %551 = arith.mulf %548, %550 : vector<16x256xf32>
    %552 = arith.truncf %551 : vector<16x256xf32> to vector<16x256xbf16>
    %c32_508 = arith.constant 32 : index
    %c0_509 = arith.constant 0 : index
    %553 = vector.load %arg6[%c32_508, %c0_509] : memref<144x256xbf16, #tpu.memory_space<vmem>>, vector<16x256xbf16>
    tpu.vector_store %arg6[%c32_508, %c0_509], %552 {strides = array<i32>} : memref<144x256xbf16, #tpu.memory_space<vmem>>, vector<16x256xbf16>,
    %c65_i32_510 = arith.constant 65 : i32
    %554 = tpu.dynamic_rotate %535 by %c65_i32_510 dim 1 : vector<16x256xf32>, i32 -> vector<16x256xf32>
    %c3_511 = arith.constant 3 : index
    %c0_512 = arith.constant 0 : index
    %c0_513 = arith.constant 0 : index
    %555 = vector.load %arg4[%c3_511, %c0_512, %c0_513] : memref<27x16x256xf32, #tpu.memory_space<vmem>>, vector<1x16x256xf32>
    %556 = vector.shape_cast %555 : vector<1x16x256xf32> to vector<16x256xf32>
    %557 = arith.mulf %554, %556 : vector<16x256xf32>
    %558 = arith.truncf %557 : vector<16x256xf32> to vector<16x256xbf16>
    %c48_514 = arith.constant 48 : index
    %c0_515 = arith.constant 0 : index
    %559 = vector.load %arg6[%c48_514, %c0_515] : memref<144x256xbf16, #tpu.memory_space<vmem>>, vector<16x256xbf16>
    tpu.vector_store %arg6[%c48_514, %c0_515], %558 {strides = array<i32>} : memref<144x256xbf16, #tpu.memory_space<vmem>>, vector<16x256xbf16>,
    %c64_i32_516 = arith.constant 64 : i32
    %560 = tpu.dynamic_rotate %535 by %c64_i32_516 dim 1 : vector<16x256xf32>, i32 -> vector<16x256xf32>
    %c4_517 = arith.constant 4 : index
    %c0_518 = arith.constant 0 : index
    %c0_519 = arith.constant 0 : index
    %561 = vector.load %arg4[%c4_517, %c0_518, %c0_519] : memref<27x16x256xf32, #tpu.memory_space<vmem>>, vector<1x16x256xf32>
    %562 = vector.shape_cast %561 : vector<1x16x256xf32> to vector<16x256xf32>
    %563 = arith.mulf %560, %562 : vector<16x256xf32>
    %564 = arith.truncf %563 : vector<16x256xf32> to vector<16x256xbf16>
    %c64_520 = arith.constant 64 : index
    %c0_521 = arith.constant 0 : index
    %565 = vector.load %arg6[%c64_520, %c0_521] : memref<144x256xbf16, #tpu.memory_space<vmem>>, vector<16x256xbf16>
    tpu.vector_store %arg6[%c64_520, %c0_521], %564 {strides = array<i32>} : memref<144x256xbf16, #tpu.memory_space<vmem>>, vector<16x256xbf16>,
    %c63_i32_522 = arith.constant 63 : i32
    %566 = tpu.dynamic_rotate %535 by %c63_i32_522 dim 1 : vector<16x256xf32>, i32 -> vector<16x256xf32>
    %c5_523 = arith.constant 5 : index
    %c0_524 = arith.constant 0 : index
    %c0_525 = arith.constant 0 : index
    %567 = vector.load %arg4[%c5_523, %c0_524, %c0_525] : memref<27x16x256xf32, #tpu.memory_space<vmem>>, vector<1x16x256xf32>
    %568 = vector.shape_cast %567 : vector<1x16x256xf32> to vector<16x256xf32>
    %569 = arith.mulf %566, %568 : vector<16x256xf32>
    %570 = arith.truncf %569 : vector<16x256xf32> to vector<16x256xbf16>
    %c80_526 = arith.constant 80 : index
    %c0_527 = arith.constant 0 : index
    %571 = vector.load %arg6[%c80_526, %c0_527] : memref<144x256xbf16, #tpu.memory_space<vmem>>, vector<16x256xbf16>
    tpu.vector_store %arg6[%c80_526, %c0_527], %570 {strides = array<i32>} : memref<144x256xbf16, #tpu.memory_space<vmem>>, vector<16x256xbf16>,
    %c57_i32_528 = arith.constant 57 : i32
    %572 = tpu.dynamic_rotate %535 by %c57_i32_528 dim 1 : vector<16x256xf32>, i32 -> vector<16x256xf32>
    %c6_529 = arith.constant 6 : index
    %c0_530 = arith.constant 0 : index
    %c0_531 = arith.constant 0 : index
    %573 = vector.load %arg4[%c6_529, %c0_530, %c0_531] : memref<27x16x256xf32, #tpu.memory_space<vmem>>, vector<1x16x256xf32>
    %574 = vector.shape_cast %573 : vector<1x16x256xf32> to vector<16x256xf32>
    %575 = arith.mulf %572, %574 : vector<16x256xf32>
    %576 = arith.truncf %575 : vector<16x256xf32> to vector<16x256xbf16>
    %c96_532 = arith.constant 96 : index
    %c0_533 = arith.constant 0 : index
    %577 = vector.load %arg6[%c96_532, %c0_533] : memref<144x256xbf16, #tpu.memory_space<vmem>>, vector<16x256xbf16>
    tpu.vector_store %arg6[%c96_532, %c0_533], %576 {strides = array<i32>} : memref<144x256xbf16, #tpu.memory_space<vmem>>, vector<16x256xbf16>,
    %c56_i32_534 = arith.constant 56 : i32
    %578 = tpu.dynamic_rotate %535 by %c56_i32_534 dim 1 : vector<16x256xf32>, i32 -> vector<16x256xf32>
    %c7_535 = arith.constant 7 : index
    %c0_536 = arith.constant 0 : index
    %c0_537 = arith.constant 0 : index
    %579 = vector.load %arg4[%c7_535, %c0_536, %c0_537] : memref<27x16x256xf32, #tpu.memory_space<vmem>>, vector<1x16x256xf32>
    %580 = vector.shape_cast %579 : vector<1x16x256xf32> to vector<16x256xf32>
    %581 = arith.mulf %578, %580 : vector<16x256xf32>
    %582 = arith.truncf %581 : vector<16x256xf32> to vector<16x256xbf16>
    %c112_538 = arith.constant 112 : index
    %c0_539 = arith.constant 0 : index
    %583 = vector.load %arg6[%c112_538, %c0_539] : memref<144x256xbf16, #tpu.memory_space<vmem>>, vector<16x256xbf16>
    tpu.vector_store %arg6[%c112_538, %c0_539], %582 {strides = array<i32>} : memref<144x256xbf16, #tpu.memory_space<vmem>>, vector<16x256xbf16>,
    %c55_i32_540 = arith.constant 55 : i32
    %584 = tpu.dynamic_rotate %535 by %c55_i32_540 dim 1 : vector<16x256xf32>, i32 -> vector<16x256xf32>
    %c8_541 = arith.constant 8 : index
    %c0_542 = arith.constant 0 : index
    %c0_543 = arith.constant 0 : index
    %585 = vector.load %arg4[%c8_541, %c0_542, %c0_543] : memref<27x16x256xf32, #tpu.memory_space<vmem>>, vector<1x16x256xf32>
    %586 = vector.shape_cast %585 : vector<1x16x256xf32> to vector<16x256xf32>
    %587 = arith.mulf %584, %586 : vector<16x256xf32>
    %588 = arith.truncf %587 : vector<16x256xf32> to vector<16x256xbf16>
    %c128_544 = arith.constant 128 : index
    %c0_545 = arith.constant 0 : index
    %589 = vector.load %arg6[%c128_544, %c0_545] : memref<144x256xbf16, #tpu.memory_space<vmem>>, vector<16x256xbf16>
    tpu.vector_store %arg6[%c128_544, %c0_545], %588 {strides = array<i32>} : memref<144x256xbf16, #tpu.memory_space<vmem>>, vector<16x256xbf16>,
    %c3_546 = arith.constant 3 : index
    %c0_547 = arith.constant 0 : index
    %c0_548 = arith.constant 0 : index
    %c0_549 = arith.constant 0 : index
    %590 = vector.load %arg2[%c3_546, %c0_547, %c0_548, %c0_549] : memref<7x3x16x144xbf16, #tpu.memory_space<vmem>>, vector<1x1x16x144xbf16>
    %591 = vector.shape_cast %590 : vector<1x1x16x144xbf16> to vector<16x144xbf16>
    %c0_550 = arith.constant 0 : index
    %c0_551 = arith.constant 0 : index
    %592 = vector.load %arg6[%c0_550, %c0_551] : memref<144x256xbf16, #tpu.memory_space<vmem>>, vector<144x256xbf16>
    %cst_552 = arith.constant dense<0.000000e+00> : vector<16x256xf32>
    %593 = tpu.matmul %591, %592, %cst_552 {dimension_numbers = #tpu.dot_dimension_numbers<[1], [0], [0], [1], [0, 0, 1, 1], [], []>} : vector<16x144xbf16>, vector<144x256xbf16>, vector<16x256xf32> -> vector<16x256xf32>
    %c9_i32_553 = arith.constant 9 : i32
    %594 = tpu.dynamic_rotate %535 by %c9_i32_553 dim 1 : vector<16x256xf32>, i32 -> vector<16x256xf32>
    %c9_554 = arith.constant 9 : index
    %c0_555 = arith.constant 0 : index
    %c0_556 = arith.constant 0 : index
    %595 = vector.load %arg4[%c9_554, %c0_555, %c0_556] : memref<27x16x256xf32, #tpu.memory_space<vmem>>, vector<1x16x256xf32>
    %596 = vector.shape_cast %595 : vector<1x16x256xf32> to vector<16x256xf32>
    %597 = arith.mulf %594, %596 : vector<16x256xf32>
    %598 = arith.truncf %597 : vector<16x256xf32> to vector<16x256xbf16>
    %c0_557 = arith.constant 0 : index
    %c0_558 = arith.constant 0 : index
    %599 = vector.load %arg7[%c0_557, %c0_558] : memref<144x256xbf16, #tpu.memory_space<vmem>>, vector<16x256xbf16>
    tpu.vector_store %arg7[%c0_557, %c0_558], %598 {strides = array<i32>} : memref<144x256xbf16, #tpu.memory_space<vmem>>, vector<16x256xbf16>,
    %c8_i32_559 = arith.constant 8 : i32
    %600 = tpu.dynamic_rotate %535 by %c8_i32_559 dim 1 : vector<16x256xf32>, i32 -> vector<16x256xf32>
    %c10_560 = arith.constant 10 : index
    %c0_561 = arith.constant 0 : index
    %c0_562 = arith.constant 0 : index
    %601 = vector.load %arg4[%c10_560, %c0_561, %c0_562] : memref<27x16x256xf32, #tpu.memory_space<vmem>>, vector<1x16x256xf32>
    %602 = vector.shape_cast %601 : vector<1x16x256xf32> to vector<16x256xf32>
    %603 = arith.mulf %600, %602 : vector<16x256xf32>
    %604 = arith.truncf %603 : vector<16x256xf32> to vector<16x256xbf16>
    %c16_563 = arith.constant 16 : index
    %c0_564 = arith.constant 0 : index
    %605 = vector.load %arg7[%c16_563, %c0_564] : memref<144x256xbf16, #tpu.memory_space<vmem>>, vector<16x256xbf16>
    tpu.vector_store %arg7[%c16_563, %c0_564], %604 {strides = array<i32>} : memref<144x256xbf16, #tpu.memory_space<vmem>>, vector<16x256xbf16>,
    %c7_i32_565 = arith.constant 7 : i32
    %606 = tpu.dynamic_rotate %535 by %c7_i32_565 dim 1 : vector<16x256xf32>, i32 -> vector<16x256xf32>
    %c11_566 = arith.constant 11 : index
    %c0_567 = arith.constant 0 : index
    %c0_568 = arith.constant 0 : index
    %607 = vector.load %arg4[%c11_566, %c0_567, %c0_568] : memref<27x16x256xf32, #tpu.memory_space<vmem>>, vector<1x16x256xf32>
    %608 = vector.shape_cast %607 : vector<1x16x256xf32> to vector<16x256xf32>
    %609 = arith.mulf %606, %608 : vector<16x256xf32>
    %610 = arith.truncf %609 : vector<16x256xf32> to vector<16x256xbf16>
    %c32_569 = arith.constant 32 : index
    %c0_570 = arith.constant 0 : index
    %611 = vector.load %arg7[%c32_569, %c0_570] : memref<144x256xbf16, #tpu.memory_space<vmem>>, vector<16x256xbf16>
    tpu.vector_store %arg7[%c32_569, %c0_570], %610 {strides = array<i32>} : memref<144x256xbf16, #tpu.memory_space<vmem>>, vector<16x256xbf16>,
    %c1_i32_571 = arith.constant 1 : i32
    %612 = tpu.dynamic_rotate %535 by %c1_i32_571 dim 1 : vector<16x256xf32>, i32 -> vector<16x256xf32>
    %c12_572 = arith.constant 12 : index
    %c0_573 = arith.constant 0 : index
    %c0_574 = arith.constant 0 : index
    %613 = vector.load %arg4[%c12_572, %c0_573, %c0_574] : memref<27x16x256xf32, #tpu.memory_space<vmem>>, vector<1x16x256xf32>
    %614 = vector.shape_cast %613 : vector<1x16x256xf32> to vector<16x256xf32>
    %615 = arith.mulf %612, %614 : vector<16x256xf32>
    %616 = arith.truncf %615 : vector<16x256xf32> to vector<16x256xbf16>
    %c48_575 = arith.constant 48 : index
    %c0_576 = arith.constant 0 : index
    %617 = vector.load %arg7[%c48_575, %c0_576] : memref<144x256xbf16, #tpu.memory_space<vmem>>, vector<16x256xbf16>
    tpu.vector_store %arg7[%c48_575, %c0_576], %616 {strides = array<i32>} : memref<144x256xbf16, #tpu.memory_space<vmem>>, vector<16x256xbf16>,
    %618 = arith.truncf %535 : vector<16x256xf32> to vector<16x256xbf16>
    %c64_577 = arith.constant 64 : index
    %c0_578 = arith.constant 0 : index
    %619 = vector.load %arg7[%c64_577, %c0_578] : memref<144x256xbf16, #tpu.memory_space<vmem>>, vector<16x256xbf16>
    tpu.vector_store %arg7[%c64_577, %c0_578], %618 {strides = array<i32>} : memref<144x256xbf16, #tpu.memory_space<vmem>>, vector<16x256xbf16>,
    %c255_i32_579 = arith.constant 255 : i32
    %620 = tpu.dynamic_rotate %535 by %c255_i32_579 dim 1 : vector<16x256xf32>, i32 -> vector<16x256xf32>
    %c14_580 = arith.constant 14 : index
    %c0_581 = arith.constant 0 : index
    %c0_582 = arith.constant 0 : index
    %621 = vector.load %arg4[%c14_580, %c0_581, %c0_582] : memref<27x16x256xf32, #tpu.memory_space<vmem>>, vector<1x16x256xf32>
    %622 = vector.shape_cast %621 : vector<1x16x256xf32> to vector<16x256xf32>
    %623 = arith.mulf %620, %622 : vector<16x256xf32>
    %624 = arith.truncf %623 : vector<16x256xf32> to vector<16x256xbf16>
    %c80_583 = arith.constant 80 : index
    %c0_584 = arith.constant 0 : index
    %625 = vector.load %arg7[%c80_583, %c0_584] : memref<144x256xbf16, #tpu.memory_space<vmem>>, vector<16x256xbf16>
    tpu.vector_store %arg7[%c80_583, %c0_584], %624 {strides = array<i32>} : memref<144x256xbf16, #tpu.memory_space<vmem>>, vector<16x256xbf16>,
    %c249_i32_585 = arith.constant 249 : i32
    %626 = tpu.dynamic_rotate %535 by %c249_i32_585 dim 1 : vector<16x256xf32>, i32 -> vector<16x256xf32>
    %c15_586 = arith.constant 15 : index
    %c0_587 = arith.constant 0 : index
    %c0_588 = arith.constant 0 : index
    %627 = vector.load %arg4[%c15_586, %c0_587, %c0_588] : memref<27x16x256xf32, #tpu.memory_space<vmem>>, vector<1x16x256xf32>
    %628 = vector.shape_cast %627 : vector<1x16x256xf32> to vector<16x256xf32>
    %629 = arith.mulf %626, %628 : vector<16x256xf32>
    %630 = arith.truncf %629 : vector<16x256xf32> to vector<16x256xbf16>
    %c96_589 = arith.constant 96 : index
    %c0_590 = arith.constant 0 : index
    %631 = vector.load %arg7[%c96_589, %c0_590] : memref<144x256xbf16, #tpu.memory_space<vmem>>, vector<16x256xbf16>
    tpu.vector_store %arg7[%c96_589, %c0_590], %630 {strides = array<i32>} : memref<144x256xbf16, #tpu.memory_space<vmem>>, vector<16x256xbf16>,
    %c248_i32_591 = arith.constant 248 : i32
    %632 = tpu.dynamic_rotate %535 by %c248_i32_591 dim 1 : vector<16x256xf32>, i32 -> vector<16x256xf32>
    %c16_592 = arith.constant 16 : index
    %c0_593 = arith.constant 0 : index
    %c0_594 = arith.constant 0 : index
    %633 = vector.load %arg4[%c16_592, %c0_593, %c0_594] : memref<27x16x256xf32, #tpu.memory_space<vmem>>, vector<1x16x256xf32>
    %634 = vector.shape_cast %633 : vector<1x16x256xf32> to vector<16x256xf32>
    %635 = arith.mulf %632, %634 : vector<16x256xf32>
    %636 = arith.truncf %635 : vector<16x256xf32> to vector<16x256xbf16>
    %c112_595 = arith.constant 112 : index
    %c0_596 = arith.constant 0 : index
    %637 = vector.load %arg7[%c112_595, %c0_596] : memref<144x256xbf16, #tpu.memory_space<vmem>>, vector<16x256xbf16>
    tpu.vector_store %arg7[%c112_595, %c0_596], %636 {strides = array<i32>} : memref<144x256xbf16, #tpu.memory_space<vmem>>, vector<16x256xbf16>,
    %c247_i32_597 = arith.constant 247 : i32
    %638 = tpu.dynamic_rotate %535 by %c247_i32_597 dim 1 : vector<16x256xf32>, i32 -> vector<16x256xf32>
    %c17_598 = arith.constant 17 : index
    %c0_599 = arith.constant 0 : index
    %c0_600 = arith.constant 0 : index
    %639 = vector.load %arg4[%c17_598, %c0_599, %c0_600] : memref<27x16x256xf32, #tpu.memory_space<vmem>>, vector<1x16x256xf32>
    %640 = vector.shape_cast %639 : vector<1x16x256xf32> to vector<16x256xf32>
    %641 = arith.mulf %638, %640 : vector<16x256xf32>
    %642 = arith.truncf %641 : vector<16x256xf32> to vector<16x256xbf16>
    %c128_601 = arith.constant 128 : index
    %c0_602 = arith.constant 0 : index
    %643 = vector.load %arg7[%c128_601, %c0_602] : memref<144x256xbf16, #tpu.memory_space<vmem>>, vector<16x256xbf16>
    tpu.vector_store %arg7[%c128_601, %c0_602], %642 {strides = array<i32>} : memref<144x256xbf16, #tpu.memory_space<vmem>>, vector<16x256xbf16>,
    %c3_603 = arith.constant 3 : index
    %c1_604 = arith.constant 1 : index
    %c0_605 = arith.constant 0 : index
    %c0_606 = arith.constant 0 : index
    %644 = vector.load %arg2[%c3_603, %c1_604, %c0_605, %c0_606] : memref<7x3x16x144xbf16, #tpu.memory_space<vmem>>, vector<1x1x16x144xbf16>
    %645 = vector.shape_cast %644 : vector<1x1x16x144xbf16> to vector<16x144xbf16>
    %c0_607 = arith.constant 0 : index
    %c0_608 = arith.constant 0 : index
    %646 = vector.load %arg7[%c0_607, %c0_608] : memref<144x256xbf16, #tpu.memory_space<vmem>>, vector<144x256xbf16>
    %cst_609 = arith.constant dense<0.000000e+00> : vector<16x256xf32>
    %647 = tpu.matmul %645, %646, %cst_609 {dimension_numbers = #tpu.dot_dimension_numbers<[1], [0], [0], [1], [0, 0, 1, 1], [], []>} : vector<16x144xbf16>, vector<144x256xbf16>, vector<16x256xf32> -> vector<16x256xf32>
    %648 = arith.addf %593, %647 : vector<16x256xf32>
    %c201_i32_610 = arith.constant 201 : i32
    %649 = tpu.dynamic_rotate %535 by %c201_i32_610 dim 1 : vector<16x256xf32>, i32 -> vector<16x256xf32>
    %c18_611 = arith.constant 18 : index
    %c0_612 = arith.constant 0 : index
    %c0_613 = arith.constant 0 : index
    %650 = vector.load %arg4[%c18_611, %c0_612, %c0_613] : memref<27x16x256xf32, #tpu.memory_space<vmem>>, vector<1x16x256xf32>
    %651 = vector.shape_cast %650 : vector<1x16x256xf32> to vector<16x256xf32>
    %652 = arith.mulf %649, %651 : vector<16x256xf32>
    %653 = arith.truncf %652 : vector<16x256xf32> to vector<16x256xbf16>
    %c0_614 = arith.constant 0 : index
    %c0_615 = arith.constant 0 : index
    %654 = vector.load %arg8[%c0_614, %c0_615] : memref<144x256xbf16, #tpu.memory_space<vmem>>, vector<16x256xbf16>
    tpu.vector_store %arg8[%c0_614, %c0_615], %653 {strides = array<i32>} : memref<144x256xbf16, #tpu.memory_space<vmem>>, vector<16x256xbf16>,
    %c200_i32_616 = arith.constant 200 : i32
    %655 = tpu.dynamic_rotate %535 by %c200_i32_616 dim 1 : vector<16x256xf32>, i32 -> vector<16x256xf32>
    %c19_617 = arith.constant 19 : index
    %c0_618 = arith.constant 0 : index
    %c0_619 = arith.constant 0 : index
    %656 = vector.load %arg4[%c19_617, %c0_618, %c0_619] : memref<27x16x256xf32, #tpu.memory_space<vmem>>, vector<1x16x256xf32>
    %657 = vector.shape_cast %656 : vector<1x16x256xf32> to vector<16x256xf32>
    %658 = arith.mulf %655, %657 : vector<16x256xf32>
    %659 = arith.truncf %658 : vector<16x256xf32> to vector<16x256xbf16>
    %c16_620 = arith.constant 16 : index
    %c0_621 = arith.constant 0 : index
    %660 = vector.load %arg8[%c16_620, %c0_621] : memref<144x256xbf16, #tpu.memory_space<vmem>>, vector<16x256xbf16>
    tpu.vector_store %arg8[%c16_620, %c0_621], %659 {strides = array<i32>} : memref<144x256xbf16, #tpu.memory_space<vmem>>, vector<16x256xbf16>,
    %c199_i32_622 = arith.constant 199 : i32
    %661 = tpu.dynamic_rotate %535 by %c199_i32_622 dim 1 : vector<16x256xf32>, i32 -> vector<16x256xf32>
    %c20_623 = arith.constant 20 : index
    %c0_624 = arith.constant 0 : index
    %c0_625 = arith.constant 0 : index
    %662 = vector.load %arg4[%c20_623, %c0_624, %c0_625] : memref<27x16x256xf32, #tpu.memory_space<vmem>>, vector<1x16x256xf32>
    %663 = vector.shape_cast %662 : vector<1x16x256xf32> to vector<16x256xf32>
    %664 = arith.mulf %661, %663 : vector<16x256xf32>
    %665 = arith.truncf %664 : vector<16x256xf32> to vector<16x256xbf16>
    %c32_626 = arith.constant 32 : index
    %c0_627 = arith.constant 0 : index
    %666 = vector.load %arg8[%c32_626, %c0_627] : memref<144x256xbf16, #tpu.memory_space<vmem>>, vector<16x256xbf16>
    tpu.vector_store %arg8[%c32_626, %c0_627], %665 {strides = array<i32>} : memref<144x256xbf16, #tpu.memory_space<vmem>>, vector<16x256xbf16>,
    %c193_i32_628 = arith.constant 193 : i32
    %667 = tpu.dynamic_rotate %535 by %c193_i32_628 dim 1 : vector<16x256xf32>, i32 -> vector<16x256xf32>
    %c21_629 = arith.constant 21 : index
    %c0_630 = arith.constant 0 : index
    %c0_631 = arith.constant 0 : index
    %668 = vector.load %arg4[%c21_629, %c0_630, %c0_631] : memref<27x16x256xf32, #tpu.memory_space<vmem>>, vector<1x16x256xf32>
    %669 = vector.shape_cast %668 : vector<1x16x256xf32> to vector<16x256xf32>
    %670 = arith.mulf %667, %669 : vector<16x256xf32>
    %671 = arith.truncf %670 : vector<16x256xf32> to vector<16x256xbf16>
    %c48_632 = arith.constant 48 : index
    %c0_633 = arith.constant 0 : index
    %672 = vector.load %arg8[%c48_632, %c0_633] : memref<144x256xbf16, #tpu.memory_space<vmem>>, vector<16x256xbf16>
    tpu.vector_store %arg8[%c48_632, %c0_633], %671 {strides = array<i32>} : memref<144x256xbf16, #tpu.memory_space<vmem>>, vector<16x256xbf16>,
    %c192_i32_634 = arith.constant 192 : i32
    %673 = tpu.dynamic_rotate %535 by %c192_i32_634 dim 1 : vector<16x256xf32>, i32 -> vector<16x256xf32>
    %c22_635 = arith.constant 22 : index
    %c0_636 = arith.constant 0 : index
    %c0_637 = arith.constant 0 : index
    %674 = vector.load %arg4[%c22_635, %c0_636, %c0_637] : memref<27x16x256xf32, #tpu.memory_space<vmem>>, vector<1x16x256xf32>
    %675 = vector.shape_cast %674 : vector<1x16x256xf32> to vector<16x256xf32>
    %676 = arith.mulf %673, %675 : vector<16x256xf32>
    %677 = arith.truncf %676 : vector<16x256xf32> to vector<16x256xbf16>
    %c64_638 = arith.constant 64 : index
    %c0_639 = arith.constant 0 : index
    %678 = vector.load %arg8[%c64_638, %c0_639] : memref<144x256xbf16, #tpu.memory_space<vmem>>, vector<16x256xbf16>
    tpu.vector_store %arg8[%c64_638, %c0_639], %677 {strides = array<i32>} : memref<144x256xbf16, #tpu.memory_space<vmem>>, vector<16x256xbf16>,
    %c191_i32_640 = arith.constant 191 : i32
    %679 = tpu.dynamic_rotate %535 by %c191_i32_640 dim 1 : vector<16x256xf32>, i32 -> vector<16x256xf32>
    %c23_641 = arith.constant 23 : index
    %c0_642 = arith.constant 0 : index
    %c0_643 = arith.constant 0 : index
    %680 = vector.load %arg4[%c23_641, %c0_642, %c0_643] : memref<27x16x256xf32, #tpu.memory_space<vmem>>, vector<1x16x256xf32>
    %681 = vector.shape_cast %680 : vector<1x16x256xf32> to vector<16x256xf32>
    %682 = arith.mulf %679, %681 : vector<16x256xf32>
    %683 = arith.truncf %682 : vector<16x256xf32> to vector<16x256xbf16>
    %c80_644 = arith.constant 80 : index
    %c0_645 = arith.constant 0 : index
    %684 = vector.load %arg8[%c80_644, %c0_645] : memref<144x256xbf16, #tpu.memory_space<vmem>>, vector<16x256xbf16>
    tpu.vector_store %arg8[%c80_644, %c0_645], %683 {strides = array<i32>} : memref<144x256xbf16, #tpu.memory_space<vmem>>, vector<16x256xbf16>,
    %c185_i32_646 = arith.constant 185 : i32
    %685 = tpu.dynamic_rotate %535 by %c185_i32_646 dim 1 : vector<16x256xf32>, i32 -> vector<16x256xf32>
    %c24_647 = arith.constant 24 : index
    %c0_648 = arith.constant 0 : index
    %c0_649 = arith.constant 0 : index
    %686 = vector.load %arg4[%c24_647, %c0_648, %c0_649] : memref<27x16x256xf32, #tpu.memory_space<vmem>>, vector<1x16x256xf32>
    %687 = vector.shape_cast %686 : vector<1x16x256xf32> to vector<16x256xf32>
    %688 = arith.mulf %685, %687 : vector<16x256xf32>
    %689 = arith.truncf %688 : vector<16x256xf32> to vector<16x256xbf16>
    %c96_650 = arith.constant 96 : index
    %c0_651 = arith.constant 0 : index
    %690 = vector.load %arg8[%c96_650, %c0_651] : memref<144x256xbf16, #tpu.memory_space<vmem>>, vector<16x256xbf16>
    tpu.vector_store %arg8[%c96_650, %c0_651], %689 {strides = array<i32>} : memref<144x256xbf16, #tpu.memory_space<vmem>>, vector<16x256xbf16>,
    %c184_i32_652 = arith.constant 184 : i32
    %691 = tpu.dynamic_rotate %535 by %c184_i32_652 dim 1 : vector<16x256xf32>, i32 -> vector<16x256xf32>
    %c25_653 = arith.constant 25 : index
    %c0_654 = arith.constant 0 : index
    %c0_655 = arith.constant 0 : index
    %692 = vector.load %arg4[%c25_653, %c0_654, %c0_655] : memref<27x16x256xf32, #tpu.memory_space<vmem>>, vector<1x16x256xf32>
    %693 = vector.shape_cast %692 : vector<1x16x256xf32> to vector<16x256xf32>
    %694 = arith.mulf %691, %693 : vector<16x256xf32>
    %695 = arith.truncf %694 : vector<16x256xf32> to vector<16x256xbf16>
    %c112_656 = arith.constant 112 : index
    %c0_657 = arith.constant 0 : index
    %696 = vector.load %arg8[%c112_656, %c0_657] : memref<144x256xbf16, #tpu.memory_space<vmem>>, vector<16x256xbf16>
    tpu.vector_store %arg8[%c112_656, %c0_657], %695 {strides = array<i32>} : memref<144x256xbf16, #tpu.memory_space<vmem>>, vector<16x256xbf16>,
    %c183_i32_658 = arith.constant 183 : i32
    %697 = tpu.dynamic_rotate %535 by %c183_i32_658 dim 1 : vector<16x256xf32>, i32 -> vector<16x256xf32>
    %c26_659 = arith.constant 26 : index
    %c0_660 = arith.constant 0 : index
    %c0_661 = arith.constant 0 : index
    %698 = vector.load %arg4[%c26_659, %c0_660, %c0_661] : memref<27x16x256xf32, #tpu.memory_space<vmem>>, vector<1x16x256xf32>
    %699 = vector.shape_cast %698 : vector<1x16x256xf32> to vector<16x256xf32>
    %700 = arith.mulf %697, %699 : vector<16x256xf32>
    %701 = arith.truncf %700 : vector<16x256xf32> to vector<16x256xbf16>
    %c128_662 = arith.constant 128 : index
    %c0_663 = arith.constant 0 : index
    %702 = vector.load %arg8[%c128_662, %c0_663] : memref<144x256xbf16, #tpu.memory_space<vmem>>, vector<16x256xbf16>
    tpu.vector_store %arg8[%c128_662, %c0_663], %701 {strides = array<i32>} : memref<144x256xbf16, #tpu.memory_space<vmem>>, vector<16x256xbf16>,
    %c3_664 = arith.constant 3 : index
    %c2_665 = arith.constant 2 : index
    %c0_666 = arith.constant 0 : index
    %c0_667 = arith.constant 0 : index
    %703 = vector.load %arg2[%c3_664, %c2_665, %c0_666, %c0_667] : memref<7x3x16x144xbf16, #tpu.memory_space<vmem>>, vector<1x1x16x144xbf16>
    %704 = vector.shape_cast %703 : vector<1x1x16x144xbf16> to vector<16x144xbf16>
    %c0_668 = arith.constant 0 : index
    %c0_669 = arith.constant 0 : index
    %705 = vector.load %arg8[%c0_668, %c0_669] : memref<144x256xbf16, #tpu.memory_space<vmem>>, vector<144x256xbf16>
    %cst_670 = arith.constant dense<0.000000e+00> : vector<16x256xf32>
    %706 = tpu.matmul %704, %705, %cst_670 {dimension_numbers = #tpu.dot_dimension_numbers<[1], [0], [0], [1], [0, 0, 1, 1], [], []>} : vector<16x144xbf16>, vector<144x256xbf16>, vector<16x256xf32> -> vector<16x256xf32>
    %707 = arith.addf %648, %706 : vector<16x256xf32>
    %c3_671 = arith.constant 3 : index
    %c0_672 = arith.constant 0 : index
    %c0_673 = arith.constant 0 : index
    %708 = vector.load %arg3[%c3_671, %c0_672, %c0_673] : memref<7x16x1xf32, #tpu.memory_space<vmem>>, vector<1x16x1xf32>
    %709 = vector.shape_cast %708 : vector<1x16x1xf32> to vector<16x1xf32>
    %710 = vector.broadcast %709 : vector<16x1xf32> to vector<16x256xf32>
    %711 = arith.addf %707, %710 : vector<16x256xf32>
    %cst_674 = arith.constant 0.000000e+00 : f32
    %712 = vector.broadcast %cst_674 : f32 to vector<16x256xf32>
    %713 = arith.maximumf %711, %712 : vector<16x256xf32>
    %c73_i32_675 = arith.constant 73 : i32
    %714 = tpu.dynamic_rotate %713 by %c73_i32_675 dim 1 : vector<16x256xf32>, i32 -> vector<16x256xf32>
    %c0_676 = arith.constant 0 : index
    %c0_677 = arith.constant 0 : index
    %c0_678 = arith.constant 0 : index
    %715 = vector.load %arg4[%c0_676, %c0_677, %c0_678] : memref<27x16x256xf32, #tpu.memory_space<vmem>>, vector<1x16x256xf32>
    %716 = vector.shape_cast %715 : vector<1x16x256xf32> to vector<16x256xf32>
    %717 = arith.mulf %714, %716 : vector<16x256xf32>
    %718 = arith.truncf %717 : vector<16x256xf32> to vector<16x256xbf16>
    %c0_679 = arith.constant 0 : index
    %c0_680 = arith.constant 0 : index
    %719 = vector.load %arg6[%c0_679, %c0_680] : memref<144x256xbf16, #tpu.memory_space<vmem>>, vector<16x256xbf16>
    tpu.vector_store %arg6[%c0_679, %c0_680], %718 {strides = array<i32>} : memref<144x256xbf16, #tpu.memory_space<vmem>>, vector<16x256xbf16>,
    %c72_i32_681 = arith.constant 72 : i32
    %720 = tpu.dynamic_rotate %713 by %c72_i32_681 dim 1 : vector<16x256xf32>, i32 -> vector<16x256xf32>
    %c1_682 = arith.constant 1 : index
    %c0_683 = arith.constant 0 : index
    %c0_684 = arith.constant 0 : index
    %721 = vector.load %arg4[%c1_682, %c0_683, %c0_684] : memref<27x16x256xf32, #tpu.memory_space<vmem>>, vector<1x16x256xf32>
    %722 = vector.shape_cast %721 : vector<1x16x256xf32> to vector<16x256xf32>
    %723 = arith.mulf %720, %722 : vector<16x256xf32>
    %724 = arith.truncf %723 : vector<16x256xf32> to vector<16x256xbf16>
    %c16_685 = arith.constant 16 : index
    %c0_686 = arith.constant 0 : index
    %725 = vector.load %arg6[%c16_685, %c0_686] : memref<144x256xbf16, #tpu.memory_space<vmem>>, vector<16x256xbf16>
    tpu.vector_store %arg6[%c16_685, %c0_686], %724 {strides = array<i32>} : memref<144x256xbf16, #tpu.memory_space<vmem>>, vector<16x256xbf16>,
    %c71_i32_687 = arith.constant 71 : i32
    %726 = tpu.dynamic_rotate %713 by %c71_i32_687 dim 1 : vector<16x256xf32>, i32 -> vector<16x256xf32>
    %c2_688 = arith.constant 2 : index
    %c0_689 = arith.constant 0 : index
    %c0_690 = arith.constant 0 : index
    %727 = vector.load %arg4[%c2_688, %c0_689, %c0_690] : memref<27x16x256xf32, #tpu.memory_space<vmem>>, vector<1x16x256xf32>
    %728 = vector.shape_cast %727 : vector<1x16x256xf32> to vector<16x256xf32>
    %729 = arith.mulf %726, %728 : vector<16x256xf32>
    %730 = arith.truncf %729 : vector<16x256xf32> to vector<16x256xbf16>
    %c32_691 = arith.constant 32 : index
    %c0_692 = arith.constant 0 : index
    %731 = vector.load %arg6[%c32_691, %c0_692] : memref<144x256xbf16, #tpu.memory_space<vmem>>, vector<16x256xbf16>
    tpu.vector_store %arg6[%c32_691, %c0_692], %730 {strides = array<i32>} : memref<144x256xbf16, #tpu.memory_space<vmem>>, vector<16x256xbf16>,
    %c65_i32_693 = arith.constant 65 : i32
    %732 = tpu.dynamic_rotate %713 by %c65_i32_693 dim 1 : vector<16x256xf32>, i32 -> vector<16x256xf32>
    %c3_694 = arith.constant 3 : index
    %c0_695 = arith.constant 0 : index
    %c0_696 = arith.constant 0 : index
    %733 = vector.load %arg4[%c3_694, %c0_695, %c0_696] : memref<27x16x256xf32, #tpu.memory_space<vmem>>, vector<1x16x256xf32>
    %734 = vector.shape_cast %733 : vector<1x16x256xf32> to vector<16x256xf32>
    %735 = arith.mulf %732, %734 : vector<16x256xf32>
    %736 = arith.truncf %735 : vector<16x256xf32> to vector<16x256xbf16>
    %c48_697 = arith.constant 48 : index
    %c0_698 = arith.constant 0 : index
    %737 = vector.load %arg6[%c48_697, %c0_698] : memref<144x256xbf16, #tpu.memory_space<vmem>>, vector<16x256xbf16>
    tpu.vector_store %arg6[%c48_697, %c0_698], %736 {strides = array<i32>} : memref<144x256xbf16, #tpu.memory_space<vmem>>, vector<16x256xbf16>,
    %c64_i32_699 = arith.constant 64 : i32
    %738 = tpu.dynamic_rotate %713 by %c64_i32_699 dim 1 : vector<16x256xf32>, i32 -> vector<16x256xf32>
    %c4_700 = arith.constant 4 : index
    %c0_701 = arith.constant 0 : index
    %c0_702 = arith.constant 0 : index
    %739 = vector.load %arg4[%c4_700, %c0_701, %c0_702] : memref<27x16x256xf32, #tpu.memory_space<vmem>>, vector<1x16x256xf32>
    %740 = vector.shape_cast %739 : vector<1x16x256xf32> to vector<16x256xf32>
    %741 = arith.mulf %738, %740 : vector<16x256xf32>
    %742 = arith.truncf %741 : vector<16x256xf32> to vector<16x256xbf16>
    %c64_703 = arith.constant 64 : index
    %c0_704 = arith.constant 0 : index
    %743 = vector.load %arg6[%c64_703, %c0_704] : memref<144x256xbf16, #tpu.memory_space<vmem>>, vector<16x256xbf16>
    tpu.vector_store %arg6[%c64_703, %c0_704], %742 {strides = array<i32>} : memref<144x256xbf16, #tpu.memory_space<vmem>>, vector<16x256xbf16>,
    %c63_i32_705 = arith.constant 63 : i32
    %744 = tpu.dynamic_rotate %713 by %c63_i32_705 dim 1 : vector<16x256xf32>, i32 -> vector<16x256xf32>
    %c5_706 = arith.constant 5 : index
    %c0_707 = arith.constant 0 : index
    %c0_708 = arith.constant 0 : index
    %745 = vector.load %arg4[%c5_706, %c0_707, %c0_708] : memref<27x16x256xf32, #tpu.memory_space<vmem>>, vector<1x16x256xf32>
    %746 = vector.shape_cast %745 : vector<1x16x256xf32> to vector<16x256xf32>
    %747 = arith.mulf %744, %746 : vector<16x256xf32>
    %748 = arith.truncf %747 : vector<16x256xf32> to vector<16x256xbf16>
    %c80_709 = arith.constant 80 : index
    %c0_710 = arith.constant 0 : index
    %749 = vector.load %arg6[%c80_709, %c0_710] : memref<144x256xbf16, #tpu.memory_space<vmem>>, vector<16x256xbf16>
    tpu.vector_store %arg6[%c80_709, %c0_710], %748 {strides = array<i32>} : memref<144x256xbf16, #tpu.memory_space<vmem>>, vector<16x256xbf16>,
    %c57_i32_711 = arith.constant 57 : i32
    %750 = tpu.dynamic_rotate %713 by %c57_i32_711 dim 1 : vector<16x256xf32>, i32 -> vector<16x256xf32>
    %c6_712 = arith.constant 6 : index
    %c0_713 = arith.constant 0 : index
    %c0_714 = arith.constant 0 : index
    %751 = vector.load %arg4[%c6_712, %c0_713, %c0_714] : memref<27x16x256xf32, #tpu.memory_space<vmem>>, vector<1x16x256xf32>
    %752 = vector.shape_cast %751 : vector<1x16x256xf32> to vector<16x256xf32>
    %753 = arith.mulf %750, %752 : vector<16x256xf32>
    %754 = arith.truncf %753 : vector<16x256xf32> to vector<16x256xbf16>
    %c96_715 = arith.constant 96 : index
    %c0_716 = arith.constant 0 : index
    %755 = vector.load %arg6[%c96_715, %c0_716] : memref<144x256xbf16, #tpu.memory_space<vmem>>, vector<16x256xbf16>
    tpu.vector_store %arg6[%c96_715, %c0_716], %754 {strides = array<i32>} : memref<144x256xbf16, #tpu.memory_space<vmem>>, vector<16x256xbf16>,
    %c56_i32_717 = arith.constant 56 : i32
    %756 = tpu.dynamic_rotate %713 by %c56_i32_717 dim 1 : vector<16x256xf32>, i32 -> vector<16x256xf32>
    %c7_718 = arith.constant 7 : index
    %c0_719 = arith.constant 0 : index
    %c0_720 = arith.constant 0 : index
    %757 = vector.load %arg4[%c7_718, %c0_719, %c0_720] : memref<27x16x256xf32, #tpu.memory_space<vmem>>, vector<1x16x256xf32>
    %758 = vector.shape_cast %757 : vector<1x16x256xf32> to vector<16x256xf32>
    %759 = arith.mulf %756, %758 : vector<16x256xf32>
    %760 = arith.truncf %759 : vector<16x256xf32> to vector<16x256xbf16>
    %c112_721 = arith.constant 112 : index
    %c0_722 = arith.constant 0 : index
    %761 = vector.load %arg6[%c112_721, %c0_722] : memref<144x256xbf16, #tpu.memory_space<vmem>>, vector<16x256xbf16>
    tpu.vector_store %arg6[%c112_721, %c0_722], %760 {strides = array<i32>} : memref<144x256xbf16, #tpu.memory_space<vmem>>, vector<16x256xbf16>,
    %c55_i32_723 = arith.constant 55 : i32
    %762 = tpu.dynamic_rotate %713 by %c55_i32_723 dim 1 : vector<16x256xf32>, i32 -> vector<16x256xf32>
    %c8_724 = arith.constant 8 : index
    %c0_725 = arith.constant 0 : index
    %c0_726 = arith.constant 0 : index
    %763 = vector.load %arg4[%c8_724, %c0_725, %c0_726] : memref<27x16x256xf32, #tpu.memory_space<vmem>>, vector<1x16x256xf32>
    %764 = vector.shape_cast %763 : vector<1x16x256xf32> to vector<16x256xf32>
    %765 = arith.mulf %762, %764 : vector<16x256xf32>
    %766 = arith.truncf %765 : vector<16x256xf32> to vector<16x256xbf16>
    %c128_727 = arith.constant 128 : index
    %c0_728 = arith.constant 0 : index
    %767 = vector.load %arg6[%c128_727, %c0_728] : memref<144x256xbf16, #tpu.memory_space<vmem>>, vector<16x256xbf16>
    tpu.vector_store %arg6[%c128_727, %c0_728], %766 {strides = array<i32>} : memref<144x256xbf16, #tpu.memory_space<vmem>>, vector<16x256xbf16>,
    %c4_729 = arith.constant 4 : index
    %c0_730 = arith.constant 0 : index
    %c0_731 = arith.constant 0 : index
    %c0_732 = arith.constant 0 : index
    %768 = vector.load %arg2[%c4_729, %c0_730, %c0_731, %c0_732] : memref<7x3x16x144xbf16, #tpu.memory_space<vmem>>, vector<1x1x16x144xbf16>
    %769 = vector.shape_cast %768 : vector<1x1x16x144xbf16> to vector<16x144xbf16>
    %c0_733 = arith.constant 0 : index
    %c0_734 = arith.constant 0 : index
    %770 = vector.load %arg6[%c0_733, %c0_734] : memref<144x256xbf16, #tpu.memory_space<vmem>>, vector<144x256xbf16>
    %cst_735 = arith.constant dense<0.000000e+00> : vector<16x256xf32>
    %771 = tpu.matmul %769, %770, %cst_735 {dimension_numbers = #tpu.dot_dimension_numbers<[1], [0], [0], [1], [0, 0, 1, 1], [], []>} : vector<16x144xbf16>, vector<144x256xbf16>, vector<16x256xf32> -> vector<16x256xf32>
    %c9_i32_736 = arith.constant 9 : i32
    %772 = tpu.dynamic_rotate %713 by %c9_i32_736 dim 1 : vector<16x256xf32>, i32 -> vector<16x256xf32>
    %c9_737 = arith.constant 9 : index
    %c0_738 = arith.constant 0 : index
    %c0_739 = arith.constant 0 : index
    %773 = vector.load %arg4[%c9_737, %c0_738, %c0_739] : memref<27x16x256xf32, #tpu.memory_space<vmem>>, vector<1x16x256xf32>
    %774 = vector.shape_cast %773 : vector<1x16x256xf32> to vector<16x256xf32>
    %775 = arith.mulf %772, %774 : vector<16x256xf32>
    %776 = arith.truncf %775 : vector<16x256xf32> to vector<16x256xbf16>
    %c0_740 = arith.constant 0 : index
    %c0_741 = arith.constant 0 : index
    %777 = vector.load %arg7[%c0_740, %c0_741] : memref<144x256xbf16, #tpu.memory_space<vmem>>, vector<16x256xbf16>
    tpu.vector_store %arg7[%c0_740, %c0_741], %776 {strides = array<i32>} : memref<144x256xbf16, #tpu.memory_space<vmem>>, vector<16x256xbf16>,
    %c8_i32_742 = arith.constant 8 : i32
    %778 = tpu.dynamic_rotate %713 by %c8_i32_742 dim 1 : vector<16x256xf32>, i32 -> vector<16x256xf32>
    %c10_743 = arith.constant 10 : index
    %c0_744 = arith.constant 0 : index
    %c0_745 = arith.constant 0 : index
    %779 = vector.load %arg4[%c10_743, %c0_744, %c0_745] : memref<27x16x256xf32, #tpu.memory_space<vmem>>, vector<1x16x256xf32>
    %780 = vector.shape_cast %779 : vector<1x16x256xf32> to vector<16x256xf32>
    %781 = arith.mulf %778, %780 : vector<16x256xf32>
    %782 = arith.truncf %781 : vector<16x256xf32> to vector<16x256xbf16>
    %c16_746 = arith.constant 16 : index
    %c0_747 = arith.constant 0 : index
    %783 = vector.load %arg7[%c16_746, %c0_747] : memref<144x256xbf16, #tpu.memory_space<vmem>>, vector<16x256xbf16>
    tpu.vector_store %arg7[%c16_746, %c0_747], %782 {strides = array<i32>} : memref<144x256xbf16, #tpu.memory_space<vmem>>, vector<16x256xbf16>,
    %c7_i32_748 = arith.constant 7 : i32
    %784 = tpu.dynamic_rotate %713 by %c7_i32_748 dim 1 : vector<16x256xf32>, i32 -> vector<16x256xf32>
    %c11_749 = arith.constant 11 : index
    %c0_750 = arith.constant 0 : index
    %c0_751 = arith.constant 0 : index
    %785 = vector.load %arg4[%c11_749, %c0_750, %c0_751] : memref<27x16x256xf32, #tpu.memory_space<vmem>>, vector<1x16x256xf32>
    %786 = vector.shape_cast %785 : vector<1x16x256xf32> to vector<16x256xf32>
    %787 = arith.mulf %784, %786 : vector<16x256xf32>
    %788 = arith.truncf %787 : vector<16x256xf32> to vector<16x256xbf16>
    %c32_752 = arith.constant 32 : index
    %c0_753 = arith.constant 0 : index
    %789 = vector.load %arg7[%c32_752, %c0_753] : memref<144x256xbf16, #tpu.memory_space<vmem>>, vector<16x256xbf16>
    tpu.vector_store %arg7[%c32_752, %c0_753], %788 {strides = array<i32>} : memref<144x256xbf16, #tpu.memory_space<vmem>>, vector<16x256xbf16>,
    %c1_i32_754 = arith.constant 1 : i32
    %790 = tpu.dynamic_rotate %713 by %c1_i32_754 dim 1 : vector<16x256xf32>, i32 -> vector<16x256xf32>
    %c12_755 = arith.constant 12 : index
    %c0_756 = arith.constant 0 : index
    %c0_757 = arith.constant 0 : index
    %791 = vector.load %arg4[%c12_755, %c0_756, %c0_757] : memref<27x16x256xf32, #tpu.memory_space<vmem>>, vector<1x16x256xf32>
    %792 = vector.shape_cast %791 : vector<1x16x256xf32> to vector<16x256xf32>
    %793 = arith.mulf %790, %792 : vector<16x256xf32>
    %794 = arith.truncf %793 : vector<16x256xf32> to vector<16x256xbf16>
    %c48_758 = arith.constant 48 : index
    %c0_759 = arith.constant 0 : index
    %795 = vector.load %arg7[%c48_758, %c0_759] : memref<144x256xbf16, #tpu.memory_space<vmem>>, vector<16x256xbf16>
    tpu.vector_store %arg7[%c48_758, %c0_759], %794 {strides = array<i32>} : memref<144x256xbf16, #tpu.memory_space<vmem>>, vector<16x256xbf16>,
    %796 = arith.truncf %713 : vector<16x256xf32> to vector<16x256xbf16>
    %c64_760 = arith.constant 64 : index
    %c0_761 = arith.constant 0 : index
    %797 = vector.load %arg7[%c64_760, %c0_761] : memref<144x256xbf16, #tpu.memory_space<vmem>>, vector<16x256xbf16>
    tpu.vector_store %arg7[%c64_760, %c0_761], %796 {strides = array<i32>} : memref<144x256xbf16, #tpu.memory_space<vmem>>, vector<16x256xbf16>,
    %c255_i32_762 = arith.constant 255 : i32
    %798 = tpu.dynamic_rotate %713 by %c255_i32_762 dim 1 : vector<16x256xf32>, i32 -> vector<16x256xf32>
    %c14_763 = arith.constant 14 : index
    %c0_764 = arith.constant 0 : index
    %c0_765 = arith.constant 0 : index
    %799 = vector.load %arg4[%c14_763, %c0_764, %c0_765] : memref<27x16x256xf32, #tpu.memory_space<vmem>>, vector<1x16x256xf32>
    %800 = vector.shape_cast %799 : vector<1x16x256xf32> to vector<16x256xf32>
    %801 = arith.mulf %798, %800 : vector<16x256xf32>
    %802 = arith.truncf %801 : vector<16x256xf32> to vector<16x256xbf16>
    %c80_766 = arith.constant 80 : index
    %c0_767 = arith.constant 0 : index
    %803 = vector.load %arg7[%c80_766, %c0_767] : memref<144x256xbf16, #tpu.memory_space<vmem>>, vector<16x256xbf16>
    tpu.vector_store %arg7[%c80_766, %c0_767], %802 {strides = array<i32>} : memref<144x256xbf16, #tpu.memory_space<vmem>>, vector<16x256xbf16>,
    %c249_i32_768 = arith.constant 249 : i32
    %804 = tpu.dynamic_rotate %713 by %c249_i32_768 dim 1 : vector<16x256xf32>, i32 -> vector<16x256xf32>
    %c15_769 = arith.constant 15 : index
    %c0_770 = arith.constant 0 : index
    %c0_771 = arith.constant 0 : index
    %805 = vector.load %arg4[%c15_769, %c0_770, %c0_771] : memref<27x16x256xf32, #tpu.memory_space<vmem>>, vector<1x16x256xf32>
    %806 = vector.shape_cast %805 : vector<1x16x256xf32> to vector<16x256xf32>
    %807 = arith.mulf %804, %806 : vector<16x256xf32>
    %808 = arith.truncf %807 : vector<16x256xf32> to vector<16x256xbf16>
    %c96_772 = arith.constant 96 : index
    %c0_773 = arith.constant 0 : index
    %809 = vector.load %arg7[%c96_772, %c0_773] : memref<144x256xbf16, #tpu.memory_space<vmem>>, vector<16x256xbf16>
    tpu.vector_store %arg7[%c96_772, %c0_773], %808 {strides = array<i32>} : memref<144x256xbf16, #tpu.memory_space<vmem>>, vector<16x256xbf16>,
    %c248_i32_774 = arith.constant 248 : i32
    %810 = tpu.dynamic_rotate %713 by %c248_i32_774 dim 1 : vector<16x256xf32>, i32 -> vector<16x256xf32>
    %c16_775 = arith.constant 16 : index
    %c0_776 = arith.constant 0 : index
    %c0_777 = arith.constant 0 : index
    %811 = vector.load %arg4[%c16_775, %c0_776, %c0_777] : memref<27x16x256xf32, #tpu.memory_space<vmem>>, vector<1x16x256xf32>
    %812 = vector.shape_cast %811 : vector<1x16x256xf32> to vector<16x256xf32>
    %813 = arith.mulf %810, %812 : vector<16x256xf32>
    %814 = arith.truncf %813 : vector<16x256xf32> to vector<16x256xbf16>
    %c112_778 = arith.constant 112 : index
    %c0_779 = arith.constant 0 : index
    %815 = vector.load %arg7[%c112_778, %c0_779] : memref<144x256xbf16, #tpu.memory_space<vmem>>, vector<16x256xbf16>
    tpu.vector_store %arg7[%c112_778, %c0_779], %814 {strides = array<i32>} : memref<144x256xbf16, #tpu.memory_space<vmem>>, vector<16x256xbf16>,
    %c247_i32_780 = arith.constant 247 : i32
    %816 = tpu.dynamic_rotate %713 by %c247_i32_780 dim 1 : vector<16x256xf32>, i32 -> vector<16x256xf32>
    %c17_781 = arith.constant 17 : index
    %c0_782 = arith.constant 0 : index
    %c0_783 = arith.constant 0 : index
    %817 = vector.load %arg4[%c17_781, %c0_782, %c0_783] : memref<27x16x256xf32, #tpu.memory_space<vmem>>, vector<1x16x256xf32>
    %818 = vector.shape_cast %817 : vector<1x16x256xf32> to vector<16x256xf32>
    %819 = arith.mulf %816, %818 : vector<16x256xf32>
    %820 = arith.truncf %819 : vector<16x256xf32> to vector<16x256xbf16>
    %c128_784 = arith.constant 128 : index
    %c0_785 = arith.constant 0 : index
    %821 = vector.load %arg7[%c128_784, %c0_785] : memref<144x256xbf16, #tpu.memory_space<vmem>>, vector<16x256xbf16>
    tpu.vector_store %arg7[%c128_784, %c0_785], %820 {strides = array<i32>} : memref<144x256xbf16, #tpu.memory_space<vmem>>, vector<16x256xbf16>,
    %c4_786 = arith.constant 4 : index
    %c1_787 = arith.constant 1 : index
    %c0_788 = arith.constant 0 : index
    %c0_789 = arith.constant 0 : index
    %822 = vector.load %arg2[%c4_786, %c1_787, %c0_788, %c0_789] : memref<7x3x16x144xbf16, #tpu.memory_space<vmem>>, vector<1x1x16x144xbf16>
    %823 = vector.shape_cast %822 : vector<1x1x16x144xbf16> to vector<16x144xbf16>
    %c0_790 = arith.constant 0 : index
    %c0_791 = arith.constant 0 : index
    %824 = vector.load %arg7[%c0_790, %c0_791] : memref<144x256xbf16, #tpu.memory_space<vmem>>, vector<144x256xbf16>
    %cst_792 = arith.constant dense<0.000000e+00> : vector<16x256xf32>
    %825 = tpu.matmul %823, %824, %cst_792 {dimension_numbers = #tpu.dot_dimension_numbers<[1], [0], [0], [1], [0, 0, 1, 1], [], []>} : vector<16x144xbf16>, vector<144x256xbf16>, vector<16x256xf32> -> vector<16x256xf32>
    %826 = arith.addf %771, %825 : vector<16x256xf32>
    %c201_i32_793 = arith.constant 201 : i32
    %827 = tpu.dynamic_rotate %713 by %c201_i32_793 dim 1 : vector<16x256xf32>, i32 -> vector<16x256xf32>
    %c18_794 = arith.constant 18 : index
    %c0_795 = arith.constant 0 : index
    %c0_796 = arith.constant 0 : index
    %828 = vector.load %arg4[%c18_794, %c0_795, %c0_796] : memref<27x16x256xf32, #tpu.memory_space<vmem>>, vector<1x16x256xf32>
    %829 = vector.shape_cast %828 : vector<1x16x256xf32> to vector<16x256xf32>
    %830 = arith.mulf %827, %829 : vector<16x256xf32>
    %831 = arith.truncf %830 : vector<16x256xf32> to vector<16x256xbf16>
    %c0_797 = arith.constant 0 : index
    %c0_798 = arith.constant 0 : index
    %832 = vector.load %arg8[%c0_797, %c0_798] : memref<144x256xbf16, #tpu.memory_space<vmem>>, vector<16x256xbf16>
    tpu.vector_store %arg8[%c0_797, %c0_798], %831 {strides = array<i32>} : memref<144x256xbf16, #tpu.memory_space<vmem>>, vector<16x256xbf16>,
    %c200_i32_799 = arith.constant 200 : i32
    %833 = tpu.dynamic_rotate %713 by %c200_i32_799 dim 1 : vector<16x256xf32>, i32 -> vector<16x256xf32>
    %c19_800 = arith.constant 19 : index
    %c0_801 = arith.constant 0 : index
    %c0_802 = arith.constant 0 : index
    %834 = vector.load %arg4[%c19_800, %c0_801, %c0_802] : memref<27x16x256xf32, #tpu.memory_space<vmem>>, vector<1x16x256xf32>
    %835 = vector.shape_cast %834 : vector<1x16x256xf32> to vector<16x256xf32>
    %836 = arith.mulf %833, %835 : vector<16x256xf32>
    %837 = arith.truncf %836 : vector<16x256xf32> to vector<16x256xbf16>
    %c16_803 = arith.constant 16 : index
    %c0_804 = arith.constant 0 : index
    %838 = vector.load %arg8[%c16_803, %c0_804] : memref<144x256xbf16, #tpu.memory_space<vmem>>, vector<16x256xbf16>
    tpu.vector_store %arg8[%c16_803, %c0_804], %837 {strides = array<i32>} : memref<144x256xbf16, #tpu.memory_space<vmem>>, vector<16x256xbf16>,
    %c199_i32_805 = arith.constant 199 : i32
    %839 = tpu.dynamic_rotate %713 by %c199_i32_805 dim 1 : vector<16x256xf32>, i32 -> vector<16x256xf32>
    %c20_806 = arith.constant 20 : index
    %c0_807 = arith.constant 0 : index
    %c0_808 = arith.constant 0 : index
    %840 = vector.load %arg4[%c20_806, %c0_807, %c0_808] : memref<27x16x256xf32, #tpu.memory_space<vmem>>, vector<1x16x256xf32>
    %841 = vector.shape_cast %840 : vector<1x16x256xf32> to vector<16x256xf32>
    %842 = arith.mulf %839, %841 : vector<16x256xf32>
    %843 = arith.truncf %842 : vector<16x256xf32> to vector<16x256xbf16>
    %c32_809 = arith.constant 32 : index
    %c0_810 = arith.constant 0 : index
    %844 = vector.load %arg8[%c32_809, %c0_810] : memref<144x256xbf16, #tpu.memory_space<vmem>>, vector<16x256xbf16>
    tpu.vector_store %arg8[%c32_809, %c0_810], %843 {strides = array<i32>} : memref<144x256xbf16, #tpu.memory_space<vmem>>, vector<16x256xbf16>,
    %c193_i32_811 = arith.constant 193 : i32
    %845 = tpu.dynamic_rotate %713 by %c193_i32_811 dim 1 : vector<16x256xf32>, i32 -> vector<16x256xf32>
    %c21_812 = arith.constant 21 : index
    %c0_813 = arith.constant 0 : index
    %c0_814 = arith.constant 0 : index
    %846 = vector.load %arg4[%c21_812, %c0_813, %c0_814] : memref<27x16x256xf32, #tpu.memory_space<vmem>>, vector<1x16x256xf32>
    %847 = vector.shape_cast %846 : vector<1x16x256xf32> to vector<16x256xf32>
    %848 = arith.mulf %845, %847 : vector<16x256xf32>
    %849 = arith.truncf %848 : vector<16x256xf32> to vector<16x256xbf16>
    %c48_815 = arith.constant 48 : index
    %c0_816 = arith.constant 0 : index
    %850 = vector.load %arg8[%c48_815, %c0_816] : memref<144x256xbf16, #tpu.memory_space<vmem>>, vector<16x256xbf16>
    tpu.vector_store %arg8[%c48_815, %c0_816], %849 {strides = array<i32>} : memref<144x256xbf16, #tpu.memory_space<vmem>>, vector<16x256xbf16>,
    %c192_i32_817 = arith.constant 192 : i32
    %851 = tpu.dynamic_rotate %713 by %c192_i32_817 dim 1 : vector<16x256xf32>, i32 -> vector<16x256xf32>
    %c22_818 = arith.constant 22 : index
    %c0_819 = arith.constant 0 : index
    %c0_820 = arith.constant 0 : index
    %852 = vector.load %arg4[%c22_818, %c0_819, %c0_820] : memref<27x16x256xf32, #tpu.memory_space<vmem>>, vector<1x16x256xf32>
    %853 = vector.shape_cast %852 : vector<1x16x256xf32> to vector<16x256xf32>
    %854 = arith.mulf %851, %853 : vector<16x256xf32>
    %855 = arith.truncf %854 : vector<16x256xf32> to vector<16x256xbf16>
    %c64_821 = arith.constant 64 : index
    %c0_822 = arith.constant 0 : index
    %856 = vector.load %arg8[%c64_821, %c0_822] : memref<144x256xbf16, #tpu.memory_space<vmem>>, vector<16x256xbf16>
    tpu.vector_store %arg8[%c64_821, %c0_822], %855 {strides = array<i32>} : memref<144x256xbf16, #tpu.memory_space<vmem>>, vector<16x256xbf16>,
    %c191_i32_823 = arith.constant 191 : i32
    %857 = tpu.dynamic_rotate %713 by %c191_i32_823 dim 1 : vector<16x256xf32>, i32 -> vector<16x256xf32>
    %c23_824 = arith.constant 23 : index
    %c0_825 = arith.constant 0 : index
    %c0_826 = arith.constant 0 : index
    %858 = vector.load %arg4[%c23_824, %c0_825, %c0_826] : memref<27x16x256xf32, #tpu.memory_space<vmem>>, vector<1x16x256xf32>
    %859 = vector.shape_cast %858 : vector<1x16x256xf32> to vector<16x256xf32>
    %860 = arith.mulf %857, %859 : vector<16x256xf32>
    %861 = arith.truncf %860 : vector<16x256xf32> to vector<16x256xbf16>
    %c80_827 = arith.constant 80 : index
    %c0_828 = arith.constant 0 : index
    %862 = vector.load %arg8[%c80_827, %c0_828] : memref<144x256xbf16, #tpu.memory_space<vmem>>, vector<16x256xbf16>
    tpu.vector_store %arg8[%c80_827, %c0_828], %861 {strides = array<i32>} : memref<144x256xbf16, #tpu.memory_space<vmem>>, vector<16x256xbf16>,
    %c185_i32_829 = arith.constant 185 : i32
    %863 = tpu.dynamic_rotate %713 by %c185_i32_829 dim 1 : vector<16x256xf32>, i32 -> vector<16x256xf32>
    %c24_830 = arith.constant 24 : index
    %c0_831 = arith.constant 0 : index
    %c0_832 = arith.constant 0 : index
    %864 = vector.load %arg4[%c24_830, %c0_831, %c0_832] : memref<27x16x256xf32, #tpu.memory_space<vmem>>, vector<1x16x256xf32>
    %865 = vector.shape_cast %864 : vector<1x16x256xf32> to vector<16x256xf32>
    %866 = arith.mulf %863, %865 : vector<16x256xf32>
    %867 = arith.truncf %866 : vector<16x256xf32> to vector<16x256xbf16>
    %c96_833 = arith.constant 96 : index
    %c0_834 = arith.constant 0 : index
    %868 = vector.load %arg8[%c96_833, %c0_834] : memref<144x256xbf16, #tpu.memory_space<vmem>>, vector<16x256xbf16>
    tpu.vector_store %arg8[%c96_833, %c0_834], %867 {strides = array<i32>} : memref<144x256xbf16, #tpu.memory_space<vmem>>, vector<16x256xbf16>,
    %c184_i32_835 = arith.constant 184 : i32
    %869 = tpu.dynamic_rotate %713 by %c184_i32_835 dim 1 : vector<16x256xf32>, i32 -> vector<16x256xf32>
    %c25_836 = arith.constant 25 : index
    %c0_837 = arith.constant 0 : index
    %c0_838 = arith.constant 0 : index
    %870 = vector.load %arg4[%c25_836, %c0_837, %c0_838] : memref<27x16x256xf32, #tpu.memory_space<vmem>>, vector<1x16x256xf32>
    %871 = vector.shape_cast %870 : vector<1x16x256xf32> to vector<16x256xf32>
    %872 = arith.mulf %869, %871 : vector<16x256xf32>
    %873 = arith.truncf %872 : vector<16x256xf32> to vector<16x256xbf16>
    %c112_839 = arith.constant 112 : index
    %c0_840 = arith.constant 0 : index
    %874 = vector.load %arg8[%c112_839, %c0_840] : memref<144x256xbf16, #tpu.memory_space<vmem>>, vector<16x256xbf16>
    tpu.vector_store %arg8[%c112_839, %c0_840], %873 {strides = array<i32>} : memref<144x256xbf16, #tpu.memory_space<vmem>>, vector<16x256xbf16>,
    %c183_i32_841 = arith.constant 183 : i32
    %875 = tpu.dynamic_rotate %713 by %c183_i32_841 dim 1 : vector<16x256xf32>, i32 -> vector<16x256xf32>
    %c26_842 = arith.constant 26 : index
    %c0_843 = arith.constant 0 : index
    %c0_844 = arith.constant 0 : index
    %876 = vector.load %arg4[%c26_842, %c0_843, %c0_844] : memref<27x16x256xf32, #tpu.memory_space<vmem>>, vector<1x16x256xf32>
    %877 = vector.shape_cast %876 : vector<1x16x256xf32> to vector<16x256xf32>
    %878 = arith.mulf %875, %877 : vector<16x256xf32>
    %879 = arith.truncf %878 : vector<16x256xf32> to vector<16x256xbf16>
    %c128_845 = arith.constant 128 : index
    %c0_846 = arith.constant 0 : index
    %880 = vector.load %arg8[%c128_845, %c0_846] : memref<144x256xbf16, #tpu.memory_space<vmem>>, vector<16x256xbf16>
    tpu.vector_store %arg8[%c128_845, %c0_846], %879 {strides = array<i32>} : memref<144x256xbf16, #tpu.memory_space<vmem>>, vector<16x256xbf16>,
    %c4_847 = arith.constant 4 : index
    %c2_848 = arith.constant 2 : index
    %c0_849 = arith.constant 0 : index
    %c0_850 = arith.constant 0 : index
    %881 = vector.load %arg2[%c4_847, %c2_848, %c0_849, %c0_850] : memref<7x3x16x144xbf16, #tpu.memory_space<vmem>>, vector<1x1x16x144xbf16>
    %882 = vector.shape_cast %881 : vector<1x1x16x144xbf16> to vector<16x144xbf16>
    %c0_851 = arith.constant 0 : index
    %c0_852 = arith.constant 0 : index
    %883 = vector.load %arg8[%c0_851, %c0_852] : memref<144x256xbf16, #tpu.memory_space<vmem>>, vector<144x256xbf16>
    %cst_853 = arith.constant dense<0.000000e+00> : vector<16x256xf32>
    %884 = tpu.matmul %882, %883, %cst_853 {dimension_numbers = #tpu.dot_dimension_numbers<[1], [0], [0], [1], [0, 0, 1, 1], [], []>} : vector<16x144xbf16>, vector<144x256xbf16>, vector<16x256xf32> -> vector<16x256xf32>
    %885 = arith.addf %826, %884 : vector<16x256xf32>
    %c4_854 = arith.constant 4 : index
    %c0_855 = arith.constant 0 : index
    %c0_856 = arith.constant 0 : index
    %886 = vector.load %arg3[%c4_854, %c0_855, %c0_856] : memref<7x16x1xf32, #tpu.memory_space<vmem>>, vector<1x16x1xf32>
    %887 = vector.shape_cast %886 : vector<1x16x1xf32> to vector<16x1xf32>
    %888 = vector.broadcast %887 : vector<16x1xf32> to vector<16x256xf32>
    %889 = arith.addf %885, %888 : vector<16x256xf32>
    %cst_857 = arith.constant 0.000000e+00 : f32
    %890 = vector.broadcast %cst_857 : f32 to vector<16x256xf32>
    %891 = arith.maximumf %889, %890 : vector<16x256xf32>
    %c73_i32_858 = arith.constant 73 : i32
    %892 = tpu.dynamic_rotate %891 by %c73_i32_858 dim 1 : vector<16x256xf32>, i32 -> vector<16x256xf32>
    %c0_859 = arith.constant 0 : index
    %c0_860 = arith.constant 0 : index
    %c0_861 = arith.constant 0 : index
    %893 = vector.load %arg4[%c0_859, %c0_860, %c0_861] : memref<27x16x256xf32, #tpu.memory_space<vmem>>, vector<1x16x256xf32>
    %894 = vector.shape_cast %893 : vector<1x16x256xf32> to vector<16x256xf32>
    %895 = arith.mulf %892, %894 : vector<16x256xf32>
    %896 = arith.truncf %895 : vector<16x256xf32> to vector<16x256xbf16>
    %c0_862 = arith.constant 0 : index
    %c0_863 = arith.constant 0 : index
    %897 = vector.load %arg6[%c0_862, %c0_863] : memref<144x256xbf16, #tpu.memory_space<vmem>>, vector<16x256xbf16>
    tpu.vector_store %arg6[%c0_862, %c0_863], %896 {strides = array<i32>} : memref<144x256xbf16, #tpu.memory_space<vmem>>, vector<16x256xbf16>,
    %c72_i32_864 = arith.constant 72 : i32
    %898 = tpu.dynamic_rotate %891 by %c72_i32_864 dim 1 : vector<16x256xf32>, i32 -> vector<16x256xf32>
    %c1_865 = arith.constant 1 : index
    %c0_866 = arith.constant 0 : index
    %c0_867 = arith.constant 0 : index
    %899 = vector.load %arg4[%c1_865, %c0_866, %c0_867] : memref<27x16x256xf32, #tpu.memory_space<vmem>>, vector<1x16x256xf32>
    %900 = vector.shape_cast %899 : vector<1x16x256xf32> to vector<16x256xf32>
    %901 = arith.mulf %898, %900 : vector<16x256xf32>
    %902 = arith.truncf %901 : vector<16x256xf32> to vector<16x256xbf16>
    %c16_868 = arith.constant 16 : index
    %c0_869 = arith.constant 0 : index
    %903 = vector.load %arg6[%c16_868, %c0_869] : memref<144x256xbf16, #tpu.memory_space<vmem>>, vector<16x256xbf16>
    tpu.vector_store %arg6[%c16_868, %c0_869], %902 {strides = array<i32>} : memref<144x256xbf16, #tpu.memory_space<vmem>>, vector<16x256xbf16>,
    %c71_i32_870 = arith.constant 71 : i32
    %904 = tpu.dynamic_rotate %891 by %c71_i32_870 dim 1 : vector<16x256xf32>, i32 -> vector<16x256xf32>
    %c2_871 = arith.constant 2 : index
    %c0_872 = arith.constant 0 : index
    %c0_873 = arith.constant 0 : index
    %905 = vector.load %arg4[%c2_871, %c0_872, %c0_873] : memref<27x16x256xf32, #tpu.memory_space<vmem>>, vector<1x16x256xf32>
    %906 = vector.shape_cast %905 : vector<1x16x256xf32> to vector<16x256xf32>
    %907 = arith.mulf %904, %906 : vector<16x256xf32>
    %908 = arith.truncf %907 : vector<16x256xf32> to vector<16x256xbf16>
    %c32_874 = arith.constant 32 : index
    %c0_875 = arith.constant 0 : index
    %909 = vector.load %arg6[%c32_874, %c0_875] : memref<144x256xbf16, #tpu.memory_space<vmem>>, vector<16x256xbf16>
    tpu.vector_store %arg6[%c32_874, %c0_875], %908 {strides = array<i32>} : memref<144x256xbf16, #tpu.memory_space<vmem>>, vector<16x256xbf16>,
    %c65_i32_876 = arith.constant 65 : i32
    %910 = tpu.dynamic_rotate %891 by %c65_i32_876 dim 1 : vector<16x256xf32>, i32 -> vector<16x256xf32>
    %c3_877 = arith.constant 3 : index
    %c0_878 = arith.constant 0 : index
    %c0_879 = arith.constant 0 : index
    %911 = vector.load %arg4[%c3_877, %c0_878, %c0_879] : memref<27x16x256xf32, #tpu.memory_space<vmem>>, vector<1x16x256xf32>
    %912 = vector.shape_cast %911 : vector<1x16x256xf32> to vector<16x256xf32>
    %913 = arith.mulf %910, %912 : vector<16x256xf32>
    %914 = arith.truncf %913 : vector<16x256xf32> to vector<16x256xbf16>
    %c48_880 = arith.constant 48 : index
    %c0_881 = arith.constant 0 : index
    %915 = vector.load %arg6[%c48_880, %c0_881] : memref<144x256xbf16, #tpu.memory_space<vmem>>, vector<16x256xbf16>
    tpu.vector_store %arg6[%c48_880, %c0_881], %914 {strides = array<i32>} : memref<144x256xbf16, #tpu.memory_space<vmem>>, vector<16x256xbf16>,
    %c64_i32_882 = arith.constant 64 : i32
    %916 = tpu.dynamic_rotate %891 by %c64_i32_882 dim 1 : vector<16x256xf32>, i32 -> vector<16x256xf32>
    %c4_883 = arith.constant 4 : index
    %c0_884 = arith.constant 0 : index
    %c0_885 = arith.constant 0 : index
    %917 = vector.load %arg4[%c4_883, %c0_884, %c0_885] : memref<27x16x256xf32, #tpu.memory_space<vmem>>, vector<1x16x256xf32>
    %918 = vector.shape_cast %917 : vector<1x16x256xf32> to vector<16x256xf32>
    %919 = arith.mulf %916, %918 : vector<16x256xf32>
    %920 = arith.truncf %919 : vector<16x256xf32> to vector<16x256xbf16>
    %c64_886 = arith.constant 64 : index
    %c0_887 = arith.constant 0 : index
    %921 = vector.load %arg6[%c64_886, %c0_887] : memref<144x256xbf16, #tpu.memory_space<vmem>>, vector<16x256xbf16>
    tpu.vector_store %arg6[%c64_886, %c0_887], %920 {strides = array<i32>} : memref<144x256xbf16, #tpu.memory_space<vmem>>, vector<16x256xbf16>,
    %c63_i32_888 = arith.constant 63 : i32
    %922 = tpu.dynamic_rotate %891 by %c63_i32_888 dim 1 : vector<16x256xf32>, i32 -> vector<16x256xf32>
    %c5_889 = arith.constant 5 : index
    %c0_890 = arith.constant 0 : index
    %c0_891 = arith.constant 0 : index
    %923 = vector.load %arg4[%c5_889, %c0_890, %c0_891] : memref<27x16x256xf32, #tpu.memory_space<vmem>>, vector<1x16x256xf32>
    %924 = vector.shape_cast %923 : vector<1x16x256xf32> to vector<16x256xf32>
    %925 = arith.mulf %922, %924 : vector<16x256xf32>
    %926 = arith.truncf %925 : vector<16x256xf32> to vector<16x256xbf16>
    %c80_892 = arith.constant 80 : index
    %c0_893 = arith.constant 0 : index
    %927 = vector.load %arg6[%c80_892, %c0_893] : memref<144x256xbf16, #tpu.memory_space<vmem>>, vector<16x256xbf16>
    tpu.vector_store %arg6[%c80_892, %c0_893], %926 {strides = array<i32>} : memref<144x256xbf16, #tpu.memory_space<vmem>>, vector<16x256xbf16>,
    %c57_i32_894 = arith.constant 57 : i32
    %928 = tpu.dynamic_rotate %891 by %c57_i32_894 dim 1 : vector<16x256xf32>, i32 -> vector<16x256xf32>
    %c6_895 = arith.constant 6 : index
    %c0_896 = arith.constant 0 : index
    %c0_897 = arith.constant 0 : index
    %929 = vector.load %arg4[%c6_895, %c0_896, %c0_897] : memref<27x16x256xf32, #tpu.memory_space<vmem>>, vector<1x16x256xf32>
    %930 = vector.shape_cast %929 : vector<1x16x256xf32> to vector<16x256xf32>
    %931 = arith.mulf %928, %930 : vector<16x256xf32>
    %932 = arith.truncf %931 : vector<16x256xf32> to vector<16x256xbf16>
    %c96_898 = arith.constant 96 : index
    %c0_899 = arith.constant 0 : index
    %933 = vector.load %arg6[%c96_898, %c0_899] : memref<144x256xbf16, #tpu.memory_space<vmem>>, vector<16x256xbf16>
    tpu.vector_store %arg6[%c96_898, %c0_899], %932 {strides = array<i32>} : memref<144x256xbf16, #tpu.memory_space<vmem>>, vector<16x256xbf16>,
    %c56_i32_900 = arith.constant 56 : i32
    %934 = tpu.dynamic_rotate %891 by %c56_i32_900 dim 1 : vector<16x256xf32>, i32 -> vector<16x256xf32>
    %c7_901 = arith.constant 7 : index
    %c0_902 = arith.constant 0 : index
    %c0_903 = arith.constant 0 : index
    %935 = vector.load %arg4[%c7_901, %c0_902, %c0_903] : memref<27x16x256xf32, #tpu.memory_space<vmem>>, vector<1x16x256xf32>
    %936 = vector.shape_cast %935 : vector<1x16x256xf32> to vector<16x256xf32>
    %937 = arith.mulf %934, %936 : vector<16x256xf32>
    %938 = arith.truncf %937 : vector<16x256xf32> to vector<16x256xbf16>
    %c112_904 = arith.constant 112 : index
    %c0_905 = arith.constant 0 : index
    %939 = vector.load %arg6[%c112_904, %c0_905] : memref<144x256xbf16, #tpu.memory_space<vmem>>, vector<16x256xbf16>
    tpu.vector_store %arg6[%c112_904, %c0_905], %938 {strides = array<i32>} : memref<144x256xbf16, #tpu.memory_space<vmem>>, vector<16x256xbf16>,
    %c55_i32_906 = arith.constant 55 : i32
    %940 = tpu.dynamic_rotate %891 by %c55_i32_906 dim 1 : vector<16x256xf32>, i32 -> vector<16x256xf32>
    %c8_907 = arith.constant 8 : index
    %c0_908 = arith.constant 0 : index
    %c0_909 = arith.constant 0 : index
    %941 = vector.load %arg4[%c8_907, %c0_908, %c0_909] : memref<27x16x256xf32, #tpu.memory_space<vmem>>, vector<1x16x256xf32>
    %942 = vector.shape_cast %941 : vector<1x16x256xf32> to vector<16x256xf32>
    %943 = arith.mulf %940, %942 : vector<16x256xf32>
    %944 = arith.truncf %943 : vector<16x256xf32> to vector<16x256xbf16>
    %c128_910 = arith.constant 128 : index
    %c0_911 = arith.constant 0 : index
    %945 = vector.load %arg6[%c128_910, %c0_911] : memref<144x256xbf16, #tpu.memory_space<vmem>>, vector<16x256xbf16>
    tpu.vector_store %arg6[%c128_910, %c0_911], %944 {strides = array<i32>} : memref<144x256xbf16, #tpu.memory_space<vmem>>, vector<16x256xbf16>,
    %c5_912 = arith.constant 5 : index
    %c0_913 = arith.constant 0 : index
    %c0_914 = arith.constant 0 : index
    %c0_915 = arith.constant 0 : index
    %946 = vector.load %arg2[%c5_912, %c0_913, %c0_914, %c0_915] : memref<7x3x16x144xbf16, #tpu.memory_space<vmem>>, vector<1x1x16x144xbf16>
    %947 = vector.shape_cast %946 : vector<1x1x16x144xbf16> to vector<16x144xbf16>
    %c0_916 = arith.constant 0 : index
    %c0_917 = arith.constant 0 : index
    %948 = vector.load %arg6[%c0_916, %c0_917] : memref<144x256xbf16, #tpu.memory_space<vmem>>, vector<144x256xbf16>
    %cst_918 = arith.constant dense<0.000000e+00> : vector<16x256xf32>
    %949 = tpu.matmul %947, %948, %cst_918 {dimension_numbers = #tpu.dot_dimension_numbers<[1], [0], [0], [1], [0, 0, 1, 1], [], []>} : vector<16x144xbf16>, vector<144x256xbf16>, vector<16x256xf32> -> vector<16x256xf32>
    %c9_i32_919 = arith.constant 9 : i32
    %950 = tpu.dynamic_rotate %891 by %c9_i32_919 dim 1 : vector<16x256xf32>, i32 -> vector<16x256xf32>
    %c9_920 = arith.constant 9 : index
    %c0_921 = arith.constant 0 : index
    %c0_922 = arith.constant 0 : index
    %951 = vector.load %arg4[%c9_920, %c0_921, %c0_922] : memref<27x16x256xf32, #tpu.memory_space<vmem>>, vector<1x16x256xf32>
    %952 = vector.shape_cast %951 : vector<1x16x256xf32> to vector<16x256xf32>
    %953 = arith.mulf %950, %952 : vector<16x256xf32>
    %954 = arith.truncf %953 : vector<16x256xf32> to vector<16x256xbf16>
    %c0_923 = arith.constant 0 : index
    %c0_924 = arith.constant 0 : index
    %955 = vector.load %arg7[%c0_923, %c0_924] : memref<144x256xbf16, #tpu.memory_space<vmem>>, vector<16x256xbf16>
    tpu.vector_store %arg7[%c0_923, %c0_924], %954 {strides = array<i32>} : memref<144x256xbf16, #tpu.memory_space<vmem>>, vector<16x256xbf16>,
    %c8_i32_925 = arith.constant 8 : i32
    %956 = tpu.dynamic_rotate %891 by %c8_i32_925 dim 1 : vector<16x256xf32>, i32 -> vector<16x256xf32>
    %c10_926 = arith.constant 10 : index
    %c0_927 = arith.constant 0 : index
    %c0_928 = arith.constant 0 : index
    %957 = vector.load %arg4[%c10_926, %c0_927, %c0_928] : memref<27x16x256xf32, #tpu.memory_space<vmem>>, vector<1x16x256xf32>
    %958 = vector.shape_cast %957 : vector<1x16x256xf32> to vector<16x256xf32>
    %959 = arith.mulf %956, %958 : vector<16x256xf32>
    %960 = arith.truncf %959 : vector<16x256xf32> to vector<16x256xbf16>
    %c16_929 = arith.constant 16 : index
    %c0_930 = arith.constant 0 : index
    %961 = vector.load %arg7[%c16_929, %c0_930] : memref<144x256xbf16, #tpu.memory_space<vmem>>, vector<16x256xbf16>
    tpu.vector_store %arg7[%c16_929, %c0_930], %960 {strides = array<i32>} : memref<144x256xbf16, #tpu.memory_space<vmem>>, vector<16x256xbf16>,
    %c7_i32_931 = arith.constant 7 : i32
    %962 = tpu.dynamic_rotate %891 by %c7_i32_931 dim 1 : vector<16x256xf32>, i32 -> vector<16x256xf32>
    %c11_932 = arith.constant 11 : index
    %c0_933 = arith.constant 0 : index
    %c0_934 = arith.constant 0 : index
    %963 = vector.load %arg4[%c11_932, %c0_933, %c0_934] : memref<27x16x256xf32, #tpu.memory_space<vmem>>, vector<1x16x256xf32>
    %964 = vector.shape_cast %963 : vector<1x16x256xf32> to vector<16x256xf32>
    %965 = arith.mulf %962, %964 : vector<16x256xf32>
    %966 = arith.truncf %965 : vector<16x256xf32> to vector<16x256xbf16>
    %c32_935 = arith.constant 32 : index
    %c0_936 = arith.constant 0 : index
    %967 = vector.load %arg7[%c32_935, %c0_936] : memref<144x256xbf16, #tpu.memory_space<vmem>>, vector<16x256xbf16>
    tpu.vector_store %arg7[%c32_935, %c0_936], %966 {strides = array<i32>} : memref<144x256xbf16, #tpu.memory_space<vmem>>, vector<16x256xbf16>,
    %c1_i32_937 = arith.constant 1 : i32
    %968 = tpu.dynamic_rotate %891 by %c1_i32_937 dim 1 : vector<16x256xf32>, i32 -> vector<16x256xf32>
    %c12_938 = arith.constant 12 : index
    %c0_939 = arith.constant 0 : index
    %c0_940 = arith.constant 0 : index
    %969 = vector.load %arg4[%c12_938, %c0_939, %c0_940] : memref<27x16x256xf32, #tpu.memory_space<vmem>>, vector<1x16x256xf32>
    %970 = vector.shape_cast %969 : vector<1x16x256xf32> to vector<16x256xf32>
    %971 = arith.mulf %968, %970 : vector<16x256xf32>
    %972 = arith.truncf %971 : vector<16x256xf32> to vector<16x256xbf16>
    %c48_941 = arith.constant 48 : index
    %c0_942 = arith.constant 0 : index
    %973 = vector.load %arg7[%c48_941, %c0_942] : memref<144x256xbf16, #tpu.memory_space<vmem>>, vector<16x256xbf16>
    tpu.vector_store %arg7[%c48_941, %c0_942], %972 {strides = array<i32>} : memref<144x256xbf16, #tpu.memory_space<vmem>>, vector<16x256xbf16>,
    %974 = arith.truncf %891 : vector<16x256xf32> to vector<16x256xbf16>
    %c64_943 = arith.constant 64 : index
    %c0_944 = arith.constant 0 : index
    %975 = vector.load %arg7[%c64_943, %c0_944] : memref<144x256xbf16, #tpu.memory_space<vmem>>, vector<16x256xbf16>
    tpu.vector_store %arg7[%c64_943, %c0_944], %974 {strides = array<i32>} : memref<144x256xbf16, #tpu.memory_space<vmem>>, vector<16x256xbf16>,
    %c255_i32_945 = arith.constant 255 : i32
    %976 = tpu.dynamic_rotate %891 by %c255_i32_945 dim 1 : vector<16x256xf32>, i32 -> vector<16x256xf32>
    %c14_946 = arith.constant 14 : index
    %c0_947 = arith.constant 0 : index
    %c0_948 = arith.constant 0 : index
    %977 = vector.load %arg4[%c14_946, %c0_947, %c0_948] : memref<27x16x256xf32, #tpu.memory_space<vmem>>, vector<1x16x256xf32>
    %978 = vector.shape_cast %977 : vector<1x16x256xf32> to vector<16x256xf32>
    %979 = arith.mulf %976, %978 : vector<16x256xf32>
    %980 = arith.truncf %979 : vector<16x256xf32> to vector<16x256xbf16>
    %c80_949 = arith.constant 80 : index
    %c0_950 = arith.constant 0 : index
    %981 = vector.load %arg7[%c80_949, %c0_950] : memref<144x256xbf16, #tpu.memory_space<vmem>>, vector<16x256xbf16>
    tpu.vector_store %arg7[%c80_949, %c0_950], %980 {strides = array<i32>} : memref<144x256xbf16, #tpu.memory_space<vmem>>, vector<16x256xbf16>,
    %c249_i32_951 = arith.constant 249 : i32
    %982 = tpu.dynamic_rotate %891 by %c249_i32_951 dim 1 : vector<16x256xf32>, i32 -> vector<16x256xf32>
    %c15_952 = arith.constant 15 : index
    %c0_953 = arith.constant 0 : index
    %c0_954 = arith.constant 0 : index
    %983 = vector.load %arg4[%c15_952, %c0_953, %c0_954] : memref<27x16x256xf32, #tpu.memory_space<vmem>>, vector<1x16x256xf32>
    %984 = vector.shape_cast %983 : vector<1x16x256xf32> to vector<16x256xf32>
    %985 = arith.mulf %982, %984 : vector<16x256xf32>
    %986 = arith.truncf %985 : vector<16x256xf32> to vector<16x256xbf16>
    %c96_955 = arith.constant 96 : index
    %c0_956 = arith.constant 0 : index
    %987 = vector.load %arg7[%c96_955, %c0_956] : memref<144x256xbf16, #tpu.memory_space<vmem>>, vector<16x256xbf16>
    tpu.vector_store %arg7[%c96_955, %c0_956], %986 {strides = array<i32>} : memref<144x256xbf16, #tpu.memory_space<vmem>>, vector<16x256xbf16>,
    %c248_i32_957 = arith.constant 248 : i32
    %988 = tpu.dynamic_rotate %891 by %c248_i32_957 dim 1 : vector<16x256xf32>, i32 -> vector<16x256xf32>
    %c16_958 = arith.constant 16 : index
    %c0_959 = arith.constant 0 : index
    %c0_960 = arith.constant 0 : index
    %989 = vector.load %arg4[%c16_958, %c0_959, %c0_960] : memref<27x16x256xf32, #tpu.memory_space<vmem>>, vector<1x16x256xf32>
    %990 = vector.shape_cast %989 : vector<1x16x256xf32> to vector<16x256xf32>
    %991 = arith.mulf %988, %990 : vector<16x256xf32>
    %992 = arith.truncf %991 : vector<16x256xf32> to vector<16x256xbf16>
    %c112_961 = arith.constant 112 : index
    %c0_962 = arith.constant 0 : index
    %993 = vector.load %arg7[%c112_961, %c0_962] : memref<144x256xbf16, #tpu.memory_space<vmem>>, vector<16x256xbf16>
    tpu.vector_store %arg7[%c112_961, %c0_962], %992 {strides = array<i32>} : memref<144x256xbf16, #tpu.memory_space<vmem>>, vector<16x256xbf16>,
    %c247_i32_963 = arith.constant 247 : i32
    %994 = tpu.dynamic_rotate %891 by %c247_i32_963 dim 1 : vector<16x256xf32>, i32 -> vector<16x256xf32>
    %c17_964 = arith.constant 17 : index
    %c0_965 = arith.constant 0 : index
    %c0_966 = arith.constant 0 : index
    %995 = vector.load %arg4[%c17_964, %c0_965, %c0_966] : memref<27x16x256xf32, #tpu.memory_space<vmem>>, vector<1x16x256xf32>
    %996 = vector.shape_cast %995 : vector<1x16x256xf32> to vector<16x256xf32>
    %997 = arith.mulf %994, %996 : vector<16x256xf32>
    %998 = arith.truncf %997 : vector<16x256xf32> to vector<16x256xbf16>
    %c128_967 = arith.constant 128 : index
    %c0_968 = arith.constant 0 : index
    %999 = vector.load %arg7[%c128_967, %c0_968] : memref<144x256xbf16, #tpu.memory_space<vmem>>, vector<16x256xbf16>
    tpu.vector_store %arg7[%c128_967, %c0_968], %998 {strides = array<i32>} : memref<144x256xbf16, #tpu.memory_space<vmem>>, vector<16x256xbf16>,
    %c5_969 = arith.constant 5 : index
    %c1_970 = arith.constant 1 : index
    %c0_971 = arith.constant 0 : index
    %c0_972 = arith.constant 0 : index
    %1000 = vector.load %arg2[%c5_969, %c1_970, %c0_971, %c0_972] : memref<7x3x16x144xbf16, #tpu.memory_space<vmem>>, vector<1x1x16x144xbf16>
    %1001 = vector.shape_cast %1000 : vector<1x1x16x144xbf16> to vector<16x144xbf16>
    %c0_973 = arith.constant 0 : index
    %c0_974 = arith.constant 0 : index
    %1002 = vector.load %arg7[%c0_973, %c0_974] : memref<144x256xbf16, #tpu.memory_space<vmem>>, vector<144x256xbf16>
    %cst_975 = arith.constant dense<0.000000e+00> : vector<16x256xf32>
    %1003 = tpu.matmul %1001, %1002, %cst_975 {dimension_numbers = #tpu.dot_dimension_numbers<[1], [0], [0], [1], [0, 0, 1, 1], [], []>} : vector<16x144xbf16>, vector<144x256xbf16>, vector<16x256xf32> -> vector<16x256xf32>
    %1004 = arith.addf %949, %1003 : vector<16x256xf32>
    %c201_i32_976 = arith.constant 201 : i32
    %1005 = tpu.dynamic_rotate %891 by %c201_i32_976 dim 1 : vector<16x256xf32>, i32 -> vector<16x256xf32>
    %c18_977 = arith.constant 18 : index
    %c0_978 = arith.constant 0 : index
    %c0_979 = arith.constant 0 : index
    %1006 = vector.load %arg4[%c18_977, %c0_978, %c0_979] : memref<27x16x256xf32, #tpu.memory_space<vmem>>, vector<1x16x256xf32>
    %1007 = vector.shape_cast %1006 : vector<1x16x256xf32> to vector<16x256xf32>
    %1008 = arith.mulf %1005, %1007 : vector<16x256xf32>
    %1009 = arith.truncf %1008 : vector<16x256xf32> to vector<16x256xbf16>
    %c0_980 = arith.constant 0 : index
    %c0_981 = arith.constant 0 : index
    %1010 = vector.load %arg8[%c0_980, %c0_981] : memref<144x256xbf16, #tpu.memory_space<vmem>>, vector<16x256xbf16>
    tpu.vector_store %arg8[%c0_980, %c0_981], %1009 {strides = array<i32>} : memref<144x256xbf16, #tpu.memory_space<vmem>>, vector<16x256xbf16>,
    %c200_i32_982 = arith.constant 200 : i32
    %1011 = tpu.dynamic_rotate %891 by %c200_i32_982 dim 1 : vector<16x256xf32>, i32 -> vector<16x256xf32>
    %c19_983 = arith.constant 19 : index
    %c0_984 = arith.constant 0 : index
    %c0_985 = arith.constant 0 : index
    %1012 = vector.load %arg4[%c19_983, %c0_984, %c0_985] : memref<27x16x256xf32, #tpu.memory_space<vmem>>, vector<1x16x256xf32>
    %1013 = vector.shape_cast %1012 : vector<1x16x256xf32> to vector<16x256xf32>
    %1014 = arith.mulf %1011, %1013 : vector<16x256xf32>
    %1015 = arith.truncf %1014 : vector<16x256xf32> to vector<16x256xbf16>
    %c16_986 = arith.constant 16 : index
    %c0_987 = arith.constant 0 : index
    %1016 = vector.load %arg8[%c16_986, %c0_987] : memref<144x256xbf16, #tpu.memory_space<vmem>>, vector<16x256xbf16>
    tpu.vector_store %arg8[%c16_986, %c0_987], %1015 {strides = array<i32>} : memref<144x256xbf16, #tpu.memory_space<vmem>>, vector<16x256xbf16>,
    %c199_i32_988 = arith.constant 199 : i32
    %1017 = tpu.dynamic_rotate %891 by %c199_i32_988 dim 1 : vector<16x256xf32>, i32 -> vector<16x256xf32>
    %c20_989 = arith.constant 20 : index
    %c0_990 = arith.constant 0 : index
    %c0_991 = arith.constant 0 : index
    %1018 = vector.load %arg4[%c20_989, %c0_990, %c0_991] : memref<27x16x256xf32, #tpu.memory_space<vmem>>, vector<1x16x256xf32>
    %1019 = vector.shape_cast %1018 : vector<1x16x256xf32> to vector<16x256xf32>
    %1020 = arith.mulf %1017, %1019 : vector<16x256xf32>
    %1021 = arith.truncf %1020 : vector<16x256xf32> to vector<16x256xbf16>
    %c32_992 = arith.constant 32 : index
    %c0_993 = arith.constant 0 : index
    %1022 = vector.load %arg8[%c32_992, %c0_993] : memref<144x256xbf16, #tpu.memory_space<vmem>>, vector<16x256xbf16>
    tpu.vector_store %arg8[%c32_992, %c0_993], %1021 {strides = array<i32>} : memref<144x256xbf16, #tpu.memory_space<vmem>>, vector<16x256xbf16>,
    %c193_i32_994 = arith.constant 193 : i32
    %1023 = tpu.dynamic_rotate %891 by %c193_i32_994 dim 1 : vector<16x256xf32>, i32 -> vector<16x256xf32>
    %c21_995 = arith.constant 21 : index
    %c0_996 = arith.constant 0 : index
    %c0_997 = arith.constant 0 : index
    %1024 = vector.load %arg4[%c21_995, %c0_996, %c0_997] : memref<27x16x256xf32, #tpu.memory_space<vmem>>, vector<1x16x256xf32>
    %1025 = vector.shape_cast %1024 : vector<1x16x256xf32> to vector<16x256xf32>
    %1026 = arith.mulf %1023, %1025 : vector<16x256xf32>
    %1027 = arith.truncf %1026 : vector<16x256xf32> to vector<16x256xbf16>
    %c48_998 = arith.constant 48 : index
    %c0_999 = arith.constant 0 : index
    %1028 = vector.load %arg8[%c48_998, %c0_999] : memref<144x256xbf16, #tpu.memory_space<vmem>>, vector<16x256xbf16>
    tpu.vector_store %arg8[%c48_998, %c0_999], %1027 {strides = array<i32>} : memref<144x256xbf16, #tpu.memory_space<vmem>>, vector<16x256xbf16>,
    %c192_i32_1000 = arith.constant 192 : i32
    %1029 = tpu.dynamic_rotate %891 by %c192_i32_1000 dim 1 : vector<16x256xf32>, i32 -> vector<16x256xf32>
    %c22_1001 = arith.constant 22 : index
    %c0_1002 = arith.constant 0 : index
    %c0_1003 = arith.constant 0 : index
    %1030 = vector.load %arg4[%c22_1001, %c0_1002, %c0_1003] : memref<27x16x256xf32, #tpu.memory_space<vmem>>, vector<1x16x256xf32>
    %1031 = vector.shape_cast %1030 : vector<1x16x256xf32> to vector<16x256xf32>
    %1032 = arith.mulf %1029, %1031 : vector<16x256xf32>
    %1033 = arith.truncf %1032 : vector<16x256xf32> to vector<16x256xbf16>
    %c64_1004 = arith.constant 64 : index
    %c0_1005 = arith.constant 0 : index
    %1034 = vector.load %arg8[%c64_1004, %c0_1005] : memref<144x256xbf16, #tpu.memory_space<vmem>>, vector<16x256xbf16>
    tpu.vector_store %arg8[%c64_1004, %c0_1005], %1033 {strides = array<i32>} : memref<144x256xbf16, #tpu.memory_space<vmem>>, vector<16x256xbf16>,
    %c191_i32_1006 = arith.constant 191 : i32
    %1035 = tpu.dynamic_rotate %891 by %c191_i32_1006 dim 1 : vector<16x256xf32>, i32 -> vector<16x256xf32>
    %c23_1007 = arith.constant 23 : index
    %c0_1008 = arith.constant 0 : index
    %c0_1009 = arith.constant 0 : index
    %1036 = vector.load %arg4[%c23_1007, %c0_1008, %c0_1009] : memref<27x16x256xf32, #tpu.memory_space<vmem>>, vector<1x16x256xf32>
    %1037 = vector.shape_cast %1036 : vector<1x16x256xf32> to vector<16x256xf32>
    %1038 = arith.mulf %1035, %1037 : vector<16x256xf32>
    %1039 = arith.truncf %1038 : vector<16x256xf32> to vector<16x256xbf16>
    %c80_1010 = arith.constant 80 : index
    %c0_1011 = arith.constant 0 : index
    %1040 = vector.load %arg8[%c80_1010, %c0_1011] : memref<144x256xbf16, #tpu.memory_space<vmem>>, vector<16x256xbf16>
    tpu.vector_store %arg8[%c80_1010, %c0_1011], %1039 {strides = array<i32>} : memref<144x256xbf16, #tpu.memory_space<vmem>>, vector<16x256xbf16>,
    %c185_i32_1012 = arith.constant 185 : i32
    %1041 = tpu.dynamic_rotate %891 by %c185_i32_1012 dim 1 : vector<16x256xf32>, i32 -> vector<16x256xf32>
    %c24_1013 = arith.constant 24 : index
    %c0_1014 = arith.constant 0 : index
    %c0_1015 = arith.constant 0 : index
    %1042 = vector.load %arg4[%c24_1013, %c0_1014, %c0_1015] : memref<27x16x256xf32, #tpu.memory_space<vmem>>, vector<1x16x256xf32>
    %1043 = vector.shape_cast %1042 : vector<1x16x256xf32> to vector<16x256xf32>
    %1044 = arith.mulf %1041, %1043 : vector<16x256xf32>
    %1045 = arith.truncf %1044 : vector<16x256xf32> to vector<16x256xbf16>
    %c96_1016 = arith.constant 96 : index
    %c0_1017 = arith.constant 0 : index
    %1046 = vector.load %arg8[%c96_1016, %c0_1017] : memref<144x256xbf16, #tpu.memory_space<vmem>>, vector<16x256xbf16>
    tpu.vector_store %arg8[%c96_1016, %c0_1017], %1045 {strides = array<i32>} : memref<144x256xbf16, #tpu.memory_space<vmem>>, vector<16x256xbf16>,
    %c184_i32_1018 = arith.constant 184 : i32
    %1047 = tpu.dynamic_rotate %891 by %c184_i32_1018 dim 1 : vector<16x256xf32>, i32 -> vector<16x256xf32>
    %c25_1019 = arith.constant 25 : index
    %c0_1020 = arith.constant 0 : index
    %c0_1021 = arith.constant 0 : index
    %1048 = vector.load %arg4[%c25_1019, %c0_1020, %c0_1021] : memref<27x16x256xf32, #tpu.memory_space<vmem>>, vector<1x16x256xf32>
    %1049 = vector.shape_cast %1048 : vector<1x16x256xf32> to vector<16x256xf32>
    %1050 = arith.mulf %1047, %1049 : vector<16x256xf32>
    %1051 = arith.truncf %1050 : vector<16x256xf32> to vector<16x256xbf16>
    %c112_1022 = arith.constant 112 : index
    %c0_1023 = arith.constant 0 : index
    %1052 = vector.load %arg8[%c112_1022, %c0_1023] : memref<144x256xbf16, #tpu.memory_space<vmem>>, vector<16x256xbf16>
    tpu.vector_store %arg8[%c112_1022, %c0_1023], %1051 {strides = array<i32>} : memref<144x256xbf16, #tpu.memory_space<vmem>>, vector<16x256xbf16>,
    %c183_i32_1024 = arith.constant 183 : i32
    %1053 = tpu.dynamic_rotate %891 by %c183_i32_1024 dim 1 : vector<16x256xf32>, i32 -> vector<16x256xf32>
    %c26_1025 = arith.constant 26 : index
    %c0_1026 = arith.constant 0 : index
    %c0_1027 = arith.constant 0 : index
    %1054 = vector.load %arg4[%c26_1025, %c0_1026, %c0_1027] : memref<27x16x256xf32, #tpu.memory_space<vmem>>, vector<1x16x256xf32>
    %1055 = vector.shape_cast %1054 : vector<1x16x256xf32> to vector<16x256xf32>
    %1056 = arith.mulf %1053, %1055 : vector<16x256xf32>
    %1057 = arith.truncf %1056 : vector<16x256xf32> to vector<16x256xbf16>
    %c128_1028 = arith.constant 128 : index
    %c0_1029 = arith.constant 0 : index
    %1058 = vector.load %arg8[%c128_1028, %c0_1029] : memref<144x256xbf16, #tpu.memory_space<vmem>>, vector<16x256xbf16>
    tpu.vector_store %arg8[%c128_1028, %c0_1029], %1057 {strides = array<i32>} : memref<144x256xbf16, #tpu.memory_space<vmem>>, vector<16x256xbf16>,
    %c5_1030 = arith.constant 5 : index
    %c2_1031 = arith.constant 2 : index
    %c0_1032 = arith.constant 0 : index
    %c0_1033 = arith.constant 0 : index
    %1059 = vector.load %arg2[%c5_1030, %c2_1031, %c0_1032, %c0_1033] : memref<7x3x16x144xbf16, #tpu.memory_space<vmem>>, vector<1x1x16x144xbf16>
    %1060 = vector.shape_cast %1059 : vector<1x1x16x144xbf16> to vector<16x144xbf16>
    %c0_1034 = arith.constant 0 : index
    %c0_1035 = arith.constant 0 : index
    %1061 = vector.load %arg8[%c0_1034, %c0_1035] : memref<144x256xbf16, #tpu.memory_space<vmem>>, vector<144x256xbf16>
    %cst_1036 = arith.constant dense<0.000000e+00> : vector<16x256xf32>
    %1062 = tpu.matmul %1060, %1061, %cst_1036 {dimension_numbers = #tpu.dot_dimension_numbers<[1], [0], [0], [1], [0, 0, 1, 1], [], []>} : vector<16x144xbf16>, vector<144x256xbf16>, vector<16x256xf32> -> vector<16x256xf32>
    %1063 = arith.addf %1004, %1062 : vector<16x256xf32>
    %c5_1037 = arith.constant 5 : index
    %c0_1038 = arith.constant 0 : index
    %c0_1039 = arith.constant 0 : index
    %1064 = vector.load %arg3[%c5_1037, %c0_1038, %c0_1039] : memref<7x16x1xf32, #tpu.memory_space<vmem>>, vector<1x16x1xf32>
    %1065 = vector.shape_cast %1064 : vector<1x16x1xf32> to vector<16x1xf32>
    %1066 = vector.broadcast %1065 : vector<16x1xf32> to vector<16x256xf32>
    %1067 = arith.addf %1063, %1066 : vector<16x256xf32>
    %cst_1040 = arith.constant 0.000000e+00 : f32
    %1068 = vector.broadcast %cst_1040 : f32 to vector<16x256xf32>
    %1069 = arith.maximumf %1067, %1068 : vector<16x256xf32>
    %c73_i32_1041 = arith.constant 73 : i32
    %1070 = tpu.dynamic_rotate %1069 by %c73_i32_1041 dim 1 : vector<16x256xf32>, i32 -> vector<16x256xf32>
    %c0_1042 = arith.constant 0 : index
    %c0_1043 = arith.constant 0 : index
    %c0_1044 = arith.constant 0 : index
    %1071 = vector.load %arg4[%c0_1042, %c0_1043, %c0_1044] : memref<27x16x256xf32, #tpu.memory_space<vmem>>, vector<1x16x256xf32>
    %1072 = vector.shape_cast %1071 : vector<1x16x256xf32> to vector<16x256xf32>
    %1073 = arith.mulf %1070, %1072 : vector<16x256xf32>
    %1074 = arith.truncf %1073 : vector<16x256xf32> to vector<16x256xbf16>
    %c0_1045 = arith.constant 0 : index
    %c0_1046 = arith.constant 0 : index
    %1075 = vector.load %arg6[%c0_1045, %c0_1046] : memref<144x256xbf16, #tpu.memory_space<vmem>>, vector<16x256xbf16>
    tpu.vector_store %arg6[%c0_1045, %c0_1046], %1074 {strides = array<i32>} : memref<144x256xbf16, #tpu.memory_space<vmem>>, vector<16x256xbf16>,
    %c72_i32_1047 = arith.constant 72 : i32
    %1076 = tpu.dynamic_rotate %1069 by %c72_i32_1047 dim 1 : vector<16x256xf32>, i32 -> vector<16x256xf32>
    %c1_1048 = arith.constant 1 : index
    %c0_1049 = arith.constant 0 : index
    %c0_1050 = arith.constant 0 : index
    %1077 = vector.load %arg4[%c1_1048, %c0_1049, %c0_1050] : memref<27x16x256xf32, #tpu.memory_space<vmem>>, vector<1x16x256xf32>
    %1078 = vector.shape_cast %1077 : vector<1x16x256xf32> to vector<16x256xf32>
    %1079 = arith.mulf %1076, %1078 : vector<16x256xf32>
    %1080 = arith.truncf %1079 : vector<16x256xf32> to vector<16x256xbf16>
    %c16_1051 = arith.constant 16 : index
    %c0_1052 = arith.constant 0 : index
    %1081 = vector.load %arg6[%c16_1051, %c0_1052] : memref<144x256xbf16, #tpu.memory_space<vmem>>, vector<16x256xbf16>
    tpu.vector_store %arg6[%c16_1051, %c0_1052], %1080 {strides = array<i32>} : memref<144x256xbf16, #tpu.memory_space<vmem>>, vector<16x256xbf16>,
    %c71_i32_1053 = arith.constant 71 : i32
    %1082 = tpu.dynamic_rotate %1069 by %c71_i32_1053 dim 1 : vector<16x256xf32>, i32 -> vector<16x256xf32>
    %c2_1054 = arith.constant 2 : index
    %c0_1055 = arith.constant 0 : index
    %c0_1056 = arith.constant 0 : index
    %1083 = vector.load %arg4[%c2_1054, %c0_1055, %c0_1056] : memref<27x16x256xf32, #tpu.memory_space<vmem>>, vector<1x16x256xf32>
    %1084 = vector.shape_cast %1083 : vector<1x16x256xf32> to vector<16x256xf32>
    %1085 = arith.mulf %1082, %1084 : vector<16x256xf32>
    %1086 = arith.truncf %1085 : vector<16x256xf32> to vector<16x256xbf16>
    %c32_1057 = arith.constant 32 : index
    %c0_1058 = arith.constant 0 : index
    %1087 = vector.load %arg6[%c32_1057, %c0_1058] : memref<144x256xbf16, #tpu.memory_space<vmem>>, vector<16x256xbf16>
    tpu.vector_store %arg6[%c32_1057, %c0_1058], %1086 {strides = array<i32>} : memref<144x256xbf16, #tpu.memory_space<vmem>>, vector<16x256xbf16>,
    %c65_i32_1059 = arith.constant 65 : i32
    %1088 = tpu.dynamic_rotate %1069 by %c65_i32_1059 dim 1 : vector<16x256xf32>, i32 -> vector<16x256xf32>
    %c3_1060 = arith.constant 3 : index
    %c0_1061 = arith.constant 0 : index
    %c0_1062 = arith.constant 0 : index
    %1089 = vector.load %arg4[%c3_1060, %c0_1061, %c0_1062] : memref<27x16x256xf32, #tpu.memory_space<vmem>>, vector<1x16x256xf32>
    %1090 = vector.shape_cast %1089 : vector<1x16x256xf32> to vector<16x256xf32>
    %1091 = arith.mulf %1088, %1090 : vector<16x256xf32>
    %1092 = arith.truncf %1091 : vector<16x256xf32> to vector<16x256xbf16>
    %c48_1063 = arith.constant 48 : index
    %c0_1064 = arith.constant 0 : index
    %1093 = vector.load %arg6[%c48_1063, %c0_1064] : memref<144x256xbf16, #tpu.memory_space<vmem>>, vector<16x256xbf16>
    tpu.vector_store %arg6[%c48_1063, %c0_1064], %1092 {strides = array<i32>} : memref<144x256xbf16, #tpu.memory_space<vmem>>, vector<16x256xbf16>,
    %c64_i32_1065 = arith.constant 64 : i32
    %1094 = tpu.dynamic_rotate %1069 by %c64_i32_1065 dim 1 : vector<16x256xf32>, i32 -> vector<16x256xf32>
    %c4_1066 = arith.constant 4 : index
    %c0_1067 = arith.constant 0 : index
    %c0_1068 = arith.constant 0 : index
    %1095 = vector.load %arg4[%c4_1066, %c0_1067, %c0_1068] : memref<27x16x256xf32, #tpu.memory_space<vmem>>, vector<1x16x256xf32>
    %1096 = vector.shape_cast %1095 : vector<1x16x256xf32> to vector<16x256xf32>
    %1097 = arith.mulf %1094, %1096 : vector<16x256xf32>
    %1098 = arith.truncf %1097 : vector<16x256xf32> to vector<16x256xbf16>
    %c64_1069 = arith.constant 64 : index
    %c0_1070 = arith.constant 0 : index
    %1099 = vector.load %arg6[%c64_1069, %c0_1070] : memref<144x256xbf16, #tpu.memory_space<vmem>>, vector<16x256xbf16>
    tpu.vector_store %arg6[%c64_1069, %c0_1070], %1098 {strides = array<i32>} : memref<144x256xbf16, #tpu.memory_space<vmem>>, vector<16x256xbf16>,
    %c63_i32_1071 = arith.constant 63 : i32
    %1100 = tpu.dynamic_rotate %1069 by %c63_i32_1071 dim 1 : vector<16x256xf32>, i32 -> vector<16x256xf32>
    %c5_1072 = arith.constant 5 : index
    %c0_1073 = arith.constant 0 : index
    %c0_1074 = arith.constant 0 : index
    %1101 = vector.load %arg4[%c5_1072, %c0_1073, %c0_1074] : memref<27x16x256xf32, #tpu.memory_space<vmem>>, vector<1x16x256xf32>
    %1102 = vector.shape_cast %1101 : vector<1x16x256xf32> to vector<16x256xf32>
    %1103 = arith.mulf %1100, %1102 : vector<16x256xf32>
    %1104 = arith.truncf %1103 : vector<16x256xf32> to vector<16x256xbf16>
    %c80_1075 = arith.constant 80 : index
    %c0_1076 = arith.constant 0 : index
    %1105 = vector.load %arg6[%c80_1075, %c0_1076] : memref<144x256xbf16, #tpu.memory_space<vmem>>, vector<16x256xbf16>
    tpu.vector_store %arg6[%c80_1075, %c0_1076], %1104 {strides = array<i32>} : memref<144x256xbf16, #tpu.memory_space<vmem>>, vector<16x256xbf16>,
    %c57_i32_1077 = arith.constant 57 : i32
    %1106 = tpu.dynamic_rotate %1069 by %c57_i32_1077 dim 1 : vector<16x256xf32>, i32 -> vector<16x256xf32>
    %c6_1078 = arith.constant 6 : index
    %c0_1079 = arith.constant 0 : index
    %c0_1080 = arith.constant 0 : index
    %1107 = vector.load %arg4[%c6_1078, %c0_1079, %c0_1080] : memref<27x16x256xf32, #tpu.memory_space<vmem>>, vector<1x16x256xf32>
    %1108 = vector.shape_cast %1107 : vector<1x16x256xf32> to vector<16x256xf32>
    %1109 = arith.mulf %1106, %1108 : vector<16x256xf32>
    %1110 = arith.truncf %1109 : vector<16x256xf32> to vector<16x256xbf16>
    %c96_1081 = arith.constant 96 : index
    %c0_1082 = arith.constant 0 : index
    %1111 = vector.load %arg6[%c96_1081, %c0_1082] : memref<144x256xbf16, #tpu.memory_space<vmem>>, vector<16x256xbf16>
    tpu.vector_store %arg6[%c96_1081, %c0_1082], %1110 {strides = array<i32>} : memref<144x256xbf16, #tpu.memory_space<vmem>>, vector<16x256xbf16>,
    %c56_i32_1083 = arith.constant 56 : i32
    %1112 = tpu.dynamic_rotate %1069 by %c56_i32_1083 dim 1 : vector<16x256xf32>, i32 -> vector<16x256xf32>
    %c7_1084 = arith.constant 7 : index
    %c0_1085 = arith.constant 0 : index
    %c0_1086 = arith.constant 0 : index
    %1113 = vector.load %arg4[%c7_1084, %c0_1085, %c0_1086] : memref<27x16x256xf32, #tpu.memory_space<vmem>>, vector<1x16x256xf32>
    %1114 = vector.shape_cast %1113 : vector<1x16x256xf32> to vector<16x256xf32>
    %1115 = arith.mulf %1112, %1114 : vector<16x256xf32>
    %1116 = arith.truncf %1115 : vector<16x256xf32> to vector<16x256xbf16>
    %c112_1087 = arith.constant 112 : index
    %c0_1088 = arith.constant 0 : index
    %1117 = vector.load %arg6[%c112_1087, %c0_1088] : memref<144x256xbf16, #tpu.memory_space<vmem>>, vector<16x256xbf16>
    tpu.vector_store %arg6[%c112_1087, %c0_1088], %1116 {strides = array<i32>} : memref<144x256xbf16, #tpu.memory_space<vmem>>, vector<16x256xbf16>,
    %c55_i32_1089 = arith.constant 55 : i32
    %1118 = tpu.dynamic_rotate %1069 by %c55_i32_1089 dim 1 : vector<16x256xf32>, i32 -> vector<16x256xf32>
    %c8_1090 = arith.constant 8 : index
    %c0_1091 = arith.constant 0 : index
    %c0_1092 = arith.constant 0 : index
    %1119 = vector.load %arg4[%c8_1090, %c0_1091, %c0_1092] : memref<27x16x256xf32, #tpu.memory_space<vmem>>, vector<1x16x256xf32>
    %1120 = vector.shape_cast %1119 : vector<1x16x256xf32> to vector<16x256xf32>
    %1121 = arith.mulf %1118, %1120 : vector<16x256xf32>
    %1122 = arith.truncf %1121 : vector<16x256xf32> to vector<16x256xbf16>
    %c128_1093 = arith.constant 128 : index
    %c0_1094 = arith.constant 0 : index
    %1123 = vector.load %arg6[%c128_1093, %c0_1094] : memref<144x256xbf16, #tpu.memory_space<vmem>>, vector<16x256xbf16>
    tpu.vector_store %arg6[%c128_1093, %c0_1094], %1122 {strides = array<i32>} : memref<144x256xbf16, #tpu.memory_space<vmem>>, vector<16x256xbf16>,
    %c6_1095 = arith.constant 6 : index
    %c0_1096 = arith.constant 0 : index
    %c0_1097 = arith.constant 0 : index
    %c0_1098 = arith.constant 0 : index
    %1124 = vector.load %arg2[%c6_1095, %c0_1096, %c0_1097, %c0_1098] : memref<7x3x16x144xbf16, #tpu.memory_space<vmem>>, vector<1x1x16x144xbf16>
    %1125 = vector.shape_cast %1124 : vector<1x1x16x144xbf16> to vector<16x144xbf16>
    %c0_1099 = arith.constant 0 : index
    %c0_1100 = arith.constant 0 : index
    %1126 = vector.load %arg6[%c0_1099, %c0_1100] : memref<144x256xbf16, #tpu.memory_space<vmem>>, vector<144x256xbf16>
    %cst_1101 = arith.constant dense<0.000000e+00> : vector<16x256xf32>
    %1127 = tpu.matmul %1125, %1126, %cst_1101 {dimension_numbers = #tpu.dot_dimension_numbers<[1], [0], [0], [1], [0, 0, 1, 1], [], []>} : vector<16x144xbf16>, vector<144x256xbf16>, vector<16x256xf32> -> vector<16x256xf32>
    %c9_i32_1102 = arith.constant 9 : i32
    %1128 = tpu.dynamic_rotate %1069 by %c9_i32_1102 dim 1 : vector<16x256xf32>, i32 -> vector<16x256xf32>
    %c9_1103 = arith.constant 9 : index
    %c0_1104 = arith.constant 0 : index
    %c0_1105 = arith.constant 0 : index
    %1129 = vector.load %arg4[%c9_1103, %c0_1104, %c0_1105] : memref<27x16x256xf32, #tpu.memory_space<vmem>>, vector<1x16x256xf32>
    %1130 = vector.shape_cast %1129 : vector<1x16x256xf32> to vector<16x256xf32>
    %1131 = arith.mulf %1128, %1130 : vector<16x256xf32>
    %1132 = arith.truncf %1131 : vector<16x256xf32> to vector<16x256xbf16>
    %c0_1106 = arith.constant 0 : index
    %c0_1107 = arith.constant 0 : index
    %1133 = vector.load %arg7[%c0_1106, %c0_1107] : memref<144x256xbf16, #tpu.memory_space<vmem>>, vector<16x256xbf16>
    tpu.vector_store %arg7[%c0_1106, %c0_1107], %1132 {strides = array<i32>} : memref<144x256xbf16, #tpu.memory_space<vmem>>, vector<16x256xbf16>,
    %c8_i32_1108 = arith.constant 8 : i32
    %1134 = tpu.dynamic_rotate %1069 by %c8_i32_1108 dim 1 : vector<16x256xf32>, i32 -> vector<16x256xf32>
    %c10_1109 = arith.constant 10 : index
    %c0_1110 = arith.constant 0 : index
    %c0_1111 = arith.constant 0 : index
    %1135 = vector.load %arg4[%c10_1109, %c0_1110, %c0_1111] : memref<27x16x256xf32, #tpu.memory_space<vmem>>, vector<1x16x256xf32>
    %1136 = vector.shape_cast %1135 : vector<1x16x256xf32> to vector<16x256xf32>
    %1137 = arith.mulf %1134, %1136 : vector<16x256xf32>
    %1138 = arith.truncf %1137 : vector<16x256xf32> to vector<16x256xbf16>
    %c16_1112 = arith.constant 16 : index
    %c0_1113 = arith.constant 0 : index
    %1139 = vector.load %arg7[%c16_1112, %c0_1113] : memref<144x256xbf16, #tpu.memory_space<vmem>>, vector<16x256xbf16>
    tpu.vector_store %arg7[%c16_1112, %c0_1113], %1138 {strides = array<i32>} : memref<144x256xbf16, #tpu.memory_space<vmem>>, vector<16x256xbf16>,
    %c7_i32_1114 = arith.constant 7 : i32
    %1140 = tpu.dynamic_rotate %1069 by %c7_i32_1114 dim 1 : vector<16x256xf32>, i32 -> vector<16x256xf32>
    %c11_1115 = arith.constant 11 : index
    %c0_1116 = arith.constant 0 : index
    %c0_1117 = arith.constant 0 : index
    %1141 = vector.load %arg4[%c11_1115, %c0_1116, %c0_1117] : memref<27x16x256xf32, #tpu.memory_space<vmem>>, vector<1x16x256xf32>
    %1142 = vector.shape_cast %1141 : vector<1x16x256xf32> to vector<16x256xf32>
    %1143 = arith.mulf %1140, %1142 : vector<16x256xf32>
    %1144 = arith.truncf %1143 : vector<16x256xf32> to vector<16x256xbf16>
    %c32_1118 = arith.constant 32 : index
    %c0_1119 = arith.constant 0 : index
    %1145 = vector.load %arg7[%c32_1118, %c0_1119] : memref<144x256xbf16, #tpu.memory_space<vmem>>, vector<16x256xbf16>
    tpu.vector_store %arg7[%c32_1118, %c0_1119], %1144 {strides = array<i32>} : memref<144x256xbf16, #tpu.memory_space<vmem>>, vector<16x256xbf16>,
    %c1_i32_1120 = arith.constant 1 : i32
    %1146 = tpu.dynamic_rotate %1069 by %c1_i32_1120 dim 1 : vector<16x256xf32>, i32 -> vector<16x256xf32>
    %c12_1121 = arith.constant 12 : index
    %c0_1122 = arith.constant 0 : index
    %c0_1123 = arith.constant 0 : index
    %1147 = vector.load %arg4[%c12_1121, %c0_1122, %c0_1123] : memref<27x16x256xf32, #tpu.memory_space<vmem>>, vector<1x16x256xf32>
    %1148 = vector.shape_cast %1147 : vector<1x16x256xf32> to vector<16x256xf32>
    %1149 = arith.mulf %1146, %1148 : vector<16x256xf32>
    %1150 = arith.truncf %1149 : vector<16x256xf32> to vector<16x256xbf16>
    %c48_1124 = arith.constant 48 : index
    %c0_1125 = arith.constant 0 : index
    %1151 = vector.load %arg7[%c48_1124, %c0_1125] : memref<144x256xbf16, #tpu.memory_space<vmem>>, vector<16x256xbf16>
    tpu.vector_store %arg7[%c48_1124, %c0_1125], %1150 {strides = array<i32>} : memref<144x256xbf16, #tpu.memory_space<vmem>>, vector<16x256xbf16>,
    %1152 = arith.truncf %1069 : vector<16x256xf32> to vector<16x256xbf16>
    %c64_1126 = arith.constant 64 : index
    %c0_1127 = arith.constant 0 : index
    %1153 = vector.load %arg7[%c64_1126, %c0_1127] : memref<144x256xbf16, #tpu.memory_space<vmem>>, vector<16x256xbf16>
    tpu.vector_store %arg7[%c64_1126, %c0_1127], %1152 {strides = array<i32>} : memref<144x256xbf16, #tpu.memory_space<vmem>>, vector<16x256xbf16>,
    %c255_i32_1128 = arith.constant 255 : i32
    %1154 = tpu.dynamic_rotate %1069 by %c255_i32_1128 dim 1 : vector<16x256xf32>, i32 -> vector<16x256xf32>
    %c14_1129 = arith.constant 14 : index
    %c0_1130 = arith.constant 0 : index
    %c0_1131 = arith.constant 0 : index
    %1155 = vector.load %arg4[%c14_1129, %c0_1130, %c0_1131] : memref<27x16x256xf32, #tpu.memory_space<vmem>>, vector<1x16x256xf32>
    %1156 = vector.shape_cast %1155 : vector<1x16x256xf32> to vector<16x256xf32>
    %1157 = arith.mulf %1154, %1156 : vector<16x256xf32>
    %1158 = arith.truncf %1157 : vector<16x256xf32> to vector<16x256xbf16>
    %c80_1132 = arith.constant 80 : index
    %c0_1133 = arith.constant 0 : index
    %1159 = vector.load %arg7[%c80_1132, %c0_1133] : memref<144x256xbf16, #tpu.memory_space<vmem>>, vector<16x256xbf16>
    tpu.vector_store %arg7[%c80_1132, %c0_1133], %1158 {strides = array<i32>} : memref<144x256xbf16, #tpu.memory_space<vmem>>, vector<16x256xbf16>,
    %c249_i32_1134 = arith.constant 249 : i32
    %1160 = tpu.dynamic_rotate %1069 by %c249_i32_1134 dim 1 : vector<16x256xf32>, i32 -> vector<16x256xf32>
    %c15_1135 = arith.constant 15 : index
    %c0_1136 = arith.constant 0 : index
    %c0_1137 = arith.constant 0 : index
    %1161 = vector.load %arg4[%c15_1135, %c0_1136, %c0_1137] : memref<27x16x256xf32, #tpu.memory_space<vmem>>, vector<1x16x256xf32>
    %1162 = vector.shape_cast %1161 : vector<1x16x256xf32> to vector<16x256xf32>
    %1163 = arith.mulf %1160, %1162 : vector<16x256xf32>
    %1164 = arith.truncf %1163 : vector<16x256xf32> to vector<16x256xbf16>
    %c96_1138 = arith.constant 96 : index
    %c0_1139 = arith.constant 0 : index
    %1165 = vector.load %arg7[%c96_1138, %c0_1139] : memref<144x256xbf16, #tpu.memory_space<vmem>>, vector<16x256xbf16>
    tpu.vector_store %arg7[%c96_1138, %c0_1139], %1164 {strides = array<i32>} : memref<144x256xbf16, #tpu.memory_space<vmem>>, vector<16x256xbf16>,
    %c248_i32_1140 = arith.constant 248 : i32
    %1166 = tpu.dynamic_rotate %1069 by %c248_i32_1140 dim 1 : vector<16x256xf32>, i32 -> vector<16x256xf32>
    %c16_1141 = arith.constant 16 : index
    %c0_1142 = arith.constant 0 : index
    %c0_1143 = arith.constant 0 : index
    %1167 = vector.load %arg4[%c16_1141, %c0_1142, %c0_1143] : memref<27x16x256xf32, #tpu.memory_space<vmem>>, vector<1x16x256xf32>
    %1168 = vector.shape_cast %1167 : vector<1x16x256xf32> to vector<16x256xf32>
    %1169 = arith.mulf %1166, %1168 : vector<16x256xf32>
    %1170 = arith.truncf %1169 : vector<16x256xf32> to vector<16x256xbf16>
    %c112_1144 = arith.constant 112 : index
    %c0_1145 = arith.constant 0 : index
    %1171 = vector.load %arg7[%c112_1144, %c0_1145] : memref<144x256xbf16, #tpu.memory_space<vmem>>, vector<16x256xbf16>
    tpu.vector_store %arg7[%c112_1144, %c0_1145], %1170 {strides = array<i32>} : memref<144x256xbf16, #tpu.memory_space<vmem>>, vector<16x256xbf16>,
    %c247_i32_1146 = arith.constant 247 : i32
    %1172 = tpu.dynamic_rotate %1069 by %c247_i32_1146 dim 1 : vector<16x256xf32>, i32 -> vector<16x256xf32>
    %c17_1147 = arith.constant 17 : index
    %c0_1148 = arith.constant 0 : index
    %c0_1149 = arith.constant 0 : index
    %1173 = vector.load %arg4[%c17_1147, %c0_1148, %c0_1149] : memref<27x16x256xf32, #tpu.memory_space<vmem>>, vector<1x16x256xf32>
    %1174 = vector.shape_cast %1173 : vector<1x16x256xf32> to vector<16x256xf32>
    %1175 = arith.mulf %1172, %1174 : vector<16x256xf32>
    %1176 = arith.truncf %1175 : vector<16x256xf32> to vector<16x256xbf16>
    %c128_1150 = arith.constant 128 : index
    %c0_1151 = arith.constant 0 : index
    %1177 = vector.load %arg7[%c128_1150, %c0_1151] : memref<144x256xbf16, #tpu.memory_space<vmem>>, vector<16x256xbf16>
    tpu.vector_store %arg7[%c128_1150, %c0_1151], %1176 {strides = array<i32>} : memref<144x256xbf16, #tpu.memory_space<vmem>>, vector<16x256xbf16>,
    %c6_1152 = arith.constant 6 : index
    %c1_1153 = arith.constant 1 : index
    %c0_1154 = arith.constant 0 : index
    %c0_1155 = arith.constant 0 : index
    %1178 = vector.load %arg2[%c6_1152, %c1_1153, %c0_1154, %c0_1155] : memref<7x3x16x144xbf16, #tpu.memory_space<vmem>>, vector<1x1x16x144xbf16>
    %1179 = vector.shape_cast %1178 : vector<1x1x16x144xbf16> to vector<16x144xbf16>
    %c0_1156 = arith.constant 0 : index
    %c0_1157 = arith.constant 0 : index
    %1180 = vector.load %arg7[%c0_1156, %c0_1157] : memref<144x256xbf16, #tpu.memory_space<vmem>>, vector<144x256xbf16>
    %cst_1158 = arith.constant dense<0.000000e+00> : vector<16x256xf32>
    %1181 = tpu.matmul %1179, %1180, %cst_1158 {dimension_numbers = #tpu.dot_dimension_numbers<[1], [0], [0], [1], [0, 0, 1, 1], [], []>} : vector<16x144xbf16>, vector<144x256xbf16>, vector<16x256xf32> -> vector<16x256xf32>
    %1182 = arith.addf %1127, %1181 : vector<16x256xf32>
    %c201_i32_1159 = arith.constant 201 : i32
    %1183 = tpu.dynamic_rotate %1069 by %c201_i32_1159 dim 1 : vector<16x256xf32>, i32 -> vector<16x256xf32>
    %c18_1160 = arith.constant 18 : index
    %c0_1161 = arith.constant 0 : index
    %c0_1162 = arith.constant 0 : index
    %1184 = vector.load %arg4[%c18_1160, %c0_1161, %c0_1162] : memref<27x16x256xf32, #tpu.memory_space<vmem>>, vector<1x16x256xf32>
    %1185 = vector.shape_cast %1184 : vector<1x16x256xf32> to vector<16x256xf32>
    %1186 = arith.mulf %1183, %1185 : vector<16x256xf32>
    %1187 = arith.truncf %1186 : vector<16x256xf32> to vector<16x256xbf16>
    %c0_1163 = arith.constant 0 : index
    %c0_1164 = arith.constant 0 : index
    %1188 = vector.load %arg8[%c0_1163, %c0_1164] : memref<144x256xbf16, #tpu.memory_space<vmem>>, vector<16x256xbf16>
    tpu.vector_store %arg8[%c0_1163, %c0_1164], %1187 {strides = array<i32>} : memref<144x256xbf16, #tpu.memory_space<vmem>>, vector<16x256xbf16>,
    %c200_i32_1165 = arith.constant 200 : i32
    %1189 = tpu.dynamic_rotate %1069 by %c200_i32_1165 dim 1 : vector<16x256xf32>, i32 -> vector<16x256xf32>
    %c19_1166 = arith.constant 19 : index
    %c0_1167 = arith.constant 0 : index
    %c0_1168 = arith.constant 0 : index
    %1190 = vector.load %arg4[%c19_1166, %c0_1167, %c0_1168] : memref<27x16x256xf32, #tpu.memory_space<vmem>>, vector<1x16x256xf32>
    %1191 = vector.shape_cast %1190 : vector<1x16x256xf32> to vector<16x256xf32>
    %1192 = arith.mulf %1189, %1191 : vector<16x256xf32>
    %1193 = arith.truncf %1192 : vector<16x256xf32> to vector<16x256xbf16>
    %c16_1169 = arith.constant 16 : index
    %c0_1170 = arith.constant 0 : index
    %1194 = vector.load %arg8[%c16_1169, %c0_1170] : memref<144x256xbf16, #tpu.memory_space<vmem>>, vector<16x256xbf16>
    tpu.vector_store %arg8[%c16_1169, %c0_1170], %1193 {strides = array<i32>} : memref<144x256xbf16, #tpu.memory_space<vmem>>, vector<16x256xbf16>,
    %c199_i32_1171 = arith.constant 199 : i32
    %1195 = tpu.dynamic_rotate %1069 by %c199_i32_1171 dim 1 : vector<16x256xf32>, i32 -> vector<16x256xf32>
    %c20_1172 = arith.constant 20 : index
    %c0_1173 = arith.constant 0 : index
    %c0_1174 = arith.constant 0 : index
    %1196 = vector.load %arg4[%c20_1172, %c0_1173, %c0_1174] : memref<27x16x256xf32, #tpu.memory_space<vmem>>, vector<1x16x256xf32>
    %1197 = vector.shape_cast %1196 : vector<1x16x256xf32> to vector<16x256xf32>
    %1198 = arith.mulf %1195, %1197 : vector<16x256xf32>
    %1199 = arith.truncf %1198 : vector<16x256xf32> to vector<16x256xbf16>
    %c32_1175 = arith.constant 32 : index
    %c0_1176 = arith.constant 0 : index
    %1200 = vector.load %arg8[%c32_1175, %c0_1176] : memref<144x256xbf16, #tpu.memory_space<vmem>>, vector<16x256xbf16>
    tpu.vector_store %arg8[%c32_1175, %c0_1176], %1199 {strides = array<i32>} : memref<144x256xbf16, #tpu.memory_space<vmem>>, vector<16x256xbf16>,
    %c193_i32_1177 = arith.constant 193 : i32
    %1201 = tpu.dynamic_rotate %1069 by %c193_i32_1177 dim 1 : vector<16x256xf32>, i32 -> vector<16x256xf32>
    %c21_1178 = arith.constant 21 : index
    %c0_1179 = arith.constant 0 : index
    %c0_1180 = arith.constant 0 : index
    %1202 = vector.load %arg4[%c21_1178, %c0_1179, %c0_1180] : memref<27x16x256xf32, #tpu.memory_space<vmem>>, vector<1x16x256xf32>
    %1203 = vector.shape_cast %1202 : vector<1x16x256xf32> to vector<16x256xf32>
    %1204 = arith.mulf %1201, %1203 : vector<16x256xf32>
    %1205 = arith.truncf %1204 : vector<16x256xf32> to vector<16x256xbf16>
    %c48_1181 = arith.constant 48 : index
    %c0_1182 = arith.constant 0 : index
    %1206 = vector.load %arg8[%c48_1181, %c0_1182] : memref<144x256xbf16, #tpu.memory_space<vmem>>, vector<16x256xbf16>
    tpu.vector_store %arg8[%c48_1181, %c0_1182], %1205 {strides = array<i32>} : memref<144x256xbf16, #tpu.memory_space<vmem>>, vector<16x256xbf16>,
    %c192_i32_1183 = arith.constant 192 : i32
    %1207 = tpu.dynamic_rotate %1069 by %c192_i32_1183 dim 1 : vector<16x256xf32>, i32 -> vector<16x256xf32>
    %c22_1184 = arith.constant 22 : index
    %c0_1185 = arith.constant 0 : index
    %c0_1186 = arith.constant 0 : index
    %1208 = vector.load %arg4[%c22_1184, %c0_1185, %c0_1186] : memref<27x16x256xf32, #tpu.memory_space<vmem>>, vector<1x16x256xf32>
    %1209 = vector.shape_cast %1208 : vector<1x16x256xf32> to vector<16x256xf32>
    %1210 = arith.mulf %1207, %1209 : vector<16x256xf32>
    %1211 = arith.truncf %1210 : vector<16x256xf32> to vector<16x256xbf16>
    %c64_1187 = arith.constant 64 : index
    %c0_1188 = arith.constant 0 : index
    %1212 = vector.load %arg8[%c64_1187, %c0_1188] : memref<144x256xbf16, #tpu.memory_space<vmem>>, vector<16x256xbf16>
    tpu.vector_store %arg8[%c64_1187, %c0_1188], %1211 {strides = array<i32>} : memref<144x256xbf16, #tpu.memory_space<vmem>>, vector<16x256xbf16>,
    %c191_i32_1189 = arith.constant 191 : i32
    %1213 = tpu.dynamic_rotate %1069 by %c191_i32_1189 dim 1 : vector<16x256xf32>, i32 -> vector<16x256xf32>
    %c23_1190 = arith.constant 23 : index
    %c0_1191 = arith.constant 0 : index
    %c0_1192 = arith.constant 0 : index
    %1214 = vector.load %arg4[%c23_1190, %c0_1191, %c0_1192] : memref<27x16x256xf32, #tpu.memory_space<vmem>>, vector<1x16x256xf32>
    %1215 = vector.shape_cast %1214 : vector<1x16x256xf32> to vector<16x256xf32>
    %1216 = arith.mulf %1213, %1215 : vector<16x256xf32>
    %1217 = arith.truncf %1216 : vector<16x256xf32> to vector<16x256xbf16>
    %c80_1193 = arith.constant 80 : index
    %c0_1194 = arith.constant 0 : index
    %1218 = vector.load %arg8[%c80_1193, %c0_1194] : memref<144x256xbf16, #tpu.memory_space<vmem>>, vector<16x256xbf16>
    tpu.vector_store %arg8[%c80_1193, %c0_1194], %1217 {strides = array<i32>} : memref<144x256xbf16, #tpu.memory_space<vmem>>, vector<16x256xbf16>,
    %c185_i32_1195 = arith.constant 185 : i32
    %1219 = tpu.dynamic_rotate %1069 by %c185_i32_1195 dim 1 : vector<16x256xf32>, i32 -> vector<16x256xf32>
    %c24_1196 = arith.constant 24 : index
    %c0_1197 = arith.constant 0 : index
    %c0_1198 = arith.constant 0 : index
    %1220 = vector.load %arg4[%c24_1196, %c0_1197, %c0_1198] : memref<27x16x256xf32, #tpu.memory_space<vmem>>, vector<1x16x256xf32>
    %1221 = vector.shape_cast %1220 : vector<1x16x256xf32> to vector<16x256xf32>
    %1222 = arith.mulf %1219, %1221 : vector<16x256xf32>
    %1223 = arith.truncf %1222 : vector<16x256xf32> to vector<16x256xbf16>
    %c96_1199 = arith.constant 96 : index
    %c0_1200 = arith.constant 0 : index
    %1224 = vector.load %arg8[%c96_1199, %c0_1200] : memref<144x256xbf16, #tpu.memory_space<vmem>>, vector<16x256xbf16>
    tpu.vector_store %arg8[%c96_1199, %c0_1200], %1223 {strides = array<i32>} : memref<144x256xbf16, #tpu.memory_space<vmem>>, vector<16x256xbf16>,
    %c184_i32_1201 = arith.constant 184 : i32
    %1225 = tpu.dynamic_rotate %1069 by %c184_i32_1201 dim 1 : vector<16x256xf32>, i32 -> vector<16x256xf32>
    %c25_1202 = arith.constant 25 : index
    %c0_1203 = arith.constant 0 : index
    %c0_1204 = arith.constant 0 : index
    %1226 = vector.load %arg4[%c25_1202, %c0_1203, %c0_1204] : memref<27x16x256xf32, #tpu.memory_space<vmem>>, vector<1x16x256xf32>
    %1227 = vector.shape_cast %1226 : vector<1x16x256xf32> to vector<16x256xf32>
    %1228 = arith.mulf %1225, %1227 : vector<16x256xf32>
    %1229 = arith.truncf %1228 : vector<16x256xf32> to vector<16x256xbf16>
    %c112_1205 = arith.constant 112 : index
    %c0_1206 = arith.constant 0 : index
    %1230 = vector.load %arg8[%c112_1205, %c0_1206] : memref<144x256xbf16, #tpu.memory_space<vmem>>, vector<16x256xbf16>
    tpu.vector_store %arg8[%c112_1205, %c0_1206], %1229 {strides = array<i32>} : memref<144x256xbf16, #tpu.memory_space<vmem>>, vector<16x256xbf16>,
    %c183_i32_1207 = arith.constant 183 : i32
    %1231 = tpu.dynamic_rotate %1069 by %c183_i32_1207 dim 1 : vector<16x256xf32>, i32 -> vector<16x256xf32>
    %c26_1208 = arith.constant 26 : index
    %c0_1209 = arith.constant 0 : index
    %c0_1210 = arith.constant 0 : index
    %1232 = vector.load %arg4[%c26_1208, %c0_1209, %c0_1210] : memref<27x16x256xf32, #tpu.memory_space<vmem>>, vector<1x16x256xf32>
    %1233 = vector.shape_cast %1232 : vector<1x16x256xf32> to vector<16x256xf32>
    %1234 = arith.mulf %1231, %1233 : vector<16x256xf32>
    %1235 = arith.truncf %1234 : vector<16x256xf32> to vector<16x256xbf16>
    %c128_1211 = arith.constant 128 : index
    %c0_1212 = arith.constant 0 : index
    %1236 = vector.load %arg8[%c128_1211, %c0_1212] : memref<144x256xbf16, #tpu.memory_space<vmem>>, vector<16x256xbf16>
    tpu.vector_store %arg8[%c128_1211, %c0_1212], %1235 {strides = array<i32>} : memref<144x256xbf16, #tpu.memory_space<vmem>>, vector<16x256xbf16>,
    %c6_1213 = arith.constant 6 : index
    %c2_1214 = arith.constant 2 : index
    %c0_1215 = arith.constant 0 : index
    %c0_1216 = arith.constant 0 : index
    %1237 = vector.load %arg2[%c6_1213, %c2_1214, %c0_1215, %c0_1216] : memref<7x3x16x144xbf16, #tpu.memory_space<vmem>>, vector<1x1x16x144xbf16>
    %1238 = vector.shape_cast %1237 : vector<1x1x16x144xbf16> to vector<16x144xbf16>
    %c0_1217 = arith.constant 0 : index
    %c0_1218 = arith.constant 0 : index
    %1239 = vector.load %arg8[%c0_1217, %c0_1218] : memref<144x256xbf16, #tpu.memory_space<vmem>>, vector<144x256xbf16>
    %cst_1219 = arith.constant dense<0.000000e+00> : vector<16x256xf32>
    %1240 = tpu.matmul %1238, %1239, %cst_1219 {dimension_numbers = #tpu.dot_dimension_numbers<[1], [0], [0], [1], [0, 0, 1, 1], [], []>} : vector<16x144xbf16>, vector<144x256xbf16>, vector<16x256xf32> -> vector<16x256xf32>
    %1241 = arith.addf %1182, %1240 : vector<16x256xf32>
    %c6_1220 = arith.constant 6 : index
    %c0_1221 = arith.constant 0 : index
    %c0_1222 = arith.constant 0 : index
    %1242 = vector.load %arg3[%c6_1220, %c0_1221, %c0_1222] : memref<7x16x1xf32, #tpu.memory_space<vmem>>, vector<1x16x1xf32>
    %1243 = vector.shape_cast %1242 : vector<1x16x1xf32> to vector<16x1xf32>
    %1244 = vector.broadcast %1243 : vector<16x1xf32> to vector<16x256xf32>
    %1245 = arith.addf %1241, %1244 : vector<16x256xf32>
    %1246 = vector.extract_strided_slice %1245 {offsets = [0, 0], sizes = [8, 256], strides = [1, 1]} : vector<16x256xf32> to vector<8x256xf32>
    %c0_1223 = arith.constant 0 : index
    %c0_1224 = arith.constant 0 : index
    %c0_1225 = arith.constant 0 : index
    %1247 = vector.load %arg1[%c0_1223, %c0_1224, %c0_1225] : memref<1x16x256xf32, #tpu.memory_space<vmem>>, vector<1x8x256xf32>
    %1248 = vector.shape_cast %1247 : vector<1x8x256xf32> to vector<8x256xf32>
    %1249 = arith.addf %1246, %1248 : vector<8x256xf32>
    %c0_1226 = arith.constant 0 : index
    %c0_1227 = arith.constant 0 : index
    %c0_1228 = arith.constant 0 : index
    %1250 = vector.load %arg5[%c0_1226, %c0_1227, %c0_1228] : memref<1x8x256xf32, #tpu.memory_space<vmem>>, vector<1x8x256xf32>
    %1251 = vector.shape_cast %1250 : vector<1x8x256xf32> to vector<8x256xf32>
    %1252 = vector.shape_cast %1249 : vector<8x256xf32> to vector<1x8x256xf32>
    tpu.vector_store %arg5[%c0_1226, %c0_1227, %c0_1228], %1252 {strides = array<i32>} : memref<1x8x256xf32, #tpu.memory_space<vmem>>, vector<1x8x256xf32>,
    return
  }
  func.func @transform_0(%arg0: i32) -> (i32, i32, i32) {
    %c0_i32 = arith.constant 0 : i32
    %c0_i32_0 = arith.constant 0 : i32
    %c0_i32_1 = arith.constant 0 : i32
    return %arg0, %c0_i32, %c0_i32_0 : i32, i32, i32
  }
  func.func @transform_1(%arg0: i32) -> (i32, i32, i32, i32) {
    %c0_i32 = arith.constant 0 : i32
    %c0_i32_0 = arith.constant 0 : i32
    %c0_i32_1 = arith.constant 0 : i32
    %c0_i32_2 = arith.constant 0 : i32
    %c0_i32_3 = arith.constant 0 : i32
    return %c0_i32, %c0_i32_0, %c0_i32_1, %c0_i32_2 : i32, i32, i32, i32
  }
  func.func @transform_2(%arg0: i32) -> (i32, i32, i32) {
    %c0_i32 = arith.constant 0 : i32
    %c0_i32_0 = arith.constant 0 : i32
    %c0_i32_1 = arith.constant 0 : i32
    %c0_i32_2 = arith.constant 0 : i32
    return %c0_i32, %c0_i32_0, %c0_i32_1 : i32, i32, i32
  }
  func.func @transform_3(%arg0: i32) -> (i32, i32, i32) {
    %c0_i32 = arith.constant 0 : i32
    %c0_i32_0 = arith.constant 0 : i32
    %c0_i32_1 = arith.constant 0 : i32
    %c0_i32_2 = arith.constant 0 : i32
    return %c0_i32, %c0_i32_0, %c0_i32_1 : i32, i32, i32
  }
  func.func @transform_4(%arg0: i32) -> (i32, i32, i32) {
    %c0_i32 = arith.constant 0 : i32
    %c0_i32_0 = arith.constant 0 : i32
    %c0_i32_1 = arith.constant 0 : i32
    return %arg0, %c0_i32, %c0_i32_0 : i32, i32, i32
  }
}

</mosaic_0001>

<bundles_post_ra>
// kernel: deepcnn_forward.1
= control target key start
LH: loop header
LB: loop body
LE: loop exit
PB: predicated region body
PF: predicated region fallthrough
CT: control target
= control target key end

     0   :  { %s6715_s15 = smov 0   ;;  %s12777_s0 = inlined_call_operand.vmem [shape: f32[2,16,256], index: 0, kind: input, shape index: {}]   ;;  %s12778_s1 = inlined_call_operand.vmem [shape: bf16[7,3,16,144], index: 1, kind: input, shape index: {}]   ;;  %s12779_s2 = inlined_call_operand.vmem [shape: f32[7,16,1], index: 2, kind: input, shape index: {}]   ;;  %s12780_s3 = inlined_call_operand.vmem [shape: f32[27,16,256], index: 3, kind: input, shape index: {}]   ;;  %s12781_s4 = inlined_call_operand.vmem [shape: f32[2,8,256], index: 4, kind: output, shape index: {}]  }
   0x1 LB: > { %s5698_s16 = sadd.s32 4294967295, %s6670_s15   ;;  %p5702_p0 = scmp.ge.s32.totalorder %s6670_s15, 1  ;;  %s6670_s15 = sphi %s6715_s15, %s14_s15  }
   0x2   : > { %p162_p1 = scmp.lt.s32.totalorder %s6670_s15, 3 }
   0x4   : > { %p163_p2 = pnand %p5702_p0, %p162_p1 }
   0x5   : > { %p188_p3 = scmp.lt.s32.totalorder (!%p163_p2), %s5698_s16, 1  ;;  %s6672_s21 = smov (!%p163_p2), 9   ;;  %v6603_v4 = vld [vmem:[%s12778_s1 + $0x14] ss:$8 sps:$4 sm:$0xff] (!%p163_p2)   ;;  %vm700_vm0 = vcmask (!%p163_p2), 130048   ;;  %v211_v5 = vlaneseq (!%p163_p2)  ;;  %v5740_v10 = vld [vmem:[%s12780_s3 + $0x128] sm:$0xff] (!%p163_p2) }
   0x6   : > { %166 = sbr.rel (%p163_p2) target bundleno = 3562 (0xdea), region = 36  ;;  %s6673_s22 = smov (!%p163_p2), 8   ;;  %5775 = vmatprep.mubr.msk.bf16.mxu0 (!%p163_p2), %vm700_vm0, %v6603_v4  ;;  %v5742_v12 = vld [vmem:[%s12780_s3 + $0x138] sm:$0xff] (!%p163_p2)  ;;  %v5739_v13 = vld [vmem:[%s12780_s3 + $0x120] sm:$0xff] (!%p163_p2)  ;;  %v5741_v14 = vld [vmem:[%s12780_s3 + $0x130] sm:$0xff] (!%p163_p2) }
   0x7   : > { %s12815_s23 = smov (!%p163_p2), 7   ;;  %s12813_s24 = smov (!%p163_p2), 1   ;;  %v6859_v6 = vand.u32 (!%p163_p2), 127, %v211_v5  ;;  %v5745_v27 = vld [vmem:[%s12780_s3 + $0x150] sm:$0xff] (!%p163_p2)  ;;  %v5746_v28 = vld [vmem:[%s12780_s3 + $0x158] sm:$0xff] (!%p163_p2)  ;;  %v5743_v29 = vld [vmem:[%s12780_s3 + $0x140] sm:$0xff] (!%p163_p2) }
   0x8   : > { %s12811_s25 = smov (!%p163_p2), 127   ;;  %s12809_s26 = smov (!%p163_p2), 121   ;;  %v5744_v30 = vld [vmem:[%s12780_s3 + $0x148] sm:$0xff] (!%p163_p2)  ;;  %v5749_v45 = vld [vmem:[%s12780_s3 + $0x170] sm:$0xff] (!%p163_p2)  ;;  %v5750_v46 = vld [vmem:[%s12780_s3 + $0x178] sm:$0xff] (!%p163_p2) }
   0x9   : > { %s12807_s27 = smov (!%p163_p2), 120   ;;  %s12805_s28 = smov (!%p163_p2), 119   ;;  %vm466_vm1 = vcmp.lt.s32.totalorder (!%p163_p2), %v6859_v6, 9  ;;  %vm492_vm2 = vcmp.lt.s32.totalorder (!%p163_p2), %v6859_v6, 8  ;;  %vm518_vm3 = vcmp.lt.s32.totalorder (!%p163_p2), %v6859_v6, 7  ;;  %v5747_v47 = vld [vmem:[%s12780_s3 + $0x160] sm:$0xff] (!%p163_p2) }
   0xa   : > { %s12803_s5 = smov (!%p163_p2), 73   ;;  %s12801_s6 = smov (!%p163_p2), 72   ;;  %v5748_v48 = vld [vmem:[%s12780_s3 + $0x168] sm:$0xff] (!%p163_p2)  ;;  %vm544_vm4 = vcmp.lt.s32.totalorder (!%p163_p2), %v6859_v6, 1  ;;  %v5753_v63 = vld [vmem:[%s12780_s3 + $0x190] sm:$0xff] (!%p163_p2)  ;;  %v5754_v4 = vld [vmem:[%s12780_s3 + $0x198] sm:$0xff] (!%p163_p2) }
   0xb   : > { %s12796_s7 = smov (!%p163_p2), 71   ;;  %s12794_s8 = smov (!%p163_p2), 65   ;;  %v5751_v5 = vld [vmem:[%s12780_s3 + $0x180] sm:$0xff] (!%p163_p2)  ;;  %vm574_vm5 = vcmp.lt.s32.totalorder (!%p163_p2), %v6859_v6, 127  ;;  %vm600_vm6 = vcmp.lt.s32.totalorder (!%p163_p2), %v6859_v6, 121  ;;  %vm626_vm7 = vcmp.lt.s32.totalorder (!%p163_p2), %v6859_v6, 120 }
   0xc   : > { %s12790_s9 = smov (!%p163_p2), 64   ;;  %s12788_s10 = smov (!%p163_p2), 63   ;;  %vm652_vm8 = vcmp.lt.s32.totalorder (!%p163_p2), %v6859_v6, 119  ;;  %vm213_vm9 = vcmp.lt.s32.totalorder (!%p163_p2), %v6859_v6, 73  ;;  %vm238_vm10 = vcmp.lt.s32.totalorder (!%p163_p2), %v6859_v6, 72  ;;  %vm12800_vm11 = vcmp.lt.s32.totalorder (!%p163_p2), %v6859_v6, 71 }
   0xd   : > { %s12934_s16 = smov (!%p188_p3, %s5698_s16), 1  ;;  %s12782_s11 = smov 57   ;;  %vm12799_vm12 = vcmp.lt.s32.totalorder %v6859_v6, 65  ;;  %vm12798_vm13 = vcmp.lt.s32.totalorder %v6859_v6, 64  ;;  %vm12792_vm14 = vcmp.lt.s32.totalorder %v6859_v6, 63  ;;  %vm12793_vm15 = vcmp.lt.s32.totalorder %v6859_v6, 57 }
   0xe   : > { %s6523_s17 = sshll.u32 %s12934_s16, 5  ;;  %s12784_s12 = smov 56  }
   0xf   : > { %s6729_s20 = scalar_lea.vmem %s12777_s0, %s6523_s17  ;;  %s12818_s13 = smov 63  }
  0x10   : > { %v6732_v0 = vld [vmem:[%s6729_s20 + $0x8] sm:$0xff]  ;;  %v6735_v1 = vld [vmem:[%s6729_s20] sm:$0xff]  ;;  %v6742_v2 = vld [vmem:[%s6729_s20 + $0x18] sm:$0xff]  ;;  %s12821_s14 = smov 55   ;;  %s12829_s19 = smov 71  }
  0x11   : > { %462 = vrot.lane.b32.xlu1 %v6732_v0, %s6672_s21  ;;  %458 = vrot.lane.b32.xlu0 %v6735_v1, %s6672_s21  ;;  %v6745_v3 = vld [vmem:[%s6729_s20 + $0x10] sm:$0xff]  ;;  %s12830_s29 = smov 65   ;;  %s12851_s30 = smov 72  }
  0x12   : > { %s12870_s17 = smov 120   ;;  %s12871_s18 = smov 119  }
  0x15   : > { %464 = vrot.lane.b32.xlu1 %v6742_v2, %s6672_s21  ;;  %460 = vrot.lane.b32.xlu0 %v6745_v3, %s6672_s21 }
  0x19   : > { %486 = vrot.lane.b32.xlu1 %v6745_v3, %s6673_s22  ;;  %484 = vrot.lane.b32.xlu0 %v6735_v1, %s6673_s22 }
  0x1d   : > { %490 = vrot.lane.b32.xlu1 %v6742_v2, %s6673_s22  ;;  %488 = vrot.lane.b32.xlu0 %v6732_v0, %s6673_s22 }
  0x21   : > { %512 = vrot.lane.b32.xlu1 %v6745_v3, %s12815_s23  ;;  %510 = vrot.lane.b32.xlu0 %v6735_v1, %s12815_s23 }
  0x25   : > { %516 = vrot.lane.b32.xlu1 %v6742_v2, %s12815_s23  ;;  %514 = vrot.lane.b32.xlu0 %v6732_v0, %s12815_s23 }
  0x29   : > { %538 = vrot.lane.b32.xlu1 %v6745_v3, %s12813_s24  ;;  %536 = vrot.lane.b32.xlu0 %v6735_v1, %s12813_s24 }
  0x2d   : > { %542 = vrot.lane.b32.xlu1 %v6742_v2, %s12813_s24  ;;  %540 = vrot.lane.b32.xlu0 %v6732_v0, %s12813_s24 }
  0x31   : > { %568 = vrot.lane.b32.xlu1 %v6745_v3, %s12811_s25  ;;  %566 = vrot.lane.b32.xlu0 %v6735_v1, %s12811_s25 }
  0x35   : > { %572 = vrot.lane.b32.xlu1 %v6742_v2, %s12811_s25  ;;  %570 = vrot.lane.b32.xlu0 %v6732_v0, %s12811_s25 }
  0x39   : > { %594 = vrot.lane.b32.xlu1 %v6745_v3, %s12809_s26  ;;  %592 = vrot.lane.b32.xlu0 %v6735_v1, %s12809_s26 }
  0x3d   : > { %598 = vrot.lane.b32.xlu1 %v6742_v2, %s12809_s26  ;;  %596 = vrot.lane.b32.xlu0 %v6732_v0, %s12809_s26 }
  0x41   : > { %620 = vrot.lane.b32.xlu1 %v6745_v3, %s12807_s27  ;;  %618 = vrot.lane.b32.xlu0 %v6735_v1, %s12807_s27 }
  0x45   : > { %624 = vrot.lane.b32.xlu1 %v6742_v2, %s12807_s27  ;;  %622 = vrot.lane.b32.xlu0 %v6732_v0, %s12807_s27 }
  0x49   : > { %646 = vrot.lane.b32.xlu1 %v6745_v3, %s12805_s28  ;;  %644 = vrot.lane.b32.xlu0 %v6735_v1, %s12805_s28 }
  0x4d   : > { %650 = vrot.lane.b32.xlu1 %v6742_v2, %s12805_s28  ;;  %648 = vrot.lane.b32.xlu0 %v6732_v0, %s12805_s28 }
  0x51   : > { %205 = vrot.lane.b32.xlu1 %v6745_v3, %s12803_s5  ;;  %203 = vrot.lane.b32.xlu0 %v6735_v1, %s12803_s5 }
  0x55   : > { %209 = vrot.lane.b32.xlu1 %v6742_v2, %s12803_s5  ;;  %207 = vrot.lane.b32.xlu0 %v6732_v0, %s12803_s5 }
  0x59   : > { %232 = vrot.lane.b32.xlu1 %v6745_v3, %s12801_s6  ;;  %230 = vrot.lane.b32.xlu0 %v6735_v1, %s12801_s6 }
  0x5d   : > { %236 = vrot.lane.b32.xlu1 %v6742_v2, %s12801_s6  ;;  %234 = vrot.lane.b32.xlu0 %v6732_v0, %s12801_s6 }
  0x61   : > { %258 = vrot.lane.b32.xlu1 %v6745_v3, %s12796_s7  ;;  %256 = vrot.lane.b32.xlu0 %v6735_v1, %s12796_s7 }
  0x65   : > { %262 = vrot.lane.b32.xlu1 %v6742_v2, %s12796_s7  ;;  %260 = vrot.lane.b32.xlu0 %v6732_v0, %s12796_s7 }
  0x69   : > { %284 = vrot.lane.b32.xlu1 %v6745_v3, %s12794_s8  ;;  %282 = vrot.lane.b32.xlu0 %v6735_v1, %s12794_s8 }
  0x6d   : > { %288 = vrot.lane.b32.xlu1 %v6742_v2, %s12794_s8  ;;  %286 = vrot.lane.b32.xlu0 %v6732_v0, %s12794_s8 }
  0x71   : > { %310 = vrot.lane.b32.xlu1 %v6745_v3, %s12790_s9  ;;  %308 = vrot.lane.b32.xlu0 %v6735_v1, %s12790_s9 }
  0x75   : > { %314 = vrot.lane.b32.xlu1 %v6742_v2, %s12790_s9  ;;  %312 = vrot.lane.b32.xlu0 %v6732_v0, %s12790_s9  ;;  %s12850_s9 = smov 73  }
  0x79   : > { %336 = vrot.lane.b32.xlu1 %v6745_v3, %s12788_s10  ;;  %334 = vrot.lane.b32.xlu0 %v6735_v1, %s12788_s10 }
  0x7d   : > { %340 = vrot.lane.b32.xlu1 %v6742_v2, %s12788_s10  ;;  %338 = vrot.lane.b32.xlu0 %v6732_v0, %s12788_s10  ;;  %s12819_s10 = smov 57  }
  0x81   : > { %362 = vrot.lane.b32.xlu1 %v6745_v3, %s12782_s11  ;;  %360 = vrot.lane.b32.xlu0 %v6735_v1, %s12782_s11 }
  0x83   : > { %v463_v7 = vpop.permute.xlu1 %462  ;;  %v459_v8 = vpop.permute.xlu0 %458 }
  0x84   : > { %v467_v9 = vsel %vm466_vm1, %v459_v8, %v463_v7  ;;  %v469_v11 = vsel %vm466_vm1, %v463_v7, %v459_v8  ;;  %v5752_v7 = vld [vmem:[%s12780_s3 + $0x188] sm:$0xff] }
  0x85   : > { %366 = vrot.lane.b32.xlu1 %v6742_v2, %s12782_s11  ;;  %364 = vrot.lane.b32.xlu0 %v6732_v0, %s12782_s11  ;;  %v477_v19 = vmul.f32 %v5740_v10, %v467_v9  ;;  %v476_v21 = vmul.f32 %v5739_v13, %v469_v11  ;;  %s12786_s11 = smov 55  }
  0x87   : > { %v465_v15 = vpop.permute.xlu1 %464  ;;  %v461_v16 = vpop.permute.xlu0 %460 }
  0x88   : > { %v470_v17 = vsel %vm466_vm1, %v465_v15, %v461_v16  ;;  %v468_v18 = vsel %vm466_vm1, %v461_v16, %v465_v15 }
  0x89   : > { %388 = vrot.lane.b32.xlu1 %v6745_v3, %s12784_s12  ;;  %386 = vrot.lane.b32.xlu0 %v6735_v1, %s12784_s12  ;;  %v479_v20 = vmul.f32 %v5742_v12, %v468_v18  ;;  %v478_v22 = vmul.f32 %v5741_v14, %v470_v17 }
  0x8b   : > { %v487_v23 = vpop.permute.xlu1 %486  ;;  %v485_v24 = vpop.permute.xlu0 %484  ;;  %v481_v25 = vpack.c.bf16 %v479_v20, %v477_v19  ;;  %v480_v26 = vpack.c.bf16 %v478_v22, %v476_v21  ;;  %v563_v22 = vpack.c.bf16 %v6742_v2, %v6732_v0 }
  0x8d   : > { %392 = vrot.lane.b32.xlu1 %v6742_v2, %s12784_s12  ;;  %390 = vrot.lane.b32.xlu0 %v6732_v0, %s12784_s12  ;;  %s12817_s12 = smov 64  }
  0x8e   : > { %704 = vmatprep.subr.bf16.mxu0 %v481_v25  ;;  %v5755_v25 = vld [vmem:[%s12780_s3 + $0x1c0] sm:$0xff] }
  0x8f   : > { %705 = vmatpush1.bf16.msra.mxu0 %v480_v26  ;;  %v491_v31 = vpop.permute.xlu1 %490  ;;  %v489_v32 = vpop.permute.xlu0 %488 }
  0x90   : > { %v494_v33 = vsel %vm492_vm2, %v487_v23, %v491_v31  ;;  %v496_v34 = vsel %vm492_vm2, %v491_v31, %v487_v23  ;;  %v493_v35 = vsel %vm492_vm2, %v485_v24, %v489_v32  ;;  %v495_v36 = vsel %vm492_vm2, %v489_v32, %v485_v24  ;;  %v5757_v23 = vld [vmem:[%s12780_s3 + $0x1d0] sm:$0xff]  ;;  %v5758_v24 = vld [vmem:[%s12780_s3 + $0x1d8] sm:$0xff] }
  0x91   : > { %v504_v37 = vmul.f32 %v5745_v27, %v496_v34  ;;  %v505_v38 = vmul.f32 %v5746_v28, %v494_v33  ;;  %v502_v39 = vmul.f32 %v5743_v29, %v495_v36  ;;  %v503_v40 = vmul.f32 %v5744_v30, %v493_v35  ;;  %414 = vrot.lane.b32.xlu1 %v6745_v3, %s12786_s11 }
  0x92   : > { %412 = vrot.lane.b32.xlu0 %v6735_v1, %s12786_s11 }
  0x93   : > { %v513_v41 = vpop.permute.xlu1 %512  ;;  %v511_v42 = vpop.permute.xlu0 %510  ;;  %v507_v43 = vpack.c.bf16 %v505_v38, %v503_v40  ;;  %v506_v44 = vpack.c.bf16 %v504_v37, %v502_v39  ;;  %v5761_v38 = vld [vmem:[%s12780_s3 + $0x1f0] sm:$0xff]  ;;  %v5762_v39 = vld [vmem:[%s12780_s3 + $0x1f8] sm:$0xff]  ;;  %v5759_v40 = vld [vmem:[%s12780_s3 + $0x1e0] sm:$0xff] }
  0x95   : > { %418 = vrot.lane.b32.xlu1 %v6742_v2, %s12786_s11  ;;  %706 = vmatprep.subr.bf16.mxu0 %v507_v43  ;;  %v562_v2 = vpack.c.bf16 %v6745_v3, %v6735_v1 }
  0x96   : > { %416 = vrot.lane.b32.xlu0 %v6732_v0, %s12786_s11  ;;  %707 = vmatpush1.bf16.msra.mxu0 %v506_v44  ;;  %v5756_v0 = vld [vmem:[%s12780_s3 + $0x1c8] sm:$0xff]  ;;  %s12820_s11 = smov 56  }
  0x97   : > { %v517_v49 = vpop.permute.xlu1 %516  ;;  %v515_v50 = vpop.permute.xlu0 %514 }
  0x98   : > { %v520_v51 = vsel %vm518_vm3, %v513_v41, %v517_v49  ;;  %v522_v52 = vsel %vm518_vm3, %v517_v49, %v513_v41  ;;  %v519_v53 = vsel %vm518_vm3, %v511_v42, %v515_v50  ;;  %v521_v54 = vsel %vm518_vm3, %v515_v50, %v511_v42  ;;  %v5760_v41 = vld [vmem:[%s12780_s3 + $0x1e8] sm:$0xff] }
  0x99   : > { %v530_v55 = vmul.f32 %v5749_v45, %v522_v52  ;;  %v531_v56 = vmul.f32 %v5750_v46, %v520_v51  ;;  %v528_v57 = vmul.f32 %v5747_v47, %v521_v54  ;;  %v529_v58 = vmul.f32 %v5748_v48, %v519_v53 }
  0x9b   : > { %v539_v59 = vpop.permute.xlu1 %538  ;;  %v537_v60 = vpop.permute.xlu0 %536  ;;  %v533_v61 = vpack.c.bf16 %v531_v56, %v529_v58  ;;  %v532_v62 = vpack.c.bf16 %v530_v55, %v528_v57  ;;  %v5765_v56 = vld [vmem:[%s12780_s3 + $0x210] sm:$0xff]  ;;  %v5766_v57 = vld [vmem:[%s12780_s3 + $0x218] sm:$0xff]  ;;  %v5763_v58 = vld [vmem:[%s12780_s3 + $0x200] sm:$0xff] }
  0x9d   : > { %708 = vmatprep.subr.bf16.mxu0 %v533_v61 }
  0x9e   : > { %709 = vmatpush1.bf16.msra.mxu0 %v532_v62  ;;  %v999_v62 = vld [vmem:[%s12779_s2] sm:$0xff] }
  0x9f   : > { %v543_v8 = vpop.permute.xlu1 %542  ;;  %v541_v9 = vpop.permute.xlu0 %540 }
  0xa0   : > { %v546_v10 = vsel %vm544_vm4, %v539_v59, %v543_v8  ;;  %v548_v11 = vsel %vm544_vm4, %v543_v8, %v539_v59  ;;  %v545_v12 = vsel %vm544_vm4, %v537_v60, %v541_v9  ;;  %v547_v13 = vsel %vm544_vm4, %v541_v9, %v537_v60  ;;  %v5764_v59 = vld [vmem:[%s12780_s3 + $0x208] sm:$0xff] }
  0xa1   : > { %v556_v14 = vmul.f32 %v5753_v63, %v548_v11  ;;  %v557_v15 = vmul.f32 %v5754_v4, %v546_v10  ;;  %v554_v16 = vmul.f32 %v5751_v5, %v547_v13  ;;  %v555_v17 = vmul.f32 %v5752_v7, %v545_v12  ;;  %v1000_v9 = vld [vmem:[%s12779_s2 + $0x8] sm:$0xff] }
  0xa2   : > { %v6689_v8 = vmov 0  }
  0xa3   : > { %v569_v18 = vpop.permute.xlu1 %568  ;;  %v567_v19 = vpop.permute.xlu0 %566  ;;  %v559_v20 = vpack.c.bf16 %v557_v15, %v555_v17  ;;  %v558_v21 = vpack.c.bf16 %v556_v14, %v554_v16  ;;  %6599 = vset.pattern.permute.xlu0 %v6689_v8  ;;  %6600 = vset.pattern.permute.xlu1 %v6689_v8  ;;  %v5708_v8 = vld [vmem:[%s12780_s3 + $0x28] sm:$0xff] }
  0xa4   : > { %1003 = vperm.xlu0 %6599, %v999_v62   ;;  %1008 = vperm.xlu1 %6600, %v1000_v9   ;;  %v5709_v62 = vld [vmem:[%s12780_s3 + $0x30] sm:$0xff]  ;;  %v5783_v9 = vld [vmem:[%s12780_s3 + $0x260] sm:$0xff] }
  0xa5   : > { %710 = vmatprep.subr.bf16.mxu0 %v559_v20  ;;  %v5767_v20 = vld [vmem:[%s12780_s3 + $0x220] sm:$0xff] }
  0xa6   : > { %711 = vmatpush1.bf16.msra.mxu0 %v558_v21  ;;  %v5768_v21 = vld [vmem:[%s12780_s3 + $0x228] sm:$0xff] }
  0xa7   : > { %v573_v26 = vpop.permute.xlu1 %572  ;;  %v571_v27 = vpop.permute.xlu0 %570  ;;  %712 = vmatprep.subr.bf16.mxu0 %v563_v22 }
  0xa8   : > { %v576_v28 = vsel %vm574_vm5, %v569_v18, %v573_v26  ;;  %v578_v29 = vsel %vm574_vm5, %v573_v26, %v569_v18  ;;  %v575_v30 = vsel %vm574_vm5, %v567_v19, %v571_v27  ;;  %v577_v31 = vsel %vm574_vm5, %v571_v27, %v567_v19  ;;  %v5769_v18 = vld [vmem:[%s12780_s3 + $0x230] sm:$0xff]  ;;  %v5770_v19 = vld [vmem:[%s12780_s3 + $0x238] sm:$0xff] }
  0xa9   : > { %v586_v32 = vmul.f32 %v5757_v23, %v576_v28  ;;  %v587_v33 = vmul.f32 %v5758_v24, %v578_v29  ;;  %v584_v34 = vmul.f32 %v5755_v25, %v575_v30  ;;  %v585_v35 = vmul.f32 %v5756_v0, %v577_v31 }
  0xaa   : > { %713 = vmatpush1.bf16.msra.mxu0 %v562_v2 }
  0xab   : > { %v595_v1 = vpop.permute.xlu1 %594  ;;  %v593_v3 = vpop.permute.xlu0 %592  ;;  %v589_v36 = vpack.c.bf16 %v587_v33, %v585_v35  ;;  %v588_v37 = vpack.c.bf16 %v586_v32, %v584_v34  ;;  %v220_v34 = vld [vmem:[%s12780_s3 + $0x10] sm:$0xff]  ;;  %v221_v35 = vld [vmem:[%s12780_s3 + $0x18] sm:$0xff] }
  0xad   : > { %714 = vmatprep.subr.bf16.mxu0 %v589_v36  ;;  %v5782_v36 = vld [vmem:[%s12780_s3 + $0x258] sm:$0xff] }
  0xae   : > { %715 = vmatpush1.bf16.msra.mxu0 %v588_v37  ;;  %v218_v37 = vld [vmem:[%s12780_s3] sm:$0xff] }
  0xaf   : > { %v599_v42 = vpop.permute.xlu1 %598  ;;  %v597_v43 = vpop.permute.xlu0 %596 }
  0xb0   : > { %v602_v44 = vsel %vm600_vm6, %v595_v1, %v599_v42  ;;  %v604_v45 = vsel %vm600_vm6, %v599_v42, %v595_v1  ;;  %v601_v46 = vsel %vm600_vm6, %v593_v3, %v597_v43  ;;  %v603_v47 = vsel %vm600_vm6, %v597_v43, %v593_v3  ;;  %v5781_v1 = vld [vmem:[%s12780_s3 + $0x250] sm:$0xff]  ;;  %v5780_v42 = vld [vmem:[%s12780_s3 + $0x248] sm:$0xff] }
  0xb1   : > { %v612_v48 = vmul.f32 %v5761_v38, %v602_v44  ;;  %v613_v49 = vmul.f32 %v5762_v39, %v604_v45  ;;  %v610_v50 = vmul.f32 %v5759_v40, %v601_v46  ;;  %v611_v51 = vmul.f32 %v5760_v41, %v603_v47  ;;  %v6601_v3 = vld [vmem:[%s12778_s1 + $0x10] ss:$8 sps:$4 sm:$0xff]   ;;  %v6604_v38 = vld [vmem:[%s12778_s1 + $0x4] ss:$8 sps:$4 sm:$0xff]  }
  0xb2   : > { %v219_v40 = vld [vmem:[%s12780_s3 + $0x8] sm:$0xff]  ;;  %v5779_v41 = vld [vmem:[%s12780_s3 + $0x240] sm:$0xff] }
  0xb3   : > { %v621_v52 = vpop.permute.xlu1 %620  ;;  %v619_v53 = vpop.permute.xlu0 %618  ;;  %v615_v54 = vpack.c.bf16 %v613_v49, %v611_v51  ;;  %v614_v55 = vpack.c.bf16 %v612_v48, %v610_v50 }
  0xb5   : > { %716 = vmatprep.subr.bf16.mxu0 %v615_v54 }
  0xb6   : > { %717 = vmatpush1.bf16.msra.mxu0 %v614_v55 }
  0xb7   : > { %v625_v60 = vpop.permute.xlu1 %624  ;;  %v623_v61 = vpop.permute.xlu0 %622 }
  0xb8   : > { %v628_v63 = vsel %vm626_vm7, %v621_v52, %v625_v60  ;;  %v630_v4 = vsel %vm626_vm7, %v625_v60, %v621_v52  ;;  %v627_v5 = vsel %vm626_vm7, %v619_v53, %v623_v61  ;;  %v629_v7 = vsel %vm626_vm7, %v623_v61, %v619_v53 }
  0xb9   : > { %v638_v10 = vmul.f32 %v5765_v56, %v628_v63  ;;  %v639_v11 = vmul.f32 %v5766_v57, %v630_v4  ;;  %v636_v12 = vmul.f32 %v5763_v58, %v627_v5  ;;  %v637_v13 = vmul.f32 %v5764_v59, %v629_v7  ;;  %v5710_v63 = vld [vmem:[%s12780_s3 + $0x38] sm:$0xff]  ;;  %v5785_v4 = vld [vmem:[%s12780_s3 + $0x270] sm:$0xff]  ;;  %v5707_v7 = vld [vmem:[%s12780_s3 + $0x20] sm:$0xff] }
  0xbb   : > { %v647_v14 = vpop.permute.xlu1 %646  ;;  %v645_v15 = vpop.permute.xlu0 %644  ;;  %v641_v16 = vpack.c.bf16 %v639_v11, %v637_v13  ;;  %v640_v17 = vpack.c.bf16 %v638_v10, %v636_v12 }
  0xbd   : > { %718 = vmatprep.subr.bf16.mxu0 %v641_v16 }
  0xbe   : > { %719 = vmatpush1.bf16.msra.mxu0 %v640_v17 }
  0xbf   : > { %v651_v22 = vpop.permute.xlu1 %650  ;;  %v649_v23 = vpop.permute.xlu0 %648 }
  0xc0   : > { %v654_v24 = vsel %vm652_vm8, %v647_v14, %v651_v22  ;;  %v656_v25 = vsel %vm652_vm8, %v651_v22, %v647_v14  ;;  %v653_v0 = vsel %vm652_vm8, %v645_v15, %v649_v23  ;;  %v655_v2 = vsel %vm652_vm8, %v649_v23, %v645_v15 }
  0xc1   : > { %v664_v26 = vmul.f32 %v5769_v18, %v654_v24  ;;  %v665_v27 = vmul.f32 %v5770_v19, %v656_v25  ;;  %v662_v28 = vmul.f32 %v5767_v20, %v653_v0  ;;  %v663_v29 = vmul.f32 %v5768_v21, %v655_v2  ;;  %v5713_v0 = vld [vmem:[%s12780_s3 + $0x50] sm:$0xff]  ;;  %v5714_v2 = vld [vmem:[%s12780_s3 + $0x58] sm:$0xff] }
  0xc3   : > { %v206_v30 = vpop.permute.xlu1 %205  ;;  %v204_v31 = vpop.permute.xlu0 %203  ;;  %v667_v32 = vpack.c.bf16 %v665_v27, %v663_v29  ;;  %v666_v33 = vpack.c.bf16 %v664_v26, %v662_v28  ;;  %v5711_v27 = vld [vmem:[%s12780_s3 + $0x40] sm:$0xff]  ;;  %v5712_v28 = vld [vmem:[%s12780_s3 + $0x48] sm:$0xff] }
  0xc5   : > { %720 = vmatprep.subr.bf16.mxu0 %v667_v32 }
  0xc6   : > { %721 = vmatpush1.bf16.msra.mxu0 %v666_v33 }
  0xc7   : > { %v210_v39 = vpop.permute.xlu1 %209  ;;  %v208_v43 = vpop.permute.xlu0 %207 }
  0xc8   : > { %v215_v44 = vsel %vm213_vm9, %v206_v30, %v210_v39  ;;  %v217_v45 = vsel %vm213_vm9, %v210_v39, %v206_v30  ;;  %v214_v46 = vsel %vm213_vm9, %v204_v31, %v208_v43  ;;  %v216_v47 = vsel %vm213_vm9, %v208_v43, %v204_v31  ;;  %v5715_v43 = vld [vmem:[%s12780_s3 + $0x60] sm:$0xff] }
  0xc9   : > { %v224_v48 = vmul.f32 %v220_v34, %v217_v45  ;;  %v225_v49 = vmul.f32 %v221_v35, %v215_v44  ;;  %v7102_v50 = vmul.f32 %v5781_v1, %v215_v44  ;;  %v7104_v51 = vmul.f32 %v5782_v36, %v217_v45  ;;  %737 = vmatmul.mubr.bf16.vlgmr.msra.gmra.mrb[0].mxu0 %v6601_v3  ;;  %v5716_v44 = vld [vmem:[%s12780_s3 + $0x68] sm:$0xff] }
  0xca   : > { %v222_v52 = vmul.f32 %v218_v37, %v216_v47  ;;  %v223_v53 = vmul.f32 %v219_v40, %v214_v46  ;;  %v7106_v54 = vmul.f32 %v5779_v41, %v214_v46  ;;  %v7108_v55 = vmul.f32 %v5780_v42, %v216_v47  ;;  %5778 = vmatprep.mubr.msk.bf16.mxu0 %vm700_vm0, %v6604_v38  ;;  %v5717_v40 = vld [vmem:[%s12780_s3 + $0x70] sm:$0xff]  ;;  %v5718_v41 = vld [vmem:[%s12780_s3 + $0x78] sm:$0xff] }
  0xcb   : > { %v233_v56 = vpop.permute.xlu1 %232  ;;  %v231_v57 = vpop.permute.xlu0 %230 }
  0xcc   : > { %v226_v58 = vpack.c.bf16 %v224_v48, %v222_v52  ;;  %v811_v59 = vpack.c.bf16 %v7102_v50, %v7106_v54  ;;  %v227_v60 = vpack.c.bf16 %v225_v49, %v223_v53  ;;  %v812_v61 = vpack.c.bf16 %v7104_v51, %v7108_v55  ;;  %v5792_v51 = vld [vmem:[%s12780_s3 + $0x2a8] sm:$0xff] }
  0xce   : > { %759 = vmatprep.subr.bf16.mxu0 %v227_v60 }
  0xcf   : > { %760 = vmatpush1.bf16.msra.mxu0 %v226_v58  ;;  %v237_v5 = vpop.permute.xlu1 %236  ;;  %v235_v10 = vpop.permute.xlu0 %234 }
  0xd0   : > { %v240_v11 = vsel %vm238_vm10, %v233_v56, %v237_v5  ;;  %v7138_v12 = vsel %vm238_vm10, %v237_v5, %v233_v56  ;;  %v239_v13 = vsel %vm238_vm10, %v231_v57, %v235_v10  ;;  %v7144_v14 = vsel %vm238_vm10, %v235_v10, %v231_v57  ;;  %v5722_v5 = vld [vmem:[%s12780_s3 + $0x98] sm:$0xff] }
  0xd1   : > { %v250_v15 = vmul.f32 %v5709_v62, %v7138_v12  ;;  %v251_v16 = vmul.f32 %v5710_v63, %v240_v11  ;;  %v7147_v17 = vmul.f32 %v5785_v4, %v240_v11  ;;  %v248_v18 = vmul.f32 %v5707_v7, %v7144_v14  ;;  %v5721_v4 = vld [vmem:[%s12780_s3 + $0x90] sm:$0xff] }
  0xd2   : > { %v249_v19 = vmul.f32 %v5708_v8, %v239_v13  ;;  %v7150_v20 = vmul.f32 %v5783_v9, %v239_v13  ;;  %v5719_v8 = vld [vmem:[%s12780_s3 + $0x80] sm:$0xff]  ;;  %v5720_v9 = vld [vmem:[%s12780_s3 + $0x88] sm:$0xff] }
  0xd3   : > { %v259_v21 = vpop.permute.xlu1 %258  ;;  %v257_v22 = vpop.permute.xlu0 %256  ;;  %v252_v23 = vpack.c.bf16 %v250_v15, %v248_v18 }
  0xd4   : > { %v824_v24 = vpack.c.bf16 %v7147_v17, %v7150_v20  ;;  %v253_v25 = vpack.c.bf16 %v251_v16, %v249_v19  ;;  %v5802_v20 = vld [vmem:[%s12780_s3 + $0x2f8] sm:$0xff] }
  0xd6   : > { %761 = vmatprep.subr.bf16.mxu0 %v253_v25 }
  0xd7   : > { %762 = vmatpush1.bf16.msra.mxu0 %v252_v23  ;;  %v263_v26 = vpop.permute.xlu1 %262  ;;  %v261_v29 = vpop.permute.xlu0 %260 }
  0xd8   : > { %v7169_v30 = vsel %vm12800_vm11, %v259_v21, %v263_v26  ;;  %v7173_v31 = vsel %vm12800_vm11, %v263_v26, %v259_v21  ;;  %v7177_v32 = vsel %vm12800_vm11, %v257_v22, %v261_v29  ;;  %v7181_v33 = vsel %vm12800_vm11, %v261_v29, %v257_v22  ;;  %v5725_v26 = vld [vmem:[%s12780_s3 + $0xb0] sm:$0xff]  ;;  %v5723_v29 = vld [vmem:[%s12780_s3 + $0xa0] sm:$0xff] }
  0xd9   : > { %v276_v34 = vmul.f32 %v5713_v0, %v7173_v31  ;;  %v277_v35 = vmul.f32 %v5714_v2, %v7169_v30  ;;  %v274_v1 = vmul.f32 %v5711_v27, %v7181_v33  ;;  %v275_v3 = vmul.f32 %v5712_v28, %v7177_v32  ;;  %v5726_v27 = vld [vmem:[%s12780_s3 + $0xb8] sm:$0xff] }
  0xdb   : > { %v285_v36 = vpop.permute.xlu1 %284  ;;  %v283_v37 = vpop.permute.xlu0 %282  ;;  %v278_v38 = vpack.c.bf16 %v276_v34, %v274_v1  ;;  %v279_v39 = vpack.c.bf16 %v277_v35, %v275_v3  ;;  %v5724_v34 = vld [vmem:[%s12780_s3 + $0xa8] sm:$0xff] }
  0xdd   : > { %763 = vmatprep.subr.bf16.mxu0 %v279_v39 }
  0xde   : > { %764 = vmatpush1.bf16.msra.mxu0 %v278_v38 }
  0xdf   : > { %v289_v42 = vpop.permute.xlu1 %288  ;;  %v287_v45 = vpop.permute.xlu0 %286 }
  0xe0   : > { %v7202_v46 = vsel %vm12799_vm12, %v285_v36, %v289_v42  ;;  %v7206_v47 = vsel %vm12799_vm12, %v289_v42, %v285_v36  ;;  %v7210_v48 = vsel %vm12799_vm12, %v283_v37, %v287_v45  ;;  %v7214_v49 = vsel %vm12799_vm12, %v287_v45, %v283_v37 }
  0xe1   : > { %v302_v52 = vmul.f32 %v5717_v40, %v7206_v47  ;;  %v303_v53 = vmul.f32 %v5718_v41, %v7202_v46  ;;  %v300_v56 = vmul.f32 %v5715_v43, %v7214_v49  ;;  %v301_v57 = vmul.f32 %v5716_v44, %v7210_v48 }
  0xe2   : > { %v847_v50 = vmul.f32 %v5792_v51, %v7214_v49  ;;  %v5797_v49 = vld [vmem:[%s12780_s3 + $0x2d0] sm:$0xff] }
  0xe3   : > { %v311_v58 = vpop.permute.xlu1 %310  ;;  %v309_v60 = vpop.permute.xlu0 %308  ;;  %v304_v62 = vpack.c.bf16 %v302_v52, %v300_v56  ;;  %v305_v63 = vpack.c.bf16 %v303_v53, %v301_v57  ;;  %v5729_v52 = vld [vmem:[%s12780_s3 + $0xd0] sm:$0xff]  ;;  %v5730_v53 = vld [vmem:[%s12780_s3 + $0xd8] sm:$0xff]  ;;  %v5727_v57 = vld [vmem:[%s12780_s3 + $0xc0] sm:$0xff] }
  0xe5   : > { %765 = vmatprep.subr.bf16.mxu0 %v305_v63 }
  0xe6   : > { %766 = vmatpush1.bf16.msra.mxu0 %v304_v62 }
  0xe7   : > { %v315_v7 = vpop.permute.xlu1 %314  ;;  %v313_v10 = vpop.permute.xlu0 %312 }
  0xe8   : > { %v7235_v11 = vsel %vm12798_vm13, %v311_v58, %v315_v7  ;;  %v7239_v13 = vsel %vm12798_vm13, %v315_v7, %v311_v58  ;;  %v7243_v15 = vsel %vm12798_vm13, %v309_v60, %v313_v10  ;;  %v7247_v16 = vsel %vm12798_vm13, %v313_v10, %v309_v60  ;;  %v5728_v58 = vld [vmem:[%s12780_s3 + $0xc8] sm:$0xff] }
  0xe9   : > { %v328_v18 = vmul.f32 %v5721_v4, %v7239_v13  ;;  %v329_v19 = vmul.f32 %v5722_v5, %v7235_v11  ;;  %v326_v21 = vmul.f32 %v5719_v8, %v7247_v16  ;;  %v327_v22 = vmul.f32 %v5720_v9, %v7243_v15 }
  0xeb   : > { %v337_v23 = vpop.permute.xlu1 %336  ;;  %v335_v25 = vpop.permute.xlu0 %334  ;;  %v330_v0 = vpack.c.bf16 %v328_v18, %v326_v21  ;;  %v331_v2 = vpack.c.bf16 %v329_v19, %v327_v22 }
  0xed   : > { %767 = vmatprep.subr.bf16.mxu0 %v331_v2  ;;  %v5731_v2 = vld [vmem:[%s12780_s3 + $0xe0] sm:$0xff] }
  0xee   : > { %768 = vmatpush1.bf16.msra.mxu0 %v330_v0 }
  0xef   : > { %v341_v28 = vpop.permute.xlu1 %340  ;;  %v339_v35 = vpop.permute.xlu0 %338 }
  0xf0   : > { %v7268_v1 = vsel %vm12792_vm14, %v337_v23, %v341_v28  ;;  %v7272_v3 = vsel %vm12792_vm14, %v341_v28, %v337_v23  ;;  %v7276_v36 = vsel %vm12792_vm14, %v335_v25, %v339_v35  ;;  %v7280_v37 = vsel %vm12792_vm14, %v339_v35, %v335_v25  ;;  %v5733_v23 = vld [vmem:[%s12780_s3 + $0xf0] sm:$0xff]  ;;  %v5734_v25 = vld [vmem:[%s12780_s3 + $0xf8] sm:$0xff] }
  0xf1   : > { %v354_v38 = vmul.f32 %v5725_v26, %v7272_v3  ;;  %v355_v39 = vmul.f32 %v5726_v27, %v7268_v1  ;;  %v352_v40 = vmul.f32 %v5723_v29, %v7280_v37  ;;  %v353_v41 = vmul.f32 %v5724_v34, %v7276_v36  ;;  %v5732_v26 = vld [vmem:[%s12780_s3 + $0xe8] sm:$0xff] }
  0xf2   : > { %vm394_vm14 = vcmp.lt.s32.totalorder %v6859_v6, 56 }
  0xf3   : > { %v363_v42 = vpop.permute.xlu1 %362  ;;  %v361_v43 = vpop.permute.xlu0 %360  ;;  %v356_v44 = vpack.c.bf16 %v354_v38, %v352_v40  ;;  %v357_v45 = vpack.c.bf16 %v355_v39, %v353_v41 }
  0xf5   : > { %769 = vmatprep.subr.bf16.mxu0 %v357_v45 }
  0xf6   : > { %770 = vmatpush1.bf16.msra.mxu0 %v356_v44 }
  0xf7   : > { %v367_v56 = vpop.permute.xlu1 %366  ;;  %v365_v60 = vpop.permute.xlu0 %364 }
  0xf8   : > { %v7301_v62 = vsel %vm12793_vm15, %v363_v42, %v367_v56  ;;  %v7305_v63 = vsel %vm12793_vm15, %v367_v56, %v363_v42  ;;  %v7309_v4 = vsel %vm12793_vm15, %v361_v43, %v365_v60  ;;  %v7313_v5 = vsel %vm12793_vm15, %v365_v60, %v361_v43  ;;  %v5735_v60 = vld [vmem:[%s12780_s3 + $0x100] sm:$0xff] }
  0xf9   : > { %v380_v7 = vmul.f32 %v5729_v52, %v7305_v63  ;;  %v381_v8 = vmul.f32 %v5730_v53, %v7301_v62  ;;  %v378_v9 = vmul.f32 %v5727_v57, %v7313_v5  ;;  %v379_v10 = vmul.f32 %v5728_v58, %v7309_v4  ;;  %v5737_v52 = vld [vmem:[%s12780_s3 + $0x110] sm:$0xff]  ;;  %v5738_v53 = vld [vmem:[%s12780_s3 + $0x118] sm:$0xff] }
  0xfa   : > { %vm420_vm15 = vcmp.lt.s32.totalorder %v6859_v6, 55 }
  0xfb   : > { %v389_v18 = vpop.permute.xlu1 %388  ;;  %v387_v19 = vpop.permute.xlu0 %386  ;;  %v382_v21 = vpack.c.bf16 %v380_v7, %v378_v9  ;;  %v383_v22 = vpack.c.bf16 %v381_v8, %v379_v10  ;;  %v5736_v7 = vld [vmem:[%s12780_s3 + $0x108] sm:$0xff] }
  0xfd   : > { %771 = vmatprep.subr.bf16.mxu0 %v383_v22 }
  0xfe   : > { %772 = vmatpush1.bf16.msra.mxu0 %v382_v21 }
  0xff   : > { %v393_v0 = vpop.permute.xlu1 %392  ;;  %v391_v27 = vpop.permute.xlu0 %390 }
 0x100   : > { %v7334_v28 = vsel %vm394_vm14, %v389_v18, %v393_v0  ;;  %v7338_v29 = vsel %vm394_vm14, %v393_v0, %v389_v18  ;;  %v7342_v34 = vsel %vm394_vm14, %v387_v19, %v391_v27  ;;  %v7346_v35 = vsel %vm394_vm14, %v391_v27, %v387_v19 }
 0x101   : > { %v406_v38 = vmul.f32 %v5733_v23, %v7338_v29  ;;  %v407_v39 = vmul.f32 %v5734_v25, %v7334_v28  ;;  %v404_v40 = vmul.f32 %v5731_v2, %v7346_v35  ;;  %v405_v41 = vmul.f32 %v5732_v26, %v7342_v34  ;;  %v5786_v23 = vld [vmem:[%s12780_s3 + $0x278] sm:$0xff]  ;;  %v5784_v25 = vld [vmem:[%s12780_s3 + $0x268] sm:$0xff] }
 0x102   : > { %v823_v26 = vmul.f32 %v5786_v23, %v7138_v12  ;;  %v821_v27 = vmul.f32 %v5784_v25, %v7144_v14  ;;  %v6607_v12 = vld [vmem:[%s12778_s1 + $0x24] ss:$8 sps:$4 sm:$0xff]   ;;  %v5789_v14 = vld [vmem:[%s12780_s3 + $0x290] sm:$0xff] }
 0x103   : > { %v415_v42 = vpop.permute.xlu1 %414  ;;  %v408_v43 = vpack.c.bf16 %v406_v38, %v404_v40  ;;  %v409_v45 = vpack.c.bf16 %v407_v39, %v405_v41  ;;  %v6606_v38 = vld [vmem:[%s12778_s1] ss:$8 sps:$4 sm:$0xff]   ;;  %v5790_v39 = vld [vmem:[%s12780_s3 + $0x298] sm:$0xff]  ;;  %v835_v55 = vmul.f32 %v5789_v14, %v7169_v30 }
 0x104   : > { %v413_v44 = vpop.permute.xlu0 %412  ;;  %v5788_v40 = vld [vmem:[%s12780_s3 + $0x288] sm:$0xff]  ;;  %v836_v41 = vmul.f32 %v5790_v39, %v7173_v31  ;;  %v5793_v31 = vld [vmem:[%s12780_s3 + $0x2b0] sm:$0xff] }
 0x105   : > { %773 = vmatprep.subr.bf16.mxu0 %v409_v45  ;;  %v5794_v45 = vld [vmem:[%s12780_s3 + $0x2b8] sm:$0xff]  ;;  %v5796_v30 = vld [vmem:[%s12780_s3 + $0x2c8] sm:$0xff] }
 0x106   : > { %774 = vmatpush1.bf16.msra.mxu0 %v408_v43  ;;  %v834_v43 = vmul.f32 %v5788_v40, %v7181_v33  ;;  %v849_v33 = vmul.f32 %v5794_v45, %v7206_v47  ;;  %v848_v47 = vmul.f32 %v5793_v31, %v7202_v46  ;;  %v5807_v40 = vld [vmem:[%s12780_s3 + $0x320] sm:$0xff] }
 0x107   : > { %v419_v56 = vpop.permute.xlu1 %418 }
 0x108   : > { %v7361_v57 = vsel %vm420_vm15, %v415_v42, %v419_v56  ;;  %v7365_v58 = vsel %vm420_vm15, %v419_v56, %v415_v42  ;;  %v417_v8 = vpop.permute.xlu0 %416  ;;  %v5787_v42 = vld [vmem:[%s12780_s3 + $0x280] sm:$0xff]  ;;  %v838_v54 = vpack.c.bf16 %v836_v41, %v834_v43  ;;  %v851_v17 = vpack.c.bf16 %v849_v33, %v847_v50  ;;  %v5814_v41 = vld [vmem:[%s12780_s3 + $0x358] sm:$0xff] }
 0x109   : > { %v432_v9 = vmul.f32 %v5737_v52, %v7365_v58  ;;  %v433_v10 = vmul.f32 %v5738_v53, %v7361_v57  ;;  %v7377_v18 = vsel %vm420_vm15, %v413_v44, %v417_v8  ;;  %v7381_v19 = vsel %vm420_vm15, %v417_v8, %v413_v44  ;;  %v5791_v52 = vld [vmem:[%s12780_s3 + $0x2a0] sm:$0xff] }
 0x10a   : > { %v430_v21 = vmul.f32 %v5735_v60, %v7381_v19  ;;  %v431_v22 = vmul.f32 %v5736_v7, %v7377_v18  ;;  %v825_v44 = vpack.c.bf16 %v823_v26, %v821_v27  ;;  %v846_v53 = vmul.f32 %v5791_v52, %v7210_v48  ;;  %v5795_v60 = vld [vmem:[%s12780_s3 + $0x2c0] sm:$0xff]  ;;  %v5810_v27 = vld [vmem:[%s12780_s3 + $0x338] sm:$0xff] }
 0x10b   : > { %v860_v7 = vmul.f32 %v5796_v30, %v7247_v16  ;;  %v861_v48 = vmul.f32 %v5797_v49, %v7235_v11  ;;  %v5801_v16 = vld [vmem:[%s12780_s3 + $0x2f0] sm:$0xff]  ;;  %v875_v8 = vmul.f32 %v5802_v20, %v7272_v3  ;;  %v5804_v11 = vld [vmem:[%s12780_s3 + $0x308] sm:$0xff]  ;;  %v901_v39 = vmul.f32 %v5810_v27, %v7338_v29 }
 0x10c   : > { %v434_v0 = vpack.c.bf16 %v432_v9, %v430_v21  ;;  %v435_v2 = vpack.c.bf16 %v433_v10, %v431_v22  ;;  %v850_v46 = vpack.c.bf16 %v848_v47, %v846_v53  ;;  %v5799_v9 = vld [vmem:[%s12780_s3 + $0x2e0] sm:$0xff]  ;;  %v5806_v22 = vld [vmem:[%s12780_s3 + $0x318] sm:$0xff]  ;;  %v874_v3 = vmul.f32 %v5801_v16, %v7268_v1  ;;  %v5808_v1 = vld [vmem:[%s12780_s3 + $0x328] sm:$0xff] }
 0x10d   : > { %v872_v23 = vmul.f32 %v5799_v9, %v7276_v36  ;;  %v888_v25 = vmul.f32 %v5806_v22, %v7305_v63  ;;  %v914_v43 = vmul.f32 %v5814_v41, %v7365_v58  ;;  %v6609_v58 = vld [vmem:[%s12778_s1 + $0x20] ss:$8 sps:$4 sm:$0xff]   ;;  %v5936_v22 = vld [vmem:[%s12779_s2 + $0x18] sm:$0xff] }
 0x10e   : > { %775 = vmatprep.subr.bf16.mxu0 %v435_v2  ;;  %v886_v2 = vmul.f32 %v5804_v11, %v7313_v5  ;;  %v5809_v5 = vld [vmem:[%s12780_s3 + $0x330] sm:$0xff] }
 0x10f   : > { %776 = vmatpush1.bf16.msra.mxu0 %v434_v0  ;;  %v5803_v0 = vld [vmem:[%s12780_s3 + $0x300] sm:$0xff]  ;;  %v876_v36 = vpack.c.bf16 %v874_v3, %v872_v23  ;;  %v900_v29 = vmul.f32 %v5809_v5, %v7334_v28 }
 0x110   : > { %952 = vmatprep.subr.bf16.mxu0 %v812_v61  ;;  %v833_v61 = vmul.f32 %v5787_v42, %v7177_v32  ;;  %v890_v14 = vpack.c.bf16 %v888_v25, %v886_v2  ;;  %v898_v42 = vmul.f32 %v5807_v40, %v7342_v34 }
 0x112   : > { %792 = vmatmul.mubr.bf16.vlgmr.msra.gmra.mrb[0].mxu0 %v6606_v38  ;;  %v837_v32 = vpack.c.bf16 %v835_v55, %v833_v61  ;;  %v885_v38 = vmul.f32 %v5803_v0, %v7309_v4  ;;  %v902_v55 = vpack.c.bf16 %v900_v29, %v898_v42  ;;  %v5855_v29 = vld [vmem:[%s12780_s3 + $0x128] sm:$0xff] }
 0x113   : > { %953 = vmatpush1.bf16.msra.mxu0 %v811_v59  ;;  %5819 = vmatprep.mubr.msk.bf16.mxu0 %vm700_vm0, %v6607_v12  ;;  %v5798_v59 = vld [vmem:[%s12780_s3 + $0x2d8] sm:$0xff]  ;;  %v899_v12 = vmul.f32 %v5808_v1, %v7346_v35  ;;  %v5813_v35 = vld [vmem:[%s12780_s3 + $0x350] sm:$0xff] }
 0x114   : > { %954 = vmatprep.subr.bf16.mxu0 %v825_v44  ;;  %v862_v56 = vmul.f32 %v5798_v59, %v7239_v13  ;;  %v859_v13 = vmul.f32 %v5795_v60, %v7243_v15  ;;  %v5811_v44 = vld [vmem:[%s12780_s3 + $0x340] sm:$0xff]  ;;  %v913_v28 = vmul.f32 %v5813_v35, %v7361_v57 }
 0x115   : > { %v903_v51 = vpack.c.bf16 %v901_v39, %v899_v12  ;;  %v911_v34 = vmul.f32 %v5811_v44, %v7377_v18  ;;  %v6612_v60 = vld [vmem:[%s12778_s1 + $0x44] ss:$8 sps:$4 sm:$0xff]  }
 0x116   : > { %v864_v21 = vpack.c.bf16 %v862_v56, %v860_v7  ;;  %v863_v15 = vpack.c.bf16 %v861_v48, %v859_v13  ;;  %5890 = vmatprep.mubr.msk.bf16.mxu1 %vm700_vm0, %v6612_v60  ;;  %v5854_v44 = vld [vmem:[%s12780_s3 + $0x120] sm:$0xff] }
 0x117   : > { %955 = vmatpush1.bf16.msra.mxu0 %v824_v24  ;;  %v5800_v24 = vld [vmem:[%s12780_s3 + $0x2e8] sm:$0xff]  ;;  %v915_v31 = vpack.c.bf16 %v913_v28, %v911_v34  ;;  %v5858_v34 = vld [vmem:[%s12780_s3 + $0x140] sm:$0xff] }
 0x118   : > { %956 = vmatprep.subr.bf16.mxu0 %v838_v54  ;;  %v873_v10 = vmul.f32 %v5800_v24, %v7280_v37  ;;  %v5805_v37 = vld [vmem:[%s12780_s3 + $0x310] sm:$0xff] }
 0x119   : > { %v887_v63 = vmul.f32 %v5805_v37, %v7301_v62  ;;  %v5812_v62 = vld [vmem:[%s12780_s3 + $0x348] sm:$0xff] }
 0x11a   : > { %v877_v26 = vpack.c.bf16 %v875_v8, %v873_v10  ;;  %v912_v45 = vmul.f32 %v5812_v62, %v7381_v19  ;;  %v5935_v10 = vld [vmem:[%s12779_s2 + $0x10] sm:$0xff] }
 0x11b   : > { %957 = vmatpush1.bf16.msra.mxu0 %v837_v32  ;;  %v889_v4 = vpack.c.bf16 %v887_v63, %v885_v38 }
 0x11c   : > { %958 = vmatprep.subr.bf16.mxu0 %v851_v17  ;;  %v916_v61 = vpack.c.bf16 %v914_v43, %v912_v45  ;;  %v5857_v43 = vld [vmem:[%s12780_s3 + $0x138] sm:$0xff]  ;;  %v5856_v45 = vld [vmem:[%s12780_s3 + $0x130] sm:$0xff] }
 0x11f   : > { %959 = vmatpush1.bf16.msra.mxu0 %v850_v46 }
 0x120   : > { %960 = vmatprep.subr.bf16.mxu0 %v864_v21 }
 0x123   : > { %961 = vmatpush1.bf16.msra.mxu0 %v863_v15  ;;  %v1004_v33 = vpop.permute.xlu0 %1003  ;;  %v1009_v52 = vpop.permute.xlu1 %1008 }
 0x124   : > { %962 = vmatprep.subr.bf16.mxu0 %v877_v26 }
 0x127   : > { %963 = vmatpush1.bf16.msra.mxu0 %v876_v36 }
 0x128   : > { %964 = vmatprep.subr.bf16.mxu0 %v890_v14 }
 0x12b   : > { %965 = vmatpush1.bf16.msra.mxu0 %v889_v4 }
 0x12c   : > { %966 = vmatprep.subr.bf16.mxu0 %v903_v51 }
 0x12f   : > { %967 = vmatpush1.bf16.msra.mxu0 %v902_v55 }
 0x130   : > { %968 = vmatprep.subr.bf16.mxu0 %v916_v61 }
 0x133   : > { %969 = vmatpush1.bf16.msra.mxu0 %v915_v31 }
 0x136   : > { %985 = vmatmul.mubr.bf16.vlgmr.msra.gmra.mrb[0].mxu0 %v6609_v58 }
 0x209   : > { %v986_v19 = vpop.f32.mrb[0].mxu0 }
 0x20a   : > { %v1011_v50 = vadd.f32 %v1004_v33, %v986_v19  ;;  %v988_v54 = vpop.f32.mrb[1].mxu0 }
 0x20b   : > { %v990_v59 = vpop.f32.mrb[2].mxu0  ;;  %v1012_v47 = vadd.f32 %v1004_v33, %v988_v54 }
 0x20c   : > { %v7524_v30 = vmax.f32 %v1011_v50, 0.0  ;;  %v1013_v57 = vadd.f32 %v1009_v52, %v990_v59  ;;  %v992_v18 = vpop.f32.mrb[3].mxu0  ;;  %v5860_v59 = vld [vmem:[%s12780_s3 + $0x150] sm:$0xff] }
 0x20d   : > { %v1014_v53 = vadd.f32 %v1009_v52, %v992_v18  ;;  %v7590_v49 = vmax.f32 %v1012_v47, 0.0  ;;  %v5859_v52 = vld [vmem:[%s12780_s3 + $0x148] sm:$0xff] }
 0x20e   : > { %v7526_v32 = vmax.f32 %v1013_v57, 0.0  ;;  %1256 = vrot.lane.b32.xlu1 %v7524_v30, %s6672_s21  ;;  %v5861_v57 = vld [vmem:[%s12780_s3 + $0x158] sm:$0xff] }
 0x20f   : > { %v7594_v56 = vmax.f32 %v1014_v53, 0.0 }
 0x210   : > { %1258 = vrot.lane.b32.xlu0 %v7526_v32, %s6672_s21 }
 0x212   : > { %1280 = vrot.lane.b32.xlu1 %v7524_v30, %s6673_s22 }
 0x214   : > { %1282 = vrot.lane.b32.xlu0 %v7526_v32, %s6673_s22 }
 0x216   : > { %1304 = vrot.lane.b32.xlu1 %v7524_v30, %s12815_s23 }
 0x218   : > { %1306 = vrot.lane.b32.xlu0 %v7526_v32, %s12815_s23 }
 0x21a   : > { %1328 = vrot.lane.b32.xlu1 %v7524_v30, %s12813_s24 }
 0x21c   : > { %1330 = vrot.lane.b32.xlu0 %v7526_v32, %s12813_s24 }
 0x21e   : > { %1356 = vrot.lane.b32.xlu1 %v7524_v30, %s12811_s25 }
 0x220   : > { %1358 = vrot.lane.b32.xlu0 %v7526_v32, %s12811_s25 }
 0x222   : > { %1380 = vrot.lane.b32.xlu1 %v7524_v30, %s12809_s26 }
 0x224   : > { %1382 = vrot.lane.b32.xlu0 %v7526_v32, %s12809_s26 }
 0x226   : > { %1404 = vrot.lane.b32.xlu1 %v7524_v30, %s12807_s27 }
 0x228   : > { %1406 = vrot.lane.b32.xlu0 %v7526_v32, %s12807_s27 }
 0x22a   : > { %1428 = vrot.lane.b32.xlu1 %v7524_v30, %s12805_s28 }
 0x22c   : > { %1430 = vrot.lane.b32.xlu0 %v7526_v32, %s12805_s28 }
 0x22e   : > { %1019 = vrot.lane.b32.xlu1 %v7524_v30, %s12803_s5 }
 0x230   : > { %1021 = vrot.lane.b32.xlu0 %v7526_v32, %s12803_s5 }
 0x232   : > { %1043 = vrot.lane.b32.xlu1 %v7524_v30, %s12801_s6 }
 0x234   : > { %1045 = vrot.lane.b32.xlu0 %v7526_v32, %s12801_s6 }
 0x236   : > { %1067 = vrot.lane.b32.xlu1 %v7524_v30, %s12796_s7 }
 0x238   : > { %1069 = vrot.lane.b32.xlu0 %v7526_v32, %s12796_s7 }
 0x23a   : > { %1091 = vrot.lane.b32.xlu1 %v7524_v30, %s12794_s8 }
 0x23c   : > { %1093 = vrot.lane.b32.xlu0 %v7526_v32, %s12794_s8 }
 0x23e   : > { %1115 = vrot.lane.b32.xlu1 %v7524_v30, %s12817_s12 }
 0x240   : > { %1117 = vrot.lane.b32.xlu0 %v7526_v32, %s12817_s12 }
 0x242   : > { %1139 = vrot.lane.b32.xlu1 %v7524_v30, %s12818_s13 }
 0x244   : > { %1141 = vrot.lane.b32.xlu0 %v7526_v32, %s12818_s13 }
 0x246   : > { %1163 = vrot.lane.b32.xlu1 %v7524_v30, %s12819_s10 }
 0x248   : > { %1165 = vrot.lane.b32.xlu0 %v7526_v32, %s12819_s10 }
 0x24a   : > { %1187 = vrot.lane.b32.xlu1 %v7524_v30, %s12820_s11 }
 0x24c   : > { %1189 = vrot.lane.b32.xlu0 %v7526_v32, %s12820_s11 }
 0x24e   : > { %1260 = vrot.lane.b32.xlu1 %v7590_v49, %s6672_s21 }
 0x250   : > { %1262 = vrot.lane.b32.xlu0 %v7594_v56, %s6672_s21 }
 0x252   : > { %1284 = vrot.lane.b32.xlu1 %v7590_v49, %s6673_s22 }
 0x254   : > { %1286 = vrot.lane.b32.xlu0 %v7594_v56, %s6673_s22 }
 0x256   : > { %1308 = vrot.lane.b32.xlu1 %v7590_v49, %s12815_s23 }
 0x258   : > { %1310 = vrot.lane.b32.xlu0 %v7594_v56, %s12815_s23 }
 0x25a   : > { %1332 = vrot.lane.b32.xlu1 %v7590_v49, %s12813_s24 }
 0x25c   : > { %1334 = vrot.lane.b32.xlu0 %v7594_v56, %s12813_s24 }
 0x25e   : > { %1211 = vrot.lane.b32.xlu1 %v7524_v30, %s12821_s14 }
 0x260   : > { %1213 = vrot.lane.b32.xlu0 %v7526_v32, %s12821_s14 }
 0x262   : > { %1360 = vrot.lane.b32.xlu1 %v7590_v49, %s12811_s25 }
 0x264   : > { %1362 = vrot.lane.b32.xlu0 %v7594_v56, %s12811_s25 }
 0x266   : > { %1384 = vrot.lane.b32.xlu1 %v7590_v49, %s12809_s26 }
 0x268   : > { %1386 = vrot.lane.b32.xlu0 %v7594_v56, %s12809_s26 }
 0x26a   : > { %1408 = vrot.lane.b32.xlu1 %v7590_v49, %s12807_s27 }
 0x26c   : > { %1410 = vrot.lane.b32.xlu0 %v7594_v56, %s12807_s27 }
 0x26e   : > { %1432 = vrot.lane.b32.xlu1 %v7590_v49, %s12805_s28 }
 0x270   : > { %1434 = vrot.lane.b32.xlu0 %v7594_v56, %s12805_s28 }
 0x272   : > { %1023 = vrot.lane.b32.xlu1 %v7590_v49, %s12803_s5 }
 0x274   : > { %1025 = vrot.lane.b32.xlu0 %v7594_v56, %s12803_s5 }
 0x276   : > { %1047 = vrot.lane.b32.xlu1 %v7590_v49, %s12801_s6 }
 0x278   : > { %1049 = vrot.lane.b32.xlu0 %v7594_v56, %s12801_s6 }
 0x27a   : > { %1071 = vrot.lane.b32.xlu1 %v7590_v49, %s12796_s7 }
 0x27c   : > { %1073 = vrot.lane.b32.xlu0 %v7594_v56, %s12796_s7  ;;  %s12890_s7 = smov 127  }
 0x27e   : > { %1095 = vrot.lane.b32.xlu1 %v7590_v49, %s12794_s8 }
 0x280   : > { %v1257_v7 = vpop.permute.xlu1 %1256  ;;  %1097 = vrot.lane.b32.xlu0 %v7594_v56, %s12794_s8  ;;  %s12891_s8 = smov 121  }
 0x282   : > { %1119 = vrot.lane.b32.xlu1 %v7590_v49, %s12817_s12  ;;  %v1259_v17 = vpop.permute.xlu0 %1258 }
 0x284   : > { %v1281_v20 = vpop.permute.xlu1 %1280  ;;  %1121 = vrot.lane.b32.xlu0 %v7594_v56, %s12817_s12 }
 0x286   : > { %1143 = vrot.lane.b32.xlu1 %v7590_v49, %s12818_s13  ;;  %v7658_v24 = vpop.permute.xlu0 %1282 }
 0x288   : > { %v7660_v46 = vpop.permute.xlu1 %1304  ;;  %1145 = vrot.lane.b32.xlu0 %v7594_v56, %s12818_s13 }
 0x28a   : > { %1167 = vrot.lane.b32.xlu1 %v7590_v49, %s12819_s10  ;;  %v7666_v48 = vpop.permute.xlu0 %1306 }
 0x28c   : > { %v7668_v13 = vpop.permute.xlu1 %1328  ;;  %1169 = vrot.lane.b32.xlu0 %v7594_v56, %s12819_s10 }
 0x28e   : > { %1191 = vrot.lane.b32.xlu1 %v7590_v49, %s12820_s11  ;;  %v7674_v16 = vpop.permute.xlu0 %1330 }
 0x290   : > { %v7676_v8 = vpop.permute.xlu1 %1356  ;;  %1193 = vrot.lane.b32.xlu0 %v7594_v56, %s12820_s11 }
 0x292   : > { %1215 = vrot.lane.b32.xlu1 %v7590_v49, %s12821_s14  ;;  %v7682_v9 = vpop.permute.xlu0 %1358 }
 0x294   : > { %v7687_v21 = vpop.permute.xlu1 %1380  ;;  %1217 = vrot.lane.b32.xlu0 %v7594_v56, %s12821_s14 }
 0x296   : > { %1776 = vperm.xlu1 %6600, %v5935_v10   ;;  %v7694_v11 = vpop.permute.xlu0 %1382 }
 0x298   : > { %v7696_v15 = vpop.permute.xlu1 %1404  ;;  %1781 = vperm.xlu0 %6599, %v5936_v22  }
 0x29a   : > { %v7698_v3 = vpop.permute.xlu0 %1406 }
 0x29c   : > { %v7700_v23 = vpop.permute.xlu1 %1428 }
 0x29e   : > { %v7702_v37 = vpop.permute.xlu0 %1430 }
 0x2a0   : > { %v7704_v25 = vpop.permute.xlu1 %1019 }
 0x2a2   : > { %v7706_v0 = vpop.permute.xlu0 %1021 }
 0x2a4   : > { %v7708_v2 = vpop.permute.xlu1 %1043 }
 0x2a6   : > { %v7710_v26 = vpop.permute.xlu0 %1045 }
 0x2a8   : > { %v7712_v27 = vpop.permute.xlu1 %1067 }
 0x2aa   : > { %v7714_v1 = vpop.permute.xlu0 %1069 }
 0x2ac   : > { %v7716_v36 = vpop.permute.xlu1 %1091 }
 0x2ae   : > { %v7718_v63 = vpop.permute.xlu0 %1093 }
 0x2b0   : > { %v7720_v38 = vpop.permute.xlu1 %1115 }
 0x2b2   : > { %v7722_v5 = vpop.permute.xlu0 %1117 }
 0x2b4   : > { %v7724_v39 = vpop.permute.xlu1 %1139 }
 0x2b6   : > { %v7726_v40 = vpop.permute.xlu0 %1141 }
 0x2b8   : > { %v7728_v12 = vpop.permute.xlu1 %1163 }
 0x2ba   : > { %v7730_v14 = vpop.permute.xlu0 %1165 }
 0x2bc   : > { %v7732_v41 = vpop.permute.xlu1 %1187 }
 0x2be   : > { %v7734_v62 = vpop.permute.xlu0 %1189 }
 0x2c0   : > { %v1261_v4 = vpop.permute.xlu1 %1260 }
 0x2c1   : > { %v1266_v42 = vsel %vm466_vm1, %v1261_v4, %v1257_v7  ;;  %v1264_v35 = vsel %vm466_vm1, %v1257_v7, %v1261_v4  ;;  %v5862_v4 = vld [vmem:[%s12780_s3 + $0x160] sm:$0xff] }
 0x2c2   : > { %v1263_v51 = vpop.permute.xlu0 %1262  ;;  %v1273_v31 = vmul.f32 %v5855_v29, %v1264_v35  ;;  %v1272_v33 = vmul.f32 %v5854_v44, %v1266_v42  ;;  %v5863_v42 = vld [vmem:[%s12780_s3 + $0x168] sm:$0xff]  ;;  %v5865_v44 = vld [vmem:[%s12780_s3 + $0x178] sm:$0xff] }
 0x2c3   : > { %v1267_v55 = vsel %vm466_vm1, %v1263_v51, %v1259_v17  ;;  %v1265_v28 = vsel %vm466_vm1, %v1259_v17, %v1263_v51 }
 0x2c4   : > { %v1285_v61 = vpop.permute.xlu1 %1284  ;;  %v1275_v58 = vmul.f32 %v5857_v43, %v1265_v28  ;;  %v1274_v19 = vmul.f32 %v5856_v45, %v1267_v55  ;;  %v5864_v43 = vld [vmem:[%s12780_s3 + $0x170] sm:$0xff] }
 0x2c5   : > { %v1288_v50 = vsel %vm492_vm2, %v1281_v20, %v1285_v61  ;;  %v1290_v54 = vsel %vm492_vm2, %v1285_v61, %v1281_v20 }
 0x2c6   : > { %v1287_v18 = vpop.permute.xlu0 %1286  ;;  %v1277_v47 = vpack.c.bf16 %v1275_v58, %v1273_v31  ;;  %v1276_v53 = vpack.c.bf16 %v1274_v19, %v1272_v33  ;;  %v1296_v17 = vmul.f32 %v5858_v34, %v1290_v54  ;;  %v1297_v20 = vmul.f32 %v5859_v52, %v1288_v50  ;;  %v5866_v33 = vld [vmem:[%s12780_s3 + $0x180] sm:$0xff]  ;;  %v5867_v52 = vld [vmem:[%s12780_s3 + $0x188] sm:$0xff]  ;;  %v5868_v54 = vld [vmem:[%s12780_s3 + $0x190] sm:$0xff] }
 0x2c7   : > { %v1289_v60 = vsel %vm492_vm2, %v7658_v24, %v1287_v18  ;;  %v1291_v7 = vsel %vm492_vm2, %v1287_v18, %v7658_v24 }
 0x2c8   : > { %v1298_v10 = vmul.f32 %v5860_v59, %v1291_v7  ;;  %v1299_v22 = vmul.f32 %v5861_v57, %v1289_v60  ;;  %v1309_v29 = vpop.permute.xlu1 %1308  ;;  %1485 = vmatprep.subr.bf16.mxu1 %v1277_v47  ;;  %v5869_v59 = vld [vmem:[%s12780_s3 + $0x198] sm:$0xff] }
 0x2c9   : > { %v1312_v35 = vsel %vm518_vm3, %v7660_v46, %v1309_v29  ;;  %v1314_v24 = vsel %vm518_vm3, %v1309_v29, %v7660_v46  ;;  %1486 = vmatpush1.bf16.msra.mxu1 %v1276_v53 }
 0x2ca   : > { %v1311_v45 = vpop.permute.xlu0 %1310  ;;  %v1301_v51 = vpack.c.bf16 %v1299_v22, %v1297_v20  ;;  %v1300_v55 = vpack.c.bf16 %v1298_v10, %v1296_v17  ;;  %v1320_v34 = vmul.f32 %v5862_v4, %v1314_v24  ;;  %v1321_v61 = vmul.f32 %v5863_v42, %v1312_v35  ;;  %v5870_v42 = vld [vmem:[%s12780_s3 + $0x1c0] sm:$0xff]  ;;  %v5871_v24 = vld [vmem:[%s12780_s3 + $0x1c8] sm:$0xff] }
 0x2cb   : > { %v1313_v28 = vsel %vm518_vm3, %v7666_v48, %v1311_v45  ;;  %v1315_v46 = vsel %vm518_vm3, %v1311_v45, %v7666_v48  ;;  %v5872_v45 = vld [vmem:[%s12780_s3 + $0x1d0] sm:$0xff] }
 0x2cc   : > { %v1322_v31 = vmul.f32 %v5864_v43, %v1315_v46  ;;  %v1323_v58 = vmul.f32 %v5865_v44, %v1313_v28  ;;  %v1333_v19 = vpop.permute.xlu1 %1332  ;;  %1487 = vmatprep.subr.bf16.mxu1 %v1301_v51 }
 0x2cd   : > { %v1336_v50 = vsel %vm544_vm4, %v7668_v13, %v1333_v19  ;;  %v1338_v48 = vsel %vm544_vm4, %v1333_v19, %v7668_v13  ;;  %1488 = vmatpush1.bf16.msra.mxu1 %v1300_v55  ;;  %v5877_v19 = vld [vmem:[%s12780_s3 + $0x1f8] sm:$0xff] }
 0x2ce   : > { %v1335_v57 = vpop.permute.xlu0 %1334  ;;  %v1325_v18 = vpack.c.bf16 %v1323_v58, %v1321_v61  ;;  %v1324_v47 = vpack.c.bf16 %v1322_v31, %v1320_v34  ;;  %v1344_v60 = vmul.f32 %v5866_v33, %v1338_v48  ;;  %v1345_v7 = vmul.f32 %v5867_v52, %v1336_v50  ;;  %v5874_v31 = vld [vmem:[%s12780_s3 + $0x1e0] sm:$0xff]  ;;  %v5875_v33 = vld [vmem:[%s12780_s3 + $0x1e8] sm:$0xff] }
 0x2cf   : > { %v1337_v53 = vsel %vm544_vm4, %v7674_v16, %v1335_v57  ;;  %v1339_v13 = vsel %vm544_vm4, %v1335_v57, %v7674_v16  ;;  %v1353_v16 = vpack.c.bf16 %v7594_v56, %v7590_v49  ;;  %v5873_v49 = vld [vmem:[%s12780_s3 + $0x1d8] sm:$0xff] }
 0x2d0   : > { %v1346_v17 = vmul.f32 %v5868_v54, %v1339_v13  ;;  %v1347_v20 = vmul.f32 %v5869_v59, %v1337_v53  ;;  %v7826_v10 = vpop.permute.xlu1 %1211  ;;  %1489 = vmatprep.subr.bf16.mxu1 %v1325_v18  ;;  %v5878_v53 = vld [vmem:[%s12780_s3 + $0x200] sm:$0xff] }
 0x2d1   : > { %1490 = vmatpush1.bf16.msra.mxu1 %v1324_v47 }
 0x2d2   : > { %v7828_v22 = vpop.permute.xlu0 %1213  ;;  %v1349_v4 = vpack.c.bf16 %v1347_v20, %v1345_v7  ;;  %v1348_v29 = vpack.c.bf16 %v1346_v17, %v1344_v60  ;;  %v5879_v60 = vld [vmem:[%s12780_s3 + $0x208] sm:$0xff]  ;;  %v5880_v17 = vld [vmem:[%s12780_s3 + $0x210] sm:$0xff]  ;;  %v5881_v20 = vld [vmem:[%s12780_s3 + $0x218] sm:$0xff] }
 0x2d4   : > { %v1361_v35 = vpop.permute.xlu1 %1360  ;;  %1491 = vmatprep.subr.bf16.mxu1 %v1349_v4 }
 0x2d5   : > { %v1364_v43 = vsel %vm574_vm5, %v7676_v8, %v1361_v35  ;;  %v1366_v44 = vsel %vm574_vm5, %v1361_v35, %v7676_v8  ;;  %1492 = vmatpush1.bf16.msra.mxu1 %v1348_v29  ;;  %v1352_v8 = vpack.c.bf16 %v7526_v32, %v7524_v30  ;;  %v5876_v32 = vld [vmem:[%s12780_s3 + $0x1f0] sm:$0xff] }
 0x2d6   : > { %v1363_v56 = vpop.permute.xlu0 %1362  ;;  %1493 = vmatprep.subr.bf16.mxu1 %v1353_v16  ;;  %v1372_v28 = vmul.f32 %v5870_v42, %v1364_v43  ;;  %v1373_v46 = vmul.f32 %v5871_v24, %v1366_v44 }
 0x2d7   : > { %v1365_v51 = vsel %vm574_vm5, %v7682_v9, %v1363_v56  ;;  %v1367_v55 = vsel %vm574_vm5, %v1363_v56, %v7682_v9  ;;  %v5885_v56 = vld [vmem:[%s12780_s3 + $0x238] sm:$0xff] }
 0x2d8   : > { %v1374_v34 = vmul.f32 %v5872_v45, %v1365_v51  ;;  %v1375_v61 = vmul.f32 %v5873_v49, %v1367_v55  ;;  %v1385_v58 = vpop.permute.xlu1 %1384  ;;  %v5884_v49 = vld [vmem:[%s12780_s3 + $0x230] sm:$0xff]  ;;  %v5882_v51 = vld [vmem:[%s12780_s3 + $0x220] sm:$0xff] }
 0x2d9   : > { %v1388_v9 = vsel %vm600_vm6, %v7687_v21, %v1385_v58  ;;  %v1390_v30 = vsel %vm600_vm6, %v1385_v58, %v7687_v21  ;;  %1494 = vmatpush1.bf16.msra.mxu1 %v1352_v8 }
 0x2da   : > { %v1387_v52 = vpop.permute.xlu0 %1386  ;;  %v1377_v50 = vpack.c.bf16 %v1375_v61, %v1373_v46  ;;  %v1376_v48 = vpack.c.bf16 %v1374_v34, %v1372_v28  ;;  %v1396_v59 = vmul.f32 %v5874_v31, %v1388_v9  ;;  %v1397_v57 = vmul.f32 %v5875_v33, %v1390_v30 }
 0x2db   : > { %v1389_v54 = vsel %vm600_vm6, %v7694_v11, %v1387_v52  ;;  %v1391_v21 = vsel %vm600_vm6, %v1387_v52, %v7694_v11 }
 0x2dc   : > { %v1398_v18 = vmul.f32 %v5876_v32, %v1389_v54  ;;  %v1399_v47 = vmul.f32 %v5877_v19, %v1391_v21  ;;  %v1409_v13 = vpop.permute.xlu1 %1408  ;;  %1495 = vmatprep.subr.bf16.mxu1 %v1377_v50  ;;  %v1031_v50 = vld [vmem:[%s12780_s3] sm:$0xff] }
 0x2dd   : > { %v1412_v7 = vsel %vm626_vm7, %v7696_v15, %v1409_v13  ;;  %v1414_v11 = vsel %vm626_vm7, %v1409_v13, %v7696_v15  ;;  %1496 = vmatpush1.bf16.msra.mxu1 %v1376_v48 }
 0x2de   : > { %v1411_v4 = vpop.permute.xlu0 %1410  ;;  %v1401_v29 = vpack.c.bf16 %v1399_v47, %v1397_v57  ;;  %v1400_v42 = vpack.c.bf16 %v1398_v18, %v1396_v59  ;;  %v1420_v16 = vmul.f32 %v5878_v53, %v1412_v7  ;;  %v1421_v24 = vmul.f32 %v5879_v60, %v1414_v11  ;;  %v1032_v57 = vld [vmem:[%s12780_s3 + $0x8] sm:$0xff] }
 0x2df   : > { %v1413_v35 = vsel %vm626_vm7, %v7698_v3, %v1411_v4  ;;  %v1415_v15 = vsel %vm626_vm7, %v1411_v4, %v7698_v3  ;;  %v5883_v3 = vld [vmem:[%s12780_s3 + $0x228] sm:$0xff]  ;;  %v5820_v4 = vld [vmem:[%s12780_s3 + $0x20] sm:$0xff] }
 0x2e0   : > { %v1422_v43 = vmul.f32 %v5880_v17, %v1413_v35  ;;  %v1423_v44 = vmul.f32 %v5881_v20, %v1415_v15  ;;  %v1433_v45 = vpop.permute.xlu1 %1432  ;;  %1497 = vmatprep.subr.bf16.mxu1 %v1401_v29  ;;  %v6610_v60 = vld [vmem:[%s12778_s1 + $0x40] ss:$8 sps:$4 sm:$0xff]   ;;  %v6613_v17 = vld [vmem:[%s12778_s1 + $0x34] ss:$8 sps:$4 sm:$0xff]  }
 0x2e1   : > { %1498 = vmatpush1.bf16.msra.mxu1 %v1400_v42  ;;  %v1436_v55 = vsel %vm652_vm8, %v7700_v23, %v1433_v45  ;;  %v1438_v8 = vsel %vm652_vm8, %v1433_v45, %v7700_v23  ;;  %v1033_v23 = vld [vmem:[%s12780_s3 + $0x10] sm:$0xff] }
 0x2e2   : > { %v1435_v28 = vpop.permute.xlu0 %1434  ;;  %v1425_v46 = vpack.c.bf16 %v1423_v44, %v1421_v24  ;;  %v1424_v34 = vpack.c.bf16 %v1422_v43, %v1420_v16  ;;  %v1444_v30 = vmul.f32 %v5882_v51, %v1436_v55  ;;  %v1445_v32 = vmul.f32 %v5883_v3, %v1438_v8  ;;  %v5821_v16 = vld [vmem:[%s12780_s3 + $0x28] sm:$0xff]  ;;  %v5827_v51 = vld [vmem:[%s12780_s3 + $0x58] sm:$0xff]  ;;  %v5824_v55 = vld [vmem:[%s12780_s3 + $0x40] sm:$0xff] }
 0x2e3   : > { %v1437_v61 = vsel %vm652_vm8, %v7702_v37, %v1435_v28  ;;  %v1439_v31 = vsel %vm652_vm8, %v1435_v28, %v7702_v37  ;;  %v1034_v37 = vld [vmem:[%s12780_s3 + $0x18] sm:$0xff] }
 0x2e4   : > { %v1446_v58 = vmul.f32 %v5884_v49, %v1437_v61  ;;  %v1447_v33 = vmul.f32 %v5885_v56, %v1439_v31  ;;  %v1024_v9 = vpop.permute.xlu1 %1023  ;;  %1499 = vmatprep.subr.bf16.mxu1 %v1425_v46  ;;  %v5825_v61 = vld [vmem:[%s12780_s3 + $0x48] sm:$0xff] }
 0x2e5   : > { %1500 = vmatpush1.bf16.msra.mxu1 %v1424_v34  ;;  %v7936_v19 = vsel %vm213_vm9, %v1024_v9, %v7704_v25  ;;  %v7960_v18 = vsel %vm213_vm9, %v7704_v25, %v1024_v9  ;;  %v5823_v25 = vld [vmem:[%s12780_s3 + $0x38] sm:$0xff] }
 0x2e6   : > { %v1026_v52 = vpop.permute.xlu0 %1025  ;;  %v1449_v21 = vpack.c.bf16 %v1447_v33, %v1445_v32  ;;  %v1448_v59 = vpack.c.bf16 %v1446_v58, %v1444_v30  ;;  %v1035_v7 = vmul.f32 %v1031_v50, %v7936_v19  ;;  %v1036_v20 = vmul.f32 %v1032_v57, %v7960_v18 }
 0x2e7   : > { %v7947_v48 = vsel %vm213_vm9, %v7706_v0, %v1026_v52  ;;  %v7952_v54 = vsel %vm213_vm9, %v1026_v52, %v7706_v0  ;;  %v5822_v0 = vld [vmem:[%s12780_s3 + $0x30] sm:$0xff]  ;;  %v5828_v52 = vld [vmem:[%s12780_s3 + $0x60] sm:$0xff] }
 0x2e8   : > { %v1037_v47 = vmul.f32 %v1033_v23, %v7952_v54  ;;  %v1048_v53 = vpop.permute.xlu1 %1047  ;;  %v1038_v13 = vmul.f32 %v1034_v37, %v7947_v48  ;;  %1501 = vmatprep.subr.bf16.mxu1 %v1449_v21  ;;  %v5831_v23 = vld [vmem:[%s12780_s3 + $0x78] sm:$0xff] }
 0x2e9   : > { %1502 = vmatpush1.bf16.msra.mxu1 %v1448_v59  ;;  %v7984_v29 = vsel %vm238_vm10, %v1048_v53, %v7708_v2  ;;  %v8002_v24 = vsel %vm238_vm10, %v7708_v2, %v1048_v53 }
 0x2ea   : > { %v1050_v11 = vpop.permute.xlu0 %1049  ;;  %v1039_v15 = vpack.c.bf16 %v1037_v47, %v1035_v7  ;;  %v1040_v49 = vpack.c.bf16 %v1038_v13, %v1036_v20  ;;  %v1059_v56 = vmul.f32 %v5820_v4, %v7984_v29  ;;  %v1060_v2 = vmul.f32 %v5821_v16, %v8002_v24  ;;  %v5829_v47 = vld [vmem:[%s12780_s3 + $0x68] sm:$0xff]  ;;  %v5832_v20 = vld [vmem:[%s12780_s3 + $0x80] sm:$0xff] }
 0x2eb   : > { %v7989_v42 = vsel %vm238_vm10, %v7710_v26, %v1050_v11  ;;  %v7994_v35 = vsel %vm238_vm10, %v1050_v11, %v7710_v26  ;;  %v5826_v26 = vld [vmem:[%s12780_s3 + $0x50] sm:$0xff]  ;;  %v5835_v11 = vld [vmem:[%s12780_s3 + $0x98] sm:$0xff] }
 0x2ec   : > { %v1061_v43 = vmul.f32 %v5822_v0, %v7994_v35  ;;  %v1072_v44 = vpop.permute.xlu1 %1071  ;;  %v1062_v45 = vmul.f32 %v5823_v25, %v7989_v42  ;;  %1518 = vmatmul.mubr.bf16.vlgmr.msra.gmra.mrb[0].mxu1 %v6610_v60  ;;  %1540 = vmatprep.subr.bf16.mxu1 %v1040_v49 }
 0x2ed   : > { %5893 = vmatprep.mubr.msk.bf16.mxu1 %vm700_vm0, %v6613_v17  ;;  %v8021_v8 = vsel %vm12800_vm11, %v1072_v44, %v7712_v27  ;;  %v8039_v31 = vsel %vm12800_vm11, %v7712_v27, %v1072_v44  ;;  %1541 = vmatpush1.bf16.msra.mxu1 %v1039_v15  ;;  %v5833_v44 = vld [vmem:[%s12780_s3 + $0x88] sm:$0xff] }
 0x2ee   : > { %v1074_v3 = vpop.permute.xlu0 %1073  ;;  %v1063_v34 = vpack.c.bf16 %v1061_v43, %v1059_v56  ;;  %v1064_v30 = vpack.c.bf16 %v1062_v45, %v1060_v2  ;;  %v1083_v32 = vmul.f32 %v5824_v55, %v8021_v8  ;;  %v1084_v27 = vmul.f32 %v5825_v61, %v8039_v31  ;;  %v5839_v2 = vld [vmem:[%s12780_s3 + $0xb8] sm:$0xff] }
 0x2ef   : > { %v8026_v28 = vsel %vm12800_vm11, %v7714_v1, %v1074_v3  ;;  %v8031_v46 = vsel %vm12800_vm11, %v1074_v3, %v7714_v1  ;;  %v5830_v1 = vld [vmem:[%s12780_s3 + $0x70] sm:$0xff] }
 0x2f0   : > { %v1085_v58 = vmul.f32 %v5826_v26, %v8031_v46  ;;  %v1096_v33 = vpop.permute.xlu1 %1095  ;;  %v1086_v9 = vmul.f32 %v5827_v51, %v8026_v28  ;;  %1542 = vmatprep.subr.bf16.mxu1 %v1064_v30  ;;  %v5837_v30 = vld [vmem:[%s12780_s3 + $0xa8] sm:$0xff] }
 0x2f1   : > { %v8057_v50 = vsel %vm12799_vm12, %v1096_v33, %v7716_v36  ;;  %v8075_v53 = vsel %vm12799_vm12, %v7716_v36, %v1096_v33  ;;  %1543 = vmatpush1.bf16.msra.mxu1 %v1063_v34  ;;  %v5836_v34 = vld [vmem:[%s12780_s3 + $0xa0] sm:$0xff] }
 0x2f2   : > { %v1098_v37 = vpop.permute.xlu0 %1097  ;;  %v1087_v57 = vpack.c.bf16 %v1085_v58, %v1083_v32  ;;  %v1088_v7 = vpack.c.bf16 %v1086_v9, %v1084_v27  ;;  %v1107_v25 = vmul.f32 %v5828_v52, %v8057_v50  ;;  %v1108_v36 = vmul.f32 %v5829_v47, %v8075_v53 }
 0x2f3   : > { %v8062_v21 = vsel %vm12799_vm12, %v7718_v63, %v1098_v37  ;;  %v8067_v59 = vsel %vm12799_vm12, %v1098_v37, %v7718_v63  ;;  %v5834_v63 = vld [vmem:[%s12780_s3 + $0x90] sm:$0xff] }
 0x2f4   : > { %v1109_v13 = vmul.f32 %v5830_v1, %v8067_v59  ;;  %v1120_v0 = vpop.permute.xlu1 %1119  ;;  %v1110_v60 = vmul.f32 %v5831_v23, %v8062_v21  ;;  %1544 = vmatprep.subr.bf16.mxu1 %v1088_v7 }
 0x2f5   : > { %v8093_v4 = vsel %vm12798_vm13, %v1120_v0, %v7720_v38  ;;  %v8111_v45 = vsel %vm12798_vm13, %v7720_v38, %v1120_v0  ;;  %1545 = vmatpush1.bf16.msra.mxu1 %v1087_v57  ;;  %v5843_v57 = vld [vmem:[%s12780_s3 + $0xd8] sm:$0xff] }
 0x2f6   : > { %v1122_v17 = vpop.permute.xlu0 %1121  ;;  %v1111_v43 = vpack.c.bf16 %v1109_v13, %v1107_v25  ;;  %v1112_v51 = vpack.c.bf16 %v1110_v60, %v1108_v36  ;;  %v1131_v3 = vmul.f32 %v5832_v20, %v8093_v4  ;;  %v1132_v38 = vmul.f32 %v5833_v44, %v8111_v45  ;;  %v5840_v13 = vld [vmem:[%s12780_s3 + $0xc0] sm:$0xff]  ;;  %v5841_v25 = vld [vmem:[%s12780_s3 + $0xc8] sm:$0xff] }
 0x2f7   : > { %v8098_v15 = vsel %vm12798_vm13, %v7722_v5, %v1122_v17  ;;  %v8103_v16 = vsel %vm12798_vm13, %v1122_v17, %v7722_v5  ;;  %v5838_v5 = vld [vmem:[%s12780_s3 + $0xb0] sm:$0xff]  ;;  %vm12822_vm13 = vcmp.lt.s32.totalorder %v6859_v6, 63 }
 0x2f8   : > { %v1133_v49 = vmul.f32 %v5834_v63, %v8103_v16  ;;  %v1144_v26 = vpop.permute.xlu1 %1143  ;;  %v1134_v56 = vmul.f32 %v5835_v11, %v8098_v15  ;;  %1546 = vmatprep.subr.bf16.mxu1 %v1112_v51  ;;  %vm12823_vm12 = vmmov %vm12822_vm13 }
 0x2f9   : > { %v8129_v61 = vsel %vm12822_vm13, %v1144_v26, %v7724_v39  ;;  %vm12824_vm11 = vmmov %vm12823_vm12  ;;  %1547 = vmatpush1.bf16.msra.mxu1 %v1111_v43 }
 0x2fa   : > { %v1146_v55 = vpop.permute.xlu0 %1145  ;;  %v1135_v9 = vpack.c.bf16 %v1133_v49, %v1131_v3  ;;  %vm12825_vm13 = vmmov %vm12824_vm11  ;;  %v1136_v27 = vpack.c.bf16 %v1134_v56, %v1132_v38  ;;  %v1155_v52 = vmul.f32 %v5836_v34, %v8129_v61  ;;  %v5847_v49 = vld [vmem:[%s12780_s3 + $0xf8] sm:$0xff]  ;;  %v5844_v56 = vld [vmem:[%s12780_s3 + $0xe0] sm:$0xff] }
 0x2fb   : > { %v8134_v58 = vsel %vm12823_vm12, %v7726_v40, %v1146_v55  ;;  %v8139_v33 = vsel %vm12824_vm11, %v1146_v55, %v7726_v40  ;;  %v8147_v1 = vsel %vm12825_vm13, %v7724_v39, %v1144_v26  ;;  %v5842_v40 = vld [vmem:[%s12780_s3 + $0xd0] sm:$0xff]  ;;  %vm12826_vm11 = vcmp.lt.s32.totalorder %v6859_v6, 57  ;;  %v5845_v55 = vld [vmem:[%s12780_s3 + $0xe8] sm:$0xff] }
 0x2fc   : > { %v1157_v32 = vmul.f32 %v5838_v5, %v8139_v33  ;;  %v1168_v23 = vpop.permute.xlu1 %1167  ;;  %v1158_v37 = vmul.f32 %v5839_v2, %v8134_v58  ;;  %v1156_v39 = vmul.f32 %v5837_v30, %v8147_v1  ;;  %1548 = vmatprep.subr.bf16.mxu1 %v1136_v27  ;;  %vm12827_vm12 = vmmov %vm12826_vm11 }
 0x2fd   : > { %v8165_v0 = vsel %vm12826_vm11, %v1168_v23, %v7728_v12  ;;  %vm12828_vm13 = vmmov %vm12826_vm11  ;;  %v8183_v11 = vsel %vm12826_vm11, %v7728_v12, %v1168_v23  ;;  %1549 = vmatpush1.bf16.msra.mxu1 %v1135_v9 }
 0x2fe   : > { %v1170_v47 = vpop.permute.xlu0 %1169  ;;  %v1159_v63 = vpack.c.bf16 %v1157_v32, %v1155_v52  ;;  %v1160_v43 = vpack.c.bf16 %v1158_v37, %v1156_v39  ;;  %v1179_v44 = vmul.f32 %v5840_v13, %v8165_v0  ;;  %v1180_v12 = vmul.f32 %v5841_v25, %v8183_v11  ;;  %v5851_v37 = vld [vmem:[%s12780_s3 + $0x118] sm:$0xff] }
 0x2ff   : > { %v8170_v60 = vsel %vm12827_vm12, %v7730_v14, %v1170_v47  ;;  %v8175_v7 = vsel %vm12828_vm13, %v1170_v47, %v7730_v14  ;;  %v5846_v14 = vld [vmem:[%s12780_s3 + $0xf0] sm:$0xff]  ;;  %vm12831_vm12 = vcmp.lt.s32.totalorder %v6859_v6, 71 }
 0x300   : > { %v1181_v17 = vmul.f32 %v5842_v40, %v8175_v7  ;;  %v1192_v36 = vpop.permute.xlu1 %1191  ;;  %v1182_v20 = vmul.f32 %v5843_v57, %v8170_v60  ;;  %1550 = vmatprep.subr.bf16.mxu1 %v1160_v43  ;;  %v5848_v57 = vld [vmem:[%s12780_s3 + $0x100] sm:$0xff]  ;;  %v5895_v43 = vld [vmem:[%s12780_s3 + $0x248] sm:$0xff]  ;;  %vm12832_vm13 = vmmov %vm12831_vm12 }
 0x301   : > { %v8201_v51 = vsel %vm394_vm14, %v1192_v36, %v7732_v41  ;;  %v8219_v38 = vsel %vm394_vm14, %v7732_v41, %v1192_v36  ;;  %1551 = vmatpush1.bf16.msra.mxu1 %v1159_v63  ;;  %v5850_v41 = vld [vmem:[%s12780_s3 + $0x110] sm:$0xff]  ;;  %v5897_v63 = vld [vmem:[%s12780_s3 + $0x258] sm:$0xff]  ;;  %vm12833_vm11 = vmmov %vm12831_vm12 }
 0x302   : > { %v1194_v26 = vpop.permute.xlu0 %1193  ;;  %v1183_v2 = vpack.c.bf16 %v1181_v17, %v1179_v44  ;;  %v1184_v23 = vpack.c.bf16 %v1182_v20, %v1180_v12  ;;  %v1203_v27 = vmul.f32 %v5844_v56, %v8201_v51  ;;  %v1204_v52 = vmul.f32 %v5845_v55, %v8219_v38  ;;  %v5896_v44 = vld [vmem:[%s12780_s3 + $0x250] sm:$0xff]  ;;  %v5894_v56 = vld [vmem:[%s12780_s3 + $0x240] sm:$0xff] }
 0x303   : > { %v8206_v5 = vsel %vm394_vm14, %v7734_v62, %v1194_v26  ;;  %v8211_v3 = vsel %vm394_vm14, %v1194_v26, %v7734_v62  ;;  %v5849_v62 = vld [vmem:[%s12780_s3 + $0x108] sm:$0xff]  ;;  %v5901_v26 = vld [vmem:[%s12780_s3 + $0x278] sm:$0xff]  ;;  %v1589_v55 = vmul.f32 %v5896_v44, %v7947_v48 }
 0x304   : > { %v1205_v34 = vmul.f32 %v5846_v14, %v8211_v3  ;;  %v1216_v9 = vpop.permute.xlu1 %1215  ;;  %v1206_v30 = vmul.f32 %v5847_v49, %v8206_v5  ;;  %1552 = vmatprep.subr.bf16.mxu1 %v1184_v23  ;;  %v1590_v49 = vmul.f32 %v5897_v63, %v7952_v54  ;;  %v5899_v54 = vld [vmem:[%s12780_s3 + $0x268] sm:$0xff]  ;;  %v5905_v48 = vld [vmem:[%s12780_s3 + $0x298] sm:$0xff] }
 0x305   : > { %v8229_v32 = vsel %vm420_vm15, %v7826_v10, %v1216_v9  ;;  %v8245_v47 = vsel %vm420_vm15, %v1216_v9, %v7826_v10  ;;  %1553 = vmatpush1.bf16.msra.mxu1 %v1183_v2  ;;  %v1588_v2 = vmul.f32 %v5895_v43, %v7936_v19  ;;  %v1602_v9 = vmul.f32 %v5901_v26, %v7994_v35  ;;  %v6616_v23 = vld [vmem:[%s12778_s1 + $0x54] ss:$8 sps:$4 sm:$0xff]   ;;  %v5898_v35 = vld [vmem:[%s12780_s3 + $0x260] sm:$0xff] }
 0x306   : > { %v1218_v40 = vpop.permute.xlu0 %1217  ;;  %v1207_v25 = vpack.c.bf16 %v1205_v34, %v1203_v27  ;;  %v1228_v17 = vmul.f32 %v5849_v62, %v8229_v32  ;;  %v1208_v20 = vpack.c.bf16 %v1206_v30, %v1204_v52  ;;  %v5900_v34 = vld [vmem:[%s12780_s3 + $0x270] sm:$0xff]  ;;  %v1587_v19 = vmul.f32 %v5894_v56, %v7960_v18  ;;  %v5903_v18 = vld [vmem:[%s12780_s3 + $0x288] sm:$0xff] }
 0x307   : > { %v8250_v39 = vsel %vm420_vm15, %v7828_v22, %v1218_v40  ;;  %v8255_v13 = vsel %vm420_vm15, %v1218_v40, %v7828_v22  ;;  %v1227_v22 = vmul.f32 %v5848_v57, %v8245_v47  ;;  %v1592_v30 = vpack.c.bf16 %v1590_v49, %v1588_v2  ;;  %v6615_v62 = vld [vmem:[%s12778_s1 + $0x30] ss:$8 sps:$4 sm:$0xff]  }
 0x308   : > { %v1229_v10 = vmul.f32 %v5850_v41, %v8255_v13  ;;  %v1230_v36 = vmul.f32 %v5851_v37, %v8250_v39  ;;  %1554 = vmatprep.subr.bf16.mxu1 %v1208_v20  ;;  %v1600_v41 = vmul.f32 %v5899_v54, %v7984_v29  ;;  %v1591_v37 = vpack.c.bf16 %v1589_v55, %v1587_v19  ;;  %v5904_v40 = vld [vmem:[%s12780_s3 + $0x290] sm:$0xff]  ;;  %v5909_v29 = vld [vmem:[%s12780_s3 + $0x2b8] sm:$0xff] }
 0x309   : > { %1555 = vmatpush1.bf16.msra.mxu1 %v1207_v25  ;;  %v1601_v27 = vmul.f32 %v5900_v34, %v7989_v42  ;;  %v1614_v52 = vmul.f32 %v5905_v48, %v8031_v46  ;;  %v1599_v63 = vmul.f32 %v5898_v35, %v8002_v24  ;;  %v5902_v42 = vld [vmem:[%s12780_s3 + $0x280] sm:$0xff]  ;;  %v1612_v25 = vmul.f32 %v5903_v18, %v8021_v8  ;;  %v5907_v24 = vld [vmem:[%s12780_s3 + $0x2a8] sm:$0xff]  ;;  %v5913_v8 = vld [vmem:[%s12780_s3 + $0x2d8] sm:$0xff] }
 0x30a   : > { %v1232_v14 = vpack.c.bf16 %v1230_v36, %v1228_v17  ;;  %v1231_v12 = vpack.c.bf16 %v1229_v10, %v1227_v22  ;;  %v1604_v57 = vpack.c.bf16 %v1602_v9, %v1600_v41  ;;  %v1613_v46 = vmul.f32 %v5904_v40, %v8026_v28  ;;  %v5908_v10 = vld [vmem:[%s12780_s3 + $0x2b0] sm:$0xff]  ;;  %v5906_v28 = vld [vmem:[%s12780_s3 + $0x2a0] sm:$0xff] }
 0x30b   : > { %v1603_v17 = vpack.c.bf16 %v1601_v27, %v1599_v63  ;;  %v1626_v36 = vmul.f32 %v5909_v29, %v8067_v59  ;;  %v1616_v20 = vpack.c.bf16 %v1614_v52, %v1612_v25  ;;  %v1611_v43 = vmul.f32 %v5902_v42, %v8039_v31  ;;  %v5911_v59 = vld [vmem:[%s12780_s3 + $0x2c8] sm:$0xff]  ;;  %v5912_v31 = vld [vmem:[%s12780_s3 + $0x2d0] sm:$0xff] }
 0x30c   : > { %1556 = vmatprep.subr.bf16.mxu1 %v1232_v14  ;;  %v1624_v22 = vmul.f32 %v5907_v24, %v8057_v50  ;;  %v1625_v44 = vmul.f32 %v5908_v10, %v8062_v21  ;;  %v1638_v49 = vmul.f32 %v5913_v8, %v8103_v16  ;;  %v5917_v50 = vld [vmem:[%s12780_s3 + $0x2f8] sm:$0xff]  ;;  %v5910_v21 = vld [vmem:[%s12780_s3 + $0x2c0] sm:$0xff]  ;;  %v1636_v56 = vmul.f32 %v5911_v59, %v8093_v4  ;;  %v5915_v16 = vld [vmem:[%s12780_s3 + $0x2e8] sm:$0xff] }
 0x30d   : > { %1557 = vmatpush1.bf16.msra.mxu1 %v1231_v12  ;;  %v1615_v14 = vpack.c.bf16 %v1613_v46, %v1611_v43  ;;  %v1623_v12 = vmul.f32 %v5906_v28, %v8075_v53  ;;  %v1637_v55 = vmul.f32 %v5912_v31, %v8098_v15  ;;  %v5916_v53 = vld [vmem:[%s12780_s3 + $0x2f0] sm:$0xff]  ;;  %v1650_v54 = vmul.f32 %v5917_v50, %v8139_v33  ;;  %v5921_v4 = vld [vmem:[%s12780_s3 + $0x318] sm:$0xff]  ;;  %v5914_v15 = vld [vmem:[%s12780_s3 + $0x2e0] sm:$0xff] }
 0x30e   : > { %1724 = vmatprep.subr.bf16.mxu1 %v1592_v30  ;;  %v1628_v26 = vpack.c.bf16 %v1626_v36, %v1624_v22  ;;  %v1640_v34 = vpack.c.bf16 %v1638_v49, %v1636_v56  ;;  %v1635_v9 = vmul.f32 %v5910_v21, %v8111_v45  ;;  %v1648_v30 = vmul.f32 %v5915_v16, %v8129_v61  ;;  %v5919_v33 = vld [vmem:[%s12780_s3 + $0x308] sm:$0xff]  ;;  %v5920_v45 = vld [vmem:[%s12780_s3 + $0x310] sm:$0xff]  ;;  %v5925_v61 = vld [vmem:[%s12780_s3 + $0x338] sm:$0xff] }
 0x30f   : > { %v1627_v2 = vpack.c.bf16 %v1625_v44, %v1623_v12  ;;  %v1649_v19 = vmul.f32 %v5916_v53, %v8134_v58  ;;  %v1662_v48 = vmul.f32 %v5921_v4, %v8175_v7  ;;  %v1647_v35 = vmul.f32 %v5914_v15, %v8147_v1  ;;  %v5918_v58 = vld [vmem:[%s12780_s3 + $0x300] sm:$0xff]  ;;  %v5923_v7 = vld [vmem:[%s12780_s3 + $0x328] sm:$0xff]  ;;  %v5924_v1 = vld [vmem:[%s12780_s3 + $0x330] sm:$0xff] }
 0x310   : > { %1573 = vmatmul.mubr.bf16.vlgmr.msra.gmra.mrb[0].mxu1 %v6615_v62  ;;  %v1639_v62 = vpack.c.bf16 %v1637_v55, %v1635_v9  ;;  %v1660_v41 = vmul.f32 %v5919_v33, %v8165_v0  ;;  %v1661_v27 = vmul.f32 %v5920_v45, %v8170_v60  ;;  %v1674_v18 = vmul.f32 %v5925_v61, %v8211_v3  ;;  %v5929_v0 = vld [vmem:[%s12780_s3 + $0x358] sm:$0xff]  ;;  %v5922_v60 = vld [vmem:[%s12780_s3 + $0x320] sm:$0xff]  ;;  %v5927_v3 = vld [vmem:[%s12780_s3 + $0x348] sm:$0xff] }
 0x311   : > { %1725 = vmatpush1.bf16.msra.mxu1 %v1591_v37  ;;  %5934 = vmatprep.mubr.msk.bf16.mxu1 %vm700_vm0, %v6616_v23  ;;  %v1652_v23 = vpack.c.bf16 %v1650_v54, %v1648_v30  ;;  %v1651_v37 = vpack.c.bf16 %v1649_v19, %v1647_v35  ;;  %v1659_v52 = vmul.f32 %v5918_v58, %v8183_v11  ;;  %v5928_v11 = vld [vmem:[%s12780_s3 + $0x350] sm:$0xff]  ;;  %v6052_v4 = vld [vmem:[%s12779_s2 + $0x20] sm:$0xff]  ;;  %v6053_v30 = vld [vmem:[%s12779_s2 + $0x28] sm:$0xff] }
 0x312   : > { %1726 = vmatprep.subr.bf16.mxu1 %v1604_v57  ;;  %v1664_v40 = vpack.c.bf16 %v1662_v48, %v1660_v41  ;;  %v1672_v57 = vmul.f32 %v5923_v7, %v8201_v51  ;;  %v1673_v29 = vmul.f32 %v5924_v1, %v8206_v5  ;;  %v1686_v42 = vmul.f32 %v5929_v0, %v8255_v13  ;;  %v5926_v51 = vld [vmem:[%s12780_s3 + $0x340] sm:$0xff]  ;;  %v6619_v12 = vld [vmem:[%s12778_s1 + $0x74] ss:$8 sps:$4 sm:$0xff]  }
 0x313   : > { %v1663_v63 = vpack.c.bf16 %v1661_v27, %v1659_v52  ;;  %v1684_v5 = vmul.f32 %v5927_v3, %v8245_v47  ;;  %v1685_v24 = vmul.f32 %v5928_v11, %v8250_v39  ;;  %v1683_v36 = vmul.f32 %v5926_v51, %v8229_v32  ;;  %6007 = vmatprep.mubr.msk.bf16.mxu0 %vm700_vm0, %v6619_v12  ;;  %v5972_v11 = vld [vmem:[%s12780_s3 + $0x128] sm:$0xff]  ;;  %v5974_v51 = vld [vmem:[%s12780_s3 + $0x138] sm:$0xff] }
 0x314   : > { %v1676_v25 = vpack.c.bf16 %v1674_v18, %v1672_v57 }
 0x315   : > { %1727 = vmatpush1.bf16.msra.mxu1 %v1603_v17  ;;  %v1671_v17 = vmul.f32 %v5922_v60, %v8219_v38  ;;  %v1688_v10 = vpack.c.bf16 %v1686_v42, %v1684_v5  ;;  %v1687_v13 = vpack.c.bf16 %v1685_v24, %v1683_v36  ;;  %v6618_v38 = vld [vmem:[%s12778_s1 + $0x50] ss:$8 sps:$4 sm:$0xff]  }
 0x316   : > { %1728 = vmatprep.subr.bf16.mxu1 %v1616_v20  ;;  %v1777_v20 = vpop.permute.xlu1 %1776 }
 0x317   : > { %v1675_v46 = vpack.c.bf16 %v1673_v29, %v1671_v17  ;;  %v1782_v28 = vpop.permute.xlu0 %1781  ;;  %v5971_v29 = vld [vmem:[%s12780_s3 + $0x120] sm:$0xff]  ;;  %v5973_v17 = vld [vmem:[%s12780_s3 + $0x130] sm:$0xff] }
 0x319   : > { %1729 = vmatpush1.bf16.msra.mxu1 %v1615_v14 }
 0x31a   : > { %1730 = vmatprep.subr.bf16.mxu1 %v1628_v26 }
 0x31d   : > { %1731 = vmatpush1.bf16.msra.mxu1 %v1627_v2 }
 0x31e   : > { %1732 = vmatprep.subr.bf16.mxu1 %v1640_v34 }
 0x321   : > { %1733 = vmatpush1.bf16.msra.mxu1 %v1639_v62 }
 0x322   : > { %1734 = vmatprep.subr.bf16.mxu1 %v1652_v23 }
 0x325   : > { %1735 = vmatpush1.bf16.msra.mxu1 %v1651_v37 }
 0x326   : > { %1736 = vmatprep.subr.bf16.mxu1 %v1664_v40 }
 0x329   : > { %1737 = vmatpush1.bf16.msra.mxu1 %v1663_v63 }
 0x32a   : > { %1738 = vmatprep.subr.bf16.mxu1 %v1676_v25 }
 0x32d   : > { %1739 = vmatpush1.bf16.msra.mxu1 %v1675_v46 }
 0x32e   : > { %1740 = vmatprep.subr.bf16.mxu1 %v1688_v10 }
 0x331   : > { %1741 = vmatpush1.bf16.msra.mxu1 %v1687_v13 }
 0x334   : > { %1757 = vmatmul.mubr.bf16.vlgmr.msra.gmra.mrb[0].mxu1 %v6618_v38 }
 0x407   : > { %v1758_v43 = vpop.f32.mrb[0].mxu1 }
 0x408   : > { %v1784_v8 = vadd.f32 %v1777_v20, %v1758_v43  ;;  %v1760_v47 = vpop.f32.mrb[1].mxu1 }
 0x409   : > { %v1762_v22 = vpop.f32.mrb[2].mxu1  ;;  %v1785_v59 = vadd.f32 %v1777_v20, %v1760_v47  ;;  %v5975_v20 = vld [vmem:[%s12780_s3 + $0x140] sm:$0xff] }
 0x40a   : > { %v8415_v14 = vmax.f32 %v1784_v8, 0.0  ;;  %v1786_v39 = vadd.f32 %v1782_v28, %v1762_v22  ;;  %v1764_v44 = vpop.f32.mrb[3].mxu1  ;;  %v5976_v8 = vld [vmem:[%s12780_s3 + $0x148] sm:$0xff]  ;;  %v5977_v22 = vld [vmem:[%s12780_s3 + $0x150] sm:$0xff] }
 0x40b   : > { %v1787_v31 = vadd.f32 %v1782_v28, %v1764_v44  ;;  %v8481_v49 = vmax.f32 %v1785_v59, 0.0 }
 0x40c   : > { %v8417_v32 = vmax.f32 %v1786_v39, 0.0  ;;  %2029 = vrot.lane.b32.xlu1 %v8415_v14, %s6672_s21  ;;  %v5978_v39 = vld [vmem:[%s12780_s3 + $0x158] sm:$0xff] }
 0x40d   : > { %v8485_v26 = vmax.f32 %v1787_v31, 0.0 }
 0x40e   : > { %2031 = vrot.lane.b32.xlu0 %v8417_v32, %s6672_s21 }
 0x410   : > { %2053 = vrot.lane.b32.xlu1 %v8415_v14, %s6673_s22 }
 0x412   : > { %2055 = vrot.lane.b32.xlu0 %v8417_v32, %s6673_s22 }
 0x414   : > { %2077 = vrot.lane.b32.xlu1 %v8415_v14, %s12815_s23 }
 0x416   : > { %2079 = vrot.lane.b32.xlu0 %v8417_v32, %s12815_s23 }
 0x418   : > { %2101 = vrot.lane.b32.xlu1 %v8415_v14, %s12813_s24 }
 0x41a   : > { %2103 = vrot.lane.b32.xlu0 %v8417_v32, %s12813_s24 }
 0x41c   : > { %2129 = vrot.lane.b32.xlu1 %v8415_v14, %s12811_s25 }
 0x41e   : > { %2131 = vrot.lane.b32.xlu0 %v8417_v32, %s12811_s25 }
 0x420   : > { %2153 = vrot.lane.b32.xlu1 %v8415_v14, %s12809_s26 }
 0x422   : > { %2155 = vrot.lane.b32.xlu0 %v8417_v32, %s12809_s26 }
 0x424   : > { %2177 = vrot.lane.b32.xlu1 %v8415_v14, %s12807_s27 }
 0x426   : > { %2179 = vrot.lane.b32.xlu0 %v8417_v32, %s12807_s27 }
 0x428   : > { %2201 = vrot.lane.b32.xlu1 %v8415_v14, %s12805_s28 }
 0x42a   : > { %2203 = vrot.lane.b32.xlu0 %v8417_v32, %s12805_s28 }
 0x42c   : > { %1792 = vrot.lane.b32.xlu1 %v8415_v14, %s12803_s5 }
 0x42e   : > { %1794 = vrot.lane.b32.xlu0 %v8417_v32, %s12803_s5 }
 0x430   : > { %1816 = vrot.lane.b32.xlu1 %v8415_v14, %s12801_s6 }
 0x432   : > { %1818 = vrot.lane.b32.xlu0 %v8417_v32, %s12801_s6 }
 0x434   : > { %1840 = vrot.lane.b32.xlu1 %v8415_v14, %s12829_s19 }
 0x436   : > { %1842 = vrot.lane.b32.xlu0 %v8417_v32, %s12829_s19 }
 0x438   : > { %1864 = vrot.lane.b32.xlu1 %v8415_v14, %s12830_s29 }
 0x43a   : > { %1866 = vrot.lane.b32.xlu0 %v8417_v32, %s12830_s29 }
 0x43c   : > { %1888 = vrot.lane.b32.xlu1 %v8415_v14, %s12817_s12 }
 0x43e   : > { %1890 = vrot.lane.b32.xlu0 %v8417_v32, %s12817_s12 }
 0x440   : > { %1912 = vrot.lane.b32.xlu1 %v8415_v14, %s12818_s13 }
 0x442   : > { %1914 = vrot.lane.b32.xlu0 %v8417_v32, %s12818_s13 }
 0x444   : > { %1936 = vrot.lane.b32.xlu1 %v8415_v14, %s12819_s10 }
 0x446   : > { %1938 = vrot.lane.b32.xlu0 %v8417_v32, %s12819_s10 }
 0x448   : > { %1960 = vrot.lane.b32.xlu1 %v8415_v14, %s12820_s11 }
 0x44a   : > { %1962 = vrot.lane.b32.xlu0 %v8417_v32, %s12820_s11 }
 0x44c   : > { %2033 = vrot.lane.b32.xlu1 %v8481_v49, %s6672_s21 }
 0x44e   : > { %2035 = vrot.lane.b32.xlu0 %v8485_v26, %s6672_s21 }
 0x450   : > { %2057 = vrot.lane.b32.xlu1 %v8481_v49, %s6673_s22 }
 0x452   : > { %2059 = vrot.lane.b32.xlu0 %v8485_v26, %s6673_s22 }
 0x454   : > { %2081 = vrot.lane.b32.xlu1 %v8481_v49, %s12815_s23 }
 0x456   : > { %2083 = vrot.lane.b32.xlu0 %v8485_v26, %s12815_s23 }
 0x458   : > { %2105 = vrot.lane.b32.xlu1 %v8481_v49, %s12813_s24 }
 0x45a   : > { %2107 = vrot.lane.b32.xlu0 %v8485_v26, %s12813_s24 }
 0x45c   : > { %1984 = vrot.lane.b32.xlu1 %v8415_v14, %s12821_s14 }
 0x45e   : > { %1986 = vrot.lane.b32.xlu0 %v8417_v32, %s12821_s14 }
 0x460   : > { %2133 = vrot.lane.b32.xlu1 %v8481_v49, %s12811_s25 }
 0x462   : > { %2135 = vrot.lane.b32.xlu0 %v8485_v26, %s12811_s25 }
 0x464   : > { %2157 = vrot.lane.b32.xlu1 %v8481_v49, %s12809_s26 }
 0x466   : > { %2159 = vrot.lane.b32.xlu0 %v8485_v26, %s12809_s26 }
 0x468   : > { %2181 = vrot.lane.b32.xlu1 %v8481_v49, %s12807_s27 }
 0x46a   : > { %2183 = vrot.lane.b32.xlu0 %v8485_v26, %s12807_s27 }
 0x46c   : > { %2205 = vrot.lane.b32.xlu1 %v8481_v49, %s12805_s28 }
 0x46e   : > { %2207 = vrot.lane.b32.xlu0 %v8485_v26, %s12805_s28 }
 0x470   : > { %1796 = vrot.lane.b32.xlu1 %v8481_v49, %s12803_s5 }
 0x472   : > { %1798 = vrot.lane.b32.xlu0 %v8485_v26, %s12803_s5  ;;  %s12911_s5 = smov 7  }
 0x474   : > { %1820 = vrot.lane.b32.xlu1 %v8481_v49, %s12801_s6 }
 0x476   : > { %1822 = vrot.lane.b32.xlu0 %v8485_v26, %s12801_s6  ;;  %s12912_s6 = smov 1  }
 0x478   : > { %1844 = vrot.lane.b32.xlu1 %v8481_v49, %s12829_s19 }
 0x47a   : > { %1846 = vrot.lane.b32.xlu0 %v8485_v26, %s12829_s19 }
 0x47c   : > { %1868 = vrot.lane.b32.xlu1 %v8481_v49, %s12830_s29 }
 0x47e   : > { %v2030_v50 = vpop.permute.xlu1 %2029  ;;  %1870 = vrot.lane.b32.xlu0 %v8485_v26, %s12830_s29 }
 0x480   : > { %1892 = vrot.lane.b32.xlu1 %v8481_v49, %s12817_s12  ;;  %v2032_v21 = vpop.permute.xlu0 %2031 }
 0x482   : > { %v2054_v56 = vpop.permute.xlu1 %2053  ;;  %1894 = vrot.lane.b32.xlu0 %v8485_v26, %s12817_s12 }
 0x484   : > { %1916 = vrot.lane.b32.xlu1 %v8481_v49, %s12818_s13  ;;  %v8549_v2 = vpop.permute.xlu0 %2055 }
 0x486   : > { %v8551_v55 = vpop.permute.xlu1 %2077  ;;  %1918 = vrot.lane.b32.xlu0 %v8485_v26, %s12818_s13 }
 0x488   : > { %1940 = vrot.lane.b32.xlu1 %v8481_v49, %s12819_s10  ;;  %v8557_v16 = vpop.permute.xlu0 %2079 }
 0x48a   : > { %v8559_v53 = vpop.permute.xlu1 %2101  ;;  %1942 = vrot.lane.b32.xlu0 %v8485_v26, %s12819_s10 }
 0x48c   : > { %1964 = vrot.lane.b32.xlu1 %v8481_v49, %s12820_s11  ;;  %v8565_v54 = vpop.permute.xlu0 %2103 }
 0x48e   : > { %v8567_v34 = vpop.permute.xlu1 %2129  ;;  %1966 = vrot.lane.b32.xlu0 %v8485_v26, %s12820_s11 }
 0x490   : > { %1988 = vrot.lane.b32.xlu1 %v8481_v49, %s12821_s14  ;;  %v8573_v9 = vpop.permute.xlu0 %2131 }
 0x492   : > { %v8578_v15 = vpop.permute.xlu1 %2153  ;;  %1990 = vrot.lane.b32.xlu0 %v8485_v26, %s12821_s14 }
 0x494   : > { %2549 = vperm.xlu1 %6600, %v6052_v4   ;;  %v8585_v62 = vpop.permute.xlu0 %2155 }
 0x496   : > { %v8587_v19 = vpop.permute.xlu1 %2177  ;;  %2554 = vperm.xlu0 %6599, %v6053_v30  }
 0x498   : > { %v8589_v33 = vpop.permute.xlu0 %2179 }
 0x49a   : > { %v8591_v45 = vpop.permute.xlu1 %2201 }
 0x49c   : > { %v8593_v48 = vpop.permute.xlu0 %2203 }
 0x49e   : > { %v8595_v23 = vpop.permute.xlu1 %1792 }
 0x4a0   : > { %v8597_v35 = vpop.permute.xlu0 %1794 }
 0x4a2   : > { %v8599_v61 = vpop.permute.xlu1 %1816 }
 0x4a4   : > { %v8601_v58 = vpop.permute.xlu0 %1818 }
 0x4a6   : > { %v8603_v41 = vpop.permute.xlu1 %1840 }
 0x4a8   : > { %v8605_v37 = vpop.permute.xlu0 %1842 }
 0x4aa   : > { %v8607_v27 = vpop.permute.xlu1 %1864 }
 0x4ac   : > { %v8609_v7 = vpop.permute.xlu0 %1866 }
 0x4ae   : > { %v8611_v1 = vpop.permute.xlu1 %1888 }
 0x4b0   : > { %v8613_v18 = vpop.permute.xlu0 %1890 }
 0x4b2   : > { %v8615_v40 = vpop.permute.xlu1 %1912 }
 0x4b4   : > { %v8617_v52 = vpop.permute.xlu0 %1914 }
 0x4b6   : > { %v8619_v0 = vpop.permute.xlu1 %1936 }
 0x4b8   : > { %v8621_v60 = vpop.permute.xlu0 %1938 }
 0x4ba   : > { %v8623_v57 = vpop.permute.xlu1 %1960 }
 0x4bc   : > { %v8625_v63 = vpop.permute.xlu0 %1962 }
 0x4be   : > { %v2034_v3 = vpop.permute.xlu1 %2033 }
 0x4bf   : > { %v2037_v42 = vsel %vm466_vm1, %v2030_v50, %v2034_v3  ;;  %v2039_v25 = vsel %vm466_vm1, %v2034_v3, %v2030_v50 }
 0x4c0   : > { %v2036_v5 = vpop.permute.xlu0 %2035  ;;  %v2045_v10 = vmul.f32 %v5971_v29, %v2039_v25  ;;  %v2046_v36 = vmul.f32 %v5972_v11, %v2037_v42  ;;  %v5979_v29 = vld [vmem:[%s12780_s3 + $0x160] sm:$0xff]  ;;  %v5980_v11 = vld [vmem:[%s12780_s3 + $0x168] sm:$0xff]  ;;  %v5981_v25 = vld [vmem:[%s12780_s3 + $0x170] sm:$0xff] }
 0x4c1   : > { %v2038_v46 = vsel %vm466_vm1, %v2032_v21, %v2036_v5  ;;  %v2040_v24 = vsel %vm466_vm1, %v2036_v5, %v2032_v21 }
 0x4c2   : > { %v2047_v13 = vmul.f32 %v5973_v17, %v2040_v24  ;;  %v2048_v38 = vmul.f32 %v5974_v51, %v2038_v46  ;;  %v2058_v43 = vpop.permute.xlu1 %2057  ;;  %v5982_v17 = vld [vmem:[%s12780_s3 + $0x178] sm:$0xff] }
 0x4c3   : > { %v2061_v47 = vsel %vm492_vm2, %v2054_v56, %v2058_v43  ;;  %v2063_v28 = vsel %vm492_vm2, %v2058_v43, %v2054_v56 }
 0x4c4   : > { %v2049_v44 = vpack.c.bf16 %v2047_v13, %v2045_v10  ;;  %v2060_v59 = vpop.permute.xlu0 %2059  ;;  %v2050_v31 = vpack.c.bf16 %v2048_v38, %v2046_v36  ;;  %v2069_v21 = vmul.f32 %v5975_v20, %v2063_v28  ;;  %v2070_v56 = vmul.f32 %v5976_v8, %v2061_v47  ;;  %v5983_v20 = vld [vmem:[%s12780_s3 + $0x180] sm:$0xff]  ;;  %v5984_v8 = vld [vmem:[%s12780_s3 + $0x188] sm:$0xff]  ;;  %v5985_v28 = vld [vmem:[%s12780_s3 + $0x190] sm:$0xff] }
 0x4c5   : > { %v2062_v12 = vsel %vm492_vm2, %v8549_v2, %v2060_v59  ;;  %v2064_v50 = vsel %vm492_vm2, %v2060_v59, %v8549_v2 }
 0x4c6   : > { %v2071_v4 = vmul.f32 %v5977_v22, %v2064_v50  ;;  %v2072_v30 = vmul.f32 %v5978_v39, %v2062_v12  ;;  %v2082_v3 = vpop.permute.xlu1 %2081  ;;  %2258 = vmatprep.subr.bf16.mxu0 %v2050_v31  ;;  %v5986_v22 = vld [vmem:[%s12780_s3 + $0x198] sm:$0xff] }
 0x4c7   : > { %v2085_v42 = vsel %vm518_vm3, %v8551_v55, %v2082_v3  ;;  %v2087_v2 = vsel %vm518_vm3, %v2082_v3, %v8551_v55  ;;  %2259 = vmatpush1.bf16.msra.mxu0 %v2049_v44 }
 0x4c8   : > { %v2073_v51 = vpack.c.bf16 %v2071_v4, %v2069_v21  ;;  %v2084_v5 = vpop.permute.xlu0 %2083  ;;  %v2074_v46 = vpack.c.bf16 %v2072_v30, %v2070_v56  ;;  %v2093_v10 = vmul.f32 %v5979_v29, %v2087_v2  ;;  %v2094_v36 = vmul.f32 %v5980_v11, %v2085_v42  ;;  %v5987_v11 = vld [vmem:[%s12780_s3 + $0x1c0] sm:$0xff]  ;;  %v5988_v2 = vld [vmem:[%s12780_s3 + $0x1c8] sm:$0xff] }
 0x4c9   : > { %v2086_v24 = vsel %vm518_vm3, %v8557_v16, %v2084_v5  ;;  %v2088_v55 = vsel %vm518_vm3, %v2084_v5, %v8557_v16 }
 0x4ca   : > { %v2095_v13 = vmul.f32 %v5981_v25, %v2088_v55  ;;  %v2096_v38 = vmul.f32 %v5982_v17, %v2086_v24  ;;  %v2106_v43 = vpop.permute.xlu1 %2105  ;;  %2260 = vmatprep.subr.bf16.mxu0 %v2074_v46 }
 0x4cb   : > { %v2109_v47 = vsel %vm544_vm4, %v8559_v53, %v2106_v43  ;;  %v2111_v16 = vsel %vm544_vm4, %v2106_v43, %v8559_v53  ;;  %2261 = vmatpush1.bf16.msra.mxu0 %v2073_v51  ;;  %v5989_v51 = vld [vmem:[%s12780_s3 + $0x1d0] sm:$0xff]  ;;  %v5994_v43 = vld [vmem:[%s12780_s3 + $0x1f8] sm:$0xff] }
 0x4cc   : > { %v2097_v39 = vpack.c.bf16 %v2095_v13, %v2093_v10  ;;  %v2108_v44 = vpop.permute.xlu0 %2107  ;;  %v2098_v59 = vpack.c.bf16 %v2096_v38, %v2094_v36  ;;  %v2117_v12 = vmul.f32 %v5983_v20, %v2111_v16  ;;  %v2118_v50 = vmul.f32 %v5984_v8, %v2109_v47  ;;  %v5991_v13 = vld [vmem:[%s12780_s3 + $0x1e0] sm:$0xff]  ;;  %v5992_v20 = vld [vmem:[%s12780_s3 + $0x1e8] sm:$0xff] }
 0x4cd   : > { %v2110_v31 = vsel %vm544_vm4, %v8565_v54, %v2108_v44  ;;  %v2112_v53 = vsel %vm544_vm4, %v2108_v44, %v8565_v54  ;;  %v2126_v54 = vpack.c.bf16 %v8485_v26, %v8481_v49  ;;  %v5990_v49 = vld [vmem:[%s12780_s3 + $0x1d8] sm:$0xff] }
 0x4ce   : > { %v2119_v21 = vmul.f32 %v5985_v28, %v2112_v53  ;;  %v2120_v56 = vmul.f32 %v5986_v22, %v2110_v31  ;;  %v8717_v4 = vpop.permute.xlu1 %1984  ;;  %2262 = vmatprep.subr.bf16.mxu0 %v2098_v59  ;;  %v5995_v31 = vld [vmem:[%s12780_s3 + $0x200] sm:$0xff] }
 0x4cf   : > { %2263 = vmatpush1.bf16.msra.mxu0 %v2097_v39 }
 0x4d0   : > { %v2121_v30 = vpack.c.bf16 %v2119_v21, %v2117_v12  ;;  %v8719_v29 = vpop.permute.xlu0 %1986  ;;  %v2122_v3 = vpack.c.bf16 %v2120_v56, %v2118_v50  ;;  %v5996_v12 = vld [vmem:[%s12780_s3 + $0x208] sm:$0xff]  ;;  %v5997_v21 = vld [vmem:[%s12780_s3 + $0x210] sm:$0xff]  ;;  %v5998_v56 = vld [vmem:[%s12780_s3 + $0x218] sm:$0xff] }
 0x4d2   : > { %v2134_v42 = vpop.permute.xlu1 %2133  ;;  %2264 = vmatprep.subr.bf16.mxu0 %v2122_v3 }
 0x4d3   : > { %v2137_v25 = vsel %vm574_vm5, %v8567_v34, %v2134_v42  ;;  %v2139_v17 = vsel %vm574_vm5, %v2134_v42, %v8567_v34  ;;  %2265 = vmatpush1.bf16.msra.mxu0 %v2121_v30  ;;  %v2125_v34 = vpack.c.bf16 %v8417_v32, %v8415_v14  ;;  %v5993_v32 = vld [vmem:[%s12780_s3 + $0x1f0] sm:$0xff] }
 0x4d4   : > { %v2136_v26 = vpop.permute.xlu0 %2135  ;;  %2266 = vmatprep.subr.bf16.mxu0 %v2126_v54  ;;  %v2145_v24 = vmul.f32 %v5987_v11, %v2137_v25  ;;  %v2146_v55 = vmul.f32 %v5988_v2, %v2139_v17 }
 0x4d5   : > { %v2138_v5 = vsel %vm574_vm5, %v8573_v9, %v2136_v26  ;;  %v2140_v46 = vsel %vm574_vm5, %v2136_v26, %v8573_v9 }
 0x4d6   : > { %v2147_v10 = vmul.f32 %v5989_v51, %v2138_v5  ;;  %v2148_v36 = vmul.f32 %v5990_v49, %v2140_v46  ;;  %v2158_v38 = vpop.permute.xlu1 %2157  ;;  %v5999_v49 = vld [vmem:[%s12780_s3 + $0x220] sm:$0xff]  ;;  %v6001_v5 = vld [vmem:[%s12780_s3 + $0x230] sm:$0xff] }
 0x4d7   : > { %v2161_v9 = vsel %vm600_vm6, %v8578_v15, %v2158_v38  ;;  %v2163_v14 = vsel %vm600_vm6, %v2158_v38, %v8578_v15  ;;  %2267 = vmatpush1.bf16.msra.mxu0 %v2125_v34  ;;  %v6000_v34 = vld [vmem:[%s12780_s3 + $0x228] sm:$0xff] }
 0x4d8   : > { %v2149_v8 = vpack.c.bf16 %v2147_v10, %v2145_v24  ;;  %v2160_v47 = vpop.permute.xlu0 %2159  ;;  %v2150_v16 = vpack.c.bf16 %v2148_v36, %v2146_v55  ;;  %v2169_v22 = vmul.f32 %v5991_v13, %v2161_v9  ;;  %v2170_v39 = vmul.f32 %v5992_v20, %v2163_v14 }
 0x4d9   : > { %v2162_v28 = vsel %vm600_vm6, %v8585_v62, %v2160_v47  ;;  %v2164_v15 = vsel %vm600_vm6, %v2160_v47, %v8585_v62 }
 0x4da   : > { %v2171_v44 = vmul.f32 %v5993_v32, %v2162_v28  ;;  %v2172_v59 = vmul.f32 %v5994_v43, %v2164_v15  ;;  %v2182_v53 = vpop.permute.xlu1 %2181  ;;  %2268 = vmatprep.subr.bf16.mxu0 %v2150_v16 }
 0x4db   : > { %v2185_v50 = vsel %vm626_vm7, %v8587_v19, %v2182_v53  ;;  %v2187_v62 = vsel %vm626_vm7, %v2182_v53, %v8587_v19  ;;  %2269 = vmatpush1.bf16.msra.mxu0 %v2149_v8  ;;  %v1807_v8 = vld [vmem:[%s12780_s3 + $0x18] sm:$0xff] }
 0x4dc   : > { %v2173_v30 = vpack.c.bf16 %v2171_v44, %v2169_v22  ;;  %v2184_v3 = vpop.permute.xlu0 %2183  ;;  %v2174_v11 = vpack.c.bf16 %v2172_v59, %v2170_v39  ;;  %v2193_v54 = vmul.f32 %v5995_v31, %v2185_v50  ;;  %v2194_v2 = vmul.f32 %v5996_v12, %v2187_v62  ;;  %v1805_v39 = vld [vmem:[%s12780_s3 + $0x8] sm:$0xff]  ;;  %v6621_v12 = vld [vmem:[%s12778_s1 + $0x70] ss:$8 sps:$4 sm:$0xff]  }
 0x4dd   : > { %v2186_v42 = vsel %vm626_vm7, %v8589_v33, %v2184_v3  ;;  %v2188_v19 = vsel %vm626_vm7, %v2184_v3, %v8589_v33  ;;  %v6002_v33 = vld [vmem:[%s12780_s3 + $0x238] sm:$0xff] }
 0x4de   : > { %v2195_v25 = vmul.f32 %v5997_v21, %v2186_v42  ;;  %v2196_v17 = vmul.f32 %v5998_v56, %v2188_v19  ;;  %v2206_v51 = vpop.permute.xlu1 %2205  ;;  %2270 = vmatprep.subr.bf16.mxu0 %v2174_v11  ;;  %v6622_v21 = vld [vmem:[%s12778_s1 + $0x64] ss:$8 sps:$4 sm:$0xff]  }
 0x4df   : > { %v2209_v26 = vsel %vm652_vm8, %v8591_v45, %v2206_v51  ;;  %2271 = vmatpush1.bf16.msra.mxu0 %v2173_v30  ;;  %v2211_v24 = vsel %vm652_vm8, %v2206_v51, %v8591_v45  ;;  %v1806_v45 = vld [vmem:[%s12780_s3 + $0x10] sm:$0xff]  ;;  %v5937_v30 = vld [vmem:[%s12780_s3 + $0x20] sm:$0xff] }
 0x4e0   : > { %v2197_v46 = vpack.c.bf16 %v2195_v25, %v2193_v54  ;;  %v2208_v55 = vpop.permute.xlu0 %2207  ;;  %v2198_v10 = vpack.c.bf16 %v2196_v17, %v2194_v2  ;;  %v2217_v38 = vmul.f32 %v5999_v49, %v2209_v26  ;;  %v2218_v32 = vmul.f32 %v6000_v34, %v2211_v24  ;;  %v5938_v54 = vld [vmem:[%s12780_s3 + $0x28] sm:$0xff] }
 0x4e1   : > { %v2210_v36 = vsel %vm652_vm8, %v8593_v48, %v2208_v55  ;;  %v2212_v13 = vsel %vm652_vm8, %v2208_v55, %v8593_v48  ;;  %v1804_v48 = vld [vmem:[%s12780_s3] sm:$0xff] }
 0x4e2   : > { %v2219_v20 = vmul.f32 %v6001_v5, %v2210_v36  ;;  %v2220_v9 = vmul.f32 %v6002_v33, %v2212_v13  ;;  %v1797_v14 = vpop.permute.xlu1 %1796  ;;  %2272 = vmatprep.subr.bf16.mxu0 %v2198_v10  ;;  %v5944_v5 = vld [vmem:[%s12780_s3 + $0x58] sm:$0xff]  ;;  %v5942_v36 = vld [vmem:[%s12780_s3 + $0x48] sm:$0xff] }
 0x4e3   : > { %2273 = vmatpush1.bf16.msra.mxu0 %v2197_v46  ;;  %v8833_v16 = vsel %vm213_vm9, %v1797_v14, %v8595_v23  ;;  %v8851_v44 = vsel %vm213_vm9, %v8595_v23, %v1797_v14  ;;  %v5940_v23 = vld [vmem:[%s12780_s3 + $0x38] sm:$0xff]  ;;  %v5941_v46 = vld [vmem:[%s12780_s3 + $0x40] sm:$0xff] }
 0x4e4   : > { %v2221_v43 = vpack.c.bf16 %v2219_v20, %v2217_v38  ;;  %v1799_v47 = vpop.permute.xlu0 %1798  ;;  %v2222_v22 = vpack.c.bf16 %v2220_v9, %v2218_v32  ;;  %v1808_v50 = vmul.f32 %v1804_v48, %v8833_v16  ;;  %v1809_v56 = vmul.f32 %v1805_v39, %v8851_v44 }
 0x4e5   : > { %v8838_v28 = vsel %vm213_vm9, %v8597_v35, %v1799_v47  ;;  %v8843_v15 = vsel %vm213_vm9, %v1799_v47, %v8597_v35  ;;  %v5939_v35 = vld [vmem:[%s12780_s3 + $0x30] sm:$0xff] }
 0x4e6   : > { %v1810_v59 = vmul.f32 %v1806_v45, %v8843_v15  ;;  %v1821_v31 = vpop.permute.xlu1 %1820  ;;  %v1811_v53 = vmul.f32 %v1807_v8, %v8838_v28  ;;  %2274 = vmatprep.subr.bf16.mxu0 %v2222_v22  ;;  %v5948_v45 = vld [vmem:[%s12780_s3 + $0x78] sm:$0xff]  ;;  %v5945_v8 = vld [vmem:[%s12780_s3 + $0x60] sm:$0xff] }
 0x4e7   : > { %2275 = vmatpush1.bf16.msra.mxu0 %v2221_v43  ;;  %v8875_v3 = vsel %vm238_vm10, %v1821_v31, %v8599_v61  ;;  %v8893_v2 = vsel %vm238_vm10, %v8599_v61, %v1821_v31 }
 0x4e8   : > { %v1823_v62 = vpop.permute.xlu0 %1822  ;;  %v1812_v19 = vpack.c.bf16 %v1810_v59, %v1808_v50  ;;  %v1813_v49 = vpack.c.bf16 %v1811_v53, %v1809_v56  ;;  %v1832_v26 = vmul.f32 %v5937_v30, %v8875_v3  ;;  %v1833_v61 = vmul.f32 %v5938_v54, %v8893_v2  ;;  %v5946_v59 = vld [vmem:[%s12780_s3 + $0x68] sm:$0xff]  ;;  %v5949_v56 = vld [vmem:[%s12780_s3 + $0x80] sm:$0xff] }
 0x4e9   : > { %v8880_v11 = vsel %vm238_vm10, %v8601_v58, %v1823_v62  ;;  %v8885_v42 = vsel %vm238_vm10, %v1823_v62, %v8601_v58  ;;  %v5943_v58 = vld [vmem:[%s12780_s3 + $0x50] sm:$0xff]  ;;  %v5952_v62 = vld [vmem:[%s12780_s3 + $0x98] sm:$0xff] }
 0x4ea   : > { %v1834_v25 = vmul.f32 %v5939_v35, %v8885_v42  ;;  %v1845_v17 = vpop.permute.xlu1 %1844  ;;  %v1835_v51 = vmul.f32 %v5940_v23, %v8880_v11  ;;  %2291 = vmatmul.mubr.bf16.vlgmr.msra.gmra.mrb[4].mxu0 %v6621_v12  ;;  %2313 = vmatprep.subr.bf16.mxu0 %v1813_v49 }
 0x4eb   : > { %6010 = vmatprep.mubr.msk.bf16.mxu0 %vm700_vm0, %v6622_v21  ;;  %v8912_v34 = vsel %vm12831_vm12, %v1845_v17, %v8603_v41  ;;  %vm12834_vm12 = vmmov %vm12833_vm11  ;;  %2314 = vmatpush1.bf16.msra.mxu0 %v1812_v19 }
 0x4ec   : > { %v1847_v33 = vpop.permute.xlu0 %1846  ;;  %v1836_v10 = vpack.c.bf16 %v1834_v25, %v1832_v26  ;;  %v8930_v13 = vsel %vm12834_vm12, %v8603_v41, %v1845_v17  ;;  %v1837_v14 = vpack.c.bf16 %v1835_v51, %v1833_v61  ;;  %v1856_v32 = vmul.f32 %v5941_v46, %v8912_v34  ;;  %v5950_v17 = vld [vmem:[%s12780_s3 + $0x88] sm:$0xff]  ;;  %v5956_v61 = vld [vmem:[%s12780_s3 + $0xb8] sm:$0xff] }
 0x4ed   : > { %v8917_v24 = vsel %vm12832_vm13, %v8605_v37, %v1847_v33  ;;  %v8922_v55 = vsel %vm12833_vm11, %v1847_v33, %v8605_v37  ;;  %v5947_v37 = vld [vmem:[%s12780_s3 + $0x70] sm:$0xff]  ;;  %v1857_v41 = vmul.f32 %v5942_v36, %v8930_v13  ;;  %vm12835_vm13 = vcmp.lt.s32.totalorder %v6859_v6, 65 }
 0x4ee   : > { %v1858_v38 = vmul.f32 %v5943_v58, %v8922_v55  ;;  %v1869_v20 = vpop.permute.xlu1 %1868  ;;  %v1859_v9 = vmul.f32 %v5944_v5, %v8917_v24  ;;  %2315 = vmatprep.subr.bf16.mxu0 %v1837_v14  ;;  %vm12836_vm11 = vmmov %vm12835_vm13  ;;  %v5954_v14 = vld [vmem:[%s12780_s3 + $0xa8] sm:$0xff] }
 0x4ef   : > { %v8948_v47 = vsel %vm12835_vm13, %v1869_v20, %v8607_v27  ;;  %vm12837_vm12 = vmmov %vm12836_vm11  ;;  %2316 = vmatpush1.bf16.msra.mxu0 %v1836_v10  ;;  %v5953_v10 = vld [vmem:[%s12780_s3 + $0xa0] sm:$0xff] }
 0x4f0   : > { %v1871_v43 = vpop.permute.xlu0 %1870  ;;  %v1860_v39 = vpack.c.bf16 %v1858_v38, %v1856_v32  ;;  %vm12838_vm13 = vmmov %vm12836_vm11  ;;  %v1861_v50 = vpack.c.bf16 %v1859_v9, %v1857_v41  ;;  %v1880_v23 = vmul.f32 %v5945_v8, %v8948_v47 }
 0x4f1   : > { %v8953_v48 = vsel %vm12836_vm11, %v8609_v7, %v1871_v43  ;;  %v8958_v22 = vsel %vm12837_vm12, %v1871_v43, %v8609_v7  ;;  %v8966_v31 = vsel %vm12838_vm13, %v8607_v27, %v1869_v20  ;;  %v5951_v7 = vld [vmem:[%s12780_s3 + $0x90] sm:$0xff]  ;;  %vm12839_vm11 = vcmp.lt.s32.totalorder %v6859_v6, 64 }
 0x4f2   : > { %v1882_v53 = vmul.f32 %v5947_v37, %v8958_v22  ;;  %v1893_v35 = vpop.permute.xlu1 %1892  ;;  %v1883_v12 = vmul.f32 %v5948_v45, %v8953_v48  ;;  %v1881_v27 = vmul.f32 %v5946_v59, %v8966_v31  ;;  %2317 = vmatprep.subr.bf16.mxu0 %v1861_v50  ;;  %vm12840_vm12 = vmmov %vm12839_vm11 }
 0x4f3   : > { %v8984_v30 = vsel %vm12839_vm11, %v1893_v35, %v8611_v1  ;;  %vm12841_vm13 = vmmov %vm12839_vm11  ;;  %v9002_v51 = vsel %vm12839_vm11, %v8611_v1, %v1893_v35  ;;  %2318 = vmatpush1.bf16.msra.mxu0 %v1860_v39  ;;  %v5960_v39 = vld [vmem:[%s12780_s3 + $0xd8] sm:$0xff] }
 0x4f4   : > { %v1895_v21 = vpop.permute.xlu0 %1894  ;;  %v1884_v25 = vpack.c.bf16 %v1882_v53, %v1880_v23  ;;  %v1885_v5 = vpack.c.bf16 %v1883_v12, %v1881_v27  ;;  %v1904_v33 = vmul.f32 %v5949_v56, %v8984_v30  ;;  %v1905_v1 = vmul.f32 %v5950_v17, %v9002_v51  ;;  %v5957_v53 = vld [vmem:[%s12780_s3 + $0xc0] sm:$0xff]  ;;  %v5958_v23 = vld [vmem:[%s12780_s3 + $0xc8] sm:$0xff] }
 0x4f5   : > { %v8989_v19 = vsel %vm12840_vm12, %v8613_v18, %v1895_v21  ;;  %v8994_v54 = vsel %vm12841_vm13, %v1895_v21, %v8613_v18  ;;  %v5955_v18 = vld [vmem:[%s12780_s3 + $0xb0] sm:$0xff]  ;;  %vm12842_vm12 = vcmp.lt.s32.totalorder %v6859_v6, 63 }
 0x4f6   : > { %v1906_v49 = vmul.f32 %v5951_v7, %v8994_v54  ;;  %v1917_v58 = vpop.permute.xlu1 %1916  ;;  %v1907_v26 = vmul.f32 %v5952_v62, %v8989_v19  ;;  %2319 = vmatprep.subr.bf16.mxu0 %v1885_v5  ;;  %vm12843_vm13 = vmmov %vm12842_vm12 }
 0x4f7   : > { %v9020_v36 = vsel %vm12842_vm12, %v1917_v58, %v8615_v40  ;;  %vm12844_vm11 = vmmov %vm12842_vm12  ;;  %2320 = vmatpush1.bf16.msra.mxu0 %v1884_v25 }
 0x4f8   : > { %v1919_v46 = vpop.permute.xlu0 %1918  ;;  %v1908_v9 = vpack.c.bf16 %v1906_v49, %v1904_v33  ;;  %vm12845_vm12 = vmmov %vm12844_vm11  ;;  %v1909_v41 = vpack.c.bf16 %v1907_v26, %v1905_v1  ;;  %v1928_v8 = vmul.f32 %v5953_v10, %v9020_v36  ;;  %v5964_v49 = vld [vmem:[%s12780_s3 + $0xf8] sm:$0xff]  ;;  %v5961_v26 = vld [vmem:[%s12780_s3 + $0xe0] sm:$0xff] }
 0x4f9   : > { %v9025_v38 = vsel %vm12843_vm13, %v8617_v52, %v1919_v46  ;;  %v9030_v20 = vsel %vm12844_vm11, %v1919_v46, %v8617_v52  ;;  %v9038_v37 = vsel %vm12845_vm12, %v8615_v40, %v1917_v58  ;;  %v5959_v52 = vld [vmem:[%s12780_s3 + $0xd0] sm:$0xff]  ;;  %vm12846_vm13 = vcmp.lt.s32.totalorder %v6859_v6, 57  ;;  %v5962_v46 = vld [vmem:[%s12780_s3 + $0xe8] sm:$0xff] }
 0x4fa   : > { %v1930_v32 = vmul.f32 %v5955_v18, %v9030_v20  ;;  %v1941_v45 = vpop.permute.xlu1 %1940  ;;  %v1931_v43 = vmul.f32 %v5956_v61, %v9025_v38  ;;  %v1929_v40 = vmul.f32 %v5954_v14, %v9038_v37  ;;  %2321 = vmatprep.subr.bf16.mxu0 %v1909_v41  ;;  %vm12847_vm11 = vmmov %vm12846_vm13 }
 0x4fb   : > { %v9056_v35 = vsel %vm12846_vm13, %v1941_v45, %v8619_v0  ;;  %vm12848_vm12 = vmmov %vm12847_vm11  ;;  %2322 = vmatpush1.bf16.msra.mxu0 %v1908_v9 }
 0x4fc   : > { %v1943_v59 = vpop.permute.xlu0 %1942  ;;  %v1932_v7 = vpack.c.bf16 %v1930_v32, %v1928_v8  ;;  %vm12849_vm13 = vmmov %vm12847_vm11  ;;  %v1933_v25 = vpack.c.bf16 %v1931_v43, %v1929_v40  ;;  %v1952_v17 = vmul.f32 %v5957_v53, %v9056_v35  ;;  %v5968_v43 = vld [vmem:[%s12780_s3 + $0x118] sm:$0xff] }
 0x4fd   : > { %v9061_v12 = vsel %vm12847_vm11, %v8621_v60, %v1943_v59  ;;  %v9066_v50 = vsel %vm12848_vm12, %v1943_v59, %v8621_v60  ;;  %v9074_v62 = vsel %vm12849_vm13, %v8619_v0, %v1941_v45  ;;  %v5963_v60 = vld [vmem:[%s12780_s3 + $0xf0] sm:$0xff]  ;;  %vm12852_vm11 = vcmp.lt.s32.totalorder %v6859_v6, 71 }
 0x4fe   : > { %v1954_v21 = vmul.f32 %v5959_v52, %v9066_v50  ;;  %v1965_v27 = vpop.permute.xlu1 %1964  ;;  %v1955_v56 = vmul.f32 %v5960_v39, %v9061_v12  ;;  %v1953_v0 = vmul.f32 %v5958_v23, %v9074_v62  ;;  %2323 = vmatprep.subr.bf16.mxu0 %v1933_v25  ;;  %v5965_v39 = vld [vmem:[%s12780_s3 + $0x100] sm:$0xff]  ;;  %v6012_v25 = vld [vmem:[%s12780_s3 + $0x248] sm:$0xff]  ;;  %vm12853_vm12 = vmmov %vm12852_vm11 }
 0x4ff   : > { %v9092_v5 = vsel %vm394_vm14, %v1965_v27, %v8623_v57  ;;  %v9110_v1 = vsel %vm394_vm14, %v8623_v57, %v1965_v27  ;;  %2324 = vmatpush1.bf16.msra.mxu0 %v1932_v7  ;;  %v5967_v57 = vld [vmem:[%s12780_s3 + $0x110] sm:$0xff]  ;;  %v6014_v7 = vld [vmem:[%s12780_s3 + $0x258] sm:$0xff]  ;;  %vm12854_vm13 = vmmov %vm12852_vm11 }
 0x500   : > { %v1967_v58 = vpop.permute.xlu0 %1966  ;;  %v1956_v61 = vpack.c.bf16 %v1954_v21, %v1952_v17  ;;  %v1957_v45 = vpack.c.bf16 %v1955_v56, %v1953_v0  ;;  %v1976_v41 = vmul.f32 %v5961_v26, %v9092_v5  ;;  %v1977_v8 = vmul.f32 %v5962_v46, %v9110_v1  ;;  %v6013_v17 = vld [vmem:[%s12780_s3 + $0x250] sm:$0xff]  ;;  %v6011_v26 = vld [vmem:[%s12780_s3 + $0x240] sm:$0xff] }
 0x501   : > { %v9097_v18 = vsel %vm394_vm14, %v8625_v63, %v1967_v58  ;;  %v9102_v33 = vsel %vm394_vm14, %v1967_v58, %v8625_v63  ;;  %v5966_v63 = vld [vmem:[%s12780_s3 + $0x108] sm:$0xff]  ;;  %v6018_v58 = vld [vmem:[%s12780_s3 + $0x278] sm:$0xff]  ;;  %v2362_v46 = vmul.f32 %v6013_v17, %v8838_v28 }
 0x502   : > { %v1978_v10 = vmul.f32 %v5963_v60, %v9102_v33  ;;  %v1989_v9 = vpop.permute.xlu1 %1988  ;;  %v1979_v14 = vmul.f32 %v5964_v49, %v9097_v18  ;;  %2325 = vmatprep.subr.bf16.mxu0 %v1957_v45  ;;  %v2363_v49 = vmul.f32 %v6014_v7, %v8843_v15  ;;  %v6016_v15 = vld [vmem:[%s12780_s3 + $0x268] sm:$0xff]  ;;  %v6022_v28 = vld [vmem:[%s12780_s3 + $0x298] sm:$0xff] }
 0x503   : > { %v9120_v32 = vsel %vm420_vm15, %v8717_v4, %v1989_v9  ;;  %v9136_v59 = vsel %vm420_vm15, %v1989_v9, %v8717_v4  ;;  %2326 = vmatpush1.bf16.msra.mxu0 %v1956_v61  ;;  %v2361_v61 = vmul.f32 %v6012_v25, %v8833_v16  ;;  %v2375_v9 = vmul.f32 %v6018_v58, %v8885_v42  ;;  %v6625_v45 = vld [vmem:[%s12778_s1 + $0x84] ss:$8 sps:$4 sm:$0xff]  }
 0x504   : > { %v1991_v52 = vpop.permute.xlu0 %1990  ;;  %v1980_v23 = vpack.c.bf16 %v1978_v10, %v1976_v41  ;;  %v2001_v21 = vmul.f32 %v5966_v63, %v9120_v32  ;;  %v1981_v56 = vpack.c.bf16 %v1979_v14, %v1977_v8  ;;  %v6017_v10 = vld [vmem:[%s12780_s3 + $0x270] sm:$0xff]  ;;  %v6624_v63 = vld [vmem:[%s12778_s1 + $0x60] ss:$8 sps:$4 sm:$0xff]   ;;  %v2360_v16 = vmul.f32 %v6011_v26, %v8851_v44 }
 0x505   : > { %v9141_v40 = vsel %vm420_vm15, %v8719_v29, %v1991_v52  ;;  %v9146_v53 = vsel %vm420_vm15, %v1991_v52, %v8719_v29  ;;  %v2000_v29 = vmul.f32 %v5965_v39, %v9136_v59  ;;  %v2365_v14 = vpack.c.bf16 %v2363_v49, %v2361_v61  ;;  %v6015_v42 = vld [vmem:[%s12780_s3 + $0x260] sm:$0xff]  ;;  %v6020_v44 = vld [vmem:[%s12780_s3 + $0x288] sm:$0xff]  ;;  %v6021_v52 = vld [vmem:[%s12780_s3 + $0x290] sm:$0xff] }
 0x506   : > { %v2002_v4 = vmul.f32 %v5967_v57, %v9146_v53  ;;  %v2003_v27 = vmul.f32 %v5968_v43, %v9141_v40  ;;  %2327 = vmatprep.subr.bf16.mxu0 %v1981_v56  ;;  %v2373_v57 = vmul.f32 %v6016_v15, %v8875_v3  ;;  %v2364_v43 = vpack.c.bf16 %v2362_v46, %v2360_v16  ;;  %v6026_v3 = vld [vmem:[%s12780_s3 + $0x2b8] sm:$0xff] }
 0x507   : > { %2328 = vmatpush1.bf16.msra.mxu0 %v1980_v23  ;;  %v2374_v41 = vmul.f32 %v6017_v10, %v8880_v11  ;;  %v2387_v8 = vmul.f32 %v6022_v28, %v8922_v55  ;;  %v2372_v7 = vmul.f32 %v6015_v42, %v8893_v2  ;;  %v6019_v11 = vld [vmem:[%s12780_s3 + $0x280] sm:$0xff]  ;;  %v2385_v23 = vmul.f32 %v6020_v44, %v8912_v34  ;;  %v6024_v2 = vld [vmem:[%s12780_s3 + $0x2a8] sm:$0xff]  ;;  %v6030_v34 = vld [vmem:[%s12780_s3 + $0x2d8] sm:$0xff] }
 0x508   : > { %v2005_v60 = vpack.c.bf16 %v2003_v27, %v2001_v21  ;;  %v2004_v0 = vpack.c.bf16 %v2002_v4, %v2000_v29  ;;  %v2377_v39 = vpack.c.bf16 %v2375_v9, %v2373_v57  ;;  %v2386_v55 = vmul.f32 %v6021_v52, %v8917_v24  ;;  %v6025_v4 = vld [vmem:[%s12780_s3 + $0x2b0] sm:$0xff]  ;;  %v6023_v24 = vld [vmem:[%s12780_s3 + $0x2a0] sm:$0xff] }
 0x509   : > { %v2376_v21 = vpack.c.bf16 %v2374_v41, %v2372_v7  ;;  %v2399_v27 = vmul.f32 %v6026_v3, %v8958_v22  ;;  %v2389_v56 = vpack.c.bf16 %v2387_v8, %v2385_v23  ;;  %v2384_v25 = vmul.f32 %v6019_v11, %v8930_v13  ;;  %v6028_v22 = vld [vmem:[%s12780_s3 + $0x2c8] sm:$0xff]  ;;  %v6029_v13 = vld [vmem:[%s12780_s3 + $0x2d0] sm:$0xff] }
 0x50a   : > { %2329 = vmatprep.subr.bf16.mxu0 %v2005_v60  ;;  %v2397_v29 = vmul.f32 %v6024_v2, %v8948_v47  ;;  %v2398_v17 = vmul.f32 %v6025_v4, %v8953_v48  ;;  %v2411_v49 = vmul.f32 %v6030_v34, %v8994_v54  ;;  %v6034_v47 = vld [vmem:[%s12780_s3 + $0x2f8] sm:$0xff]  ;;  %v6027_v48 = vld [vmem:[%s12780_s3 + $0x2c0] sm:$0xff]  ;;  %v2409_v26 = vmul.f32 %v6028_v22, %v8984_v30  ;;  %v6032_v54 = vld [vmem:[%s12780_s3 + $0x2e8] sm:$0xff] }
 0x50b   : > { %2330 = vmatpush1.bf16.msra.mxu0 %v2004_v0  ;;  %v2388_v60 = vpack.c.bf16 %v2386_v55, %v2384_v25  ;;  %v2396_v0 = vmul.f32 %v6023_v24, %v8966_v31  ;;  %v2410_v46 = vmul.f32 %v6029_v13, %v8989_v19  ;;  %v6033_v31 = vld [vmem:[%s12780_s3 + $0x2f0] sm:$0xff]  ;;  %v2423_v15 = vmul.f32 %v6034_v47, %v9030_v20  ;;  %v6038_v30 = vld [vmem:[%s12780_s3 + $0x318] sm:$0xff]  ;;  %v6031_v19 = vld [vmem:[%s12780_s3 + $0x2e0] sm:$0xff] }
 0x50c   : > { %2497 = vmatprep.subr.bf16.mxu0 %v2365_v14  ;;  %v2401_v58 = vpack.c.bf16 %v2399_v27, %v2397_v29  ;;  %v2413_v10 = vpack.c.bf16 %v2411_v49, %v2409_v26  ;;  %v2408_v9 = vmul.f32 %v6027_v48, %v9002_v51  ;;  %v2421_v14 = vmul.f32 %v6032_v54, %v9020_v36  ;;  %v6036_v20 = vld [vmem:[%s12780_s3 + $0x308] sm:$0xff]  ;;  %v6037_v51 = vld [vmem:[%s12780_s3 + $0x310] sm:$0xff]  ;;  %v6042_v36 = vld [vmem:[%s12780_s3 + $0x338] sm:$0xff] }
 0x50d   : > { %v2400_v61 = vpack.c.bf16 %v2398_v17, %v2396_v0  ;;  %v2422_v16 = vmul.f32 %v6033_v31, %v9025_v38  ;;  %v2435_v28 = vmul.f32 %v6038_v30, %v9066_v50  ;;  %v2420_v42 = vmul.f32 %v6031_v19, %v9038_v37  ;;  %v6035_v38 = vld [vmem:[%s12780_s3 + $0x300] sm:$0xff]  ;;  %v6040_v50 = vld [vmem:[%s12780_s3 + $0x328] sm:$0xff]  ;;  %v6041_v37 = vld [vmem:[%s12780_s3 + $0x330] sm:$0xff] }
 0x50e   : > { %2346 = vmatmul.mubr.bf16.vlgmr.msra.gmra.mrb[4].mxu0 %v6624_v63  ;;  %v2412_v63 = vpack.c.bf16 %v2410_v46, %v2408_v9  ;;  %v2433_v57 = vmul.f32 %v6036_v20, %v9056_v35  ;;  %v2434_v41 = vmul.f32 %v6037_v51, %v9061_v12  ;;  %v2447_v44 = vmul.f32 %v6042_v36, %v9102_v33  ;;  %v6046_v35 = vld [vmem:[%s12780_s3 + $0x358] sm:$0xff]  ;;  %v6039_v12 = vld [vmem:[%s12780_s3 + $0x320] sm:$0xff]  ;;  %v6044_v33 = vld [vmem:[%s12780_s3 + $0x348] sm:$0xff] }
 0x50f   : > { %2498 = vmatpush1.bf16.msra.mxu0 %v2364_v43  ;;  %6051 = vmatprep.mubr.msk.bf16.mxu0 %vm700_vm0, %v6625_v45  ;;  %v2425_v45 = vpack.c.bf16 %v2423_v15, %v2421_v14  ;;  %v2424_v43 = vpack.c.bf16 %v2422_v16, %v2420_v42  ;;  %v2432_v8 = vmul.f32 %v6035_v38, %v9074_v62  ;;  %v6045_v62 = vld [vmem:[%s12780_s3 + $0x350] sm:$0xff]  ;;  %v6628_v0 = vld [vmem:[%s12778_s1 + $0xa4] ss:$8 sps:$4 sm:$0xff]   ;;  %v6170_v14 = vld [vmem:[%s12779_s2 + $0x38] sm:$0xff] }
 0x510   : > { %2499 = vmatprep.subr.bf16.mxu0 %v2377_v39  ;;  %v2437_v52 = vpack.c.bf16 %v2435_v28, %v2433_v57  ;;  %v2445_v39 = vmul.f32 %v6040_v50, %v9092_v5  ;;  %v2446_v3 = vmul.f32 %v6041_v37, %v9097_v18  ;;  %v2459_v11 = vmul.f32 %v6046_v35, %v9146_v53  ;;  %v6043_v5 = vld [vmem:[%s12780_s3 + $0x340] sm:$0xff]  ;;  %v6169_v30 = vld [vmem:[%s12779_s2 + $0x30] sm:$0xff] }
 0x511   : > { %v2436_v7 = vpack.c.bf16 %v2434_v41, %v2432_v8  ;;  %v2457_v18 = vmul.f32 %v6044_v33, %v9136_v59  ;;  %v2458_v2 = vmul.f32 %v6045_v62, %v9141_v40  ;;  %v2456_v27 = vmul.f32 %v6043_v5, %v9120_v32  ;;  %6124 = vmatprep.mubr.msk.bf16.mxu1 %vm700_vm0, %v6628_v0  ;;  %v6089_v62 = vld [vmem:[%s12780_s3 + $0x128] sm:$0xff]  ;;  %v6091_v5 = vld [vmem:[%s12780_s3 + $0x138] sm:$0xff] }
 0x512   : > { %v2449_v23 = vpack.c.bf16 %v2447_v44, %v2445_v39 }
 0x513   : > { %2500 = vmatpush1.bf16.msra.mxu0 %v2376_v21  ;;  %v2444_v21 = vmul.f32 %v6039_v12, %v9110_v1  ;;  %v2461_v4 = vpack.c.bf16 %v2459_v11, %v2457_v18  ;;  %v2460_v53 = vpack.c.bf16 %v2458_v2, %v2456_v27  ;;  %v6627_v1 = vld [vmem:[%s12778_s1 + $0x80] ss:$8 sps:$4 sm:$0xff]  }
 0x514   : > { %2501 = vmatprep.subr.bf16.mxu0 %v2389_v56  ;;  %v2550_v56 = vpop.permute.xlu1 %2549 }
 0x515   : > { %v2448_v55 = vpack.c.bf16 %v2446_v3, %v2444_v21  ;;  %v2555_v24 = vpop.permute.xlu0 %2554  ;;  %v6088_v3 = vld [vmem:[%s12780_s3 + $0x120] sm:$0xff]  ;;  %v6090_v21 = vld [vmem:[%s12780_s3 + $0x130] sm:$0xff] }
 0x517   : > { %2502 = vmatpush1.bf16.msra.mxu0 %v2388_v60 }
 0x518   : > { %2503 = vmatprep.subr.bf16.mxu0 %v2401_v58 }
 0x51b   : > { %2504 = vmatpush1.bf16.msra.mxu0 %v2400_v61 }
 0x51c   : > { %2505 = vmatprep.subr.bf16.mxu0 %v2413_v10 }
 0x51f   : > { %2506 = vmatpush1.bf16.msra.mxu0 %v2412_v63 }
 0x520   : > { %2507 = vmatprep.subr.bf16.mxu0 %v2425_v45 }
 0x523   : > { %2508 = vmatpush1.bf16.msra.mxu0 %v2424_v43 }
 0x524   : > { %2509 = vmatprep.subr.bf16.mxu0 %v2437_v52 }
 0x527   : > { %2510 = vmatpush1.bf16.msra.mxu0 %v2436_v7 }
 0x528   : > { %2511 = vmatprep.subr.bf16.mxu0 %v2449_v23 }
 0x52b   : > { %2512 = vmatpush1.bf16.msra.mxu0 %v2448_v55 }
 0x52c   : > { %2513 = vmatprep.subr.bf16.mxu0 %v2461_v4 }
 0x52f   : > { %2514 = vmatpush1.bf16.msra.mxu0 %v2460_v53 }
 0x532   : > { %2530 = vmatmul.mubr.bf16.vlgmr.msra.gmra.mrb[4].mxu0 %v6627_v1 }
 0x605   : > { %v2531_v25 = vpop.f32.mrb[4].mxu0 }
 0x606   : > { %v2557_v34 = vadd.f32 %v2550_v56, %v2531_v25  ;;  %v2533_v59 = vpop.f32.mrb[5].mxu0 }
 0x607   : > { %v2535_v29 = vpop.f32.mrb[6].mxu0  ;;  %v2558_v22 = vadd.f32 %v2550_v56, %v2533_v59  ;;  %v6092_v56 = vld [vmem:[%s12780_s3 + $0x140] sm:$0xff] }
 0x608   : > { %v9306_v60 = vmax.f32 %v2557_v34, 0.0  ;;  %v2559_v40 = vadd.f32 %v2555_v24, %v2535_v29  ;;  %v2537_v17 = vpop.f32.mrb[7].mxu0  ;;  %v6093_v34 = vld [vmem:[%s12780_s3 + $0x148] sm:$0xff]  ;;  %v6094_v29 = vld [vmem:[%s12780_s3 + $0x150] sm:$0xff] }
 0x609   : > { %v2560_v13 = vadd.f32 %v2555_v24, %v2537_v17  ;;  %v9372_v49 = vmax.f32 %v2558_v22, 0.0 }
 0x60a   : > { %v9308_v32 = vmax.f32 %v2559_v40, 0.0  ;;  %2802 = vrot.lane.b32.xlu1 %v9306_v60, %s6672_s21  ;;  %v6095_v40 = vld [vmem:[%s12780_s3 + $0x158] sm:$0xff] }
 0x60b   : > { %v9376_v58 = vmax.f32 %v2560_v13, 0.0 }
 0x60c   : > { %2804 = vrot.lane.b32.xlu0 %v9308_v32, %s6672_s21 }
 0x60e   : > { %2826 = vrot.lane.b32.xlu1 %v9306_v60, %s6673_s22 }
 0x610   : > { %2828 = vrot.lane.b32.xlu0 %v9308_v32, %s6673_s22 }
 0x612   : > { %2850 = vrot.lane.b32.xlu1 %v9306_v60, %s12815_s23 }
 0x614   : > { %2852 = vrot.lane.b32.xlu0 %v9308_v32, %s12815_s23 }
 0x616   : > { %2874 = vrot.lane.b32.xlu1 %v9306_v60, %s12813_s24 }
 0x618   : > { %2876 = vrot.lane.b32.xlu0 %v9308_v32, %s12813_s24 }
 0x61a   : > { %2902 = vrot.lane.b32.xlu1 %v9306_v60, %s12811_s25 }
 0x61c   : > { %2904 = vrot.lane.b32.xlu0 %v9308_v32, %s12811_s25 }
 0x61e   : > { %2926 = vrot.lane.b32.xlu1 %v9306_v60, %s12809_s26 }
 0x620   : > { %2928 = vrot.lane.b32.xlu0 %v9308_v32, %s12809_s26 }
 0x622   : > { %2950 = vrot.lane.b32.xlu1 %v9306_v60, %s12807_s27 }
 0x624   : > { %2952 = vrot.lane.b32.xlu0 %v9308_v32, %s12807_s27 }
 0x626   : > { %2974 = vrot.lane.b32.xlu1 %v9306_v60, %s12805_s28 }
 0x628   : > { %2976 = vrot.lane.b32.xlu0 %v9308_v32, %s12805_s28 }
 0x62a   : > { %2565 = vrot.lane.b32.xlu1 %v9306_v60, %s12850_s9 }
 0x62c   : > { %2567 = vrot.lane.b32.xlu0 %v9308_v32, %s12850_s9 }
 0x62e   : > { %2589 = vrot.lane.b32.xlu1 %v9306_v60, %s12851_s30 }
 0x630   : > { %2591 = vrot.lane.b32.xlu0 %v9308_v32, %s12851_s30 }
 0x632   : > { %2613 = vrot.lane.b32.xlu1 %v9306_v60, %s12829_s19 }
 0x634   : > { %2615 = vrot.lane.b32.xlu0 %v9308_v32, %s12829_s19 }
 0x636   : > { %2637 = vrot.lane.b32.xlu1 %v9306_v60, %s12830_s29 }
 0x638   : > { %2639 = vrot.lane.b32.xlu0 %v9308_v32, %s12830_s29 }
 0x63a   : > { %2661 = vrot.lane.b32.xlu1 %v9306_v60, %s12817_s12 }
 0x63c   : > { %2663 = vrot.lane.b32.xlu0 %v9308_v32, %s12817_s12 }
 0x63e   : > { %2685 = vrot.lane.b32.xlu1 %v9306_v60, %s12818_s13 }
 0x640   : > { %2687 = vrot.lane.b32.xlu0 %v9308_v32, %s12818_s13 }
 0x642   : > { %2709 = vrot.lane.b32.xlu1 %v9306_v60, %s12819_s10 }
 0x644   : > { %2711 = vrot.lane.b32.xlu0 %v9308_v32, %s12819_s10 }
 0x646   : > { %2733 = vrot.lane.b32.xlu1 %v9306_v60, %s12820_s11 }
 0x648   : > { %2735 = vrot.lane.b32.xlu0 %v9308_v32, %s12820_s11 }
 0x64a   : > { %2806 = vrot.lane.b32.xlu1 %v9372_v49, %s6672_s21 }
 0x64c   : > { %2808 = vrot.lane.b32.xlu0 %v9376_v58, %s6672_s21 }
 0x64e   : > { %2830 = vrot.lane.b32.xlu1 %v9372_v49, %s6673_s22 }
 0x650   : > { %2832 = vrot.lane.b32.xlu0 %v9376_v58, %s6673_s22 }
 0x652   : > { %2854 = vrot.lane.b32.xlu1 %v9372_v49, %s12815_s23 }
 0x654   : > { %2856 = vrot.lane.b32.xlu0 %v9376_v58, %s12815_s23 }
 0x656   : > { %2878 = vrot.lane.b32.xlu1 %v9372_v49, %s12813_s24 }
 0x658   : > { %2880 = vrot.lane.b32.xlu0 %v9376_v58, %s12813_s24 }
 0x65a   : > { %2757 = vrot.lane.b32.xlu1 %v9306_v60, %s12821_s14 }
 0x65c   : > { %2759 = vrot.lane.b32.xlu0 %v9308_v32, %s12821_s14 }
 0x65e   : > { %2906 = vrot.lane.b32.xlu1 %v9372_v49, %s12811_s25 }
 0x660   : > { %2908 = vrot.lane.b32.xlu0 %v9376_v58, %s12811_s25 }
 0x662   : > { %2930 = vrot.lane.b32.xlu1 %v9372_v49, %s12809_s26 }
 0x664   : > { %2932 = vrot.lane.b32.xlu0 %v9376_v58, %s12809_s26 }
 0x666   : > { %2954 = vrot.lane.b32.xlu1 %v9372_v49, %s12807_s27 }
 0x668   : > { %2956 = vrot.lane.b32.xlu0 %v9376_v58, %s12807_s27 }
 0x66a   : > { %2978 = vrot.lane.b32.xlu1 %v9372_v49, %s12805_s28 }
 0x66c   : > { %2980 = vrot.lane.b32.xlu0 %v9376_v58, %s12805_s28 }
 0x66e   : > { %2569 = vrot.lane.b32.xlu1 %v9372_v49, %s12850_s9 }
 0x670   : > { %2571 = vrot.lane.b32.xlu0 %v9376_v58, %s12850_s9 }
 0x672   : > { %2593 = vrot.lane.b32.xlu1 %v9372_v49, %s12851_s30 }
 0x674   : > { %2595 = vrot.lane.b32.xlu0 %v9376_v58, %s12851_s30 }
 0x676   : > { %2617 = vrot.lane.b32.xlu1 %v9372_v49, %s12829_s19 }
 0x678   : > { %2619 = vrot.lane.b32.xlu0 %v9376_v58, %s12829_s19 }
 0x67a   : > { %2641 = vrot.lane.b32.xlu1 %v9372_v49, %s12830_s29 }
 0x67c   : > { %v2803_v47 = vpop.permute.xlu1 %2802  ;;  %2643 = vrot.lane.b32.xlu0 %v9376_v58, %s12830_s29 }
 0x67e   : > { %2665 = vrot.lane.b32.xlu1 %v9372_v49, %s12817_s12  ;;  %v2805_v48 = vpop.permute.xlu0 %2804 }
 0x680   : > { %v2827_v26 = vpop.permute.xlu1 %2826  ;;  %2667 = vrot.lane.b32.xlu0 %v9376_v58, %s12817_s12 }
 0x682   : > { %2689 = vrot.lane.b32.xlu1 %v9372_v49, %s12818_s13  ;;  %v9440_v61 = vpop.permute.xlu0 %2828 }
 0x684   : > { %v9442_v46 = vpop.permute.xlu1 %2850  ;;  %2691 = vrot.lane.b32.xlu0 %v9376_v58, %s12818_s13 }
 0x686   : > { %2713 = vrot.lane.b32.xlu1 %v9372_v49, %s12819_s10  ;;  %v9448_v54 = vpop.permute.xlu0 %2852 }
 0x688   : > { %v9450_v31 = vpop.permute.xlu1 %2874  ;;  %2715 = vrot.lane.b32.xlu0 %v9376_v58, %s12819_s10 }
 0x68a   : > { %2737 = vrot.lane.b32.xlu1 %v9372_v49, %s12820_s11  ;;  %v9456_v15 = vpop.permute.xlu0 %2876 }
 0x68c   : > { %v9458_v10 = vpop.permute.xlu1 %2902  ;;  %2739 = vrot.lane.b32.xlu0 %v9376_v58, %s12820_s11 }
 0x68e   : > { %2761 = vrot.lane.b32.xlu1 %v9372_v49, %s12821_s14  ;;  %v9464_v9 = vpop.permute.xlu0 %2904 }
 0x690   : > { %v9469_v19 = vpop.permute.xlu1 %2926  ;;  %2763 = vrot.lane.b32.xlu0 %v9376_v58, %s12821_s14 }
 0x692   : > { %3322 = vperm.xlu1 %6600, %v6169_v30   ;;  %v9476_v63 = vpop.permute.xlu0 %2928 }
 0x694   : > { %v9478_v16 = vpop.permute.xlu1 %2950  ;;  %3327 = vperm.xlu0 %6599, %v6170_v14  }
 0x696   : > { %v9480_v20 = vpop.permute.xlu0 %2952 }
 0x698   : > { %v9482_v51 = vpop.permute.xlu1 %2974 }
 0x69a   : > { %v9484_v28 = vpop.permute.xlu0 %2976 }
 0x69c   : > { %v9486_v45 = vpop.permute.xlu1 %2565 }
 0x69e   : > { %v9488_v42 = vpop.permute.xlu0 %2567 }
 0x6a0   : > { %v9490_v36 = vpop.permute.xlu1 %2589 }
 0x6a2   : > { %v9492_v38 = vpop.permute.xlu0 %2591 }
 0x6a4   : > { %v9494_v57 = vpop.permute.xlu1 %2613 }
 0x6a6   : > { %v9496_v43 = vpop.permute.xlu0 %2615 }
 0x6a8   : > { %v9498_v41 = vpop.permute.xlu1 %2637 }
 0x6aa   : > { %v9500_v50 = vpop.permute.xlu0 %2639 }
 0x6ac   : > { %v9502_v37 = vpop.permute.xlu1 %2661 }
 0x6ae   : > { %v9504_v44 = vpop.permute.xlu0 %2663 }
 0x6b0   : > { %v9506_v52 = vpop.permute.xlu1 %2685 }
 0x6b2   : > { %v9508_v8 = vpop.permute.xlu0 %2687 }
 0x6b4   : > { %v9510_v35 = vpop.permute.xlu1 %2709 }
 0x6b6   : > { %v9512_v12 = vpop.permute.xlu0 %2711 }
 0x6b8   : > { %v9514_v39 = vpop.permute.xlu1 %2733 }
 0x6ba   : > { %v9516_v7 = vpop.permute.xlu0 %2735 }
 0x6bc   : > { %v2807_v33 = vpop.permute.xlu1 %2806 }
 0x6bd   : > { %v2810_v11 = vsel %vm466_vm1, %v2803_v47, %v2807_v33  ;;  %v2812_v23 = vsel %vm466_vm1, %v2807_v33, %v2803_v47 }
 0x6be   : > { %v2809_v18 = vpop.permute.xlu0 %2808  ;;  %v2818_v4 = vmul.f32 %v6088_v3, %v2812_v23  ;;  %v2819_v27 = vmul.f32 %v6089_v62, %v2810_v11  ;;  %v6096_v3 = vld [vmem:[%s12780_s3 + $0x160] sm:$0xff]  ;;  %v6097_v62 = vld [vmem:[%s12780_s3 + $0x168] sm:$0xff]  ;;  %v6098_v23 = vld [vmem:[%s12780_s3 + $0x170] sm:$0xff] }
 0x6bf   : > { %v2811_v55 = vsel %vm466_vm1, %v2805_v48, %v2809_v18  ;;  %v2813_v2 = vsel %vm466_vm1, %v2809_v18, %v2805_v48 }
 0x6c0   : > { %v2820_v53 = vmul.f32 %v6090_v21, %v2813_v2  ;;  %v2821_v1 = vmul.f32 %v6091_v5, %v2811_v55  ;;  %v2831_v25 = vpop.permute.xlu1 %2830  ;;  %v6099_v21 = vld [vmem:[%s12780_s3 + $0x178] sm:$0xff] }
 0x6c1   : > { %v2834_v59 = vsel %vm492_vm2, %v2827_v26, %v2831_v25  ;;  %v2836_v24 = vsel %vm492_vm2, %v2831_v25, %v2827_v26 }
 0x6c2   : > { %v2822_v17 = vpack.c.bf16 %v2820_v53, %v2818_v4  ;;  %v2833_v22 = vpop.permute.xlu0 %2832  ;;  %v2823_v13 = vpack.c.bf16 %v2821_v1, %v2819_v27  ;;  %v2842_v48 = vmul.f32 %v6092_v56, %v2836_v24  ;;  %v2843_v26 = vmul.f32 %v6093_v34, %v2834_v59  ;;  %v6100_v56 = vld [vmem:[%s12780_s3 + $0x180] sm:$0xff]  ;;  %v6101_v34 = vld [vmem:[%s12780_s3 + $0x188] sm:$0xff]  ;;  %v6102_v24 = vld [vmem:[%s12780_s3 + $0x190] sm:$0xff] }
 0x6c3   : > { %v2835_v0 = vsel %vm492_vm2, %v9440_v61, %v2833_v22  ;;  %v2837_v47 = vsel %vm492_vm2, %v2833_v22, %v9440_v61 }
 0x6c4   : > { %v2844_v30 = vmul.f32 %v6094_v29, %v2837_v47  ;;  %v2845_v14 = vmul.f32 %v6095_v40, %v2835_v0  ;;  %v2855_v33 = vpop.permute.xlu1 %2854  ;;  %3031 = vmatprep.subr.bf16.mxu1 %v2823_v13  ;;  %v6103_v29 = vld [vmem:[%s12780_s3 + $0x198] sm:$0xff] }
 0x6c5   : > { %v2858_v11 = vsel %vm518_vm3, %v9442_v46, %v2855_v33  ;;  %v2860_v61 = vsel %vm518_vm3, %v2855_v33, %v9442_v46  ;;  %3032 = vmatpush1.bf16.msra.mxu1 %v2822_v17 }
 0x6c6   : > { %v2846_v5 = vpack.c.bf16 %v2844_v30, %v2842_v48  ;;  %v2857_v18 = vpop.permute.xlu0 %2856  ;;  %v2847_v55 = vpack.c.bf16 %v2845_v14, %v2843_v26  ;;  %v2866_v4 = vmul.f32 %v6096_v3, %v2860_v61  ;;  %v2867_v27 = vmul.f32 %v6097_v62, %v2858_v11  ;;  %v6104_v62 = vld [vmem:[%s12780_s3 + $0x1c0] sm:$0xff]  ;;  %v6105_v61 = vld [vmem:[%s12780_s3 + $0x1c8] sm:$0xff] }
 0x6c7   : > { %v2859_v2 = vsel %vm518_vm3, %v9448_v54, %v2857_v18  ;;  %v2861_v46 = vsel %vm518_vm3, %v2857_v18, %v9448_v54 }
 0x6c8   : > { %v2868_v53 = vmul.f32 %v6098_v23, %v2861_v46  ;;  %v2869_v1 = vmul.f32 %v6099_v21, %v2859_v2  ;;  %v2879_v25 = vpop.permute.xlu1 %2878  ;;  %3033 = vmatprep.subr.bf16.mxu1 %v2847_v55 }
 0x6c9   : > { %v2882_v59 = vsel %vm544_vm4, %v9450_v31, %v2879_v25  ;;  %v2884_v54 = vsel %vm544_vm4, %v2879_v25, %v9450_v31  ;;  %3034 = vmatpush1.bf16.msra.mxu1 %v2846_v5  ;;  %v6106_v5 = vld [vmem:[%s12780_s3 + $0x1d0] sm:$0xff]  ;;  %v6111_v25 = vld [vmem:[%s12780_s3 + $0x1f8] sm:$0xff] }
 0x6ca   : > { %v2870_v40 = vpack.c.bf16 %v2868_v53, %v2866_v4  ;;  %v2881_v17 = vpop.permute.xlu0 %2880  ;;  %v2871_v22 = vpack.c.bf16 %v2869_v1, %v2867_v27  ;;  %v2890_v0 = vmul.f32 %v6100_v56, %v2884_v54  ;;  %v2891_v47 = vmul.f32 %v6101_v34, %v2882_v59  ;;  %v6108_v53 = vld [vmem:[%s12780_s3 + $0x1e0] sm:$0xff]  ;;  %v6109_v56 = vld [vmem:[%s12780_s3 + $0x1e8] sm:$0xff] }
 0x6cb   : > { %v2883_v13 = vsel %vm544_vm4, %v9456_v15, %v2881_v17  ;;  %v2885_v31 = vsel %vm544_vm4, %v2881_v17, %v9456_v15  ;;  %v2899_v15 = vpack.c.bf16 %v9376_v58, %v9372_v49  ;;  %v6107_v49 = vld [vmem:[%s12780_s3 + $0x1d8] sm:$0xff] }
 0x6cc   : > { %v2892_v48 = vmul.f32 %v6102_v24, %v2885_v31  ;;  %v2893_v26 = vmul.f32 %v6103_v29, %v2883_v13  ;;  %v9608_v30 = vpop.permute.xlu1 %2757  ;;  %3035 = vmatprep.subr.bf16.mxu1 %v2871_v22  ;;  %v6112_v13 = vld [vmem:[%s12780_s3 + $0x200] sm:$0xff] }
 0x6cd   : > { %3036 = vmatpush1.bf16.msra.mxu1 %v2870_v40 }
 0x6ce   : > { %v2894_v14 = vpack.c.bf16 %v2892_v48, %v2890_v0  ;;  %v9610_v3 = vpop.permute.xlu0 %2759  ;;  %v2895_v33 = vpack.c.bf16 %v2893_v26, %v2891_v47  ;;  %v6113_v0 = vld [vmem:[%s12780_s3 + $0x208] sm:$0xff]  ;;  %v6114_v48 = vld [vmem:[%s12780_s3 + $0x210] sm:$0xff]  ;;  %v6115_v26 = vld [vmem:[%s12780_s3 + $0x218] sm:$0xff] }
 0x6d0   : > { %v2907_v11 = vpop.permute.xlu1 %2906  ;;  %3037 = vmatprep.subr.bf16.mxu1 %v2895_v33 }
 0x6d1   : > { %v2910_v23 = vsel %vm574_vm5, %v9458_v10, %v2907_v11  ;;  %v2912_v21 = vsel %vm574_vm5, %v2907_v11, %v9458_v10  ;;  %3038 = vmatpush1.bf16.msra.mxu1 %v2894_v14  ;;  %v2898_v10 = vpack.c.bf16 %v9308_v32, %v9306_v60  ;;  %v6110_v32 = vld [vmem:[%s12780_s3 + $0x1f0] sm:$0xff] }
 0x6d2   : > { %v2909_v58 = vpop.permute.xlu0 %2908  ;;  %3039 = vmatprep.subr.bf16.mxu1 %v2899_v15  ;;  %v2918_v2 = vmul.f32 %v6104_v62, %v2910_v23  ;;  %v2919_v46 = vmul.f32 %v6105_v61, %v2912_v21 }
 0x6d3   : > { %v2911_v18 = vsel %vm574_vm5, %v9464_v9, %v2909_v58  ;;  %v2913_v55 = vsel %vm574_vm5, %v2909_v58, %v9464_v9 }
 0x6d4   : > { %v2920_v4 = vmul.f32 %v6106_v5, %v2911_v18  ;;  %v2921_v27 = vmul.f32 %v6107_v49, %v2913_v55  ;;  %v2931_v1 = vpop.permute.xlu1 %2930  ;;  %v6116_v49 = vld [vmem:[%s12780_s3 + $0x220] sm:$0xff]  ;;  %v6118_v18 = vld [vmem:[%s12780_s3 + $0x230] sm:$0xff] }
 0x6d5   : > { %v2934_v9 = vsel %vm600_vm6, %v9469_v19, %v2931_v1  ;;  %v2936_v60 = vsel %vm600_vm6, %v2931_v1, %v9469_v19  ;;  %3040 = vmatpush1.bf16.msra.mxu1 %v2898_v10  ;;  %v6117_v10 = vld [vmem:[%s12780_s3 + $0x228] sm:$0xff] }
 0x6d6   : > { %v2922_v34 = vpack.c.bf16 %v2920_v4, %v2918_v2  ;;  %v2933_v59 = vpop.permute.xlu0 %2932  ;;  %v2923_v54 = vpack.c.bf16 %v2921_v27, %v2919_v46  ;;  %v2942_v29 = vmul.f32 %v6108_v53, %v2934_v9  ;;  %v2943_v40 = vmul.f32 %v6109_v56, %v2936_v60 }
 0x6d7   : > { %v2935_v24 = vsel %vm600_vm6, %v9476_v63, %v2933_v59  ;;  %v2937_v19 = vsel %vm600_vm6, %v2933_v59, %v9476_v63 }
 0x6d8   : > { %v2944_v17 = vmul.f32 %v6110_v32, %v2935_v24  ;;  %v2945_v22 = vmul.f32 %v6111_v25, %v2937_v19  ;;  %v2955_v31 = vpop.permute.xlu1 %2954  ;;  %3041 = vmatprep.subr.bf16.mxu1 %v2923_v54 }
 0x6d9   : > { %v2958_v47 = vsel %vm626_vm7, %v9478_v16, %v2955_v31  ;;  %v2960_v63 = vsel %vm626_vm7, %v2955_v31, %v9478_v16  ;;  %3042 = vmatpush1.bf16.msra.mxu1 %v2922_v34  ;;  %v2580_v34 = vld [vmem:[%s12780_s3 + $0x18] sm:$0xff] }
 0x6da   : > { %v2946_v14 = vpack.c.bf16 %v2944_v17, %v2942_v29  ;;  %v2957_v33 = vpop.permute.xlu0 %2956  ;;  %v2947_v62 = vpack.c.bf16 %v2945_v22, %v2943_v40  ;;  %v2966_v15 = vmul.f32 %v6112_v13, %v2958_v47  ;;  %v2967_v61 = vmul.f32 %v6113_v0, %v2960_v63  ;;  %v2578_v40 = vld [vmem:[%s12780_s3 + $0x8] sm:$0xff] }
 0x6db   : > { %v2959_v11 = vsel %vm626_vm7, %v9480_v20, %v2957_v33  ;;  %v2961_v16 = vsel %vm626_vm7, %v2957_v33, %v9480_v20  ;;  %v6119_v20 = vld [vmem:[%s12780_s3 + $0x238] sm:$0xff]  ;;  %v6630_v0 = vld [vmem:[%s12778_s1 + $0xa0] ss:$8 sps:$4 sm:$0xff]  }
 0x6dc   : > { %v2968_v23 = vmul.f32 %v6114_v48, %v2959_v11  ;;  %v2969_v21 = vmul.f32 %v6115_v26, %v2961_v16  ;;  %v2979_v5 = vpop.permute.xlu1 %2978  ;;  %3043 = vmatprep.subr.bf16.mxu1 %v2947_v62  ;;  %v6631_v48 = vld [vmem:[%s12778_s1 + $0x94] ss:$8 sps:$4 sm:$0xff]  }
 0x6dd   : > { %v2982_v58 = vsel %vm652_vm8, %v9482_v51, %v2979_v5  ;;  %3044 = vmatpush1.bf16.msra.mxu1 %v2946_v14  ;;  %v2984_v2 = vsel %vm652_vm8, %v2979_v5, %v9482_v51  ;;  %v2579_v51 = vld [vmem:[%s12780_s3 + $0x10] sm:$0xff]  ;;  %v6054_v14 = vld [vmem:[%s12780_s3 + $0x20] sm:$0xff] }
 0x6de   : > { %v2970_v55 = vpack.c.bf16 %v2968_v23, %v2966_v15  ;;  %v2981_v46 = vpop.permute.xlu0 %2980  ;;  %v2971_v4 = vpack.c.bf16 %v2969_v21, %v2967_v61  ;;  %v2990_v1 = vmul.f32 %v6116_v49, %v2982_v58  ;;  %v2991_v32 = vmul.f32 %v6117_v10, %v2984_v2  ;;  %v6055_v15 = vld [vmem:[%s12780_s3 + $0x28] sm:$0xff] }
 0x6df   : > { %v2983_v27 = vsel %vm652_vm8, %v9484_v28, %v2981_v46  ;;  %v2985_v53 = vsel %vm652_vm8, %v2981_v46, %v9484_v28  ;;  %v2577_v28 = vld [vmem:[%s12780_s3] sm:$0xff] }
 0x6e0   : > { %v2992_v56 = vmul.f32 %v6118_v18, %v2983_v27  ;;  %v2993_v9 = vmul.f32 %v6119_v20, %v2985_v53  ;;  %v2570_v60 = vpop.permute.xlu1 %2569  ;;  %3045 = vmatprep.subr.bf16.mxu1 %v2971_v4  ;;  %v6061_v18 = vld [vmem:[%s12780_s3 + $0x58] sm:$0xff]  ;;  %v6059_v27 = vld [vmem:[%s12780_s3 + $0x48] sm:$0xff] }
 0x6e1   : > { %3046 = vmatpush1.bf16.msra.mxu1 %v2970_v55  ;;  %v9724_v54 = vsel %vm213_vm9, %v2570_v60, %v9486_v45  ;;  %v9742_v17 = vsel %vm213_vm9, %v9486_v45, %v2570_v60  ;;  %v6057_v45 = vld [vmem:[%s12780_s3 + $0x38] sm:$0xff]  ;;  %v6058_v55 = vld [vmem:[%s12780_s3 + $0x40] sm:$0xff] }
 0x6e2   : > { %v2994_v25 = vpack.c.bf16 %v2992_v56, %v2990_v1  ;;  %v2572_v59 = vpop.permute.xlu0 %2571  ;;  %v2995_v29 = vpack.c.bf16 %v2993_v9, %v2991_v32  ;;  %v2581_v47 = vmul.f32 %v2577_v28, %v9724_v54  ;;  %v2582_v26 = vmul.f32 %v2578_v40, %v9742_v17 }
 0x6e3   : > { %v9729_v24 = vsel %vm213_vm9, %v9488_v42, %v2572_v59  ;;  %v9734_v19 = vsel %vm213_vm9, %v2572_v59, %v9488_v42  ;;  %v6056_v42 = vld [vmem:[%s12780_s3 + $0x30] sm:$0xff] }
 0x6e4   : > { %v2583_v22 = vmul.f32 %v2579_v51, %v9734_v19  ;;  %v2594_v13 = vpop.permute.xlu1 %2593  ;;  %v2584_v31 = vmul.f32 %v2580_v34, %v9729_v24  ;;  %3047 = vmatprep.subr.bf16.mxu1 %v2995_v29  ;;  %v6065_v51 = vld [vmem:[%s12780_s3 + $0x78] sm:$0xff]  ;;  %v6062_v34 = vld [vmem:[%s12780_s3 + $0x60] sm:$0xff] }
 0x6e5   : > { %3048 = vmatpush1.bf16.msra.mxu1 %v2994_v25  ;;  %v9766_v33 = vsel %vm238_vm10, %v2594_v13, %v9490_v36  ;;  %v9784_v61 = vsel %vm238_vm10, %v9490_v36, %v2594_v13 }
 0x6e6   : > { %v2596_v63 = vpop.permute.xlu0 %2595  ;;  %v2585_v16 = vpack.c.bf16 %v2583_v22, %v2581_v47  ;;  %v2586_v49 = vpack.c.bf16 %v2584_v31, %v2582_v26  ;;  %v2605_v58 = vmul.f32 %v6054_v14, %v9766_v33  ;;  %v2606_v36 = vmul.f32 %v6055_v15, %v9784_v61  ;;  %v6063_v22 = vld [vmem:[%s12780_s3 + $0x68] sm:$0xff]  ;;  %v6066_v26 = vld [vmem:[%s12780_s3 + $0x80] sm:$0xff] }
 0x6e7   : > { %v9771_v62 = vsel %vm238_vm10, %v9492_v38, %v2596_v63  ;;  %v9776_v11 = vsel %vm238_vm10, %v2596_v63, %v9492_v38  ;;  %v6060_v38 = vld [vmem:[%s12780_s3 + $0x50] sm:$0xff]  ;;  %v6069_v63 = vld [vmem:[%s12780_s3 + $0x98] sm:$0xff] }
 0x6e8   : > { %v2607_v23 = vmul.f32 %v6056_v42, %v9776_v11  ;;  %v2618_v21 = vpop.permute.xlu1 %2617  ;;  %v2608_v5 = vmul.f32 %v6057_v45, %v9771_v62  ;;  %3064 = vmatmul.mubr.bf16.vlgmr.msra.gmra.mrb[4].mxu1 %v6630_v0  ;;  %3086 = vmatprep.subr.bf16.mxu1 %v2586_v49 }
 0x6e9   : > { %6127 = vmatprep.mubr.msk.bf16.mxu1 %vm700_vm0, %v6631_v48  ;;  %v9803_v10 = vsel %vm12852_vm11, %v2618_v21, %v9494_v57  ;;  %v9821_v53 = vsel %vm12852_vm11, %v9494_v57, %v2618_v21  ;;  %3087 = vmatpush1.bf16.msra.mxu1 %v2585_v16  ;;  %v6067_v21 = vld [vmem:[%s12780_s3 + $0x88] sm:$0xff] }
 0x6ea   : > { %v2620_v20 = vpop.permute.xlu0 %2619  ;;  %v2609_v4 = vpack.c.bf16 %v2607_v23, %v2605_v58  ;;  %v2610_v60 = vpack.c.bf16 %v2608_v5, %v2606_v36  ;;  %v2629_v32 = vmul.f32 %v6058_v55, %v9803_v10  ;;  %v2630_v57 = vmul.f32 %v6059_v27, %v9821_v53  ;;  %v6073_v36 = vld [vmem:[%s12780_s3 + $0xb8] sm:$0xff] }
 0x6eb   : > { %v9808_v2 = vsel %vm12853_vm12, %v9496_v43, %v2620_v20  ;;  %v9813_v46 = vsel %vm12854_vm13, %v2620_v20, %v9496_v43  ;;  %v6064_v43 = vld [vmem:[%s12780_s3 + $0x70] sm:$0xff]  ;;  %vm12855_vm12 = vcmp.lt.s32.totalorder %v6859_v6, 65 }
 0x6ec   : > { %v2631_v1 = vmul.f32 %v6060_v38, %v9813_v46  ;;  %v2642_v56 = vpop.permute.xlu1 %2641  ;;  %v2632_v9 = vmul.f32 %v6061_v18, %v9808_v2  ;;  %3088 = vmatprep.subr.bf16.mxu1 %v2610_v60  ;;  %vm12856_vm13 = vmmov %vm12855_vm12  ;;  %v6071_v60 = vld [vmem:[%s12780_s3 + $0xa8] sm:$0xff] }
 0x6ed   : > { %v9839_v59 = vsel %vm12855_vm12, %v2642_v56, %v9498_v41  ;;  %vm12857_vm11 = vmmov %vm12855_vm12  ;;  %3089 = vmatpush1.bf16.msra.mxu1 %v2609_v4  ;;  %v6070_v4 = vld [vmem:[%s12780_s3 + $0xa0] sm:$0xff] }
 0x6ee   : > { %v2644_v25 = vpop.permute.xlu0 %2643  ;;  %v2633_v40 = vpack.c.bf16 %v2631_v1, %v2629_v32  ;;  %vm12858_vm12 = vmmov %vm12857_vm11  ;;  %v2634_v47 = vpack.c.bf16 %v2632_v9, %v2630_v57  ;;  %v2653_v45 = vmul.f32 %v6062_v34, %v9839_v59 }
 0x6ef   : > { %v9844_v28 = vsel %vm12856_vm13, %v9500_v50, %v2644_v25  ;;  %v9849_v29 = vsel %vm12857_vm11, %v2644_v25, %v9500_v50  ;;  %v9857_v13 = vsel %vm12858_vm12, %v9498_v41, %v2642_v56  ;;  %v6068_v50 = vld [vmem:[%s12780_s3 + $0x90] sm:$0xff]  ;;  %vm12859_vm13 = vcmp.lt.s32.totalorder %v6859_v6, 64 }
 0x6f0   : > { %v2655_v31 = vmul.f32 %v6064_v43, %v9849_v29  ;;  %v2666_v42 = vpop.permute.xlu1 %2665  ;;  %v2656_v0 = vmul.f32 %v6065_v51, %v9844_v28  ;;  %v2654_v41 = vmul.f32 %v6063_v22, %v9857_v13  ;;  %3090 = vmatprep.subr.bf16.mxu1 %v2634_v47  ;;  %vm12860_vm11 = vmmov %vm12859_vm13 }
 0x6f1   : > { %v9875_v14 = vsel %vm12859_vm13, %v2666_v42, %v9502_v37  ;;  %vm12861_vm12 = vmmov %vm12860_vm11  ;;  %3091 = vmatpush1.bf16.msra.mxu1 %v2633_v40  ;;  %v6077_v40 = vld [vmem:[%s12780_s3 + $0xd8] sm:$0xff] }
 0x6f2   : > { %v2668_v48 = vpop.permute.xlu0 %2667  ;;  %v2657_v23 = vpack.c.bf16 %v2655_v31, %v2653_v45  ;;  %vm12862_vm13 = vmmov %vm12860_vm11  ;;  %v2658_v18 = vpack.c.bf16 %v2656_v0, %v2654_v41  ;;  %v2677_v20 = vmul.f32 %v6066_v26, %v9875_v14  ;;  %v6074_v31 = vld [vmem:[%s12780_s3 + $0xc0] sm:$0xff]  ;;  %v6075_v45 = vld [vmem:[%s12780_s3 + $0xc8] sm:$0xff] }
 0x6f3   : > { %v9880_v16 = vsel %vm12860_vm11, %v9504_v44, %v2668_v48  ;;  %v9885_v15 = vsel %vm12861_vm12, %v2668_v48, %v9504_v44  ;;  %v9893_v5 = vsel %vm12862_vm13, %v9502_v37, %v2666_v42  ;;  %v6072_v44 = vld [vmem:[%s12780_s3 + $0xb0] sm:$0xff]  ;;  %vm12863_vm11 = vcmp.lt.s32.totalorder %v6859_v6, 63 }
 0x6f4   : > { %v2679_v49 = vmul.f32 %v6068_v50, %v9885_v15  ;;  %v2690_v38 = vpop.permute.xlu1 %2689  ;;  %v2680_v58 = vmul.f32 %v6069_v63, %v9880_v16  ;;  %v2678_v37 = vmul.f32 %v6067_v21, %v9893_v5  ;;  %3092 = vmatprep.subr.bf16.mxu1 %v2658_v18  ;;  %vm12864_vm12 = vmmov %vm12863_vm11 }
 0x6f5   : > { %v9911_v27 = vsel %vm12863_vm11, %v2690_v38, %v9506_v52  ;;  %vm12865_vm13 = vmmov %vm12863_vm11  ;;  %v9929_v43 = vsel %vm12863_vm11, %v9506_v52, %v2690_v38  ;;  %3093 = vmatpush1.bf16.msra.mxu1 %v2657_v23 }
 0x6f6   : > { %v2692_v55 = vpop.permute.xlu0 %2691  ;;  %v2681_v9 = vpack.c.bf16 %v2679_v49, %v2677_v20  ;;  %v2682_v57 = vpack.c.bf16 %v2680_v58, %v2678_v37  ;;  %v2701_v34 = vmul.f32 %v6070_v4, %v9911_v27  ;;  %v2702_v52 = vmul.f32 %v6071_v60, %v9929_v43  ;;  %v6081_v49 = vld [vmem:[%s12780_s3 + $0xf8] sm:$0xff]  ;;  %v6078_v58 = vld [vmem:[%s12780_s3 + $0xe0] sm:$0xff] }
 0x6f7   : > { %v9916_v1 = vsel %vm12864_vm12, %v9508_v8, %v2692_v55  ;;  %v9921_v56 = vsel %vm12865_vm13, %v2692_v55, %v9508_v8  ;;  %v6076_v8 = vld [vmem:[%s12780_s3 + $0xd0] sm:$0xff]  ;;  %vm12866_vm12 = vcmp.lt.s32.totalorder %v6859_v6, 57  ;;  %v6079_v55 = vld [vmem:[%s12780_s3 + $0xe8] sm:$0xff] }
 0x6f8   : > { %v2703_v32 = vmul.f32 %v6072_v44, %v9921_v56  ;;  %v2714_v51 = vpop.permute.xlu1 %2713  ;;  %v2704_v25 = vmul.f32 %v6073_v36, %v9916_v1  ;;  %3094 = vmatprep.subr.bf16.mxu1 %v2682_v57  ;;  %vm12867_vm13 = vmmov %vm12866_vm12 }
 0x6f9   : > { %v9947_v42 = vsel %vm12866_vm12, %v2714_v51, %v9510_v35  ;;  %vm12868_vm11 = vmmov %vm12866_vm12  ;;  %3095 = vmatpush1.bf16.msra.mxu1 %v2681_v9 }
 0x6fa   : > { %v2716_v22 = vpop.permute.xlu0 %2715  ;;  %v2705_v50 = vpack.c.bf16 %v2703_v32, %v2701_v34  ;;  %vm12869_vm12 = vmmov %vm12868_vm11  ;;  %v2706_v23 = vpack.c.bf16 %v2704_v25, %v2702_v52  ;;  %v2725_v21 = vmul.f32 %v6074_v31, %v9947_v42  ;;  %v6085_v25 = vld [vmem:[%s12780_s3 + $0x118] sm:$0xff] }
 0x6fb   : > { %v9952_v0 = vsel %vm12867_vm13, %v9512_v12, %v2716_v22  ;;  %v9957_v47 = vsel %vm12868_vm11, %v2716_v22, %v9512_v12  ;;  %v9965_v63 = vsel %vm12869_vm12, %v9510_v35, %v2714_v51  ;;  %v6080_v12 = vld [vmem:[%s12780_s3 + $0xf0] sm:$0xff]  ;;  %vm12872_vm13 = vcmp.lt.s32.totalorder %v6859_v6, 71 }
 0x6fc   : > { %v2727_v48 = vmul.f32 %v6076_v8, %v9957_v47  ;;  %v2738_v41 = vpop.permute.xlu1 %2737  ;;  %v2728_v26 = vmul.f32 %v6077_v40, %v9952_v0  ;;  %v2726_v35 = vmul.f32 %v6075_v45, %v9965_v63  ;;  %3096 = vmatprep.subr.bf16.mxu1 %v2706_v23  ;;  %v6082_v40 = vld [vmem:[%s12780_s3 + $0x100] sm:$0xff]  ;;  %v6129_v23 = vld [vmem:[%s12780_s3 + $0x248] sm:$0xff]  ;;  %vm12873_vm11 = vmmov %vm12872_vm13 }
 0x6fd   : > { %v9983_v18 = vsel %vm394_vm14, %v2738_v41, %v9514_v39  ;;  %v10001_v37 = vsel %vm394_vm14, %v9514_v39, %v2738_v41  ;;  %3097 = vmatpush1.bf16.msra.mxu1 %v2705_v50  ;;  %v6084_v39 = vld [vmem:[%s12780_s3 + $0x110] sm:$0xff]  ;;  %v6131_v50 = vld [vmem:[%s12780_s3 + $0x258] sm:$0xff]  ;;  %vm12874_vm12 = vmmov %vm12873_vm11 }
 0x6fe   : > { %v2740_v38 = vpop.permute.xlu0 %2739  ;;  %v2729_v36 = vpack.c.bf16 %v2727_v48, %v2725_v21  ;;  %v2730_v51 = vpack.c.bf16 %v2728_v26, %v2726_v35  ;;  %v2749_v57 = vmul.f32 %v6078_v58, %v9983_v18  ;;  %v2750_v34 = vmul.f32 %v6079_v55, %v10001_v37  ;;  %v6130_v21 = vld [vmem:[%s12780_s3 + $0x250] sm:$0xff]  ;;  %v6128_v58 = vld [vmem:[%s12780_s3 + $0x240] sm:$0xff] }
 0x6ff   : > { %v9988_v44 = vsel %vm394_vm14, %v9516_v7, %v2740_v38  ;;  %v9993_v20 = vsel %vm394_vm14, %v2740_v38, %v9516_v7  ;;  %v6083_v7 = vld [vmem:[%s12780_s3 + $0x108] sm:$0xff]  ;;  %v6135_v38 = vld [vmem:[%s12780_s3 + $0x278] sm:$0xff]  ;;  %v3135_v55 = vmul.f32 %v6130_v21, %v9729_v24 }
 0x700   : > { %v2751_v4 = vmul.f32 %v6080_v12, %v9993_v20  ;;  %v2762_v9 = vpop.permute.xlu1 %2761  ;;  %v2752_v60 = vmul.f32 %v6081_v49, %v9988_v44  ;;  %3098 = vmatprep.subr.bf16.mxu1 %v2730_v51  ;;  %v3136_v49 = vmul.f32 %v6131_v50, %v9734_v19  ;;  %v6133_v19 = vld [vmem:[%s12780_s3 + $0x268] sm:$0xff]  ;;  %v6139_v24 = vld [vmem:[%s12780_s3 + $0x298] sm:$0xff] }
 0x701   : > { %v10011_v32 = vsel %vm420_vm15, %v9608_v30, %v2762_v9  ;;  %v10027_v22 = vsel %vm420_vm15, %v2762_v9, %v9608_v30  ;;  %3099 = vmatpush1.bf16.msra.mxu1 %v2729_v36  ;;  %v3134_v36 = vmul.f32 %v6129_v23, %v9724_v54  ;;  %v3148_v9 = vmul.f32 %v6135_v38, %v9776_v11  ;;  %v6634_v51 = vld [vmem:[%s12778_s1 + $0xb4] ss:$8 sps:$4 sm:$0xff]   ;;  %v6132_v11 = vld [vmem:[%s12780_s3 + $0x260] sm:$0xff] }
 0x702   : > { %v2764_v8 = vpop.permute.xlu0 %2763  ;;  %v2753_v45 = vpack.c.bf16 %v2751_v4, %v2749_v57  ;;  %v2774_v48 = vmul.f32 %v6083_v7, %v10011_v32  ;;  %v2754_v26 = vpack.c.bf16 %v2752_v60, %v2750_v34  ;;  %v6134_v4 = vld [vmem:[%s12780_s3 + $0x270] sm:$0xff]  ;;  %v3133_v54 = vmul.f32 %v6128_v58, %v9742_v17  ;;  %v6137_v17 = vld [vmem:[%s12780_s3 + $0x288] sm:$0xff] }
 0x703   : > { %v10032_v52 = vsel %vm420_vm15, %v9610_v3, %v2764_v8  ;;  %v10037_v31 = vsel %vm420_vm15, %v2764_v8, %v9610_v3  ;;  %v2773_v3 = vmul.f32 %v6082_v40, %v10027_v22  ;;  %v3138_v60 = vpack.c.bf16 %v3136_v49, %v3134_v36  ;;  %v6633_v7 = vld [vmem:[%s12778_s1 + $0x90] ss:$8 sps:$4 sm:$0xff]  }
 0x704   : > { %v2775_v30 = vmul.f32 %v6084_v39, %v10037_v31  ;;  %v2776_v41 = vmul.f32 %v6085_v25, %v10032_v52  ;;  %3100 = vmatprep.subr.bf16.mxu1 %v2754_v26  ;;  %v3146_v39 = vmul.f32 %v6133_v19, %v9766_v33  ;;  %v3137_v25 = vpack.c.bf16 %v3135_v55, %v3133_v54  ;;  %v6138_v8 = vld [vmem:[%s12780_s3 + $0x290] sm:$0xff]  ;;  %v6143_v33 = vld [vmem:[%s12780_s3 + $0x2b8] sm:$0xff] }
 0x705   : > { %3101 = vmatpush1.bf16.msra.mxu1 %v2753_v45  ;;  %v3147_v57 = vmul.f32 %v6134_v4, %v9771_v62  ;;  %v3160_v34 = vmul.f32 %v6139_v24, %v9813_v46  ;;  %v3145_v50 = vmul.f32 %v6132_v11, %v9784_v61  ;;  %v6136_v62 = vld [vmem:[%s12780_s3 + $0x280] sm:$0xff]  ;;  %v3158_v45 = vmul.f32 %v6137_v17, %v9803_v10  ;;  %v6141_v61 = vld [vmem:[%s12780_s3 + $0x2a8] sm:$0xff]  ;;  %v6147_v10 = vld [vmem:[%s12780_s3 + $0x2d8] sm:$0xff] }
 0x706   : > { %v2778_v12 = vpack.c.bf16 %v2776_v41, %v2774_v48  ;;  %v2777_v35 = vpack.c.bf16 %v2775_v30, %v2773_v3  ;;  %v3150_v40 = vpack.c.bf16 %v3148_v9, %v3146_v39  ;;  %v3159_v46 = vmul.f32 %v6138_v8, %v9808_v2  ;;  %v6142_v30 = vld [vmem:[%s12780_s3 + $0x2b0] sm:$0xff]  ;;  %v6140_v2 = vld [vmem:[%s12780_s3 + $0x2a0] sm:$0xff] }
 0x707   : > { %v3149_v48 = vpack.c.bf16 %v3147_v57, %v3145_v50  ;;  %v3172_v41 = vmul.f32 %v6143_v33, %v9849_v29  ;;  %v3162_v26 = vpack.c.bf16 %v3160_v34, %v3158_v45  ;;  %v3157_v23 = vmul.f32 %v6136_v62, %v9821_v53  ;;  %v6145_v29 = vld [vmem:[%s12780_s3 + $0x2c8] sm:$0xff]  ;;  %v6146_v53 = vld [vmem:[%s12780_s3 + $0x2d0] sm:$0xff] }
 0x708   : > { %3102 = vmatprep.subr.bf16.mxu1 %v2778_v12  ;;  %v3170_v3 = vmul.f32 %v6141_v61, %v9839_v59  ;;  %v3171_v21 = vmul.f32 %v6142_v30, %v9844_v28  ;;  %v3184_v49 = vmul.f32 %v6147_v10, %v9885_v15  ;;  %v6151_v59 = vld [vmem:[%s12780_s3 + $0x2f8] sm:$0xff]  ;;  %v6144_v28 = vld [vmem:[%s12780_s3 + $0x2c0] sm:$0xff]  ;;  %v3182_v58 = vmul.f32 %v6145_v29, %v9875_v14  ;;  %v6149_v15 = vld [vmem:[%s12780_s3 + $0x2e8] sm:$0xff] }
 0x709   : > { %3103 = vmatpush1.bf16.msra.mxu1 %v2777_v35  ;;  %v3161_v12 = vpack.c.bf16 %v3159_v46, %v3157_v23  ;;  %v3169_v35 = vmul.f32 %v6140_v2, %v9857_v13  ;;  %v3183_v55 = vmul.f32 %v6146_v53, %v9880_v16  ;;  %v6150_v13 = vld [vmem:[%s12780_s3 + $0x2f0] sm:$0xff]  ;;  %v3196_v19 = vmul.f32 %v6151_v59, %v9921_v56  ;;  %v6155_v14 = vld [vmem:[%s12780_s3 + $0x318] sm:$0xff]  ;;  %v6148_v16 = vld [vmem:[%s12780_s3 + $0x2e0] sm:$0xff] }
 0x70a   : > { %3270 = vmatprep.subr.bf16.mxu1 %v3138_v60  ;;  %v3174_v38 = vpack.c.bf16 %v3172_v41, %v3170_v3  ;;  %v3186_v4 = vpack.c.bf16 %v3184_v49, %v3182_v58  ;;  %v3181_v9 = vmul.f32 %v6144_v28, %v9893_v5  ;;  %v3194_v60 = vmul.f32 %v6149_v15, %v9911_v27  ;;  %v6153_v56 = vld [vmem:[%s12780_s3 + $0x308] sm:$0xff]  ;;  %v6154_v5 = vld [vmem:[%s12780_s3 + $0x310] sm:$0xff]  ;;  %v6159_v27 = vld [vmem:[%s12780_s3 + $0x338] sm:$0xff] }
 0x70b   : > { %v3173_v36 = vpack.c.bf16 %v3171_v21, %v3169_v35  ;;  %v3195_v54 = vmul.f32 %v6150_v13, %v9916_v1  ;;  %v3208_v24 = vmul.f32 %v6155_v14, %v9957_v47  ;;  %v3193_v11 = vmul.f32 %v6148_v16, %v9929_v43  ;;  %v6152_v1 = vld [vmem:[%s12780_s3 + $0x300] sm:$0xff]  ;;  %v6157_v47 = vld [vmem:[%s12780_s3 + $0x328] sm:$0xff]  ;;  %v6158_v43 = vld [vmem:[%s12780_s3 + $0x330] sm:$0xff] }
 0x70c   : > { %3119 = vmatmul.mubr.bf16.vlgmr.msra.gmra.mrb[4].mxu1 %v6633_v7  ;;  %v3185_v7 = vpack.c.bf16 %v3183_v55, %v3181_v9  ;;  %v3206_v39 = vmul.f32 %v6153_v56, %v9947_v42  ;;  %v3207_v57 = vmul.f32 %v6154_v5, %v9952_v0  ;;  %v3220_v17 = vmul.f32 %v6159_v27, %v9993_v20  ;;  %v6163_v42 = vld [vmem:[%s12780_s3 + $0x358] sm:$0xff]  ;;  %v6156_v0 = vld [vmem:[%s12780_s3 + $0x320] sm:$0xff]  ;;  %v6161_v20 = vld [vmem:[%s12780_s3 + $0x348] sm:$0xff] }
 0x70d   : > { %3271 = vmatpush1.bf16.msra.mxu1 %v3137_v25  ;;  %6168 = vmatprep.mubr.msk.bf16.mxu1 %vm700_vm0, %v6634_v51  ;;  %v3198_v51 = vpack.c.bf16 %v3196_v19, %v3194_v60  ;;  %v3197_v25 = vpack.c.bf16 %v3195_v54, %v3193_v11  ;;  %v3205_v34 = vmul.f32 %v6152_v1, %v9965_v63  ;;  %v6162_v63 = vld [vmem:[%s12780_s3 + $0x350] sm:$0xff]  ;;  %v6286_v14 = vld [vmem:[%s12779_s2 + $0x40] sm:$0xff]  ;;  %v6287_v60 = vld [vmem:[%s12779_s2 + $0x48] sm:$0xff] }
 0x70e   : > { %3272 = vmatprep.subr.bf16.mxu1 %v3150_v40  ;;  %v3210_v8 = vpack.c.bf16 %v3208_v24, %v3206_v39  ;;  %v3218_v40 = vmul.f32 %v6157_v47, %v9983_v18  ;;  %v3219_v33 = vmul.f32 %v6158_v43, %v9988_v44  ;;  %v3232_v62 = vmul.f32 %v6163_v42, %v10037_v31  ;;  %v6160_v18 = vld [vmem:[%s12780_s3 + $0x340] sm:$0xff]  ;;  %v6637_v35 = vld [vmem:[%s12778_s1 + $0xd4] ss:$8 sps:$4 sm:$0xff]  }
 0x70f   : > { %v3209_v50 = vpack.c.bf16 %v3207_v57, %v3205_v34  ;;  %v3230_v44 = vmul.f32 %v6161_v20, %v10027_v22  ;;  %v3231_v61 = vmul.f32 %v6162_v63, %v10032_v52  ;;  %v3229_v41 = vmul.f32 %v6160_v18, %v10011_v32  ;;  %6241 = vmatprep.mubr.msk.bf16.mxu0 %vm700_vm0, %v6637_v35  ;;  %v6206_v63 = vld [vmem:[%s12780_s3 + $0x128] sm:$0xff]  ;;  %v6208_v18 = vld [vmem:[%s12780_s3 + $0x138] sm:$0xff] }
 0x710   : > { %v3222_v45 = vpack.c.bf16 %v3220_v17, %v3218_v40 }
 0x711   : > { %3273 = vmatpush1.bf16.msra.mxu1 %v3149_v48  ;;  %v3217_v48 = vmul.f32 %v6156_v0, %v10001_v37  ;;  %v3234_v30 = vpack.c.bf16 %v3232_v62, %v3230_v44  ;;  %v3233_v31 = vpack.c.bf16 %v3231_v61, %v3229_v41  ;;  %v6636_v37 = vld [vmem:[%s12778_s1 + $0xb0] ss:$8 sps:$4 sm:$0xff]  }
 0x712   : > { %3274 = vmatprep.subr.bf16.mxu1 %v3162_v26  ;;  %v3323_v26 = vpop.permute.xlu1 %3322 }
 0x713   : > { %v3221_v46 = vpack.c.bf16 %v3219_v33, %v3217_v48  ;;  %v3328_v2 = vpop.permute.xlu0 %3327  ;;  %v6205_v33 = vld [vmem:[%s12780_s3 + $0x120] sm:$0xff]  ;;  %v6207_v48 = vld [vmem:[%s12780_s3 + $0x130] sm:$0xff] }
 0x715   : > { %3275 = vmatpush1.bf16.msra.mxu1 %v3161_v12 }
 0x716   : > { %3276 = vmatprep.subr.bf16.mxu1 %v3174_v38 }
 0x719   : > { %3277 = vmatpush1.bf16.msra.mxu1 %v3173_v36 }
 0x71a   : > { %3278 = vmatprep.subr.bf16.mxu1 %v3186_v4 }
 0x71d   : > { %3279 = vmatpush1.bf16.msra.mxu1 %v3185_v7 }
 0x71e   : > { %3280 = vmatprep.subr.bf16.mxu1 %v3198_v51 }
 0x721   : > { %3281 = vmatpush1.bf16.msra.mxu1 %v3197_v25 }
 0x722   : > { %3282 = vmatprep.subr.bf16.mxu1 %v3210_v8 }
 0x725   : > { %3283 = vmatpush1.bf16.msra.mxu1 %v3209_v50 }
 0x726   : > { %3284 = vmatprep.subr.bf16.mxu1 %v3222_v45 }
 0x729   : > { %3285 = vmatpush1.bf16.msra.mxu1 %v3221_v46 }
 0x72a   : > { %3286 = vmatprep.subr.bf16.mxu1 %v3234_v30 }
 0x72d   : > { %3287 = vmatpush1.bf16.msra.mxu1 %v3233_v31 }
 0x730   : > { %3303 = vmatmul.mubr.bf16.vlgmr.msra.gmra.mrb[4].mxu1 %v6636_v37 }
 0x803   : > { %v3304_v23 = vpop.f32.mrb[4].mxu1 }
 0x804   : > { %v3330_v10 = vadd.f32 %v3323_v26, %v3304_v23  ;;  %v3306_v22 = vpop.f32.mrb[5].mxu1 }
 0x805   : > { %v3308_v3 = vpop.f32.mrb[6].mxu1  ;;  %v3331_v29 = vadd.f32 %v3323_v26, %v3306_v22  ;;  %v6209_v26 = vld [vmem:[%s12780_s3 + $0x140] sm:$0xff] }
 0x806   : > { %v10197_v12 = vmax.f32 %v3330_v10, 0.0  ;;  %v3332_v52 = vadd.f32 %v3328_v2, %v3308_v3  ;;  %v3310_v21 = vpop.f32.mrb[7].mxu1  ;;  %v6210_v10 = vld [vmem:[%s12780_s3 + $0x148] sm:$0xff]  ;;  %v6211_v3 = vld [vmem:[%s12780_s3 + $0x150] sm:$0xff] }
 0x807   : > { %v3333_v53 = vadd.f32 %v3328_v2, %v3310_v21  ;;  %v10263_v49 = vmax.f32 %v3331_v29, 0.0 }
 0x808   : > { %v10199_v32 = vmax.f32 %v3332_v52, 0.0  ;;  %3575 = vrot.lane.b32.xlu1 %v10197_v12, %s6672_s21  ;;  %v6212_v52 = vld [vmem:[%s12780_s3 + $0x158] sm:$0xff] }
 0x809   : > { %v10267_v38 = vmax.f32 %v3333_v53, 0.0 }
 0x80a   : > { %3577 = vrot.lane.b32.xlu0 %v10199_v32, %s6672_s21 }
 0x80c   : > { %3599 = vrot.lane.b32.xlu1 %v10197_v12, %s6673_s22 }
 0x80e   : > { %3601 = vrot.lane.b32.xlu0 %v10199_v32, %s6673_s22 }
 0x810   : > { %3623 = vrot.lane.b32.xlu1 %v10197_v12, %s12815_s23 }
 0x812   : > { %3625 = vrot.lane.b32.xlu0 %v10199_v32, %s12815_s23 }
 0x814   : > { %3647 = vrot.lane.b32.xlu1 %v10197_v12, %s12813_s24 }
 0x816   : > { %3649 = vrot.lane.b32.xlu0 %v10199_v32, %s12813_s24 }
 0x818   : > { %3675 = vrot.lane.b32.xlu1 %v10197_v12, %s12811_s25 }
 0x81a   : > { %3677 = vrot.lane.b32.xlu0 %v10199_v32, %s12811_s25 }
 0x81c   : > { %3699 = vrot.lane.b32.xlu1 %v10197_v12, %s12809_s26 }
 0x81e   : > { %3701 = vrot.lane.b32.xlu0 %v10199_v32, %s12809_s26 }
 0x820   : > { %3723 = vrot.lane.b32.xlu1 %v10197_v12, %s12870_s17 }
 0x822   : > { %3725 = vrot.lane.b32.xlu0 %v10199_v32, %s12870_s17 }
 0x824   : > { %3747 = vrot.lane.b32.xlu1 %v10197_v12, %s12871_s18 }
 0x826   : > { %3749 = vrot.lane.b32.xlu0 %v10199_v32, %s12871_s18 }
 0x828   : > { %3338 = vrot.lane.b32.xlu1 %v10197_v12, %s12850_s9 }
 0x82a   : > { %3340 = vrot.lane.b32.xlu0 %v10199_v32, %s12850_s9 }
 0x82c   : > { %3362 = vrot.lane.b32.xlu1 %v10197_v12, %s12851_s30 }
 0x82e   : > { %3364 = vrot.lane.b32.xlu0 %v10199_v32, %s12851_s30 }
 0x830   : > { %3386 = vrot.lane.b32.xlu1 %v10197_v12, %s12829_s19 }
 0x832   : > { %3388 = vrot.lane.b32.xlu0 %v10199_v32, %s12829_s19 }
 0x834   : > { %3410 = vrot.lane.b32.xlu1 %v10197_v12, %s12830_s29 }
 0x836   : > { %3412 = vrot.lane.b32.xlu0 %v10199_v32, %s12830_s29 }
 0x838   : > { %3434 = vrot.lane.b32.xlu1 %v10197_v12, %s12817_s12 }
 0x83a   : > { %3436 = vrot.lane.b32.xlu0 %v10199_v32, %s12817_s12 }
 0x83c   : > { %3458 = vrot.lane.b32.xlu1 %v10197_v12, %s12818_s13 }
 0x83e   : > { %3460 = vrot.lane.b32.xlu0 %v10199_v32, %s12818_s13 }
 0x840   : > { %3482 = vrot.lane.b32.xlu1 %v10197_v12, %s12819_s10 }
 0x842   : > { %3484 = vrot.lane.b32.xlu0 %v10199_v32, %s12819_s10 }
 0x844   : > { %3506 = vrot.lane.b32.xlu1 %v10197_v12, %s12820_s11 }
 0x846   : > { %3508 = vrot.lane.b32.xlu0 %v10199_v32, %s12820_s11 }
 0x848   : > { %3579 = vrot.lane.b32.xlu1 %v10263_v49, %s6672_s21 }
 0x84a   : > { %3581 = vrot.lane.b32.xlu0 %v10267_v38, %s6672_s21 }
 0x84c   : > { %3603 = vrot.lane.b32.xlu1 %v10263_v49, %s6673_s22 }
 0x84e   : > { %3605 = vrot.lane.b32.xlu0 %v10267_v38, %s6673_s22 }
 0x850   : > { %3627 = vrot.lane.b32.xlu1 %v10263_v49, %s12815_s23 }
 0x852   : > { %3629 = vrot.lane.b32.xlu0 %v10267_v38, %s12815_s23 }
 0x854   : > { %3651 = vrot.lane.b32.xlu1 %v10263_v49, %s12813_s24 }
 0x856   : > { %3653 = vrot.lane.b32.xlu0 %v10267_v38, %s12813_s24 }
 0x858   : > { %3530 = vrot.lane.b32.xlu1 %v10197_v12, %s12821_s14 }
 0x85a   : > { %3532 = vrot.lane.b32.xlu0 %v10199_v32, %s12821_s14 }
 0x85c   : > { %3679 = vrot.lane.b32.xlu1 %v10263_v49, %s12811_s25 }
 0x85e   : > { %3681 = vrot.lane.b32.xlu0 %v10267_v38, %s12811_s25 }
 0x860   : > { %3703 = vrot.lane.b32.xlu1 %v10263_v49, %s12809_s26 }
 0x862   : > { %3705 = vrot.lane.b32.xlu0 %v10267_v38, %s12809_s26 }
 0x864   : > { %3727 = vrot.lane.b32.xlu1 %v10263_v49, %s12870_s17 }
 0x866   : > { %3729 = vrot.lane.b32.xlu0 %v10267_v38, %s12870_s17 }
 0x868   : > { %3751 = vrot.lane.b32.xlu1 %v10263_v49, %s12871_s18 }
 0x86a   : > { %3753 = vrot.lane.b32.xlu0 %v10267_v38, %s12871_s18 }
 0x86c   : > { %3342 = vrot.lane.b32.xlu1 %v10263_v49, %s12850_s9 }
 0x86e   : > { %3344 = vrot.lane.b32.xlu0 %v10267_v38, %s12850_s9 }
 0x870   : > { %3366 = vrot.lane.b32.xlu1 %v10263_v49, %s12851_s30 }
 0x872   : > { %3368 = vrot.lane.b32.xlu0 %v10267_v38, %s12851_s30 }
 0x874   : > { %3390 = vrot.lane.b32.xlu1 %v10263_v49, %s12829_s19 }
 0x876   : > { %3392 = vrot.lane.b32.xlu0 %v10267_v38, %s12829_s19 }
 0x878   : > { %3414 = vrot.lane.b32.xlu1 %v10263_v49, %s12830_s29 }
 0x87a   : > { %v3576_v59 = vpop.permute.xlu1 %3575  ;;  %3416 = vrot.lane.b32.xlu0 %v10267_v38, %s12830_s29 }
 0x87c   : > { %3438 = vrot.lane.b32.xlu1 %v10263_v49, %s12817_s12  ;;  %v3578_v28 = vpop.permute.xlu0 %3577 }
 0x87e   : > { %v3600_v58 = vpop.permute.xlu1 %3599  ;;  %3440 = vrot.lane.b32.xlu0 %v10267_v38, %s12817_s12 }
 0x880   : > { %3462 = vrot.lane.b32.xlu1 %v10263_v49, %s12818_s13  ;;  %v10331_v36 = vpop.permute.xlu0 %3601 }
 0x882   : > { %v10333_v55 = vpop.permute.xlu1 %3623  ;;  %3464 = vrot.lane.b32.xlu0 %v10267_v38, %s12818_s13 }
 0x884   : > { %3486 = vrot.lane.b32.xlu1 %v10263_v49, %s12819_s10  ;;  %v10339_v15 = vpop.permute.xlu0 %3625 }
 0x886   : > { %v10341_v13 = vpop.permute.xlu1 %3647  ;;  %3488 = vrot.lane.b32.xlu0 %v10267_v38, %s12819_s10 }
 0x888   : > { %3510 = vrot.lane.b32.xlu1 %v10263_v49, %s12820_s11  ;;  %v10347_v19 = vpop.permute.xlu0 %3649 }
 0x88a   : > { %v10349_v4 = vpop.permute.xlu1 %3675  ;;  %3512 = vrot.lane.b32.xlu0 %v10267_v38, %s12820_s11 }
 0x88c   : > { %3534 = vrot.lane.b32.xlu1 %v10263_v49, %s12821_s14  ;;  %v10355_v9 = vpop.permute.xlu0 %3677 }
 0x88e   : > { %v10360_v16 = vpop.permute.xlu1 %3699  ;;  %3536 = vrot.lane.b32.xlu0 %v10267_v38, %s12821_s14 }
 0x890   : > { %4095 = vperm.xlu1 %6600, %v6286_v14   ;;  %v10367_v7 = vpop.permute.xlu0 %3701 }
 0x892   : > { %v10369_v54 = vpop.permute.xlu1 %3723  ;;  %4100 = vperm.xlu0 %6599, %v6287_v60  }
 0x894   : > { %v10371_v56 = vpop.permute.xlu0 %3725 }
 0x896   : > { %v10373_v5 = vpop.permute.xlu1 %3747 }
 0x898   : > { %v10375_v24 = vpop.permute.xlu0 %3749 }
 0x89a   : > { %v10377_v51 = vpop.permute.xlu1 %3338 }
 0x89c   : > { %v10379_v11 = vpop.permute.xlu0 %3340 }
 0x89e   : > { %v10381_v27 = vpop.permute.xlu1 %3362 }
 0x8a0   : > { %v10383_v1 = vpop.permute.xlu0 %3364 }
 0x8a2   : > { %v10385_v39 = vpop.permute.xlu1 %3386 }
 0x8a4   : > { %v10387_v25 = vpop.permute.xlu0 %3388 }
 0x8a6   : > { %v10389_v57 = vpop.permute.xlu1 %3410 }
 0x8a8   : > { %v10391_v47 = vpop.permute.xlu0 %3412 }
 0x8aa   : > { %v10393_v43 = vpop.permute.xlu1 %3434 }
 0x8ac   : > { %v10395_v17 = vpop.permute.xlu0 %3436 }
 0x8ae   : > { %v10397_v8 = vpop.permute.xlu1 %3458 }
 0x8b0   : > { %v10399_v34 = vpop.permute.xlu0 %3460 }
 0x8b2   : > { %v10401_v42 = vpop.permute.xlu1 %3482 }
 0x8b4   : > { %v10403_v0 = vpop.permute.xlu0 %3484 }
 0x8b6   : > { %v10405_v40 = vpop.permute.xlu1 %3506 }
 0x8b8   : > { %v10407_v50 = vpop.permute.xlu0 %3508 }
 0x8ba   : > { %v3580_v20 = vpop.permute.xlu1 %3579 }
 0x8bb   : > { %v3583_v62 = vsel %vm466_vm1, %v3576_v59, %v3580_v20  ;;  %v3585_v45 = vsel %vm466_vm1, %v3580_v20, %v3576_v59 }
 0x8bc   : > { %v3582_v44 = vpop.permute.xlu0 %3581  ;;  %v3591_v30 = vmul.f32 %v6205_v33, %v3585_v45  ;;  %v3592_v41 = vmul.f32 %v6206_v63, %v3583_v62  ;;  %v6213_v33 = vld [vmem:[%s12780_s3 + $0x160] sm:$0xff]  ;;  %v6214_v63 = vld [vmem:[%s12780_s3 + $0x168] sm:$0xff]  ;;  %v6215_v45 = vld [vmem:[%s12780_s3 + $0x170] sm:$0xff] }
 0x8bd   : > { %v3584_v46 = vsel %vm466_vm1, %v3578_v28, %v3582_v44  ;;  %v3586_v61 = vsel %vm466_vm1, %v3582_v44, %v3578_v28 }
 0x8be   : > { %v3593_v31 = vmul.f32 %v6207_v48, %v3586_v61  ;;  %v3594_v37 = vmul.f32 %v6208_v18, %v3584_v46  ;;  %v3604_v23 = vpop.permute.xlu1 %3603  ;;  %v6216_v48 = vld [vmem:[%s12780_s3 + $0x178] sm:$0xff] }
 0x8bf   : > { %v3607_v22 = vsel %vm492_vm2, %v3600_v58, %v3604_v23  ;;  %v3609_v2 = vsel %vm492_vm2, %v3604_v23, %v3600_v58 }
 0x8c0   : > { %v3595_v21 = vpack.c.bf16 %v3593_v31, %v3591_v30  ;;  %v3606_v29 = vpop.permute.xlu0 %3605  ;;  %v3596_v53 = vpack.c.bf16 %v3594_v37, %v3592_v41  ;;  %v3615_v28 = vmul.f32 %v6209_v26, %v3609_v2  ;;  %v3616_v58 = vmul.f32 %v6210_v10, %v3607_v22  ;;  %v6217_v26 = vld [vmem:[%s12780_s3 + $0x180] sm:$0xff]  ;;  %v6218_v10 = vld [vmem:[%s12780_s3 + $0x188] sm:$0xff]  ;;  %v6219_v2 = vld [vmem:[%s12780_s3 + $0x190] sm:$0xff] }
 0x8c1   : > { %v3608_v35 = vsel %vm492_vm2, %v10331_v36, %v3606_v29  ;;  %v3610_v59 = vsel %vm492_vm2, %v3606_v29, %v10331_v36 }
 0x8c2   : > { %v3617_v14 = vmul.f32 %v6211_v3, %v3610_v59  ;;  %v3618_v60 = vmul.f32 %v6212_v52, %v3608_v35  ;;  %v3628_v20 = vpop.permute.xlu1 %3627  ;;  %3804 = vmatprep.subr.bf16.mxu0 %v3596_v53  ;;  %v6220_v3 = vld [vmem:[%s12780_s3 + $0x198] sm:$0xff] }
 0x8c3   : > { %v3631_v62 = vsel %vm518_vm3, %v10333_v55, %v3628_v20  ;;  %v3633_v36 = vsel %vm518_vm3, %v3628_v20, %v10333_v55  ;;  %3805 = vmatpush1.bf16.msra.mxu0 %v3595_v21 }
 0x8c4   : > { %v3619_v18 = vpack.c.bf16 %v3617_v14, %v3615_v28  ;;  %v3630_v44 = vpop.permute.xlu0 %3629  ;;  %v3620_v46 = vpack.c.bf16 %v3618_v60, %v3616_v58  ;;  %v3639_v30 = vmul.f32 %v6213_v33, %v3633_v36  ;;  %v3640_v41 = vmul.f32 %v6214_v63, %v3631_v62  ;;  %v6221_v63 = vld [vmem:[%s12780_s3 + $0x1c0] sm:$0xff]  ;;  %v6222_v36 = vld [vmem:[%s12780_s3 + $0x1c8] sm:$0xff] }
 0x8c5   : > { %v3632_v61 = vsel %vm518_vm3, %v10339_v15, %v3630_v44  ;;  %v3634_v55 = vsel %vm518_vm3, %v3630_v44, %v10339_v15 }
 0x8c6   : > { %v3641_v31 = vmul.f32 %v6215_v45, %v3634_v55  ;;  %v3642_v37 = vmul.f32 %v6216_v48, %v3632_v61  ;;  %v3652_v23 = vpop.permute.xlu1 %3651  ;;  %3806 = vmatprep.subr.bf16.mxu0 %v3620_v46 }
 0x8c7   : > { %v3655_v22 = vsel %vm544_vm4, %v10341_v13, %v3652_v23  ;;  %v3657_v15 = vsel %vm544_vm4, %v3652_v23, %v10341_v13  ;;  %3807 = vmatpush1.bf16.msra.mxu0 %v3619_v18  ;;  %v6223_v18 = vld [vmem:[%s12780_s3 + $0x1d0] sm:$0xff]  ;;  %v6228_v23 = vld [vmem:[%s12780_s3 + $0x1f8] sm:$0xff] }
 0x8c8   : > { %v3643_v52 = vpack.c.bf16 %v3641_v31, %v3639_v30  ;;  %v3654_v21 = vpop.permute.xlu0 %3653  ;;  %v3644_v29 = vpack.c.bf16 %v3642_v37, %v3640_v41  ;;  %v3663_v35 = vmul.f32 %v6217_v26, %v3657_v15  ;;  %v3664_v59 = vmul.f32 %v6218_v10, %v3655_v22  ;;  %v6225_v31 = vld [vmem:[%s12780_s3 + $0x1e0] sm:$0xff]  ;;  %v6226_v26 = vld [vmem:[%s12780_s3 + $0x1e8] sm:$0xff] }
 0x8c9   : > { %v3656_v53 = vsel %vm544_vm4, %v10347_v19, %v3654_v21  ;;  %v3658_v13 = vsel %vm544_vm4, %v3654_v21, %v10347_v19  ;;  %v3672_v19 = vpack.c.bf16 %v10267_v38, %v10263_v49  ;;  %v6224_v49 = vld [vmem:[%s12780_s3 + $0x1d8] sm:$0xff] }
 0x8ca   : > { %v3665_v28 = vmul.f32 %v6219_v2, %v3658_v13  ;;  %v3666_v58 = vmul.f32 %v6220_v3, %v3656_v53  ;;  %v10499_v14 = vpop.permute.xlu1 %3530  ;;  %3808 = vmatprep.subr.bf16.mxu0 %v3644_v29  ;;  %v6229_v53 = vld [vmem:[%s12780_s3 + $0x200] sm:$0xff] }
 0x8cb   : > { %3809 = vmatpush1.bf16.msra.mxu0 %v3643_v52 }
 0x8cc   : > { %v3667_v60 = vpack.c.bf16 %v3665_v28, %v3663_v35  ;;  %v10501_v33 = vpop.permute.xlu0 %3532  ;;  %v3668_v20 = vpack.c.bf16 %v3666_v58, %v3664_v59  ;;  %v6230_v35 = vld [vmem:[%s12780_s3 + $0x208] sm:$0xff]  ;;  %v6231_v28 = vld [vmem:[%s12780_s3 + $0x210] sm:$0xff]  ;;  %v6232_v58 = vld [vmem:[%s12780_s3 + $0x218] sm:$0xff] }
 0x8ce   : > { %v3680_v62 = vpop.permute.xlu1 %3679  ;;  %3810 = vmatprep.subr.bf16.mxu0 %v3668_v20 }
 0x8cf   : > { %v3683_v45 = vsel %vm574_vm5, %v10349_v4, %v3680_v62  ;;  %v3685_v48 = vsel %vm574_vm5, %v3680_v62, %v10349_v4  ;;  %3811 = vmatpush1.bf16.msra.mxu0 %v3667_v60  ;;  %v3671_v4 = vpack.c.bf16 %v10199_v32, %v10197_v12  ;;  %v6227_v32 = vld [vmem:[%s12780_s3 + $0x1f0] sm:$0xff] }
 0x8d0   : > { %v3682_v38 = vpop.permute.xlu0 %3681  ;;  %3812 = vmatprep.subr.bf16.mxu0 %v3672_v19  ;;  %v3691_v61 = vmul.f32 %v6221_v63, %v3683_v45  ;;  %v3692_v55 = vmul.f32 %v6222_v36, %v3685_v48 }
 0x8d1   : > { %v3684_v44 = vsel %vm574_vm5, %v10355_v9, %v3682_v38  ;;  %v3686_v46 = vsel %vm574_vm5, %v3682_v38, %v10355_v9 }
 0x8d2   : > { %v3693_v30 = vmul.f32 %v6223_v18, %v3684_v44  ;;  %v3694_v41 = vmul.f32 %v6224_v49, %v3686_v46  ;;  %v3704_v37 = vpop.permute.xlu1 %3703  ;;  %v6233_v49 = vld [vmem:[%s12780_s3 + $0x220] sm:$0xff]  ;;  %v6235_v44 = vld [vmem:[%s12780_s3 + $0x230] sm:$0xff] }
 0x8d3   : > { %v3707_v9 = vsel %vm600_vm6, %v10360_v16, %v3704_v37  ;;  %v3709_v12 = vsel %vm600_vm6, %v3704_v37, %v10360_v16  ;;  %3813 = vmatpush1.bf16.msra.mxu0 %v3671_v4  ;;  %v6234_v4 = vld [vmem:[%s12780_s3 + $0x228] sm:$0xff] }
 0x8d4   : > { %v3695_v10 = vpack.c.bf16 %v3693_v30, %v3691_v61  ;;  %v3706_v22 = vpop.permute.xlu0 %3705  ;;  %v3696_v15 = vpack.c.bf16 %v3694_v41, %v3692_v55  ;;  %v3715_v3 = vmul.f32 %v6225_v31, %v3707_v9  ;;  %v3716_v52 = vmul.f32 %v6226_v26, %v3709_v12 }
 0x8d5   : > { %v3708_v2 = vsel %vm600_vm6, %v10367_v7, %v3706_v22  ;;  %v3710_v16 = vsel %vm600_vm6, %v3706_v22, %v10367_v7 }
 0x8d6   : > { %v3717_v21 = vmul.f32 %v6227_v32, %v3708_v2  ;;  %v3718_v29 = vmul.f32 %v6228_v23, %v3710_v16  ;;  %v3728_v13 = vpop.permute.xlu1 %3727  ;;  %3814 = vmatprep.subr.bf16.mxu0 %v3696_v15 }
 0x8d7   : > { %v3731_v59 = vsel %vm626_vm7, %v10369_v54, %v3728_v13  ;;  %v3733_v7 = vsel %vm626_vm7, %v3728_v13, %v10369_v54  ;;  %3815 = vmatpush1.bf16.msra.mxu0 %v3695_v10  ;;  %v3353_v10 = vld [vmem:[%s12780_s3 + $0x18] sm:$0xff] }
 0x8d8   : > { %v3719_v60 = vpack.c.bf16 %v3717_v21, %v3715_v3  ;;  %v3730_v20 = vpop.permute.xlu0 %3729  ;;  %v3720_v63 = vpack.c.bf16 %v3718_v29, %v3716_v52  ;;  %v3739_v19 = vmul.f32 %v6229_v53, %v3731_v59  ;;  %v3740_v36 = vmul.f32 %v6230_v35, %v3733_v7  ;;  %v3351_v52 = vld [vmem:[%s12780_s3 + $0x8] sm:$0xff]  ;;  %v6639_v35 = vld [vmem:[%s12778_s1 + $0xd0] ss:$8 sps:$4 sm:$0xff]  }
 0x8d9   : > { %v3732_v62 = vsel %vm626_vm7, %v10371_v56, %v3730_v20  ;;  %v3734_v54 = vsel %vm626_vm7, %v3730_v20, %v10371_v56  ;;  %v6236_v56 = vld [vmem:[%s12780_s3 + $0x238] sm:$0xff] }
 0x8da   : > { %v3741_v45 = vmul.f32 %v6231_v28, %v3732_v62  ;;  %v3742_v48 = vmul.f32 %v6232_v58, %v3734_v54  ;;  %v3752_v18 = vpop.permute.xlu1 %3751  ;;  %3816 = vmatprep.subr.bf16.mxu0 %v3720_v63  ;;  %v6640_v28 = vld [vmem:[%s12778_s1 + $0xc4] ss:$8 sps:$4 sm:$0xff]  }
 0x8db   : > { %v3755_v38 = vsel %vm652_vm8, %v10373_v5, %v3752_v18  ;;  %3817 = vmatpush1.bf16.msra.mxu0 %v3719_v60  ;;  %v3757_v61 = vsel %vm652_vm8, %v3752_v18, %v10373_v5  ;;  %v3352_v5 = vld [vmem:[%s12780_s3 + $0x10] sm:$0xff]  ;;  %v6171_v60 = vld [vmem:[%s12780_s3 + $0x20] sm:$0xff] }
 0x8dc   : > { %v3743_v46 = vpack.c.bf16 %v3741_v45, %v3739_v19  ;;  %v3754_v55 = vpop.permute.xlu0 %3753  ;;  %v3744_v30 = vpack.c.bf16 %v3742_v48, %v3740_v36  ;;  %v3763_v37 = vmul.f32 %v6233_v49, %v3755_v38  ;;  %v3764_v32 = vmul.f32 %v6234_v4, %v3757_v61  ;;  %v6172_v19 = vld [vmem:[%s12780_s3 + $0x28] sm:$0xff] }
 0x8dd   : > { %v3756_v41 = vsel %vm652_vm8, %v10375_v24, %v3754_v55  ;;  %v3758_v31 = vsel %vm652_vm8, %v3754_v55, %v10375_v24  ;;  %v3350_v24 = vld [vmem:[%s12780_s3] sm:$0xff] }
 0x8de   : > { %v3765_v26 = vmul.f32 %v6235_v44, %v3756_v41  ;;  %v3766_v9 = vmul.f32 %v6236_v56, %v3758_v31  ;;  %v3343_v12 = vpop.permute.xlu1 %3342  ;;  %3818 = vmatprep.subr.bf16.mxu0 %v3744_v30  ;;  %v6178_v44 = vld [vmem:[%s12780_s3 + $0x58] sm:$0xff]  ;;  %v6176_v41 = vld [vmem:[%s12780_s3 + $0x48] sm:$0xff] }
 0x8df   : > { %3819 = vmatpush1.bf16.msra.mxu0 %v3743_v46  ;;  %v10615_v15 = vsel %vm213_vm9, %v3343_v12, %v10377_v51  ;;  %v10633_v21 = vsel %vm213_vm9, %v10377_v51, %v3343_v12  ;;  %v6174_v51 = vld [vmem:[%s12780_s3 + $0x38] sm:$0xff]  ;;  %v6175_v46 = vld [vmem:[%s12780_s3 + $0x40] sm:$0xff] }
 0x8e0   : > { %v3767_v23 = vpack.c.bf16 %v3765_v26, %v3763_v37  ;;  %v3345_v22 = vpop.permute.xlu0 %3344  ;;  %v3768_v3 = vpack.c.bf16 %v3766_v9, %v3764_v32  ;;  %v3354_v59 = vmul.f32 %v3350_v24, %v10615_v15  ;;  %v3355_v58 = vmul.f32 %v3351_v52, %v10633_v21 }
 0x8e1   : > { %v10620_v2 = vsel %vm213_vm9, %v10379_v11, %v3345_v22  ;;  %v10625_v16 = vsel %vm213_vm9, %v3345_v22, %v10379_v11  ;;  %v6173_v11 = vld [vmem:[%s12780_s3 + $0x30] sm:$0xff] }
 0x8e2   : > { %v3356_v29 = vmul.f32 %v3352_v5, %v10625_v16  ;;  %v3367_v53 = vpop.permute.xlu1 %3366  ;;  %v3357_v13 = vmul.f32 %v3353_v10, %v10620_v2  ;;  %3820 = vmatprep.subr.bf16.mxu0 %v3768_v3  ;;  %v6182_v5 = vld [vmem:[%s12780_s3 + $0x78] sm:$0xff]  ;;  %v6179_v10 = vld [vmem:[%s12780_s3 + $0x60] sm:$0xff] }
 0x8e3   : > { %3821 = vmatpush1.bf16.msra.mxu0 %v3767_v23  ;;  %v10657_v20 = vsel %vm238_vm10, %v3367_v53, %v10381_v27  ;;  %v10675_v36 = vsel %vm238_vm10, %v10381_v27, %v3367_v53 }
 0x8e4   : > { %v3369_v7 = vpop.permute.xlu0 %3368  ;;  %v3358_v54 = vpack.c.bf16 %v3356_v29, %v3354_v59  ;;  %v3359_v49 = vpack.c.bf16 %v3357_v13, %v3355_v58  ;;  %v3378_v38 = vmul.f32 %v6171_v60, %v10657_v20  ;;  %v3379_v27 = vmul.f32 %v6172_v19, %v10675_v36  ;;  %v6180_v29 = vld [vmem:[%s12780_s3 + $0x68] sm:$0xff]  ;;  %v6183_v58 = vld [vmem:[%s12780_s3 + $0x80] sm:$0xff] }
 0x8e5   : > { %v10662_v63 = vsel %vm238_vm10, %v10383_v1, %v3369_v7  ;;  %v10667_v62 = vsel %vm238_vm10, %v3369_v7, %v10383_v1  ;;  %v6177_v1 = vld [vmem:[%s12780_s3 + $0x50] sm:$0xff]  ;;  %v6186_v7 = vld [vmem:[%s12780_s3 + $0x98] sm:$0xff] }
 0x8e6   : > { %v3380_v45 = vmul.f32 %v6173_v11, %v10667_v62  ;;  %v3391_v48 = vpop.permute.xlu1 %3390  ;;  %v3381_v18 = vmul.f32 %v6174_v51, %v10662_v63  ;;  %3837 = vmatmul.mubr.bf16.vlgmr.msra.gmra.mrb[8].mxu0 %v6639_v35  ;;  %3859 = vmatprep.subr.bf16.mxu0 %v3359_v49 }
 0x8e7   : > { %6244 = vmatprep.mubr.msk.bf16.mxu0 %vm700_vm0, %v6640_v28  ;;  %v10694_v4 = vsel %vm12872_vm13, %v3391_v48, %v10385_v39  ;;  %vm12875_vm13 = vmmov %vm12873_vm11  ;;  %3860 = vmatpush1.bf16.msra.mxu0 %v3358_v54 }
 0x8e8   : > { %v3393_v56 = vpop.permute.xlu0 %3392  ;;  %v3382_v30 = vpack.c.bf16 %v3380_v45, %v3378_v38  ;;  %v10712_v31 = vsel %vm12875_vm13, %v10385_v39, %v3391_v48  ;;  %v3383_v12 = vpack.c.bf16 %v3381_v18, %v3379_v27  ;;  %v3402_v32 = vmul.f32 %v6175_v46, %v10694_v4  ;;  %v6184_v48 = vld [vmem:[%s12780_s3 + $0x88] sm:$0xff]  ;;  %v6190_v27 = vld [vmem:[%s12780_s3 + $0xb8] sm:$0xff] }
 0x8e9   : > { %v10699_v61 = vsel %vm12873_vm11, %v10387_v25, %v3393_v56  ;;  %v10704_v55 = vsel %vm12874_vm12, %v3393_v56, %v10387_v25  ;;  %v6181_v25 = vld [vmem:[%s12780_s3 + $0x70] sm:$0xff]  ;;  %v3403_v39 = vmul.f32 %v6176_v41, %v10712_v31  ;;  %vm12876_vm11 = vcmp.lt.s32.totalorder %v6859_v6, 65 }
 0x8ea   : > { %v3404_v37 = vmul.f32 %v6177_v1, %v10704_v55  ;;  %v3415_v26 = vpop.permute.xlu1 %3414  ;;  %v3405_v9 = vmul.f32 %v6178_v44, %v10699_v61  ;;  %3861 = vmatprep.subr.bf16.mxu0 %v3383_v12  ;;  %vm12877_vm12 = vmmov %vm12876_vm11  ;;  %v6188_v12 = vld [vmem:[%s12780_s3 + $0xa8] sm:$0xff] }
 0x8eb   : > { %v10730_v22 = vsel %vm12876_vm11, %v3415_v26, %v10389_v57  ;;  %vm12878_vm13 = vmmov %vm12876_vm11  ;;  %v10748_v53 = vsel %vm12876_vm11, %v10389_v57, %v3415_v26  ;;  %3862 = vmatpush1.bf16.msra.mxu0 %v3382_v30  ;;  %v6187_v30 = vld [vmem:[%s12780_s3 + $0xa0] sm:$0xff] }
 0x8ec   : > { %v3417_v23 = vpop.permute.xlu0 %3416  ;;  %v3406_v52 = vpack.c.bf16 %v3404_v37, %v3402_v32  ;;  %v3407_v59 = vpack.c.bf16 %v3405_v9, %v3403_v39  ;;  %v3426_v51 = vmul.f32 %v6179_v10, %v10730_v22  ;;  %v3427_v57 = vmul.f32 %v6180_v29, %v10748_v53 }
 0x8ed   : > { %v10735_v24 = vsel %vm12877_vm12, %v10391_v47, %v3417_v23  ;;  %v10740_v3 = vsel %vm12878_vm13, %v3417_v23, %v10391_v47  ;;  %v6185_v47 = vld [vmem:[%s12780_s3 + $0x90] sm:$0xff]  ;;  %vm12879_vm12 = vcmp.lt.s32.totalorder %v6859_v6, 64 }
 0x8ee   : > { %v3428_v13 = vmul.f32 %v6181_v25, %v10740_v3  ;;  %v3439_v11 = vpop.permute.xlu1 %3438  ;;  %v3429_v35 = vmul.f32 %v6182_v5, %v10735_v24  ;;  %3863 = vmatprep.subr.bf16.mxu0 %v3407_v59  ;;  %vm12880_vm13 = vmmov %vm12879_vm12 }
 0x8ef   : > { %v10766_v60 = vsel %vm12879_vm12, %v3439_v11, %v10393_v43  ;;  %vm12881_vm11 = vmmov %vm12879_vm12  ;;  %3864 = vmatpush1.bf16.msra.mxu0 %v3406_v52  ;;  %v6194_v52 = vld [vmem:[%s12780_s3 + $0xd8] sm:$0xff] }
 0x8f0   : > { %v3441_v28 = vpop.permute.xlu0 %3440  ;;  %v3430_v45 = vpack.c.bf16 %v3428_v13, %v3426_v51  ;;  %vm12882_vm12 = vmmov %vm12881_vm11  ;;  %v3431_v44 = vpack.c.bf16 %v3429_v35, %v3427_v57  ;;  %v3450_v56 = vmul.f32 %v6183_v58, %v10766_v60  ;;  %v6191_v13 = vld [vmem:[%s12780_s3 + $0xc0] sm:$0xff]  ;;  %v6192_v51 = vld [vmem:[%s12780_s3 + $0xc8] sm:$0xff] }
 0x8f1   : > { %v10771_v54 = vsel %vm12880_vm13, %v10395_v17, %v3441_v28  ;;  %v10776_v19 = vsel %vm12881_vm11, %v3441_v28, %v10395_v17  ;;  %v10784_v18 = vsel %vm12882_vm12, %v10393_v43, %v3439_v11  ;;  %v6189_v17 = vld [vmem:[%s12780_s3 + $0xb0] sm:$0xff]  ;;  %vm12883_vm13 = vcmp.lt.s32.totalorder %v6859_v6, 63 }
 0x8f2   : > { %v3452_v49 = vmul.f32 %v6185_v47, %v10776_v19  ;;  %v3463_v1 = vpop.permute.xlu1 %3462  ;;  %v3453_v38 = vmul.f32 %v6186_v7, %v10771_v54  ;;  %v3451_v43 = vmul.f32 %v6184_v48, %v10784_v18  ;;  %3865 = vmatprep.subr.bf16.mxu0 %v3431_v44  ;;  %vm12884_vm11 = vmmov %vm12883_vm13 }
 0x8f3   : > { %v10802_v41 = vsel %vm12883_vm13, %v3463_v1, %v10397_v8  ;;  %vm12885_vm12 = vmmov %vm12884_vm11  ;;  %3866 = vmatpush1.bf16.msra.mxu0 %v3430_v45 }
 0x8f4   : > { %v3465_v46 = vpop.permute.xlu0 %3464  ;;  %v3454_v9 = vpack.c.bf16 %v3452_v49, %v3450_v56  ;;  %vm12886_vm13 = vmmov %vm12884_vm11  ;;  %v3455_v39 = vpack.c.bf16 %v3453_v38, %v3451_v43  ;;  %v3474_v10 = vmul.f32 %v6187_v30, %v10802_v41  ;;  %v6198_v49 = vld [vmem:[%s12780_s3 + $0xf8] sm:$0xff]  ;;  %v6195_v38 = vld [vmem:[%s12780_s3 + $0xe0] sm:$0xff] }
 0x8f5   : > { %v10807_v37 = vsel %vm12884_vm11, %v10399_v34, %v3465_v46  ;;  %v10812_v26 = vsel %vm12885_vm12, %v3465_v46, %v10399_v34  ;;  %v10820_v25 = vsel %vm12886_vm13, %v10397_v8, %v3463_v1  ;;  %v6193_v34 = vld [vmem:[%s12780_s3 + $0xd0] sm:$0xff]  ;;  %vm12887_vm11 = vcmp.lt.s32.totalorder %v6859_v6, 57  ;;  %v6196_v46 = vld [vmem:[%s12780_s3 + $0xe8] sm:$0xff] }
 0x8f6   : > { %v3476_v32 = vmul.f32 %v6189_v17, %v10812_v26  ;;  %v3487_v5 = vpop.permute.xlu1 %3486  ;;  %v3477_v23 = vmul.f32 %v6190_v27, %v10807_v37  ;;  %v3475_v8 = vmul.f32 %v6188_v12, %v10820_v25  ;;  %3867 = vmatprep.subr.bf16.mxu0 %v3455_v39  ;;  %vm12888_vm12 = vmmov %vm12887_vm11 }
 0x8f7   : > { %v10838_v11 = vsel %vm12887_vm11, %v3487_v5, %v10401_v42  ;;  %vm12889_vm13 = vmmov %vm12887_vm11  ;;  %v10856_v7 = vsel %vm12887_vm11, %v10401_v42, %v3487_v5  ;;  %3868 = vmatpush1.bf16.msra.mxu0 %v3454_v9 }
 0x8f8   : > { %v3489_v29 = vpop.permute.xlu0 %3488  ;;  %v3478_v47 = vpack.c.bf16 %v3476_v32, %v3474_v10  ;;  %v3479_v45 = vpack.c.bf16 %v3477_v23, %v3475_v8  ;;  %v3498_v48 = vmul.f32 %v6191_v13, %v10838_v11  ;;  %v3499_v42 = vmul.f32 %v6192_v51, %v10856_v7  ;;  %v6202_v23 = vld [vmem:[%s12780_s3 + $0x118] sm:$0xff] }
 0x8f9   : > { %v10843_v35 = vsel %vm12888_vm12, %v10403_v0, %v3489_v29  ;;  %v10848_v59 = vsel %vm12889_vm13, %v3489_v29, %v10403_v0  ;;  %v6197_v0 = vld [vmem:[%s12780_s3 + $0xf0] sm:$0xff]  ;;  %vm12892_vm12 = vcmp.lt.s32.totalorder %v6859_v6, 71 }
 0x8fa   : > { %v3500_v28 = vmul.f32 %v6193_v34, %v10848_v59  ;;  %v3511_v57 = vpop.permute.xlu1 %3510  ;;  %v3501_v58 = vmul.f32 %v6194_v52, %v10843_v35  ;;  %3869 = vmatprep.subr.bf16.mxu0 %v3479_v45  ;;  %v6199_v52 = vld [vmem:[%s12780_s3 + $0x100] sm:$0xff]  ;;  %v6246_v45 = vld [vmem:[%s12780_s3 + $0x248] sm:$0xff]  ;;  %vm12893_vm13 = vmmov %vm12892_vm12 }
 0x8fb   : > { %v10874_v44 = vsel %vm394_vm14, %v3511_v57, %v10405_v40  ;;  %v10892_v43 = vsel %vm394_vm14, %v10405_v40, %v3511_v57  ;;  %3870 = vmatpush1.bf16.msra.mxu0 %v3478_v47  ;;  %v6201_v40 = vld [vmem:[%s12780_s3 + $0x110] sm:$0xff]  ;;  %v6248_v47 = vld [vmem:[%s12780_s3 + $0x258] sm:$0xff]  ;;  %vm12894_vm11 = vmmov %vm12892_vm12 }
 0x8fc   : > { %v3513_v1 = vpop.permute.xlu0 %3512  ;;  %v3502_v27 = vpack.c.bf16 %v3500_v28, %v3498_v48  ;;  %v3503_v5 = vpack.c.bf16 %v3501_v58, %v3499_v42  ;;  %v3522_v39 = vmul.f32 %v6195_v38, %v10874_v44  ;;  %v3523_v10 = vmul.f32 %v6196_v46, %v10892_v43  ;;  %v6247_v48 = vld [vmem:[%s12780_s3 + $0x250] sm:$0xff]  ;;  %v6245_v38 = vld [vmem:[%s12780_s3 + $0x240] sm:$0xff] }
 0x8fd   : > { %v10879_v17 = vsel %vm394_vm14, %v10407_v50, %v3513_v1  ;;  %v10884_v56 = vsel %vm394_vm14, %v3513_v1, %v10407_v50  ;;  %v6200_v50 = vld [vmem:[%s12780_s3 + $0x108] sm:$0xff]  ;;  %v6252_v1 = vld [vmem:[%s12780_s3 + $0x278] sm:$0xff]  ;;  %v3908_v46 = vmul.f32 %v6247_v48, %v10620_v2 }
 0x8fe   : > { %v3524_v30 = vmul.f32 %v6197_v0, %v10884_v56  ;;  %v3535_v9 = vpop.permute.xlu1 %3534  ;;  %v3525_v12 = vmul.f32 %v6198_v49, %v10879_v17  ;;  %3871 = vmatprep.subr.bf16.mxu0 %v3503_v5  ;;  %v3909_v49 = vmul.f32 %v6248_v47, %v10625_v16  ;;  %v6250_v16 = vld [vmem:[%s12780_s3 + $0x268] sm:$0xff]  ;;  %v6256_v2 = vld [vmem:[%s12780_s3 + $0x298] sm:$0xff] }
 0x8ff   : > { %v10902_v32 = vsel %vm420_vm15, %v10499_v14, %v3535_v9  ;;  %v10918_v29 = vsel %vm420_vm15, %v3535_v9, %v10499_v14  ;;  %3872 = vmatpush1.bf16.msra.mxu0 %v3502_v27  ;;  %v3907_v27 = vmul.f32 %v6246_v45, %v10615_v15  ;;  %v3921_v9 = vmul.f32 %v6252_v1, %v10667_v62  ;;  %v6643_v5 = vld [vmem:[%s12778_s1 + $0xe4] ss:$8 sps:$4 sm:$0xff]  }
 0x900   : > { %v3537_v34 = vpop.permute.xlu0 %3536  ;;  %v3526_v51 = vpack.c.bf16 %v3524_v30, %v3522_v39  ;;  %v3547_v28 = vmul.f32 %v6200_v50, %v10902_v32  ;;  %v3527_v58 = vpack.c.bf16 %v3525_v12, %v3523_v10  ;;  %v6251_v30 = vld [vmem:[%s12780_s3 + $0x270] sm:$0xff]  ;;  %v6642_v50 = vld [vmem:[%s12778_s1 + $0xc0] ss:$8 sps:$4 sm:$0xff]   ;;  %v3906_v15 = vmul.f32 %v6245_v38, %v10633_v21 }
 0x901   : > { %v10923_v8 = vsel %vm420_vm15, %v10501_v33, %v3537_v34  ;;  %v10928_v13 = vsel %vm420_vm15, %v3537_v34, %v10501_v33  ;;  %v3546_v33 = vmul.f32 %v6199_v52, %v10918_v29  ;;  %v3911_v12 = vpack.c.bf16 %v3909_v49, %v3907_v27  ;;  %v6249_v62 = vld [vmem:[%s12780_s3 + $0x260] sm:$0xff]  ;;  %v6254_v21 = vld [vmem:[%s12780_s3 + $0x288] sm:$0xff]  ;;  %v6255_v34 = vld [vmem:[%s12780_s3 + $0x290] sm:$0xff] }
 0x902   : > { %v3548_v14 = vmul.f32 %v6201_v40, %v10928_v13  ;;  %v3549_v57 = vmul.f32 %v6202_v23, %v10923_v8  ;;  %3873 = vmatprep.subr.bf16.mxu0 %v3527_v58  ;;  %v3919_v40 = vmul.f32 %v6250_v16, %v10657_v20  ;;  %v3910_v23 = vpack.c.bf16 %v3908_v46, %v3906_v15  ;;  %v6260_v20 = vld [vmem:[%s12780_s3 + $0x2b8] sm:$0xff] }
 0x903   : > { %3874 = vmatpush1.bf16.msra.mxu0 %v3526_v51  ;;  %v3920_v39 = vmul.f32 %v6251_v30, %v10662_v63  ;;  %v3933_v10 = vmul.f32 %v6256_v2, %v10704_v55  ;;  %v3918_v47 = vmul.f32 %v6249_v62, %v10675_v36  ;;  %v6253_v63 = vld [vmem:[%s12780_s3 + $0x280] sm:$0xff]  ;;  %v3931_v51 = vmul.f32 %v6254_v21, %v10694_v4  ;;  %v6258_v36 = vld [vmem:[%s12780_s3 + $0x2a8] sm:$0xff]  ;;  %v6264_v4 = vld [vmem:[%s12780_s3 + $0x2d8] sm:$0xff] }
 0x904   : > { %v3551_v0 = vpack.c.bf16 %v3549_v57, %v3547_v28  ;;  %v3550_v42 = vpack.c.bf16 %v3548_v14, %v3546_v33  ;;  %v3923_v52 = vpack.c.bf16 %v3921_v9, %v3919_v40  ;;  %v3932_v55 = vmul.f32 %v6255_v34, %v10699_v61  ;;  %v6259_v14 = vld [vmem:[%s12780_s3 + $0x2b0] sm:$0xff]  ;;  %v6257_v61 = vld [vmem:[%s12780_s3 + $0x2a0] sm:$0xff] }
 0x905   : > { %v3922_v28 = vpack.c.bf16 %v3920_v39, %v3918_v47  ;;  %v3945_v57 = vmul.f32 %v6260_v20, %v10740_v3  ;;  %v3935_v58 = vpack.c.bf16 %v3933_v10, %v3931_v51  ;;  %v3930_v45 = vmul.f32 %v6253_v63, %v10712_v31  ;;  %v6262_v3 = vld [vmem:[%s12780_s3 + $0x2c8] sm:$0xff]  ;;  %v6263_v31 = vld [vmem:[%s12780_s3 + $0x2d0] sm:$0xff] }
 0x906   : > { %3875 = vmatprep.subr.bf16.mxu0 %v3551_v0  ;;  %v3943_v33 = vmul.f32 %v6258_v36, %v10730_v22  ;;  %v3944_v48 = vmul.f32 %v6259_v14, %v10735_v24  ;;  %v3957_v49 = vmul.f32 %v6264_v4, %v10776_v19  ;;  %v6268_v22 = vld [vmem:[%s12780_s3 + $0x2f8] sm:$0xff]  ;;  %v6261_v24 = vld [vmem:[%s12780_s3 + $0x2c0] sm:$0xff]  ;;  %v3955_v38 = vmul.f32 %v6262_v3, %v10766_v60  ;;  %v6266_v19 = vld [vmem:[%s12780_s3 + $0x2e8] sm:$0xff] }
 0x907   : > { %3876 = vmatpush1.bf16.msra.mxu0 %v3550_v42  ;;  %v3934_v0 = vpack.c.bf16 %v3932_v55, %v3930_v45  ;;  %v3942_v42 = vmul.f32 %v6257_v61, %v10748_v53  ;;  %v3956_v46 = vmul.f32 %v6263_v31, %v10771_v54  ;;  %v6267_v53 = vld [vmem:[%s12780_s3 + $0x2f0] sm:$0xff]  ;;  %v3969_v16 = vmul.f32 %v6268_v22, %v10812_v26  ;;  %v6272_v60 = vld [vmem:[%s12780_s3 + $0x318] sm:$0xff]  ;;  %v6265_v54 = vld [vmem:[%s12780_s3 + $0x2e0] sm:$0xff] }
 0x908   : > { %4043 = vmatprep.subr.bf16.mxu0 %v3911_v12  ;;  %v3947_v1 = vpack.c.bf16 %v3945_v57, %v3943_v33  ;;  %v3959_v30 = vpack.c.bf16 %v3957_v49, %v3955_v38  ;;  %v3954_v9 = vmul.f32 %v6261_v24, %v10784_v18  ;;  %v3967_v12 = vmul.f32 %v6266_v19, %v10802_v41  ;;  %v6270_v26 = vld [vmem:[%s12780_s3 + $0x308] sm:$0xff]  ;;  %v6271_v18 = vld [vmem:[%s12780_s3 + $0x310] sm:$0xff]  ;;  %v6276_v41 = vld [vmem:[%s12780_s3 + $0x338] sm:$0xff] }
 0x909   : > { %v3946_v27 = vpack.c.bf16 %v3944_v48, %v3942_v42  ;;  %v3968_v15 = vmul.f32 %v6267_v53, %v10807_v37  ;;  %v3981_v2 = vmul.f32 %v6272_v60, %v10848_v59  ;;  %v3966_v62 = vmul.f32 %v6265_v54, %v10820_v25  ;;  %v6269_v37 = vld [vmem:[%s12780_s3 + $0x300] sm:$0xff]  ;;  %v6274_v59 = vld [vmem:[%s12780_s3 + $0x328] sm:$0xff]  ;;  %v6275_v25 = vld [vmem:[%s12780_s3 + $0x330] sm:$0xff] }
 0x90a   : > { %3892 = vmatmul.mubr.bf16.vlgmr.msra.gmra.mrb[8].mxu0 %v6642_v50  ;;  %v3958_v50 = vpack.c.bf16 %v3956_v46, %v3954_v9  ;;  %v3979_v40 = vmul.f32 %v6270_v26, %v10838_v11  ;;  %v3980_v39 = vmul.f32 %v6271_v18, %v10843_v35  ;;  %v3993_v21 = vmul.f32 %v6276_v41, %v10884_v56  ;;  %v6280_v11 = vld [vmem:[%s12780_s3 + $0x358] sm:$0xff]  ;;  %v6273_v35 = vld [vmem:[%s12780_s3 + $0x320] sm:$0xff]  ;;  %v6278_v56 = vld [vmem:[%s12780_s3 + $0x348] sm:$0xff] }
 0x90b   : > { %4044 = vmatpush1.bf16.msra.mxu0 %v3910_v23  ;;  %6285 = vmatprep.mubr.msk.bf16.mxu0 %vm700_vm0, %v6643_v5  ;;  %v3971_v5 = vpack.c.bf16 %v3969_v16, %v3967_v12  ;;  %v3970_v23 = vpack.c.bf16 %v3968_v15, %v3966_v62  ;;  %v3978_v10 = vmul.f32 %v6269_v37, %v10856_v7  ;;  %v6279_v7 = vld [vmem:[%s12780_s3 + $0x350] sm:$0xff]  ;;  %v6646_v42 = vld [vmem:[%s12778_s1 + $0x104] ss:$8 sps:$4 sm:$0xff]   ;;  %v6404_v12 = vld [vmem:[%s12779_s2 + $0x58] sm:$0xff] }
 0x90c   : > { %4045 = vmatprep.subr.bf16.mxu0 %v3923_v52  ;;  %v3983_v34 = vpack.c.bf16 %v3981_v2, %v3979_v40  ;;  %v3991_v52 = vmul.f32 %v6274_v59, %v10874_v44  ;;  %v3992_v20 = vmul.f32 %v6275_v25, %v10879_v17  ;;  %v4005_v63 = vmul.f32 %v6280_v11, %v10928_v13  ;;  %v6277_v44 = vld [vmem:[%s12780_s3 + $0x340] sm:$0xff]  ;;  %v6403_v60 = vld [vmem:[%s12779_s2 + $0x50] sm:$0xff] }
 0x90d   : > { %v3982_v47 = vpack.c.bf16 %v3980_v39, %v3978_v10  ;;  %v4003_v17 = vmul.f32 %v6278_v56, %v10918_v29  ;;  %v4004_v36 = vmul.f32 %v6279_v7, %v10923_v8  ;;  %v4002_v57 = vmul.f32 %v6277_v44, %v10902_v32  ;;  %6358 = vmatprep.mubr.msk.bf16.mxu1 %vm700_vm0, %v6646_v42  ;;  %v6323_v7 = vld [vmem:[%s12780_s3 + $0x128] sm:$0xff]  ;;  %v6325_v44 = vld [vmem:[%s12780_s3 + $0x138] sm:$0xff] }
 0x90e   : > { %v3995_v51 = vpack.c.bf16 %v3993_v21, %v3991_v52 }
 0x90f   : > { %4046 = vmatpush1.bf16.msra.mxu0 %v3922_v28  ;;  %v3990_v28 = vmul.f32 %v6273_v35, %v10892_v43  ;;  %v4007_v14 = vpack.c.bf16 %v4005_v63, %v4003_v17  ;;  %v4006_v13 = vpack.c.bf16 %v4004_v36, %v4002_v57  ;;  %v6645_v43 = vld [vmem:[%s12778_s1 + $0xe0] ss:$8 sps:$4 sm:$0xff]  }
 0x910   : > { %4047 = vmatprep.subr.bf16.mxu0 %v3935_v58  ;;  %v4096_v58 = vpop.permute.xlu1 %4095 }
 0x911   : > { %v3994_v55 = vpack.c.bf16 %v3992_v20, %v3990_v28  ;;  %v4101_v61 = vpop.permute.xlu0 %4100  ;;  %v6322_v20 = vld [vmem:[%s12780_s3 + $0x120] sm:$0xff]  ;;  %v6324_v28 = vld [vmem:[%s12780_s3 + $0x130] sm:$0xff] }
 0x913   : > { %4048 = vmatpush1.bf16.msra.mxu0 %v3934_v0 }
 0x914   : > { %4049 = vmatprep.subr.bf16.mxu0 %v3947_v1 }
 0x917   : > { %4050 = vmatpush1.bf16.msra.mxu0 %v3946_v27 }
 0x918   : > { %4051 = vmatprep.subr.bf16.mxu0 %v3959_v30 }
 0x91b   : > { %4052 = vmatpush1.bf16.msra.mxu0 %v3958_v50 }
 0x91c   : > { %4053 = vmatprep.subr.bf16.mxu0 %v3971_v5 }
 0x91f   : > { %4054 = vmatpush1.bf16.msra.mxu0 %v3970_v23 }
 0x920   : > { %4055 = vmatprep.subr.bf16.mxu0 %v3983_v34 }
 0x923   : > { %4056 = vmatpush1.bf16.msra.mxu0 %v3982_v47 }
 0x924   : > { %4057 = vmatprep.subr.bf16.mxu0 %v3995_v51 }
 0x927   : > { %4058 = vmatpush1.bf16.msra.mxu0 %v3994_v55 }
 0x928   : > { %4059 = vmatprep.subr.bf16.mxu0 %v4007_v14 }
 0x92b   : > { %4060 = vmatpush1.bf16.msra.mxu0 %v4006_v13 }
 0x92e   : > { %4076 = vmatmul.mubr.bf16.vlgmr.msra.gmra.mrb[8].mxu0 %v6645_v43 }
 0xa01   : > { %v4077_v45 = vpop.f32.mrb[8].mxu0 }
 0xa02   : > { %v4103_v4 = vadd.f32 %v4096_v58, %v4077_v45  ;;  %v4079_v29 = vpop.f32.mrb[9].mxu0 }
 0xa03   : > { %v4081_v33 = vpop.f32.mrb[10].mxu0  ;;  %v4104_v3 = vadd.f32 %v4096_v58, %v4079_v29  ;;  %v6326_v58 = vld [vmem:[%s12780_s3 + $0x140] sm:$0xff] }
 0xa04   : > { %v11088_v0 = vmax.f32 %v4103_v4, 0.0  ;;  %v4105_v8 = vadd.f32 %v4101_v61, %v4081_v33  ;;  %v4083_v48 = vpop.f32.mrb[11].mxu0  ;;  %v6327_v4 = vld [vmem:[%s12780_s3 + $0x148] sm:$0xff]  ;;  %v6328_v33 = vld [vmem:[%s12780_s3 + $0x150] sm:$0xff] }
 0xa05   : > { %v4106_v31 = vadd.f32 %v4101_v61, %v4083_v48  ;;  %v11154_v49 = vmax.f32 %v4104_v3, 0.0 }
 0xa06   : > { %v11090_v32 = vmax.f32 %v4105_v8, 0.0  ;;  %4348 = vrot.lane.b32.xlu1 %v11088_v0, %s6672_s21  ;;  %v6329_v8 = vld [vmem:[%s12780_s3 + $0x158] sm:$0xff] }
 0xa07   : > { %v11158_v1 = vmax.f32 %v4106_v31, 0.0 }
 0xa08   : > { %4350 = vrot.lane.b32.xlu0 %v11090_v32, %s6672_s21 }
 0xa0a   : > { %4372 = vrot.lane.b32.xlu1 %v11088_v0, %s6673_s22 }
 0xa0c   : > { %4374 = vrot.lane.b32.xlu0 %v11090_v32, %s6673_s22 }
 0xa0e   : > { %4396 = vrot.lane.b32.xlu1 %v11088_v0, %s12815_s23 }
 0xa10   : > { %4398 = vrot.lane.b32.xlu0 %v11090_v32, %s12815_s23 }
 0xa12   : > { %4420 = vrot.lane.b32.xlu1 %v11088_v0, %s12813_s24 }
 0xa14   : > { %4422 = vrot.lane.b32.xlu0 %v11090_v32, %s12813_s24 }
 0xa16   : > { %4448 = vrot.lane.b32.xlu1 %v11088_v0, %s12890_s7 }
 0xa18   : > { %4450 = vrot.lane.b32.xlu0 %v11090_v32, %s12890_s7 }
 0xa1a   : > { %4472 = vrot.lane.b32.xlu1 %v11088_v0, %s12891_s8 }
 0xa1c   : > { %4474 = vrot.lane.b32.xlu0 %v11090_v32, %s12891_s8 }
 0xa1e   : > { %4496 = vrot.lane.b32.xlu1 %v11088_v0, %s12870_s17 }
 0xa20   : > { %4498 = vrot.lane.b32.xlu0 %v11090_v32, %s12870_s17 }
 0xa22   : > { %4520 = vrot.lane.b32.xlu1 %v11088_v0, %s12871_s18 }
 0xa24   : > { %4522 = vrot.lane.b32.xlu0 %v11090_v32, %s12871_s18 }
 0xa26   : > { %4111 = vrot.lane.b32.xlu1 %v11088_v0, %s12850_s9 }
 0xa28   : > { %4113 = vrot.lane.b32.xlu0 %v11090_v32, %s12850_s9 }
 0xa2a   : > { %4135 = vrot.lane.b32.xlu1 %v11088_v0, %s12851_s30 }
 0xa2c   : > { %4137 = vrot.lane.b32.xlu0 %v11090_v32, %s12851_s30 }
 0xa2e   : > { %4159 = vrot.lane.b32.xlu1 %v11088_v0, %s12829_s19 }
 0xa30   : > { %4161 = vrot.lane.b32.xlu0 %v11090_v32, %s12829_s19 }
 0xa32   : > { %4183 = vrot.lane.b32.xlu1 %v11088_v0, %s12830_s29 }
 0xa34   : > { %4185 = vrot.lane.b32.xlu0 %v11090_v32, %s12830_s29 }
 0xa36   : > { %4207 = vrot.lane.b32.xlu1 %v11088_v0, %s12817_s12 }
 0xa38   : > { %4209 = vrot.lane.b32.xlu0 %v11090_v32, %s12817_s12 }
 0xa3a   : > { %4231 = vrot.lane.b32.xlu1 %v11088_v0, %s12818_s13 }
 0xa3c   : > { %4233 = vrot.lane.b32.xlu0 %v11090_v32, %s12818_s13 }
 0xa3e   : > { %4255 = vrot.lane.b32.xlu1 %v11088_v0, %s12819_s10 }
 0xa40   : > { %4257 = vrot.lane.b32.xlu0 %v11090_v32, %s12819_s10 }
 0xa42   : > { %4279 = vrot.lane.b32.xlu1 %v11088_v0, %s12820_s11 }
 0xa44   : > { %4281 = vrot.lane.b32.xlu0 %v11090_v32, %s12820_s11 }
 0xa46   : > { %4352 = vrot.lane.b32.xlu1 %v11154_v49, %s6672_s21 }
 0xa48   : > { %4354 = vrot.lane.b32.xlu0 %v11158_v1, %s6672_s21 }
 0xa4a   : > { %4376 = vrot.lane.b32.xlu1 %v11154_v49, %s6673_s22 }
 0xa4c   : > { %4378 = vrot.lane.b32.xlu0 %v11158_v1, %s6673_s22 }
 0xa4e   : > { %4400 = vrot.lane.b32.xlu1 %v11154_v49, %s12815_s23 }
 0xa50   : > { %4402 = vrot.lane.b32.xlu0 %v11158_v1, %s12815_s23  ;;  %s6524_s23 = sshll.u32 %s12934_s16, 4 }
 0xa51   : > { %s197_s28 = scalar_lea.vmem %s12781_s4, %s6524_s23 }
 0xa52   : > { %4424 = vrot.lane.b32.xlu1 %v11154_v49, %s12813_s24 }
 0xa54   : > { %4426 = vrot.lane.b32.xlu0 %v11158_v1, %s12813_s24 }
 0xa56   : > { %4303 = vrot.lane.b32.xlu1 %v11088_v0, %s12821_s14 }
 0xa58   : > { %4305 = vrot.lane.b32.xlu0 %v11090_v32, %s12821_s14 }
 0xa5a   : > { %4452 = vrot.lane.b32.xlu1 %v11154_v49, %s12890_s7 }
 0xa5c   : > { %4454 = vrot.lane.b32.xlu0 %v11158_v1, %s12890_s7 }
 0xa5e   : > { %4476 = vrot.lane.b32.xlu1 %v11154_v49, %s12891_s8 }
 0xa60   : > { %4478 = vrot.lane.b32.xlu0 %v11158_v1, %s12891_s8 }
 0xa62   : > { %4500 = vrot.lane.b32.xlu1 %v11154_v49, %s12870_s17 }
 0xa64   : > { %4502 = vrot.lane.b32.xlu0 %v11158_v1, %s12870_s17 }
 0xa66   : > { %4524 = vrot.lane.b32.xlu1 %v11154_v49, %s12871_s18 }
 0xa68   : > { %4526 = vrot.lane.b32.xlu0 %v11158_v1, %s12871_s18 }
 0xa6a   : > { %4115 = vrot.lane.b32.xlu1 %v11154_v49, %s12850_s9 }
 0xa6c   : > { %4117 = vrot.lane.b32.xlu0 %v11158_v1, %s12850_s9 }
 0xa6e   : > { %4139 = vrot.lane.b32.xlu1 %v11154_v49, %s12851_s30 }
 0xa70   : > { %4141 = vrot.lane.b32.xlu0 %v11158_v1, %s12851_s30 }
 0xa72   : > { %4163 = vrot.lane.b32.xlu1 %v11154_v49, %s12829_s19 }
 0xa74   : > { %4165 = vrot.lane.b32.xlu0 %v11158_v1, %s12829_s19 }
 0xa76   : > { %4187 = vrot.lane.b32.xlu1 %v11154_v49, %s12830_s29 }
 0xa78   : > { %v4349_v22 = vpop.permute.xlu1 %4348  ;;  %4189 = vrot.lane.b32.xlu0 %v11158_v1, %s12830_s29 }
 0xa7a   : > { %4211 = vrot.lane.b32.xlu1 %v11154_v49, %s12817_s12  ;;  %v4351_v24 = vpop.permute.xlu0 %4350 }
 0xa7c   : > { %v4373_v38 = vpop.permute.xlu1 %4372  ;;  %4213 = vrot.lane.b32.xlu0 %v11158_v1, %s12817_s12 }
 0xa7e   : > { %4235 = vrot.lane.b32.xlu1 %v11154_v49, %s12818_s13  ;;  %v11222_v27 = vpop.permute.xlu0 %4374 }
 0xa80   : > { %v11224_v46 = vpop.permute.xlu1 %4396  ;;  %4237 = vrot.lane.b32.xlu0 %v11158_v1, %s12818_s13 }
 0xa82   : > { %4259 = vrot.lane.b32.xlu1 %v11154_v49, %s12819_s10  ;;  %v11230_v19 = vpop.permute.xlu0 %4398 }
 0xa84   : > { %v11232_v53 = vpop.permute.xlu1 %4420  ;;  %4261 = vrot.lane.b32.xlu0 %v11158_v1, %s12819_s10 }
 0xa86   : > { %4283 = vrot.lane.b32.xlu1 %v11154_v49, %s12820_s11  ;;  %v11238_v16 = vpop.permute.xlu0 %4422 }
 0xa88   : > { %v11240_v30 = vpop.permute.xlu1 %4448  ;;  %4285 = vrot.lane.b32.xlu0 %v11158_v1, %s12820_s11 }
 0xa8a   : > { %4307 = vrot.lane.b32.xlu1 %v11154_v49, %s12821_s14  ;;  %v11246_v9 = vpop.permute.xlu0 %4450 }
 0xa8c   : > { %v11251_v54 = vpop.permute.xlu1 %4472  ;;  %4309 = vrot.lane.b32.xlu0 %v11158_v1, %s12821_s14 }
 0xa8e   : > { %4868 = vperm.xlu1 %6600, %v6403_v60   ;;  %v11258_v50 = vpop.permute.xlu0 %4474 }
 0xa90   : > { %v11260_v15 = vpop.permute.xlu1 %4496  ;;  %4873 = vperm.xlu0 %6599, %v6404_v12  }
 0xa92   : > { %v11262_v26 = vpop.permute.xlu0 %4498 }
 0xa94   : > { %v11264_v18 = vpop.permute.xlu1 %4520 }
 0xa96   : > { %v11266_v2 = vpop.permute.xlu0 %4522 }
 0xa98   : > { %v11268_v5 = vpop.permute.xlu1 %4111 }
 0xa9a   : > { %v11270_v62 = vpop.permute.xlu0 %4113 }
 0xa9c   : > { %v11272_v41 = vpop.permute.xlu1 %4135 }
 0xa9e   : > { %v11274_v37 = vpop.permute.xlu0 %4137 }
 0xaa0   : > { %v11276_v40 = vpop.permute.xlu1 %4159 }
 0xaa2   : > { %v11278_v23 = vpop.permute.xlu0 %4161 }
 0xaa4   : > { %v11280_v39 = vpop.permute.xlu1 %4183 }
 0xaa6   : > { %v11282_v59 = vpop.permute.xlu0 %4185 }
 0xaa8   : > { %v11284_v25 = vpop.permute.xlu1 %4207 }
 0xaaa   : > { %v11286_v21 = vpop.permute.xlu0 %4209 }
 0xaac   : > { %v11288_v34 = vpop.permute.xlu1 %4231 }
 0xaae   : > { %v11290_v10 = vpop.permute.xlu0 %4233 }
 0xab0   : > { %v11292_v11 = vpop.permute.xlu1 %4255 }
 0xab2   : > { %v11294_v35 = vpop.permute.xlu0 %4257 }
 0xab4   : > { %v11296_v52 = vpop.permute.xlu1 %4279 }
 0xab6   : > { %v11298_v47 = vpop.permute.xlu0 %4281 }
 0xab8   : > { %v4353_v56 = vpop.permute.xlu1 %4352 }
 0xab9   : > { %v4356_v63 = vsel %vm466_vm1, %v4349_v22, %v4353_v56  ;;  %v4358_v51 = vsel %vm466_vm1, %v4353_v56, %v4349_v22 }
 0xaba   : > { %v4355_v17 = vpop.permute.xlu0 %4354  ;;  %v4364_v14 = vmul.f32 %v6322_v20, %v4358_v51  ;;  %v4365_v57 = vmul.f32 %v6323_v7, %v4356_v63  ;;  %v6330_v20 = vld [vmem:[%s12780_s3 + $0x160] sm:$0xff]  ;;  %v6331_v7 = vld [vmem:[%s12780_s3 + $0x168] sm:$0xff]  ;;  %v6332_v51 = vld [vmem:[%s12780_s3 + $0x170] sm:$0xff] }
 0xabb   : > { %v4357_v55 = vsel %vm466_vm1, %v4351_v24, %v4355_v17  ;;  %v4359_v36 = vsel %vm466_vm1, %v4355_v17, %v4351_v24 }
 0xabc   : > { %v4366_v13 = vmul.f32 %v6324_v28, %v4359_v36  ;;  %v4367_v43 = vmul.f32 %v6325_v44, %v4357_v55  ;;  %v4377_v45 = vpop.permute.xlu1 %4376  ;;  %v6333_v28 = vld [vmem:[%s12780_s3 + $0x178] sm:$0xff] }
 0xabd   : > { %v4380_v29 = vsel %vm492_vm2, %v4373_v38, %v4377_v45  ;;  %v4382_v61 = vsel %vm492_vm2, %v4377_v45, %v4373_v38 }
 0xabe   : > { %v4368_v48 = vpack.c.bf16 %v4366_v13, %v4364_v14  ;;  %v4379_v3 = vpop.permute.xlu0 %4378  ;;  %v4369_v31 = vpack.c.bf16 %v4367_v43, %v4365_v57  ;;  %v4388_v24 = vmul.f32 %v6326_v58, %v4382_v61  ;;  %v4389_v38 = vmul.f32 %v6327_v4, %v4380_v29  ;;  %v6334_v58 = vld [vmem:[%s12780_s3 + $0x180] sm:$0xff]  ;;  %v6335_v4 = vld [vmem:[%s12780_s3 + $0x188] sm:$0xff]  ;;  %v6336_v61 = vld [vmem:[%s12780_s3 + $0x190] sm:$0xff] }
 0xabf   : > { %v4381_v42 = vsel %vm492_vm2, %v11222_v27, %v4379_v3  ;;  %v4383_v22 = vsel %vm492_vm2, %v4379_v3, %v11222_v27 }
 0xac0   : > { %v4390_v60 = vmul.f32 %v6328_v33, %v4383_v22  ;;  %v4391_v12 = vmul.f32 %v6329_v8, %v4381_v42  ;;  %v4401_v56 = vpop.permute.xlu1 %4400  ;;  %4577 = vmatprep.subr.bf16.mxu1 %v4369_v31  ;;  %v6337_v33 = vld [vmem:[%s12780_s3 + $0x198] sm:$0xff] }
 0xac1   : > { %v4404_v63 = vsel %vm518_vm3, %v11224_v46, %v4401_v56  ;;  %v4406_v27 = vsel %vm518_vm3, %v4401_v56, %v11224_v46  ;;  %4578 = vmatpush1.bf16.msra.mxu1 %v4368_v48 }
 0xac2   : > { %v4392_v44 = vpack.c.bf16 %v4390_v60, %v4388_v24  ;;  %v4403_v17 = vpop.permute.xlu0 %4402  ;;  %v4393_v55 = vpack.c.bf16 %v4391_v12, %v4389_v38  ;;  %v4412_v14 = vmul.f32 %v6330_v20, %v4406_v27  ;;  %v4413_v57 = vmul.f32 %v6331_v7, %v4404_v63  ;;  %v6338_v7 = vld [vmem:[%s12780_s3 + $0x1c0] sm:$0xff]  ;;  %v6339_v27 = vld [vmem:[%s12780_s3 + $0x1c8] sm:$0xff] }
 0xac3   : > { %v4405_v36 = vsel %vm518_vm3, %v11230_v19, %v4403_v17  ;;  %v4407_v46 = vsel %vm518_vm3, %v4403_v17, %v11230_v19 }
 0xac4   : > { %v4414_v13 = vmul.f32 %v6332_v51, %v4407_v46  ;;  %v4415_v43 = vmul.f32 %v6333_v28, %v4405_v36  ;;  %v4425_v45 = vpop.permute.xlu1 %4424  ;;  %4579 = vmatprep.subr.bf16.mxu1 %v4393_v55 }
 0xac5   : > { %v4428_v29 = vsel %vm544_vm4, %v11232_v53, %v4425_v45  ;;  %v4430_v19 = vsel %vm544_vm4, %v4425_v45, %v11232_v53  ;;  %4580 = vmatpush1.bf16.msra.mxu1 %v4392_v44  ;;  %v6340_v44 = vld [vmem:[%s12780_s3 + $0x1d0] sm:$0xff]  ;;  %v6345_v45 = vld [vmem:[%s12780_s3 + $0x1f8] sm:$0xff] }
 0xac6   : > { %v4416_v8 = vpack.c.bf16 %v4414_v13, %v4412_v14  ;;  %v4427_v48 = vpop.permute.xlu0 %4426  ;;  %v4417_v3 = vpack.c.bf16 %v4415_v43, %v4413_v57  ;;  %v4436_v42 = vmul.f32 %v6334_v58, %v4430_v19  ;;  %v4437_v22 = vmul.f32 %v6335_v4, %v4428_v29  ;;  %v6342_v13 = vld [vmem:[%s12780_s3 + $0x1e0] sm:$0xff]  ;;  %v6343_v58 = vld [vmem:[%s12780_s3 + $0x1e8] sm:$0xff] }
 0xac7   : > { %v4429_v31 = vsel %vm544_vm4, %v11238_v16, %v4427_v48  ;;  %v4431_v53 = vsel %vm544_vm4, %v4427_v48, %v11238_v16  ;;  %v4445_v16 = vpack.c.bf16 %v11158_v1, %v11154_v49  ;;  %v6341_v49 = vld [vmem:[%s12780_s3 + $0x1d8] sm:$0xff] }
 0xac8   : > { %v4438_v24 = vmul.f32 %v6336_v61, %v4431_v53  ;;  %v4439_v38 = vmul.f32 %v6337_v33, %v4429_v31  ;;  %v11390_v60 = vpop.permute.xlu1 %4303  ;;  %4581 = vmatprep.subr.bf16.mxu1 %v4417_v3  ;;  %v6346_v31 = vld [vmem:[%s12780_s3 + $0x200] sm:$0xff] }
 0xac9   : > { %4582 = vmatpush1.bf16.msra.mxu1 %v4416_v8 }
 0xaca   : > { %v4440_v12 = vpack.c.bf16 %v4438_v24, %v4436_v42  ;;  %v11392_v20 = vpop.permute.xlu0 %4305  ;;  %v4441_v56 = vpack.c.bf16 %v4439_v38, %v4437_v22  ;;  %v6347_v42 = vld [vmem:[%s12780_s3 + $0x208] sm:$0xff]  ;;  %v6348_v24 = vld [vmem:[%s12780_s3 + $0x210] sm:$0xff]  ;;  %v6349_v38 = vld [vmem:[%s12780_s3 + $0x218] sm:$0xff] }
 0xacc   : > { %v4453_v63 = vpop.permute.xlu1 %4452  ;;  %4583 = vmatprep.subr.bf16.mxu1 %v4441_v56 }
 0xacd   : > { %v4456_v51 = vsel %vm574_vm5, %v11240_v30, %v4453_v63  ;;  %v4458_v28 = vsel %vm574_vm5, %v4453_v63, %v11240_v30  ;;  %4584 = vmatpush1.bf16.msra.mxu1 %v4440_v12  ;;  %v4444_v30 = vpack.c.bf16 %v11090_v32, %v11088_v0  ;;  %v6344_v32 = vld [vmem:[%s12780_s3 + $0x1f0] sm:$0xff] }
 0xace   : > { %v4455_v1 = vpop.permute.xlu0 %4454  ;;  %4585 = vmatprep.subr.bf16.mxu1 %v4445_v16  ;;  %v4464_v36 = vmul.f32 %v6338_v7, %v4456_v51  ;;  %v4465_v46 = vmul.f32 %v6339_v27, %v4458_v28 }
 0xacf   : > { %v4457_v17 = vsel %vm574_vm5, %v11246_v9, %v4455_v1  ;;  %v4459_v55 = vsel %vm574_vm5, %v4455_v1, %v11246_v9 }
 0xad0   : > { %v4466_v14 = vmul.f32 %v6340_v44, %v4457_v17  ;;  %v4467_v57 = vmul.f32 %v6341_v49, %v4459_v55  ;;  %v4477_v43 = vpop.permute.xlu1 %4476  ;;  %v6350_v49 = vld [vmem:[%s12780_s3 + $0x220] sm:$0xff]  ;;  %v6352_v17 = vld [vmem:[%s12780_s3 + $0x230] sm:$0xff] }
 0xad1   : > { %v4480_v9 = vsel %vm600_vm6, %v11251_v54, %v4477_v43  ;;  %v4482_v0 = vsel %vm600_vm6, %v4477_v43, %v11251_v54  ;;  %4586 = vmatpush1.bf16.msra.mxu1 %v4444_v30  ;;  %v6351_v30 = vld [vmem:[%s12780_s3 + $0x228] sm:$0xff] }
 0xad2   : > { %v4468_v4 = vpack.c.bf16 %v4466_v14, %v4464_v36  ;;  %v4479_v29 = vpop.permute.xlu0 %4478  ;;  %v4469_v19 = vpack.c.bf16 %v4467_v57, %v4465_v46  ;;  %v4488_v33 = vmul.f32 %v6342_v13, %v4480_v9  ;;  %v4489_v8 = vmul.f32 %v6343_v58, %v4482_v0 }
 0xad3   : > { %v4481_v61 = vsel %vm600_vm6, %v11258_v50, %v4479_v29  ;;  %v4483_v54 = vsel %vm600_vm6, %v4479_v29, %v11258_v50 }
 0xad4   : > { %v4490_v48 = vmul.f32 %v6344_v32, %v4481_v61  ;;  %v4491_v3 = vmul.f32 %v6345_v45, %v4483_v54  ;;  %v4501_v53 = vpop.permute.xlu1 %4500  ;;  %4587 = vmatprep.subr.bf16.mxu1 %v4469_v19 }
 0xad5   : > { %v4504_v22 = vsel %vm626_vm7, %v11260_v15, %v4501_v53  ;;  %v4506_v50 = vsel %vm626_vm7, %v4501_v53, %v11260_v15  ;;  %4588 = vmatpush1.bf16.msra.mxu1 %v4468_v4  ;;  %v4126_v4 = vld [vmem:[%s12780_s3 + $0x18] sm:$0xff] }
 0xad6   : > { %v4492_v12 = vpack.c.bf16 %v4490_v48, %v4488_v33  ;;  %v4503_v56 = vpop.permute.xlu0 %4502  ;;  %v4493_v7 = vpack.c.bf16 %v4491_v3, %v4489_v8  ;;  %v4512_v16 = vmul.f32 %v6346_v31, %v4504_v22  ;;  %v4513_v27 = vmul.f32 %v6347_v42, %v4506_v50  ;;  %v4124_v8 = vld [vmem:[%s12780_s3 + $0x8] sm:$0xff] }
 0xad7   : > { %v4505_v63 = vsel %vm626_vm7, %v11262_v26, %v4503_v56  ;;  %v4507_v15 = vsel %vm626_vm7, %v4503_v56, %v11262_v26  ;;  %v6353_v26 = vld [vmem:[%s12780_s3 + $0x238] sm:$0xff]  ;;  %v6648_v42 = vld [vmem:[%s12778_s1 + $0x100] ss:$8 sps:$4 sm:$0xff]  }
 0xad8   : > { %v4514_v51 = vmul.f32 %v6348_v24, %v4505_v63  ;;  %v4515_v28 = vmul.f32 %v6349_v38, %v4507_v15  ;;  %v4525_v44 = vpop.permute.xlu1 %4524  ;;  %4589 = vmatprep.subr.bf16.mxu1 %v4493_v7  ;;  %v6649_v24 = vld [vmem:[%s12778_s1 + $0xf4] ss:$8 sps:$4 sm:$0xff]  }
 0xad9   : > { %v4528_v1 = vsel %vm652_vm8, %v11264_v18, %v4525_v44  ;;  %4590 = vmatpush1.bf16.msra.mxu1 %v4492_v12  ;;  %v4530_v36 = vsel %vm652_vm8, %v4525_v44, %v11264_v18  ;;  %v4125_v18 = vld [vmem:[%s12780_s3 + $0x10] sm:$0xff]  ;;  %v6288_v12 = vld [vmem:[%s12780_s3 + $0x20] sm:$0xff] }
 0xada   : > { %v4516_v55 = vpack.c.bf16 %v4514_v51, %v4512_v16  ;;  %v4527_v46 = vpop.permute.xlu0 %4526  ;;  %v4517_v14 = vpack.c.bf16 %v4515_v28, %v4513_v27  ;;  %v4536_v43 = vmul.f32 %v6350_v49, %v4528_v1  ;;  %v4537_v32 = vmul.f32 %v6351_v30, %v4530_v36  ;;  %v6289_v16 = vld [vmem:[%s12780_s3 + $0x28] sm:$0xff] }
 0xadb   : > { %v4529_v57 = vsel %vm652_vm8, %v11266_v2, %v4527_v46  ;;  %v4531_v13 = vsel %vm652_vm8, %v4527_v46, %v11266_v2  ;;  %v4123_v2 = vld [vmem:[%s12780_s3] sm:$0xff] }
 0xadc   : > { %v4538_v58 = vmul.f32 %v6352_v17, %v4529_v57  ;;  %v4539_v9 = vmul.f32 %v6353_v26, %v4531_v13  ;;  %v4116_v0 = vpop.permute.xlu1 %4115  ;;  %4591 = vmatprep.subr.bf16.mxu1 %v4517_v14  ;;  %v6295_v17 = vld [vmem:[%s12780_s3 + $0x58] sm:$0xff]  ;;  %v6293_v57 = vld [vmem:[%s12780_s3 + $0x48] sm:$0xff] }
 0xadd   : > { %4592 = vmatpush1.bf16.msra.mxu1 %v4516_v55  ;;  %v11506_v19 = vsel %vm213_vm9, %v4116_v0, %v11268_v5  ;;  %v11524_v48 = vsel %vm213_vm9, %v11268_v5, %v4116_v0  ;;  %v6291_v5 = vld [vmem:[%s12780_s3 + $0x38] sm:$0xff]  ;;  %v6292_v55 = vld [vmem:[%s12780_s3 + $0x40] sm:$0xff] }
 0xade   : > { %v4540_v45 = vpack.c.bf16 %v4538_v58, %v4536_v43  ;;  %v4118_v29 = vpop.permute.xlu0 %4117  ;;  %v4541_v33 = vpack.c.bf16 %v4539_v9, %v4537_v32  ;;  %v4127_v22 = vmul.f32 %v4123_v2, %v11506_v19  ;;  %v4128_v38 = vmul.f32 %v4124_v8, %v11524_v48 }
 0xadf   : > { %v11511_v61 = vsel %vm213_vm9, %v11270_v62, %v4118_v29  ;;  %v11516_v54 = vsel %vm213_vm9, %v4118_v29, %v11270_v62  ;;  %v6290_v62 = vld [vmem:[%s12780_s3 + $0x30] sm:$0xff] }
 0xae0   : > { %v4129_v3 = vmul.f32 %v4125_v18, %v11516_v54  ;;  %v4140_v31 = vpop.permute.xlu1 %4139  ;;  %v4130_v53 = vmul.f32 %v4126_v4, %v11511_v61  ;;  %4593 = vmatprep.subr.bf16.mxu1 %v4541_v33  ;;  %v6299_v18 = vld [vmem:[%s12780_s3 + $0x78] sm:$0xff]  ;;  %v6296_v4 = vld [vmem:[%s12780_s3 + $0x60] sm:$0xff] }
 0xae1   : > { %4594 = vmatpush1.bf16.msra.mxu1 %v4540_v45  ;;  %v11548_v56 = vsel %vm238_vm10, %v4140_v31, %v11272_v41  ;;  %v11566_v27 = vsel %vm238_vm10, %v11272_v41, %v4140_v31 }
 0xae2   : > { %v4142_v50 = vpop.permute.xlu0 %4141  ;;  %v4131_v15 = vpack.c.bf16 %v4129_v3, %v4127_v22  ;;  %v4132_v49 = vpack.c.bf16 %v4130_v53, %v4128_v38  ;;  %v4151_v1 = vmul.f32 %v6288_v12, %v11548_v56  ;;  %v4152_v41 = vmul.f32 %v6289_v16, %v11566_v27  ;;  %v6297_v3 = vld [vmem:[%s12780_s3 + $0x68] sm:$0xff]  ;;  %v6300_v38 = vld [vmem:[%s12780_s3 + $0x80] sm:$0xff] }
 0xae3   : > { %v11553_v7 = vsel %vm238_vm10, %v11274_v37, %v4142_v50  ;;  %v11558_v63 = vsel %vm238_vm10, %v4142_v50, %v11274_v37  ;;  %v6294_v37 = vld [vmem:[%s12780_s3 + $0x50] sm:$0xff]  ;;  %v6303_v50 = vld [vmem:[%s12780_s3 + $0x98] sm:$0xff] }
 0xae4   : > { %v4153_v51 = vmul.f32 %v6290_v62, %v11558_v63  ;;  %v4164_v28 = vpop.permute.xlu1 %4163  ;;  %v4154_v44 = vmul.f32 %v6291_v5, %v11553_v7  ;;  %4610 = vmatmul.mubr.bf16.vlgmr.msra.gmra.mrb[8].mxu1 %v6648_v42  ;;  %4632 = vmatprep.subr.bf16.mxu1 %v4132_v49 }
 0xae5   : > { %6361 = vmatprep.mubr.msk.bf16.mxu1 %vm700_vm0, %v6649_v24  ;;  %v11585_v30 = vsel %vm12892_vm12, %v4164_v28, %v11276_v40  ;;  %vm12895_vm12 = vmmov %vm12894_vm11  ;;  %4633 = vmatpush1.bf16.msra.mxu1 %v4131_v15 }
 0xae6   : > { %v4166_v26 = vpop.permute.xlu0 %4165  ;;  %v4155_v14 = vpack.c.bf16 %v4153_v51, %v4151_v1  ;;  %v11603_v13 = vsel %vm12895_vm12, %v11276_v40, %v4164_v28  ;;  %v4156_v0 = vpack.c.bf16 %v4154_v44, %v4152_v41  ;;  %v4175_v32 = vmul.f32 %v6292_v55, %v11585_v30  ;;  %v6301_v28 = vld [vmem:[%s12780_s3 + $0x88] sm:$0xff]  ;;  %v6307_v41 = vld [vmem:[%s12780_s3 + $0xb8] sm:$0xff] }
 0xae7   : > { %v11590_v36 = vsel %vm12893_vm13, %v11278_v23, %v4166_v26  ;;  %v11595_v46 = vsel %vm12894_vm11, %v4166_v26, %v11278_v23  ;;  %v6298_v23 = vld [vmem:[%s12780_s3 + $0x70] sm:$0xff]  ;;  %v4176_v40 = vmul.f32 %v6293_v57, %v11603_v13  ;;  %vm12896_vm13 = vcmp.lt.s32.totalorder %v6859_v6, 65 }
 0xae8   : > { %v4177_v43 = vmul.f32 %v6294_v37, %v11595_v46  ;;  %v4188_v58 = vpop.permute.xlu1 %4187  ;;  %v4178_v9 = vmul.f32 %v6295_v17, %v11590_v36  ;;  %4634 = vmatprep.subr.bf16.mxu1 %v4156_v0  ;;  %vm12897_vm11 = vmmov %vm12896_vm13  ;;  %v6305_v0 = vld [vmem:[%s12780_s3 + $0xa8] sm:$0xff] }
 0xae9   : > { %v11621_v29 = vsel %vm12896_vm13, %v4188_v58, %v11280_v39  ;;  %vm12898_vm12 = vmmov %vm12897_vm11  ;;  %4635 = vmatpush1.bf16.msra.mxu1 %v4155_v14  ;;  %v6304_v14 = vld [vmem:[%s12780_s3 + $0xa0] sm:$0xff] }
 0xaea   : > { %v4190_v45 = vpop.permute.xlu0 %4189  ;;  %v4179_v8 = vpack.c.bf16 %v4177_v43, %v4175_v32  ;;  %vm12899_vm13 = vmmov %vm12897_vm11  ;;  %v4180_v22 = vpack.c.bf16 %v4178_v9, %v4176_v40  ;;  %v4199_v5 = vmul.f32 %v6296_v4, %v11621_v29 }
 0xaeb   : > { %v11626_v2 = vsel %vm12897_vm11, %v11282_v59, %v4190_v45  ;;  %v11631_v33 = vsel %vm12898_vm12, %v4190_v45, %v11282_v59  ;;  %v11639_v31 = vsel %vm12899_vm13, %v11280_v39, %v4188_v58  ;;  %v6302_v59 = vld [vmem:[%s12780_s3 + $0x90] sm:$0xff]  ;;  %vm12900_vm11 = vcmp.lt.s32.totalorder %v6859_v6, 64 }
 0xaec   : > { %v4201_v53 = vmul.f32 %v6298_v23, %v11631_v33  ;;  %v4212_v62 = vpop.permute.xlu1 %4211  ;;  %v4202_v42 = vmul.f32 %v6299_v18, %v11626_v2  ;;  %v4200_v39 = vmul.f32 %v6297_v3, %v11639_v31  ;;  %4636 = vmatprep.subr.bf16.mxu1 %v4180_v22  ;;  %vm12901_vm12 = vmmov %vm12900_vm11 }
 0xaed   : > { %v11657_v12 = vsel %vm12900_vm11, %v4212_v62, %v11284_v25  ;;  %vm12902_vm13 = vmmov %vm12900_vm11  ;;  %v11675_v44 = vsel %vm12900_vm11, %v11284_v25, %v4212_v62  ;;  %4637 = vmatpush1.bf16.msra.mxu1 %v4179_v8  ;;  %v6311_v8 = vld [vmem:[%s12780_s3 + $0xd8] sm:$0xff] }
 0xaee   : > { %v4214_v24 = vpop.permute.xlu0 %4213  ;;  %v4203_v51 = vpack.c.bf16 %v4201_v53, %v4199_v5  ;;  %v4204_v17 = vpack.c.bf16 %v4202_v42, %v4200_v39  ;;  %v4223_v26 = vmul.f32 %v6300_v38, %v11657_v12  ;;  %v4224_v25 = vmul.f32 %v6301_v28, %v11675_v44  ;;  %v6308_v53 = vld [vmem:[%s12780_s3 + $0xc0] sm:$0xff]  ;;  %v6309_v5 = vld [vmem:[%s12780_s3 + $0xc8] sm:$0xff] }
 0xaef   : > { %v11662_v15 = vsel %vm12901_vm12, %v11286_v21, %v4214_v24  ;;  %v11667_v16 = vsel %vm12902_vm13, %v4214_v24, %v11286_v21  ;;  %v6306_v21 = vld [vmem:[%s12780_s3 + $0xb0] sm:$0xff]  ;;  %vm12903_vm12 = vcmp.lt.s32.totalorder %v6859_v6, 63 }
 0xaf0   : > { %v4225_v49 = vmul.f32 %v6302_v59, %v11667_v16  ;;  %v4236_v37 = vpop.permute.xlu1 %4235  ;;  %v4226_v1 = vmul.f32 %v6303_v50, %v11662_v15  ;;  %4638 = vmatprep.subr.bf16.mxu1 %v4204_v17  ;;  %vm12904_vm13 = vmmov %vm12903_vm12 }
 0xaf1   : > { %v11693_v57 = vsel %vm12903_vm12, %v4236_v37, %v11288_v34  ;;  %vm12905_vm11 = vmmov %vm12903_vm12  ;;  %4639 = vmatpush1.bf16.msra.mxu1 %v4203_v51 }
 0xaf2   : > { %v4238_v55 = vpop.permute.xlu0 %4237  ;;  %v4227_v9 = vpack.c.bf16 %v4225_v49, %v4223_v26  ;;  %vm12906_vm12 = vmmov %vm12905_vm11  ;;  %v4228_v40 = vpack.c.bf16 %v4226_v1, %v4224_v25  ;;  %v4247_v4 = vmul.f32 %v6304_v14, %v11693_v57  ;;  %v6315_v49 = vld [vmem:[%s12780_s3 + $0xf8] sm:$0xff]  ;;  %v6312_v1 = vld [vmem:[%s12780_s3 + $0xe0] sm:$0xff] }
 0xaf3   : > { %v11698_v43 = vsel %vm12904_vm13, %v11290_v10, %v4238_v55  ;;  %v11703_v58 = vsel %vm12905_vm11, %v4238_v55, %v11290_v10  ;;  %v11711_v23 = vsel %vm12906_vm12, %v11288_v34, %v4236_v37  ;;  %v6310_v10 = vld [vmem:[%s12780_s3 + $0xd0] sm:$0xff]  ;;  %vm12907_vm13 = vcmp.lt.s32.totalorder %v6859_v6, 57  ;;  %v6313_v55 = vld [vmem:[%s12780_s3 + $0xe8] sm:$0xff] }
 0xaf4   : > { %v4249_v32 = vmul.f32 %v6306_v21, %v11703_v58  ;;  %v4260_v18 = vpop.permute.xlu1 %4259  ;;  %v4250_v45 = vmul.f32 %v6307_v41, %v11698_v43  ;;  %v4248_v34 = vmul.f32 %v6305_v0, %v11711_v23  ;;  %4640 = vmatprep.subr.bf16.mxu1 %v4228_v40  ;;  %vm12908_vm11 = vmmov %vm12907_vm13 }
 0xaf5   : > { %v11729_v62 = vsel %vm12907_vm13, %v4260_v18, %v11292_v11  ;;  %vm12909_vm12 = vmmov %vm12908_vm11  ;;  %4641 = vmatpush1.bf16.msra.mxu1 %v4227_v9 }
 0xaf6   : > { %v4262_v3 = vpop.permute.xlu0 %4261  ;;  %v4251_v59 = vpack.c.bf16 %v4249_v32, %v4247_v4  ;;  %vm12910_vm13 = vmmov %vm12908_vm11  ;;  %v4252_v51 = vpack.c.bf16 %v4250_v45, %v4248_v34  ;;  %v4271_v28 = vmul.f32 %v6308_v53, %v11729_v62  ;;  %v6319_v45 = vld [vmem:[%s12780_s3 + $0x118] sm:$0xff] }
 0xaf7   : > { %v11734_v42 = vsel %vm12908_vm11, %v11294_v35, %v4262_v3  ;;  %v11739_v22 = vsel %vm12909_vm12, %v4262_v3, %v11294_v35  ;;  %v11747_v50 = vsel %vm12910_vm13, %v11292_v11, %v4260_v18  ;;  %v6314_v35 = vld [vmem:[%s12780_s3 + $0xf0] sm:$0xff]  ;;  %vm12925_vm12 = vcmp.lt.s32.totalorder %v6859_v6, 63 }
 0xaf8   : > { %v4273_v24 = vmul.f32 %v6310_v10, %v11739_v22  ;;  %v4284_v39 = vpop.permute.xlu1 %4283  ;;  %v4274_v38 = vmul.f32 %v6311_v8, %v11734_v42  ;;  %v4272_v11 = vmul.f32 %v6309_v5, %v11747_v50  ;;  %4642 = vmatprep.subr.bf16.mxu1 %v4252_v51  ;;  %v6316_v8 = vld [vmem:[%s12780_s3 + $0x100] sm:$0xff]  ;;  %v6363_v51 = vld [vmem:[%s12780_s3 + $0x248] sm:$0xff]  ;;  %vm12926_vm13 = vmmov %vm12925_vm12 }
 0xaf9   : > { %v11765_v17 = vsel %vm394_vm14, %v4284_v39, %v11296_v52  ;;  %v11783_v25 = vsel %vm394_vm14, %v11296_v52, %v4284_v39  ;;  %4643 = vmatpush1.bf16.msra.mxu1 %v4251_v59  ;;  %v6318_v52 = vld [vmem:[%s12780_s3 + $0x110] sm:$0xff]  ;;  %v6365_v59 = vld [vmem:[%s12780_s3 + $0x258] sm:$0xff] }
 0xafa   : > { %v4286_v37 = vpop.permute.xlu0 %4285  ;;  %v4275_v41 = vpack.c.bf16 %v4273_v24, %v4271_v28  ;;  %v4276_v18 = vpack.c.bf16 %v4274_v38, %v4272_v11  ;;  %v4295_v40 = vmul.f32 %v6312_v1, %v11765_v17  ;;  %v4296_v4 = vmul.f32 %v6313_v55, %v11783_v25  ;;  %v6364_v28 = vld [vmem:[%s12780_s3 + $0x250] sm:$0xff]  ;;  %v6362_v1 = vld [vmem:[%s12780_s3 + $0x240] sm:$0xff] }
 0xafb   : > { %v11770_v21 = vsel %vm394_vm14, %v11298_v47, %v4286_v37  ;;  %v11775_v26 = vsel %vm394_vm14, %v4286_v37, %v11298_v47  ;;  %v6317_v47 = vld [vmem:[%s12780_s3 + $0x108] sm:$0xff]  ;;  %v6369_v37 = vld [vmem:[%s12780_s3 + $0x278] sm:$0xff]  ;;  %v4681_v55 = vmul.f32 %v6364_v28, %v11511_v61 }
 0xafc   : > { %v4297_v14 = vmul.f32 %v6314_v35, %v11775_v26  ;;  %v4308_v9 = vpop.permute.xlu1 %4307  ;;  %v4298_v0 = vmul.f32 %v6315_v49, %v11770_v21  ;;  %4644 = vmatprep.subr.bf16.mxu1 %v4276_v18  ;;  %v4682_v49 = vmul.f32 %v6365_v59, %v11516_v54  ;;  %v6367_v54 = vld [vmem:[%s12780_s3 + $0x268] sm:$0xff]  ;;  %v6373_v61 = vld [vmem:[%s12780_s3 + $0x298] sm:$0xff] }
 0xafd   : > { %v11793_v32 = vsel %vm420_vm15, %v11390_v60, %v4308_v9  ;;  %v11809_v3 = vsel %vm420_vm15, %v4308_v9, %v11390_v60  ;;  %4645 = vmatpush1.bf16.msra.mxu1 %v4275_v41  ;;  %v4680_v41 = vmul.f32 %v6363_v51, %v11506_v19  ;;  %v4694_v9 = vmul.f32 %v6369_v37, %v11558_v63  ;;  %v6652_v18 = vld [vmem:[%s12778_s1 + $0x114] ss:$8 sps:$4 sm:$0xff]   ;;  %v6366_v63 = vld [vmem:[%s12780_s3 + $0x260] sm:$0xff] }
 0xafe   : > { %v4310_v10 = vpop.permute.xlu0 %4309  ;;  %v4299_v5 = vpack.c.bf16 %v4297_v14, %v4295_v40  ;;  %v4320_v24 = vmul.f32 %v6317_v47, %v11793_v32  ;;  %v4300_v38 = vpack.c.bf16 %v4298_v0, %v4296_v4  ;;  %v6368_v14 = vld [vmem:[%s12780_s3 + $0x270] sm:$0xff]  ;;  %v4679_v19 = vmul.f32 %v6362_v1, %v11524_v48  ;;  %v6371_v48 = vld [vmem:[%s12780_s3 + $0x288] sm:$0xff] }
 0xaff   : > { %v11814_v34 = vsel %vm420_vm15, %v11392_v20, %v4310_v10  ;;  %v11819_v53 = vsel %vm420_vm15, %v4310_v10, %v11392_v20  ;;  %v4319_v20 = vmul.f32 %v6316_v8, %v11809_v3  ;;  %v4684_v0 = vpack.c.bf16 %v4682_v49, %v4680_v41  ;;  %v6651_v47 = vld [vmem:[%s12778_s1 + $0xf0] ss:$8 sps:$4 sm:$0xff]  }
 0xb00   : > { %v4321_v60 = vmul.f32 %v6318_v52, %v11819_v53  ;;  %v4322_v39 = vmul.f32 %v6319_v45, %v11814_v34  ;;  %4646 = vmatprep.subr.bf16.mxu1 %v4300_v38  ;;  %v4692_v52 = vmul.f32 %v6367_v54, %v11548_v56  ;;  %v4683_v45 = vpack.c.bf16 %v4681_v55, %v4679_v19  ;;  %v6372_v10 = vld [vmem:[%s12780_s3 + $0x290] sm:$0xff]  ;;  %v6377_v56 = vld [vmem:[%s12780_s3 + $0x2b8] sm:$0xff] }
 0xb01   : > { %4647 = vmatpush1.bf16.msra.mxu1 %v4299_v5  ;;  %v4693_v40 = vmul.f32 %v6368_v14, %v11553_v7  ;;  %v4706_v4 = vmul.f32 %v6373_v61, %v11595_v46  ;;  %v4691_v59 = vmul.f32 %v6366_v63, %v11566_v27  ;;  %v6370_v7 = vld [vmem:[%s12780_s3 + $0x280] sm:$0xff]  ;;  %v4704_v5 = vmul.f32 %v6371_v48, %v11585_v30  ;;  %v6375_v27 = vld [vmem:[%s12780_s3 + $0x2a8] sm:$0xff]  ;;  %v6381_v30 = vld [vmem:[%s12780_s3 + $0x2d8] sm:$0xff] }
 0xb02   : > { %v4324_v35 = vpack.c.bf16 %v4322_v39, %v4320_v24  ;;  %v4323_v11 = vpack.c.bf16 %v4321_v60, %v4319_v20  ;;  %v4696_v8 = vpack.c.bf16 %v4694_v9, %v4692_v52  ;;  %v4705_v46 = vmul.f32 %v6372_v10, %v11590_v36  ;;  %v6376_v60 = vld [vmem:[%s12780_s3 + $0x2b0] sm:$0xff]  ;;  %v6374_v36 = vld [vmem:[%s12780_s3 + $0x2a0] sm:$0xff] }
 0xb03   : > { %v4695_v24 = vpack.c.bf16 %v4693_v40, %v4691_v59  ;;  %v4718_v39 = vmul.f32 %v6377_v56, %v11631_v33  ;;  %v4708_v38 = vpack.c.bf16 %v4706_v4, %v4704_v5  ;;  %v4703_v51 = vmul.f32 %v6370_v7, %v11603_v13  ;;  %v6379_v33 = vld [vmem:[%s12780_s3 + $0x2c8] sm:$0xff]  ;;  %v6380_v13 = vld [vmem:[%s12780_s3 + $0x2d0] sm:$0xff] }
 0xb04   : > { %4648 = vmatprep.subr.bf16.mxu1 %v4324_v35  ;;  %v4716_v20 = vmul.f32 %v6375_v27, %v11621_v29  ;;  %v4717_v28 = vmul.f32 %v6376_v60, %v11626_v2  ;;  %v4730_v49 = vmul.f32 %v6381_v30, %v11667_v16  ;;  %v6385_v29 = vld [vmem:[%s12780_s3 + $0x2f8] sm:$0xff]  ;;  %v6378_v2 = vld [vmem:[%s12780_s3 + $0x2c0] sm:$0xff]  ;;  %v4728_v1 = vmul.f32 %v6379_v33, %v11657_v12  ;;  %v6383_v16 = vld [vmem:[%s12780_s3 + $0x2e8] sm:$0xff] }
 0xb05   : > { %4649 = vmatpush1.bf16.msra.mxu1 %v4323_v11  ;;  %v4707_v35 = vpack.c.bf16 %v4705_v46, %v4703_v51  ;;  %v4715_v11 = vmul.f32 %v6374_v36, %v11639_v31  ;;  %v4729_v55 = vmul.f32 %v6380_v13, %v11662_v15  ;;  %v6384_v31 = vld [vmem:[%s12780_s3 + $0x2f0] sm:$0xff]  ;;  %v4742_v54 = vmul.f32 %v6385_v29, %v11703_v58  ;;  %v6389_v12 = vld [vmem:[%s12780_s3 + $0x318] sm:$0xff]  ;;  %v6382_v15 = vld [vmem:[%s12780_s3 + $0x2e0] sm:$0xff] }
 0xb06   : > { %4816 = vmatprep.subr.bf16.mxu1 %v4684_v0  ;;  %v4720_v37 = vpack.c.bf16 %v4718_v39, %v4716_v20  ;;  %v4732_v14 = vpack.c.bf16 %v4730_v49, %v4728_v1  ;;  %v4727_v9 = vmul.f32 %v6378_v2, %v11675_v44  ;;  %v4740_v0 = vmul.f32 %v6383_v16, %v11693_v57  ;;  %v6387_v58 = vld [vmem:[%s12780_s3 + $0x308] sm:$0xff]  ;;  %v6388_v44 = vld [vmem:[%s12780_s3 + $0x310] sm:$0xff]  ;;  %v6393_v57 = vld [vmem:[%s12780_s3 + $0x338] sm:$0xff] }
 0xb07   : > { %v4719_v41 = vpack.c.bf16 %v4717_v28, %v4715_v11  ;;  %v4741_v19 = vmul.f32 %v6384_v31, %v11698_v43  ;;  %v4754_v61 = vmul.f32 %v6389_v12, %v11739_v22  ;;  %v4739_v63 = vmul.f32 %v6382_v15, %v11711_v23  ;;  %v6386_v43 = vld [vmem:[%s12780_s3 + $0x300] sm:$0xff]  ;;  %v6391_v22 = vld [vmem:[%s12780_s3 + $0x328] sm:$0xff]  ;;  %v6392_v23 = vld [vmem:[%s12780_s3 + $0x330] sm:$0xff] }
 0xb08   : > { %4665 = vmatmul.mubr.bf16.vlgmr.msra.gmra.mrb[8].mxu1 %v6651_v47  ;;  %v4731_v47 = vpack.c.bf16 %v4729_v55, %v4727_v9  ;;  %v4752_v52 = vmul.f32 %v6387_v58, %v11729_v62  ;;  %v4753_v40 = vmul.f32 %v6388_v44, %v11734_v42  ;;  %v4766_v48 = vmul.f32 %v6393_v57, %v11775_v26  ;;  %v6397_v62 = vld [vmem:[%s12780_s3 + $0x358] sm:$0xff]  ;;  %v6390_v42 = vld [vmem:[%s12780_s3 + $0x320] sm:$0xff]  ;;  %v6395_v26 = vld [vmem:[%s12780_s3 + $0x348] sm:$0xff] }
 0xb09   : > { %4817 = vmatpush1.bf16.msra.mxu1 %v4683_v45  ;;  %6402 = vmatprep.mubr.msk.bf16.mxu1 %vm700_vm0, %v6652_v18  ;;  %v4744_v18 = vpack.c.bf16 %v4742_v54, %v4740_v0  ;;  %v4743_v45 = vpack.c.bf16 %v4741_v19, %v4739_v63  ;;  %v4751_v4 = vmul.f32 %v6386_v43, %v11747_v50  ;;  %v6396_v50 = vld [vmem:[%s12780_s3 + $0x350] sm:$0xff]  ;;  %v6520_v12 = vld [vmem:[%s12779_s2 + $0x60] sm:$0xff] }
 0xb0a   : > { %4818 = vmatprep.subr.bf16.mxu1 %v4696_v8  ;;  %v4756_v10 = vpack.c.bf16 %v4754_v61, %v4752_v52  ;;  %v4764_v8 = vmul.f32 %v6391_v22, %v11765_v17  ;;  %v4765_v56 = vmul.f32 %v6392_v23, %v11770_v21  ;;  %v4778_v7 = vmul.f32 %v6397_v62, %v11819_v53  ;;  %v6394_v17 = vld [vmem:[%s12780_s3 + $0x340] sm:$0xff]  ;;  %v6655_v11 = vld [vmem:[%s12778_s1 + $0x134] ss:$8 sps:$4 sm:$0xff]  }
 0xb0b   : > { %v4755_v59 = vpack.c.bf16 %v4753_v40, %v4751_v4  ;;  %v4776_v21 = vmul.f32 %v6395_v26, %v11809_v3  ;;  %v4777_v27 = vmul.f32 %v6396_v50, %v11814_v34  ;;  %v4775_v39 = vmul.f32 %v6394_v17, %v11793_v32  ;;  %6475 = vmatprep.mubr.msk.bf16.mxu0 %vm700_vm0, %v6655_v11  ;;  %v6658_v0 = vld [vmem:[%s12778_s1 + $0x124] ss:$8 sps:$4 sm:$0xff]   ;;  %v6442_v17 = vld [vmem:[%s12780_s3 + $0x138] sm:$0xff] }
 0xb0c   : > { %v4768_v5 = vpack.c.bf16 %v4766_v48, %v4764_v8  ;;  %v6440_v50 = vld [vmem:[%s12780_s3 + $0x128] sm:$0xff] }
 0xb0d   : > { %4819 = vmatpush1.bf16.msra.mxu1 %v4695_v24  ;;  %v4763_v24 = vmul.f32 %v6390_v42, %v11783_v25  ;;  %v4780_v60 = vpack.c.bf16 %v4778_v7, %v4776_v21  ;;  %v4779_v53 = vpack.c.bf16 %v4777_v27, %v4775_v39  ;;  %v6654_v25 = vld [vmem:[%s12778_s1 + $0x110] ss:$8 sps:$4 sm:$0xff]  }
 0xb0e   : > { %4820 = vmatprep.subr.bf16.mxu1 %v4708_v38  ;;  %v4869_v38 = vpop.permute.xlu1 %4868 }
 0xb0f   : > { %v4767_v46 = vpack.c.bf16 %v4765_v56, %v4763_v24  ;;  %v4874_v36 = vpop.permute.xlu0 %4873  ;;  %v6439_v56 = vld [vmem:[%s12780_s3 + $0x120] sm:$0xff]  ;;  %v6441_v24 = vld [vmem:[%s12780_s3 + $0x130] sm:$0xff] }
 0xb11   : > { %4821 = vmatpush1.bf16.msra.mxu1 %v4707_v35 }
 0xb12   : > { %4822 = vmatprep.subr.bf16.mxu1 %v4720_v37 }
 0xb15   : > { %4823 = vmatpush1.bf16.msra.mxu1 %v4719_v41 }
 0xb16   : > { %4824 = vmatprep.subr.bf16.mxu1 %v4732_v14 }
 0xb19   : > { %4825 = vmatpush1.bf16.msra.mxu1 %v4731_v47 }
 0xb1a   : > { %4826 = vmatprep.subr.bf16.mxu1 %v4744_v18 }
 0xb1d   : > { %4827 = vmatpush1.bf16.msra.mxu1 %v4743_v45 }
 0xb1e   : > { %4828 = vmatprep.subr.bf16.mxu1 %v4756_v10 }
 0xb21   : > { %4829 = vmatpush1.bf16.msra.mxu1 %v4755_v59 }
 0xb22   : > { %4830 = vmatprep.subr.bf16.mxu1 %v4768_v5 }
 0xb25   : > { %4831 = vmatpush1.bf16.msra.mxu1 %v4767_v46 }
 0xb26   : > { %4832 = vmatprep.subr.bf16.mxu1 %v4780_v60 }
 0xb29   : > { %4833 = vmatpush1.bf16.msra.mxu1 %v4779_v53 }
 0xb2c   : > { %4849 = vmatmul.mubr.bf16.vlgmr.msra.gmra.mrb[8].mxu1 %v6654_v25 }
 0xb2d   : > { %6478 = vmatprep.mubr.msk.bf16.mxu1 %vm700_vm0, %v6658_v0 }
 0xbff   : > { %v4850_v51 = vpop.f32.mrb[8].mxu1 }
 0xc00   : > { %v4876_v30 = vadd.f32 %v4869_v38, %v4850_v51  ;;  %v4852_v3 = vpop.f32.mrb[9].mxu1 }
 0xc01   : > { %v4854_v20 = vpop.f32.mrb[10].mxu1  ;;  %v4877_v33 = vadd.f32 %v4869_v38, %v4852_v3  ;;  %v6443_v38 = vld [vmem:[%s12780_s3 + $0x140] sm:$0xff] }
 0xc02   : > { %v11979_v35 = vmax.f32 %v4876_v30, 0.0  ;;  %v4878_v34 = vadd.f32 %v4874_v36, %v4854_v20  ;;  %v4856_v28 = vpop.f32.mrb[11].mxu1  ;;  %v6444_v30 = vld [vmem:[%s12780_s3 + $0x148] sm:$0xff]  ;;  %v6445_v20 = vld [vmem:[%s12780_s3 + $0x150] sm:$0xff] }
 0xc03   : > { %v4879_v13 = vadd.f32 %v4874_v36, %v4856_v28  ;;  %v12045_v49 = vmax.f32 %v4877_v33, 0.0 }
 0xc04   : > { %v11981_v32 = vmax.f32 %v4878_v34, 0.0  ;;  %5121 = vrot.lane.b32.xlu1 %v11979_v35, %s6672_s21  ;;  %v6446_v34 = vld [vmem:[%s12780_s3 + $0x158] sm:$0xff] }
 0xc05   : > { %v12049_v37 = vmax.f32 %v4879_v13, 0.0 }
 0xc06   : > { %5123 = vrot.lane.b32.xlu0 %v11981_v32, %s6672_s21 }
 0xc08   : > { %5145 = vrot.lane.b32.xlu1 %v11979_v35, %s6673_s22 }
 0xc0a   : > { %5147 = vrot.lane.b32.xlu0 %v11981_v32, %s6673_s22 }
 0xc0c   : > { %5169 = vrot.lane.b32.xlu1 %v11979_v35, %s12911_s5 }
 0xc0e   : > { %5171 = vrot.lane.b32.xlu0 %v11981_v32, %s12911_s5 }
 0xc10   : > { %5193 = vrot.lane.b32.xlu1 %v11979_v35, %s12912_s6 }
 0xc12   : > { %5195 = vrot.lane.b32.xlu0 %v11981_v32, %s12912_s6 }
 0xc14   : > { %5221 = vrot.lane.b32.xlu1 %v11979_v35, %s12890_s7 }
 0xc16   : > { %5223 = vrot.lane.b32.xlu0 %v11981_v32, %s12890_s7 }
 0xc18   : > { %5245 = vrot.lane.b32.xlu1 %v11979_v35, %s12891_s8 }
 0xc1a   : > { %5247 = vrot.lane.b32.xlu0 %v11981_v32, %s12891_s8 }
 0xc1c   : > { %5269 = vrot.lane.b32.xlu1 %v11979_v35, %s12870_s17 }
 0xc1e   : > { %5271 = vrot.lane.b32.xlu0 %v11981_v32, %s12870_s17 }
 0xc20   : > { %5293 = vrot.lane.b32.xlu1 %v11979_v35, %s12871_s18 }
 0xc22   : > { %5295 = vrot.lane.b32.xlu0 %v11981_v32, %s12871_s18 }
 0xc24   : > { %4884 = vrot.lane.b32.xlu1 %v11979_v35, %s12850_s9 }
 0xc26   : > { %4886 = vrot.lane.b32.xlu0 %v11981_v32, %s12850_s9 }
 0xc28   : > { %4908 = vrot.lane.b32.xlu1 %v11979_v35, %s12851_s30 }
 0xc2a   : > { %4910 = vrot.lane.b32.xlu0 %v11981_v32, %s12851_s30 }
 0xc2c   : > { %4932 = vrot.lane.b32.xlu1 %v11979_v35, %s12829_s19 }
 0xc2e   : > { %4934 = vrot.lane.b32.xlu0 %v11981_v32, %s12829_s19 }
 0xc30   : > { %4956 = vrot.lane.b32.xlu1 %v11979_v35, %s12830_s29 }
 0xc32   : > { %4958 = vrot.lane.b32.xlu0 %v11981_v32, %s12830_s29 }
 0xc34   : > { %4980 = vrot.lane.b32.xlu1 %v11979_v35, %s12817_s12 }
 0xc36   : > { %4982 = vrot.lane.b32.xlu0 %v11981_v32, %s12817_s12 }
 0xc38   : > { %5004 = vrot.lane.b32.xlu1 %v11979_v35, %s12818_s13 }
 0xc3a   : > { %5006 = vrot.lane.b32.xlu0 %v11981_v32, %s12818_s13 }
 0xc3c   : > { %5028 = vrot.lane.b32.xlu1 %v11979_v35, %s12819_s10 }
 0xc3e   : > { %5030 = vrot.lane.b32.xlu0 %v11981_v32, %s12819_s10 }
 0xc40   : > { %5052 = vrot.lane.b32.xlu1 %v11979_v35, %s12820_s11 }
 0xc42   : > { %5054 = vrot.lane.b32.xlu0 %v11981_v32, %s12820_s11 }
 0xc44   : > { %5125 = vrot.lane.b32.xlu1 %v12045_v49, %s6672_s21 }
 0xc46   : > { %5127 = vrot.lane.b32.xlu0 %v12049_v37, %s6672_s21 }
 0xc48   : > { %5149 = vrot.lane.b32.xlu1 %v12045_v49, %s6673_s22 }
 0xc4a   : > { %5151 = vrot.lane.b32.xlu0 %v12049_v37, %s6673_s22 }
 0xc4c   : > { %5173 = vrot.lane.b32.xlu1 %v12045_v49, %s12911_s5 }
 0xc4e   : > { %5175 = vrot.lane.b32.xlu0 %v12049_v37, %s12911_s5 }
 0xc50   : > { %5197 = vrot.lane.b32.xlu1 %v12045_v49, %s12912_s6 }
 0xc52   : > { %5199 = vrot.lane.b32.xlu0 %v12049_v37, %s12912_s6 }
 0xc54   : > { %5076 = vrot.lane.b32.xlu1 %v11979_v35, %s12821_s14 }
 0xc56   : > { %5078 = vrot.lane.b32.xlu0 %v11981_v32, %s12821_s14 }
 0xc58   : > { %5225 = vrot.lane.b32.xlu1 %v12045_v49, %s12890_s7 }
 0xc5a   : > { %5227 = vrot.lane.b32.xlu0 %v12049_v37, %s12890_s7 }
 0xc5c   : > { %5249 = vrot.lane.b32.xlu1 %v12045_v49, %s12891_s8 }
 0xc5e   : > { %5251 = vrot.lane.b32.xlu0 %v12049_v37, %s12891_s8 }
 0xc60   : > { %5273 = vrot.lane.b32.xlu1 %v12045_v49, %s12870_s17 }
 0xc62   : > { %5275 = vrot.lane.b32.xlu0 %v12049_v37, %s12870_s17 }
 0xc64   : > { %5297 = vrot.lane.b32.xlu1 %v12045_v49, %s12871_s18 }
 0xc66   : > { %5299 = vrot.lane.b32.xlu0 %v12049_v37, %s12871_s18 }
 0xc68   : > { %4888 = vrot.lane.b32.xlu1 %v12045_v49, %s12850_s9 }
 0xc6a   : > { %4890 = vrot.lane.b32.xlu0 %v12049_v37, %s12850_s9 }
 0xc6c   : > { %4912 = vrot.lane.b32.xlu1 %v12045_v49, %s12851_s30 }
 0xc6e   : > { %4914 = vrot.lane.b32.xlu0 %v12049_v37, %s12851_s30 }
 0xc70   : > { %4936 = vrot.lane.b32.xlu1 %v12045_v49, %s12829_s19 }
 0xc72   : > { %4938 = vrot.lane.b32.xlu0 %v12049_v37, %s12829_s19 }
 0xc74   : > { %4960 = vrot.lane.b32.xlu1 %v12045_v49, %s12830_s29 }
 0xc76   : > { %v5122_v29 = vpop.permute.xlu1 %5121  ;;  %4962 = vrot.lane.b32.xlu0 %v12049_v37, %s12830_s29 }
 0xc78   : > { %4984 = vrot.lane.b32.xlu1 %v12045_v49, %s12817_s12  ;;  %v5124_v2 = vpop.permute.xlu0 %5123 }
 0xc7a   : > { %v5146_v1 = vpop.permute.xlu1 %5145  ;;  %4986 = vrot.lane.b32.xlu0 %v12049_v37, %s12817_s12 }
 0xc7c   : > { %5008 = vrot.lane.b32.xlu1 %v12045_v49, %s12818_s13  ;;  %v12113_v41 = vpop.permute.xlu0 %5147 }
 0xc7e   : > { %v12115_v55 = vpop.permute.xlu1 %5169  ;;  %5010 = vrot.lane.b32.xlu0 %v12049_v37, %s12818_s13 }
 0xc80   : > { %5032 = vrot.lane.b32.xlu1 %v12045_v49, %s12819_s10  ;;  %v12121_v16 = vpop.permute.xlu0 %5171 }
 0xc82   : > { %v12123_v31 = vpop.permute.xlu1 %5193  ;;  %5034 = vrot.lane.b32.xlu0 %v12049_v37, %s12819_s10 }
 0xc84   : > { %5056 = vrot.lane.b32.xlu1 %v12045_v49, %s12820_s11  ;;  %v12129_v54 = vpop.permute.xlu0 %5195 }
 0xc86   : > { %v12131_v14 = vpop.permute.xlu1 %5221  ;;  %5058 = vrot.lane.b32.xlu0 %v12049_v37, %s12820_s11 }
 0xc88   : > { %5080 = vrot.lane.b32.xlu1 %v12045_v49, %s12821_s14  ;;  %v12137_v9 = vpop.permute.xlu0 %5223 }
 0xc8a   : > { %v12142_v15 = vpop.permute.xlu1 %5245  ;;  %5082 = vrot.lane.b32.xlu0 %v12049_v37, %s12821_s14 }
 0xc8c   : > { %5632 = vperm.xlu1 %6600, %v6520_v12   ;;  %v12149_v47 = vpop.permute.xlu0 %5247 }
 0xc8e   : > { %v12152_v19 = vpop.permute.xlu1 %5269 }
 0xc90   : > { %v12154_v58 = vpop.permute.xlu0 %5271 }
 0xc92   : > { %v12156_v44 = vpop.permute.xlu1 %5293 }
 0xc94   : > { %v12158_v61 = vpop.permute.xlu0 %5295 }
 0xc96   : > { %v12160_v18 = vpop.permute.xlu1 %4884 }
 0xc98   : > { %v12162_v63 = vpop.permute.xlu0 %4886 }
 0xc9a   : > { %v12164_v57 = vpop.permute.xlu1 %4908 }
 0xc9c   : > { %v12166_v43 = vpop.permute.xlu0 %4910 }
 0xc9e   : > { %v12168_v52 = vpop.permute.xlu1 %4932 }
 0xca0   : > { %v12170_v45 = vpop.permute.xlu0 %4934 }
 0xca2   : > { %v12172_v40 = vpop.permute.xlu1 %4956 }
 0xca4   : > { %v12174_v22 = vpop.permute.xlu0 %4958 }
 0xca6   : > { %v12176_v23 = vpop.permute.xlu1 %4980 }
 0xca8   : > { %v12178_v48 = vpop.permute.xlu0 %4982 }
 0xcaa   : > { %v12180_v10 = vpop.permute.xlu1 %5004 }
 0xcac   : > { %v12182_v4 = vpop.permute.xlu0 %5006 }
 0xcae   : > { %v12184_v62 = vpop.permute.xlu1 %5028 }
 0xcb0   : > { %v12186_v42 = vpop.permute.xlu0 %5030 }
 0xcb2   : > { %v12188_v8 = vpop.permute.xlu1 %5052 }
 0xcb4   : > { %v12190_v59 = vpop.permute.xlu0 %5054 }
 0xcb6   : > { %v5126_v26 = vpop.permute.xlu1 %5125 }
 0xcb7   : > { %v5129_v7 = vsel %vm466_vm1, %v5122_v29, %v5126_v26  ;;  %v5131_v5 = vsel %vm466_vm1, %v5126_v26, %v5122_v29 }
 0xcb8   : > { %v5128_v21 = vpop.permute.xlu0 %5127  ;;  %v5137_v60 = vmul.f32 %v6439_v56, %v5131_v5  ;;  %v5138_v39 = vmul.f32 %v6440_v50, %v5129_v7  ;;  %v6447_v56 = vld [vmem:[%s12780_s3 + $0x160] sm:$0xff]  ;;  %v6448_v50 = vld [vmem:[%s12780_s3 + $0x168] sm:$0xff]  ;;  %v6449_v5 = vld [vmem:[%s12780_s3 + $0x170] sm:$0xff] }
 0xcb9   : > { %v5130_v46 = vsel %vm466_vm1, %v5124_v2, %v5128_v21  ;;  %v5132_v27 = vsel %vm466_vm1, %v5128_v21, %v5124_v2  ;;  %vm12913_vm1 = vcmp.lt.s32.totalorder %v6859_v6, 71 }
 0xcba   : > { %v5139_v53 = vmul.f32 %v6441_v24, %v5132_v27  ;;  %v5140_v25 = vmul.f32 %v6442_v17, %v5130_v46  ;;  %v5150_v51 = vpop.permute.xlu1 %5149  ;;  %v6450_v24 = vld [vmem:[%s12780_s3 + $0x178] sm:$0xff] }
 0xcbb   : > { %v5153_v3 = vsel %vm492_vm2, %v5146_v1, %v5150_v51  ;;  %v5155_v36 = vsel %vm492_vm2, %v5150_v51, %v5146_v1 }
 0xcbc   : > { %v5141_v28 = vpack.c.bf16 %v5139_v53, %v5137_v60  ;;  %v5152_v33 = vpop.permute.xlu0 %5151  ;;  %v5142_v13 = vpack.c.bf16 %v5140_v25, %v5138_v39  ;;  %v5161_v2 = vmul.f32 %v6443_v38, %v5155_v36  ;;  %v5162_v1 = vmul.f32 %v6444_v30, %v5153_v3  ;;  %v6451_v38 = vld [vmem:[%s12780_s3 + $0x180] sm:$0xff]  ;;  %v6452_v30 = vld [vmem:[%s12780_s3 + $0x188] sm:$0xff]  ;;  %v6453_v36 = vld [vmem:[%s12780_s3 + $0x190] sm:$0xff] }
 0xcbd   : > { %v5154_v11 = vsel %vm492_vm2, %v12113_v41, %v5152_v33  ;;  %v5156_v29 = vsel %vm492_vm2, %v5152_v33, %v12113_v41  ;;  %vm12914_vm2 = vmmov %vm12913_vm1 }
 0xcbe   : > { %v5163_v12 = vmul.f32 %v6445_v20, %v5156_v29  ;;  %v5164_v0 = vmul.f32 %v6446_v34, %v5154_v11  ;;  %v5174_v26 = vpop.permute.xlu1 %5173  ;;  %5350 = vmatprep.subr.bf16.mxu0 %v5142_v13  ;;  %v6454_v20 = vld [vmem:[%s12780_s3 + $0x198] sm:$0xff] }
 0xcbf   : > { %v5177_v7 = vsel %vm518_vm3, %v12115_v55, %v5174_v26  ;;  %v5179_v41 = vsel %vm518_vm3, %v5174_v26, %v12115_v55  ;;  %5351 = vmatpush1.bf16.msra.mxu0 %v5141_v28 }
 0xcc0   : > { %v5165_v17 = vpack.c.bf16 %v5163_v12, %v5161_v2  ;;  %v5176_v21 = vpop.permute.xlu0 %5175  ;;  %v5166_v46 = vpack.c.bf16 %v5164_v0, %v5162_v1  ;;  %v5185_v60 = vmul.f32 %v6447_v56, %v5179_v41  ;;  %v5186_v39 = vmul.f32 %v6448_v50, %v5177_v7  ;;  %v6455_v50 = vld [vmem:[%s12780_s3 + $0x1c0] sm:$0xff]  ;;  %v6456_v41 = vld [vmem:[%s12780_s3 + $0x1c8] sm:$0xff] }
 0xcc1   : > { %v5178_v27 = vsel %vm518_vm3, %v12121_v16, %v5176_v21  ;;  %v5180_v55 = vsel %vm518_vm3, %v5176_v21, %v12121_v16 }
 0xcc2   : > { %v5187_v53 = vmul.f32 %v6449_v5, %v5180_v55  ;;  %v5188_v25 = vmul.f32 %v6450_v24, %v5178_v27  ;;  %v5198_v51 = vpop.permute.xlu1 %5197  ;;  %5352 = vmatprep.subr.bf16.mxu0 %v5166_v46 }
 0xcc3   : > { %v5201_v3 = vsel %vm544_vm4, %v12123_v31, %v5198_v51  ;;  %v5203_v16 = vsel %vm544_vm4, %v5198_v51, %v12123_v31  ;;  %5353 = vmatpush1.bf16.msra.mxu0 %v5165_v17  ;;  %v6457_v17 = vld [vmem:[%s12780_s3 + $0x1d0] sm:$0xff]  ;;  %v6462_v51 = vld [vmem:[%s12780_s3 + $0x1f8] sm:$0xff] }
 0xcc4   : > { %v5189_v34 = vpack.c.bf16 %v5187_v53, %v5185_v60  ;;  %v5200_v28 = vpop.permute.xlu0 %5199  ;;  %v5190_v33 = vpack.c.bf16 %v5188_v25, %v5186_v39  ;;  %v5209_v11 = vmul.f32 %v6451_v38, %v5203_v16  ;;  %v5210_v29 = vmul.f32 %v6452_v30, %v5201_v3  ;;  %v6459_v53 = vld [vmem:[%s12780_s3 + $0x1e0] sm:$0xff]  ;;  %v6460_v38 = vld [vmem:[%s12780_s3 + $0x1e8] sm:$0xff] }
 0xcc5   : > { %v5202_v13 = vsel %vm544_vm4, %v12129_v54, %v5200_v28  ;;  %v5204_v31 = vsel %vm544_vm4, %v5200_v28, %v12129_v54  ;;  %v5218_v54 = vpack.c.bf16 %v12049_v37, %v12045_v49  ;;  %v6458_v49 = vld [vmem:[%s12780_s3 + $0x1d8] sm:$0xff]  ;;  %vm12917_vm4 = vcmp.lt.s32.totalorder %v6859_v6, 65 }
 0xcc6   : > { %v5211_v2 = vmul.f32 %v6453_v36, %v5204_v31  ;;  %v5212_v1 = vmul.f32 %v6454_v20, %v5202_v13  ;;  %v12282_v12 = vpop.permute.xlu1 %5076  ;;  %5354 = vmatprep.subr.bf16.mxu0 %v5190_v33  ;;  %v6463_v13 = vld [vmem:[%s12780_s3 + $0x200] sm:$0xff] }
 0xcc7   : > { %5355 = vmatpush1.bf16.msra.mxu0 %v5189_v34 }
 0xcc8   : > { %v5213_v0 = vpack.c.bf16 %v5211_v2, %v5209_v11  ;;  %v12284_v56 = vpop.permute.xlu0 %5078  ;;  %v5214_v26 = vpack.c.bf16 %v5212_v1, %v5210_v29  ;;  %v6464_v11 = vld [vmem:[%s12780_s3 + $0x208] sm:$0xff]  ;;  %v6465_v2 = vld [vmem:[%s12780_s3 + $0x210] sm:$0xff]  ;;  %v6466_v1 = vld [vmem:[%s12780_s3 + $0x218] sm:$0xff] }
 0xcca   : > { %v5226_v7 = vpop.permute.xlu1 %5225  ;;  %5356 = vmatprep.subr.bf16.mxu0 %v5214_v26 }
 0xccb   : > { %v5229_v5 = vsel %vm574_vm5, %v12131_v14, %v5226_v7  ;;  %v5231_v24 = vsel %vm574_vm5, %v5226_v7, %v12131_v14  ;;  %5357 = vmatpush1.bf16.msra.mxu0 %v5213_v0  ;;  %v5217_v14 = vpack.c.bf16 %v11981_v32, %v11979_v35  ;;  %v6461_v32 = vld [vmem:[%s12780_s3 + $0x1f0] sm:$0xff] }
 0xccc   : > { %v5228_v37 = vpop.permute.xlu0 %5227  ;;  %5358 = vmatprep.subr.bf16.mxu0 %v5218_v54  ;;  %v5237_v27 = vmul.f32 %v6455_v50, %v5229_v5  ;;  %v5238_v55 = vmul.f32 %v6456_v41, %v5231_v24 }
 0xccd   : > { %v5230_v21 = vsel %vm574_vm5, %v12137_v9, %v5228_v37  ;;  %v5232_v46 = vsel %vm574_vm5, %v5228_v37, %v12137_v9  ;;  %vm12918_vm5 = vmmov %vm12917_vm4 }
 0xcce   : > { %v5239_v60 = vmul.f32 %v6457_v17, %v5230_v21  ;;  %v5240_v39 = vmul.f32 %v6458_v49, %v5232_v46  ;;  %v5250_v25 = vpop.permute.xlu1 %5249  ;;  %v6467_v49 = vld [vmem:[%s12780_s3 + $0x220] sm:$0xff]  ;;  %v6469_v21 = vld [vmem:[%s12780_s3 + $0x230] sm:$0xff] }
 0xccf   : > { %v5253_v9 = vsel %vm600_vm6, %v12142_v15, %v5250_v25  ;;  %v5255_v35 = vsel %vm600_vm6, %v5250_v25, %v12142_v15  ;;  %5359 = vmatpush1.bf16.msra.mxu0 %v5217_v14  ;;  %v6468_v14 = vld [vmem:[%s12780_s3 + $0x228] sm:$0xff] }
 0xcd0   : > { %v5241_v30 = vpack.c.bf16 %v5239_v60, %v5237_v27  ;;  %v5252_v3 = vpop.permute.xlu0 %5251  ;;  %v5242_v16 = vpack.c.bf16 %v5240_v39, %v5238_v55  ;;  %v5261_v20 = vmul.f32 %v6459_v53, %v5253_v9  ;;  %v5262_v34 = vmul.f32 %v6460_v38, %v5255_v35 }
 0xcd1   : > { %v5254_v36 = vsel %vm600_vm6, %v12149_v47, %v5252_v3  ;;  %v5256_v15 = vsel %vm600_vm6, %v5252_v3, %v12149_v47  ;;  %vm12919_vm6 = vmmov %vm12917_vm4 }
 0xcd2   : > { %v5263_v28 = vmul.f32 %v6461_v32, %v5254_v36  ;;  %v5264_v33 = vmul.f32 %v6462_v51, %v5256_v15  ;;  %v5274_v31 = vpop.permute.xlu1 %5273  ;;  %5360 = vmatprep.subr.bf16.mxu0 %v5242_v16  ;;  %v4899_v16 = vld [vmem:[%s12780_s3 + $0x18] sm:$0xff] }
 0xcd3   : > { %v5277_v29 = vsel %vm626_vm7, %v12152_v19, %v5274_v31  ;;  %v5279_v47 = vsel %vm626_vm7, %v5274_v31, %v12152_v19  ;;  %5361 = vmatpush1.bf16.msra.mxu0 %v5241_v30  ;;  %v4898_v30 = vld [vmem:[%s12780_s3 + $0x10] sm:$0xff]  ;;  %v6482_v36 = vld [vmem:[%s12780_s3 + $0x258] sm:$0xff] }
 0xcd4   : > { %v5265_v0 = vpack.c.bf16 %v5263_v28, %v5261_v20  ;;  %v5276_v26 = vpop.permute.xlu0 %5275  ;;  %v5266_v50 = vpack.c.bf16 %v5264_v33, %v5262_v34  ;;  %v5285_v54 = vmul.f32 %v6463_v13, %v5277_v29  ;;  %v5286_v41 = vmul.f32 %v6464_v11, %v5279_v47  ;;  %v4897_v20 = vld [vmem:[%s12780_s3 + $0x8] sm:$0xff]  ;;  %v6479_v34 = vld [vmem:[%s12780_s3 + $0x240] sm:$0xff] }
 0xcd5   : > { %v5278_v7 = vsel %vm626_vm7, %v12154_v58, %v5276_v26  ;;  %v5280_v19 = vsel %vm626_vm7, %v5276_v26, %v12154_v58  ;;  %v6470_v58 = vld [vmem:[%s12780_s3 + $0x238] sm:$0xff]  ;;  %v6480_v11 = vld [vmem:[%s12780_s3 + $0x248] sm:$0xff]  ;;  %vm12920_vm7 = vmmov %vm12917_vm4 }
 0xcd6   : > { %v5287_v5 = vmul.f32 %v6465_v2, %v5278_v7  ;;  %v5288_v24 = vmul.f32 %v6466_v1, %v5280_v19  ;;  %v5298_v17 = vpop.permute.xlu1 %5297  ;;  %5362 = vmatprep.subr.bf16.mxu0 %v5266_v50  ;;  %v6406_v50 = vld [vmem:[%s12780_s3 + $0x28] sm:$0xff]  ;;  %v6407_v19 = vld [vmem:[%s12780_s3 + $0x30] sm:$0xff] }
 0xcd7   : > { %v5301_v37 = vsel %vm652_vm8, %v12156_v44, %v5298_v17  ;;  %5363 = vmatpush1.bf16.msra.mxu0 %v5265_v0  ;;  %v5303_v27 = vsel %vm652_vm8, %v5298_v17, %v12156_v44  ;;  %v4896_v44 = vld [vmem:[%s12780_s3] sm:$0xff] }
 0xcd8   : > { %v5289_v46 = vpack.c.bf16 %v5287_v5, %v5285_v54  ;;  %v5300_v55 = vpop.permute.xlu0 %5299  ;;  %v5290_v60 = vpack.c.bf16 %v5288_v24, %v5286_v41  ;;  %v5309_v25 = vmul.f32 %v6467_v49, %v5301_v37  ;;  %v5310_v32 = vmul.f32 %v6468_v14, %v5303_v27  ;;  %v6657_v54 = vld [vmem:[%s12778_s1 + $0x130] ss:$8 sps:$4 sm:$0xff]   ;;  %v6483_v24 = vld [vmem:[%s12780_s3 + $0x260] sm:$0xff] }
 0xcd9   : > { %v5302_v39 = vsel %vm652_vm8, %v12158_v61, %v5300_v55  ;;  %v5304_v53 = vsel %vm652_vm8, %v5300_v55, %v12158_v61  ;;  %v6481_v61 = vld [vmem:[%s12780_s3 + $0x250] sm:$0xff]  ;;  %v6660_v49 = vld [vmem:[%s12778_s1 + $0x144] ss:$8 sps:$4 sm:$0xff]   ;;  %vm12921_vm8 = vcmp.lt.s32.totalorder %v6859_v6, 64 }
 0xcda   : > { %v5311_v38 = vmul.f32 %v6469_v21, %v5302_v39  ;;  %v5312_v9 = vmul.f32 %v6470_v58, %v5304_v53  ;;  %v4889_v35 = vpop.permute.xlu1 %4888  ;;  %5364 = vmatprep.subr.bf16.mxu0 %v5290_v60  ;;  %v6484_v58 = vld [vmem:[%s12780_s3 + $0x268] sm:$0xff]  ;;  %v6486_v53 = vld [vmem:[%s12780_s3 + $0x278] sm:$0xff]  ;;  %vm12924_vm11 = vmmov %vm12921_vm8 }
 0xcdb   : > { %v4894_v51 = vsel %vm213_vm9, %v4889_v35, %v12160_v18  ;;  %5365 = vmatpush1.bf16.msra.mxu0 %v5289_v46  ;;  %v4892_v28 = vsel %vm213_vm9, %v12160_v18, %v4889_v35  ;;  %v6405_v18 = vld [vmem:[%s12780_s3 + $0x20] sm:$0xff]  ;;  %v6408_v46 = vld [vmem:[%s12780_s3 + $0x38] sm:$0xff] }
 0xcdc   : > { %v5313_v3 = vpack.c.bf16 %v5311_v38, %v5309_v25  ;;  %v4891_v15 = vpop.permute.xlu0 %4890  ;;  %v5314_v31 = vpack.c.bf16 %v5312_v9, %v5310_v32  ;;  %v4900_v29 = vmul.f32 %v4896_v44, %v4894_v51  ;;  %v4901_v41 = vmul.f32 %v4897_v20, %v4892_v28  ;;  %v6490_v20 = vld [vmem:[%s12780_s3 + $0x298] sm:$0xff] }
 0xcdd   : > { %v4893_v33 = vsel %vm213_vm9, %v12162_v63, %v4891_v15  ;;  %v4895_v13 = vsel %vm213_vm9, %v4891_v15, %v12162_v63  ;;  %v5448_v5 = vmul.f32 %v6479_v34, %v4892_v28  ;;  %v5449_v37 = vmul.f32 %v6480_v11, %v4894_v51  ;;  %v6489_v51 = vld [vmem:[%s12780_s3 + $0x290] sm:$0xff]  ;;  %vm12922_vm9 = vmmov %vm12921_vm8 }
 0xcde   : > { %v4902_v47 = vmul.f32 %v4898_v30, %v4895_v13  ;;  %v5450_v2 = vmul.f32 %v6481_v61, %v4893_v33  ;;  %v4913_v1 = vpop.permute.xlu1 %4912  ;;  %v4903_v0 = vmul.f32 %v4899_v16, %v4893_v33  ;;  %v5451_v26 = vmul.f32 %v6482_v36, %v4895_v13  ;;  %5366 = vmatprep.subr.bf16.mxu0 %v5314_v31  ;;  %v6487_v16 = vld [vmem:[%s12780_s3 + $0x280] sm:$0xff]  ;;  %v6410_v13 = vld [vmem:[%s12780_s3 + $0x48] sm:$0xff] }
 0xcdf   : > { %v4916_v63 = vsel %vm238_vm10, %v12164_v57, %v4913_v1  ;;  %v4918_v7 = vsel %vm238_vm10, %v4913_v1, %v12164_v57  ;;  %5367 = vmatpush1.bf16.msra.mxu0 %v5313_v3  ;;  %v6485_v57 = vld [vmem:[%s12780_s3 + $0x270] sm:$0xff]  ;;  %v6409_v3 = vld [vmem:[%s12780_s3 + $0x40] sm:$0xff]  ;;  %v6488_v31 = vld [vmem:[%s12780_s3 + $0x288] sm:$0xff] }
 0xce0   : > { %v4915_v17 = vpop.permute.xlu0 %4914  ;;  %v4904_v21 = vpack.c.bf16 %v4902_v47, %v4900_v29  ;;  %v5452_v55 = vpack.c.bf16 %v5450_v2, %v5448_v5  ;;  %v12461_v60 = vmul.f32 %v6405_v18, %v4918_v7  ;;  %v4925_v39 = vmul.f32 %v6406_v50, %v4916_v63  ;;  %v6493_v5 = vld [vmem:[%s12780_s3 + $0x2b0] sm:$0xff] }
 0xce1   : > { %v4917_v14 = vsel %vm238_vm10, %v12166_v43, %v4915_v17  ;;  %v4919_v27 = vsel %vm238_vm10, %v4915_v17, %v12166_v43  ;;  %v12468_v9 = vmul.f32 %v6483_v24, %v4916_v63  ;;  %v4905_v32 = vpack.c.bf16 %v4903_v0, %v4901_v41  ;;  %v6412_v43 = vld [vmem:[%s12780_s3 + $0x58] sm:$0xff]  ;;  %v6415_v41 = vld [vmem:[%s12780_s3 + $0x70] sm:$0xff]  ;;  %vm12923_vm10 = vmmov %vm12921_vm8 }
 0xce2   : > { %v12466_v25 = vmul.f32 %v6407_v19, %v4919_v27  ;;  %v4937_v38 = vpop.permute.xlu1 %4936  ;;  %v5462_v35 = vmul.f32 %v6485_v57, %v4917_v14  ;;  %5383 = vmatmul.mubr.bf16.vlgmr.msra.gmra.mrb[12].mxu0 %v6657_v54  ;;  %v5453_v44 = vpack.c.bf16 %v5451_v26, %v5449_v37  ;;  %v5461_v30 = vmul.f32 %v6484_v58, %v4918_v7  ;;  %v6413_v54 = vld [vmem:[%s12780_s3 + $0x60] sm:$0xff]  ;;  %v6414_v58 = vld [vmem:[%s12780_s3 + $0x68] sm:$0xff] }
 0xce3   : > { %v4927_v61 = vmul.f32 %v6408_v46, %v4917_v14  ;;  %v4940_v36 = vsel %vm12913_vm1, %v12168_v52, %v4937_v38  ;;  %v4942_v15 = vsel %vm12914_vm2, %v4937_v38, %v12168_v52  ;;  %6519 = vmatprep.mubr.msk.bf16.mxu0 %vm700_vm0, %v6660_v49  ;;  %v5463_v33 = vmul.f32 %v6486_v53, %v4919_v27  ;;  %v6411_v52 = vld [vmem:[%s12780_s3 + $0x50] sm:$0xff]  ;;  %vm12915_vm0 = vmmov %vm12913_vm1  ;;  %v6491_v46 = vld [vmem:[%s12780_s3 + $0x2a0] sm:$0xff] }
 0xce4   : > { %v4939_v34 = vpop.permute.xlu0 %4938  ;;  %v4928_v28 = vpack.c.bf16 %v12466_v25, %v12461_v60  ;;  %5403 = vmatprep.subr.bf16.mxu1 %v4905_v32  ;;  %5585 = vmatprep.subr.bf16.mxu0 %v5453_v44  ;;  %vm12916_vm3 = vmmov %vm12915_vm0  ;;  %v5464_v1 = vpack.c.bf16 %v5462_v35, %v12468_v9  ;;  %v4948_v0 = vmul.f32 %v6409_v3, %v4942_v15  ;;  %v6492_v14 = vld [vmem:[%s12780_s3 + $0x2a8] sm:$0xff]  ;;  %v6494_v25 = vld [vmem:[%s12780_s3 + $0x2b8] sm:$0xff] }
 0xce5   : > { %v4941_v11 = vsel %vm12915_vm0, %v12170_v45, %v4939_v34  ;;  %5404 = vmatpush1.bf16.msra.mxu1 %v4904_v21  ;;  %5586 = vmatpush1.bf16.msra.mxu0 %v5452_v55  ;;  %v4943_v29 = vsel %vm12916_vm3, %v4939_v34, %v12170_v45  ;;  %v5472_v26 = vmul.f32 %v6487_v16, %v4940_v36  ;;  %v6416_v21 = vld [vmem:[%s12780_s3 + $0x78] sm:$0xff]  ;;  %vm12927_vm1 = vmmov %vm12925_vm12  ;;  %vm12929_vm0 = vcmp.lt.s32.totalorder %v6859_v6, 57 }
 0xce6   : > { %v4951_v47 = vmul.f32 %v6412_v43, %v4941_v11  ;;  %v12509_v2 = vmul.f32 %v6489_v51, %v4941_v11  ;;  %v4961_v18 = vpop.permute.xlu1 %4960  ;;  %v5475_v50 = vmul.f32 %v6490_v20, %v4943_v29  ;;  %v4949_v63 = vmul.f32 %v6410_v13, %v4940_v36  ;;  %v6419_v43 = vld [vmem:[%s12780_s3 + $0x90] sm:$0xff]  ;;  %v6418_v36 = vld [vmem:[%s12780_s3 + $0x88] sm:$0xff]  ;;  %v6420_v13 = vld [vmem:[%s12780_s3 + $0x98] sm:$0xff] }
 0xce7   : > { %v5473_v7 = vmul.f32 %v6488_v31, %v4942_v15  ;;  %v4950_v19 = vmul.f32 %v6411_v52, %v4943_v29  ;;  %v4966_v45 = vsel %vm12917_vm4, %v4961_v18, %v12172_v40  ;;  %v4964_v17 = vsel %vm12918_vm5, %v12172_v40, %v4961_v18  ;;  %v6497_v51 = vld [vmem:[%s12780_s3 + $0x2d0] sm:$0xff]  ;;  %vm12928_vm2 = vmmov %vm12927_vm1 }
 0xce8   : > { %v4963_v24 = vpop.permute.xlu0 %4962  ;;  %v5476_v57 = vpack.c.bf16 %v12509_v2, %v5472_v26  ;;  %v4929_v49 = vpack.c.bf16 %v4927_v61, %v4925_v39  ;;  %v5465_v37 = vpack.c.bf16 %v5463_v33, %v5461_v30  ;;  %v4953_v60 = vpack.c.bf16 %v4951_v47, %v4949_v63  ;;  %v6496_v33 = vld [vmem:[%s12780_s3 + $0x2c8] sm:$0xff]  ;;  %v6498_v47 = vld [vmem:[%s12780_s3 + $0x2d8] sm:$0xff]  ;;  %vm12930_vm3 = vmmov %vm12929_vm0 }
 0xce9   : > { %v4965_v40 = vsel %vm12919_vm6, %v12174_v22, %v4963_v24  ;;  %v4967_v27 = vsel %vm12920_vm7, %v4963_v24, %v12174_v22  ;;  %v5477_v39 = vpack.c.bf16 %v5475_v50, %v5473_v7  ;;  %v12546_v53 = vmul.f32 %v6413_v54, %v4966_v45  ;;  %v6417_v22 = vld [vmem:[%s12780_s3 + $0x80] sm:$0xff]  ;;  %v6501_v50 = vld [vmem:[%s12780_s3 + $0x2f0] sm:$0xff]  ;;  %vm12931_vm4 = vmmov %vm12929_vm0 }
 0xcea   : > { %v4985_v55 = vpop.permute.xlu1 %4984  ;;  %5405 = vmatprep.subr.bf16.mxu1 %v4929_v49  ;;  %5587 = vmatprep.subr.bf16.mxu0 %v5465_v37  ;;  %v4974_v38 = vmul.f32 %v6415_v41, %v4967_v27  ;;  %v12551_v9 = vmul.f32 %v6493_v5, %v4965_v40  ;;  %v4952_v35 = vpack.c.bf16 %v4950_v19, %v4948_v0  ;;  %v6423_v5 = vld [vmem:[%s12780_s3 + $0xb0] sm:$0xff]  ;;  %v6500_v49 = vld [vmem:[%s12780_s3 + $0x2e8] sm:$0xff]  ;;  %vm12932_vm5 = vmmov %vm12929_vm0 }
 0xceb   : > { %5406 = vmatpush1.bf16.msra.mxu1 %v4928_v28  ;;  %5588 = vmatpush1.bf16.msra.mxu0 %v5464_v1  ;;  %v4975_v32 = vmul.f32 %v6416_v21, %v4965_v40  ;;  %v4990_v44 = vsel %vm12921_vm8, %v4985_v55, %v12176_v23  ;;  %v4973_v61 = vmul.f32 %v6414_v58, %v4964_v17  ;;  %v6495_v28 = vld [vmem:[%s12780_s3 + $0x2c0] sm:$0xff]  ;;  %v6502_v40 = vld [vmem:[%s12780_s3 + $0x2f8] sm:$0xff] }
 0xcec   : > { %v4987_v30 = vpop.permute.xlu0 %4986  ;;  %v5484_v3 = vmul.f32 %v6491_v46, %v4964_v17  ;;  %v5485_v16 = vmul.f32 %v6492_v14, %v4966_v45  ;;  %v4988_v15 = vsel %vm12922_vm9, %v12176_v23, %v4985_v55  ;;  %5407 = vmatprep.subr.bf16.mxu1 %v4953_v60  ;;  %v4976_v20 = vpack.c.bf16 %v4974_v38, %v12546_v53  ;;  %v6499_v45 = vld [vmem:[%s12780_s3 + $0x2e0] sm:$0xff]  ;;  %v6422_v17 = vld [vmem:[%s12780_s3 + $0xa8] sm:$0xff] }
 0xced   : > { %v5487_v34 = vmul.f32 %v6494_v25, %v4967_v27  ;;  %5589 = vmatprep.subr.bf16.mxu0 %v5477_v39  ;;  %v4989_v23 = vsel %vm12923_vm10, %v12178_v48, %v4987_v30  ;;  %v4991_v31 = vsel %vm12924_vm11, %v4987_v30, %v12178_v48  ;;  %v12588_v29 = vmul.f32 %v6417_v22, %v4990_v44  ;;  %v6421_v48 = vld [vmem:[%s12780_s3 + $0xa0] sm:$0xff]  ;;  %v6504_v30 = vld [vmem:[%s12780_s3 + $0x308] sm:$0xff] }
 0xcee   : > { %v5009_v52 = vpop.permute.xlu1 %5008  ;;  %v5488_v11 = vpack.c.bf16 %v12551_v9, %v5484_v3  ;;  %v12593_v2 = vmul.f32 %v6419_v43, %v4991_v31  ;;  %v12595_v18 = vmul.f32 %v6497_v51, %v4989_v23  ;;  %v4997_v1 = vmul.f32 %v6418_v36, %v4988_v15  ;;  %v6425_v53 = vld [vmem:[%s12780_s3 + $0xc0] sm:$0xff]  ;;  %v6428_v36 = vld [vmem:[%s12780_s3 + $0xd8] sm:$0xff] }
 0xcef   : > { %5408 = vmatpush1.bf16.msra.mxu1 %v4952_v35  ;;  %5590 = vmatpush1.bf16.msra.mxu0 %v5476_v57  ;;  %v5014_v0 = vsel %vm12925_vm12, %v5009_v52, %v12180_v10  ;;  %v4977_v26 = vpack.c.bf16 %v4975_v32, %v4973_v61  ;;  %v5496_v7 = vmul.f32 %v6495_v28, %v4988_v15  ;;  %v6426_v32 = vld [vmem:[%s12780_s3 + $0xc8] sm:$0xff]  ;;  %v6503_v22 = vld [vmem:[%s12780_s3 + $0x300] sm:$0xff] }
 0xcf0   : > { %v5011_v63 = vpop.permute.xlu0 %5010  ;;  %v5497_v19 = vmul.f32 %v6496_v33, %v4990_v44  ;;  %v4999_v54 = vmul.f32 %v6420_v13, %v4989_v23  ;;  %v5012_v41 = vsel %vm12926_vm13, %v12180_v10, %v5009_v52  ;;  %v5000_v24 = vpack.c.bf16 %v12593_v2, %v12588_v29  ;;  %v6424_v10 = vld [vmem:[%s12780_s3 + $0xb8] sm:$0xff]  ;;  %v6429_v13 = vld [vmem:[%s12780_s3 + $0xe0] sm:$0xff] }
 0xcf1   : > { %v5499_v57 = vmul.f32 %v6498_v47, %v4991_v31  ;;  %5409 = vmatprep.subr.bf16.mxu1 %v4977_v26  ;;  %v5489_v37 = vpack.c.bf16 %v5487_v34, %v5485_v16  ;;  %v5013_v21 = vsel %vm12927_vm1, %v12182_v4, %v5011_v63  ;;  %v5500_v46 = vpack.c.bf16 %v12595_v18, %v5496_v7  ;;  %v6427_v16 = vld [vmem:[%s12780_s3 + $0xd0] sm:$0xff]  ;;  %v6506_v34 = vld [vmem:[%s12780_s3 + $0x318] sm:$0xff] }
 0xcf2   : > { %v5033_v58 = vpop.permute.xlu1 %5032  ;;  %v12630_v14 = vmul.f32 %v6421_v48, %v5014_v0  ;;  %v5015_v27 = vsel %vm12928_vm2, %v5011_v63, %v12182_v4  ;;  %v12638_v55 = vmul.f32 %v6501_v50, %v5013_v21  ;;  %v12640_v60 = vmul.f32 %v6499_v45, %v5012_v41  ;;  %v6432_v48 = vld [vmem:[%s12780_s3 + $0xf8] sm:$0xff] }
 0xcf3   : > { %5591 = vmatprep.subr.bf16.mxu0 %v5489_v37  ;;  %5410 = vmatpush1.bf16.msra.mxu1 %v4976_v20  ;;  %v12642_v39 = vmul.f32 %v6423_v5, %v5015_v27  ;;  %v5038_v25 = vsel %vm12929_vm0, %v5033_v58, %v12184_v62  ;;  %v5021_v9 = vmul.f32 %v6422_v17, %v5012_v41  ;;  %v6505_v20 = vld [vmem:[%s12780_s3 + $0x310] sm:$0xff] }
 0xcf4   : > { %v5035_v38 = vpop.permute.xlu0 %5034  ;;  %v5509_v35 = vmul.f32 %v6500_v49, %v5014_v0  ;;  %5592 = vmatpush1.bf16.msra.mxu0 %v5488_v11  ;;  %v5023_v4 = vmul.f32 %v6424_v10, %v5013_v21  ;;  %v5036_v44 = vsel %vm12930_vm3, %v12184_v62, %v5033_v58  ;;  %v5511_v43 = vmul.f32 %v6502_v40, %v5015_v27  ;;  %v6510_v0 = vld [vmem:[%s12780_s3 + $0x338] sm:$0xff] }
 0xcf5   : > { %v5512_v51 = vpack.c.bf16 %v12638_v55, %v12640_v60  ;;  %v5001_v61 = vpack.c.bf16 %v4999_v54, %v4997_v1  ;;  %v5501_v3 = vpack.c.bf16 %v5499_v57, %v5497_v19  ;;  %v12670_v62 = vmul.f32 %v6425_v53, %v5038_v25  ;;  %v6431_v1 = vld [vmem:[%s12780_s3 + $0xf0] sm:$0xff]  ;;  %v6508_v19 = vld [vmem:[%s12780_s3 + $0x328] sm:$0xff]  ;;  %v6507_v57 = vld [vmem:[%s12780_s3 + $0x320] sm:$0xff] }
 0xcf6   : > { %v5057_v15 = vpop.permute.xlu1 %5056  ;;  %v5037_v28 = vsel %vm12931_vm4, %v12186_v42, %v5035_v38  ;;  %v5039_v33 = vsel %vm12932_vm5, %v5035_v38, %v12186_v42  ;;  %v5024_v31 = vpack.c.bf16 %v12642_v39, %v12630_v14  ;;  %v5045_v52 = vmul.f32 %v6426_v32, %v5036_v44  ;;  %v6430_v42 = vld [vmem:[%s12780_s3 + $0xe8] sm:$0xff]  ;;  %v6436_v60 = vld [vmem:[%s12780_s3 + $0x118] sm:$0xff]  ;;  %v6513_v32 = vld [vmem:[%s12780_s3 + $0x350] sm:$0xff] }
 0xcf7   : > { %v5062_v23 = vsel %vm394_vm14, %v5057_v15, %v12188_v8  ;;  %v12692_v11 = vmul.f32 %v6503_v22, %v5036_v44  ;;  %5411 = vmatprep.subr.bf16.mxu1 %v5001_v61  ;;  %5593 = vmatprep.subr.bf16.mxu0 %v5501_v3  ;;  %v5046_v47 = vmul.f32 %v6427_v16, %v5039_v33  ;;  %v6514_v39 = vld [vmem:[%s12780_s3 + $0x358] sm:$0xff]  ;;  %v6512_v38 = vld [vmem:[%s12780_s3 + $0x348] sm:$0xff]  ;;  %v6511_v61 = vld [vmem:[%s12780_s3 + $0x340] sm:$0xff] }
 0xcf8   : > { %v5059_v29 = vpop.permute.xlu0 %5058  ;;  %5412 = vmatpush1.bf16.msra.mxu1 %v5000_v24  ;;  %5594 = vmatpush1.bf16.msra.mxu0 %v5500_v46  ;;  %v5047_v2 = vmul.f32 %v6428_v36, %v5037_v28  ;;  %v5060_v18 = vsel %vm394_vm14, %v12188_v8, %v5057_v15  ;;  %v5521_v26 = vmul.f32 %v6504_v30, %v5038_v25  ;;  %v6509_v8 = vld [vmem:[%s12780_s3 + $0x330] sm:$0xff]  ;;  %v6433_v30 = vld [vmem:[%s12780_s3 + $0x100] sm:$0xff] }
 0xcf9   : > { %v5522_v50 = vmul.f32 %v6505_v20, %v5037_v28  ;;  %v5523_v63 = vmul.f32 %v6506_v34, %v5039_v33  ;;  %v5068_v7 = vmul.f32 %v6429_v13, %v5062_v23  ;;  %v5025_v54 = vpack.c.bf16 %v5023_v4, %v5021_v9  ;;  %v6435_v4 = vld [vmem:[%s12780_s3 + $0x110] sm:$0xff] }
 0xcfa   : > { %v5513_v45 = vpack.c.bf16 %v5511_v43, %v5509_v35  ;;  %v5061_v41 = vsel %vm394_vm14, %v12190_v59, %v5059_v29  ;;  %v5063_v5 = vsel %vm394_vm14, %v5059_v29, %v12190_v59  ;;  %v5081_v24 = vpop.permute.xlu1 %5080  ;;  %v5069_v17 = vmul.f32 %v6430_v42, %v5060_v18  ;;  %v6434_v59 = vld [vmem:[%s12780_s3 + $0x108] sm:$0xff] }
 0xcfb   : > { %v5070_v49 = vmul.f32 %v6431_v1, %v5063_v5  ;;  %v5071_v37 = vmul.f32 %v6432_v48, %v5061_v41  ;;  %v5535_v10 = vmul.f32 %v6510_v0, %v5063_v5  ;;  %v5048_v21 = vpack.c.bf16 %v5046_v47, %v12670_v62  ;;  %5413 = vmatprep.subr.bf16.mxu1 %v5025_v54  ;;  %v5637_v54 = vld [vmem:[%s6729_s20] sm:$0xff]  ;;  %v5638_v5 = vld [vmem:[%s6729_s20 + $0x8] sm:$0xff] }
 0xcfc   : > { %5595 = vmatprep.subr.bf16.mxu0 %v5513_v45  ;;  %v5534_v58 = vmul.f32 %v6509_v8, %v5061_v41  ;;  %v5049_v46 = vpack.c.bf16 %v5047_v2, %v5045_v52  ;;  %v5083_v14 = vpop.permute.xlu0 %5082  ;;  %v5524_v40 = vpack.c.bf16 %v5522_v50, %v12692_v11  ;;  %v5533_v27 = vmul.f32 %v6508_v19, %v5062_v23  ;;  %v6662_v23 = vld [vmem:[%s12778_s1 + $0x120] ss:$8 sps:$4 sm:$0xff]  }
 0xcfd   : > { %5414 = vmatpush1.bf16.msra.mxu1 %v5024_v31  ;;  %5596 = vmatpush1.bf16.msra.mxu0 %v5512_v51  ;;  %v5084_v55 = vsel %vm420_vm15, %v12282_v12, %v5081_v24  ;;  %v5532_v53 = vmul.f32 %v6507_v57, %v5060_v18  ;;  %v5072_v25 = vpack.c.bf16 %v5070_v49, %v5068_v7  ;;  %v6663_v31 = vld [vmem:[%s12778_s1 + $0x140] ss:$8 sps:$4 sm:$0xff]  }
 0xcfe   : > { %v5086_v9 = vsel %vm420_vm15, %v5081_v24, %v12282_v12  ;;  %5415 = vmatprep.subr.bf16.mxu1 %v5049_v46  ;;  %v5525_v35 = vpack.c.bf16 %v5523_v63, %v5521_v26  ;;  %v5085_v22 = vsel %vm420_vm15, %v12284_v56, %v5083_v14  ;;  %v5087_v44 = vsel %vm420_vm15, %v5083_v14, %v12284_v56 }
 0xcff   : > { %v5073_v43 = vpack.c.bf16 %v5071_v37, %v5069_v17  ;;  %v5537_v12 = vpack.c.bf16 %v5535_v10, %v5533_v27  ;;  %v5536_v51 = vpack.c.bf16 %v5534_v58, %v5532_v53  ;;  %v5093_v3 = vmul.f32 %v6434_v59, %v5084_v55 }
 0xd00   : > { %5597 = vmatprep.subr.bf16.mxu0 %v5525_v35  ;;  %v5095_v16 = vmul.f32 %v6436_v60, %v5085_v22  ;;  %v5547_v36 = vmul.f32 %v6514_v39, %v5087_v44  ;;  %v5545_v15 = vmul.f32 %v6512_v38, %v5086_v9  ;;  %v5094_v6 = vmul.f32 %v6435_v4, %v5087_v44 }
 0xd01   : > { %5416 = vmatpush1.bf16.msra.mxu1 %v5048_v21  ;;  %5598 = vmatpush1.bf16.msra.mxu0 %v5524_v40  ;;  %v5546_v56 = vmul.f32 %v6513_v32, %v5085_v22  ;;  %v5092_v20 = vmul.f32 %v6433_v30, %v5086_v9  ;;  %v5544_v34 = vmul.f32 %v6511_v61, %v5084_v55 }
 0xd02   : > { %5417 = vmatprep.subr.bf16.mxu1 %v5073_v43  ;;  %5599 = vmatprep.subr.bf16.mxu0 %v5537_v12  ;;  %v5097_v62 = vpack.c.bf16 %v5095_v16, %v5093_v3  ;;  %v5549_v28 = vpack.c.bf16 %v5547_v36, %v5545_v15 }
 0xd03   : > { %v5096_v33 = vpack.c.bf16 %v5094_v6, %v5092_v20  ;;  %v5548_v13 = vpack.c.bf16 %v5546_v56, %v5544_v34 }
 0xd05   : > { %5418 = vmatpush1.bf16.msra.mxu1 %v5072_v25  ;;  %5600 = vmatpush1.bf16.msra.mxu0 %v5536_v51 }
 0xd06   : > { %5419 = vmatprep.subr.bf16.mxu1 %v5097_v62  ;;  %5601 = vmatprep.subr.bf16.mxu0 %v5549_v28 }
 0xd09   : > { %5420 = vmatpush1.bf16.msra.mxu1 %v5096_v33  ;;  %5602 = vmatpush1.bf16.msra.mxu0 %v5548_v13 }
 0xd0b   : > { %v5633_v19 = vpop.permute.xlu1 %5632 }
 0xd0c   : > { %5436 = vmatmul.mubr.bf16.vlgmr.msra.gmra.mrb[12].mxu1 %v6662_v23  ;;  %5618 = vmatmul.mubr.bf16.vlgmr.msra.gmra.mrb[16].mxu0 %v6663_v31 }
 0xdb5   : > { %v5384_v52 = vpop.f32.mrb[12].mxu0 }
 0xdb6   : > { %v5386_v11 = vpop.f32.mrb[13].mxu0 }
 0xdb7   : > { %v5388_v42 = vpop.f32.mrb[14].mxu0 }
 0xdb8   : > { %v5389_v29 = vpop.f32.mrb[15].mxu0 }
 0xddf   : > { %v5437_v47 = vpop.f32.mrb[12].mxu1  ;;  %v5619_v2 = vpop.f32.mrb[16].mxu0 }
 0xde0   : > { %v5438_v18 = vadd.f32 %v5437_v47, %v5384_v52  ;;  %v5439_v1 = vpop.f32.mrb[13].mxu1  ;;  %v5621_v48 = vpop.f32.mrb[17].mxu0 }
 0xde1   : > { %v5440_v0 = vadd.f32 %v5439_v1, %v5386_v11  ;;  %v5441_v26 = vpop.f32.mrb[14].mxu1  ;;  %v5623_v50 = vpop.f32.mrb[18].mxu0 }
 0xde2   : > { %v5626_v63 = vadd.f32 %v5619_v2, %v5438_v18  ;;  %v5442_v7 = vpop.f32.mrb[15].mxu1  ;;  %v5624_v8 = vpop.f32.mrb[19].mxu0 }
 0xde3   : > { %v5627_v45 = vadd.f32 %v5621_v48, %v5440_v0 }
 0xde4   : > { %v5635_v41 = vadd.f32 %v5633_v19, %v5626_v63 }
 0xde5   : > { %v5636_v24 = vadd.f32 %v5633_v19, %v5627_v45 }
 0xde6   : > { %v5639_v57 = vadd.f32 %v5637_v54, %v5635_v41 }
 0xde7   : > { %v5640_v17 = vadd.f32 %v5638_v5, %v5636_v24 }
 0xde8   : > { %5641 = vst [vmem:[%s197_s28] sm:$0xff] %v5639_v57 }
 0xde9   : > { %5642 = vst [vmem:[%s197_s28 + $0x8] sm:$0xff] %v5640_v17 }
 0xdea PF: > { %s14_s15 = sadd.s32 1, %s6670_s15  }
 0xdeb   : > { %p11_p4 = scmp.ge.s32.totalorder %s14_s15, 4  }
 0xded   :  { %13 = sbr.rel (!%p11_p4) target bundleno = 1 (0x1), region = 117 }

</bundles_post_ra>
